<compile_context>
chip_gen: v7x
topology: tpu7x:2x2x1
jax: 0.10.0
libtpu: 0.0.40
codegen_flags: <defaults>
</compile_context>

<pallas_src>
import functools

import jax
import jax.numpy as jnp
from jax import lax
from jax.experimental import pallas as pl
from jax.experimental.pallas import tpu as pltpu

_SCALAR_TILE = (8, 128)
_VMEM_LIMIT = 48 * 1024 * 1024          # raised scoped-VMEM limit; safe on v5e/v6e/v7x
_WIDTHS = (8, 16, 32)                   # stand-in extractor channel widths (3 levels)
_LANE = 128


def _round_up(a, b):
    return (a + b - 1) // b * b


# ---------------------------------------------------------------------------
# Kernel 1: fused pixel losses + [output, output_comp, gt] stack on a
# lane-dense (rows, H*W) view.  Per-tile partial sums (rows of an (8,128)
# tile): 0=hole 1=valid 2=tv_w 3=tv_h 4=mse.
# ---------------------------------------------------------------------------
def _pixel_losses_kernel(x_ref, y_ref, g_ref, stack_ref, part_ref, *, H, W):
    x = x_ref[...]          # (row_tile, H*W) f32
    y = y_ref[...]
    g = g_ref[...]
    # custom_replace_normalise(t, 0, 1): exact ==0 test, as in the reference.
    full_mask = (x != 0).astype(jnp.float32)
    full_mask_gt = (g != 0).astype(jnp.float32)
    comp = full_mask * x + (1.0 - full_mask) * y          # output_comp

    # Emit the extractor input stack directly (no XLA concat of full images).
    stack_ref[0] = y
    stack_ref[1] = comp
    stack_ref[2] = g

    hole_p = jnp.sum((y - g) ** 2 * full_mask_gt)         # weighted_mse numerators
    valid_p = jnp.sum((y - x) ** 2 * full_mask)
    mse_p = jnp.sum((x - g) ** 2)

    # Total variation via XLU roll + static boundary masks (no lane-unaligned
    # slices).  pltpu.roll follows the jnp.roll convention (element i -> i+shift),
    # so roll by HW-1 / HW-W yields the f+1 / f+W neighbours.
    HW = H * W
    col = lax.broadcasted_iota(jnp.int32, comp.shape, 1)
    mask_w = ((col % W) != (W - 1)).astype(jnp.float32)   # drop last column pairs
    mask_h = (col < (H - 1) * W).astype(jnp.float32)      # drop last row pairs
    d_w = comp - pltpu.roll(comp, HW - 1, axis=1)         # comp[f] - comp[f+1]
    d_h = comp - pltpu.roll(comp, HW - W, axis=1)         # comp[f] - comp[f+W]
    tvw_p = jnp.sum(jnp.abs(d_w) * mask_w)
    tvh_p = jnp.sum(jnp.abs(d_h) * mask_h)

    rows = lax.broadcasted_iota(jnp.int32, _SCALAR_TILE, 0)
    part_ref[0] = (jnp.where(rows == 0, hole_p, 0.0)
                   + jnp.where(rows == 1, valid_p, 0.0)
                   + jnp.where(rows == 2, tvw_p, 0.0)
                   + jnp.where(rows == 3, tvh_p, 0.0)
                   + jnp.where(rows == 4, mse_p, 0.0))


def pixel_losses(inp, out, gt):
    N, C, H, W = inp.shape
    NC, HW = N * C, H * W
    x = inp.reshape(NC, HW)
    y = out.reshape(NC, HW)
    g = gt.reshape(NC, HW)

    # Row tile sized against a VMEM budget (3 input blocks + 3-slab output
    # block, double-buffered, f32): bigger tiles amortize the ~0.35us/step
    # overhead on real image sizes.
    budget = 24 * 1024 * 1024
    rows_cap = max(8, budget // (12 * HW * 4) // 8 * 8)
    if NC <= min(rows_cap, 512):
        row_tile, NCp = NC, NC                        # single block, no padding
    else:
        row_tile = min(512, rows_cap)
        NCp = _round_up(NC, row_tile)
        pad = ((0, NCp - NC), (0, 0))                 # zero rows contribute 0 everywhere
        x, y, g = jnp.pad(x, pad), jnp.pad(y, pad), jnp.pad(g, pad)
    grid = NCp // row_tile

    stacked, parts = pl.pallas_call(
        functools.partial(_pixel_losses_kernel, H=H, W=W),
        grid=(grid,),
        in_specs=[pl.BlockSpec((row_tile, HW), lambda i: (i, 0))] * 3,
        out_specs=(pl.BlockSpec((3, row_tile, HW), lambda i: (0, i, 0)),
                   pl.BlockSpec((1,) + _SCALAR_TILE, lambda i: (i, 0, 0))),
        out_shape=(jax.ShapeDtypeStruct((3, NCp, HW), jnp.float32),
                   jax.ShapeDtypeStruct((grid,) + _SCALAR_TILE, jnp.float32)),
        compiler_params=pltpu.CompilerParams(
            dimension_semantics=("parallel",),        # per-tile partials -> both v7x cores
            vmem_limit_bytes=_VMEM_LIMIT),
    )(x, y, g)

    sums = jnp.sum(parts, axis=0)                     # tiny second-stage reduce
    numel = float(N * C * H * W)
    hole = sums[0, 0] / numel
    valid = sums[1, 0] / numel
    tv = (sums[2, 0] / float(N * C * H * (W - 1))
          + sums[3, 0] / float(N * C * (H - 1) * W))
    # TODO(synk): reference does float(error_sq.sum()) (host sync) then
    # torch.Tensor([mse]); we keep mse on-device as a (1,) array.
    mse = sums[4:5, 0] / numel
    if NCp != NC:
        stacked = stacked[:, :NC, :]
    return stacked, hole, valid, tv, mse


# ---------------------------------------------------------------------------
# Kernel 2: fused 3x3 / stride-2 / pad-1 conv + bias + ReLU.
# The wrapper supplies a padded, space-to-depth view (B, 4, Ho+1, Wo+1, Cin)
# so every one of the 9 taps is a contiguous, stride-free slice of the
# VMEM-resident image; the patch matrix never touches HBM.
# ---------------------------------------------------------------------------
def _fused_conv_kernel(x_ref, w_ref, b_ref, o_ref, *, Ho, Wo):
    coutp = o_ref.shape[-1]
    acc = jnp.zeros((Ho * Wo, coutp), jnp.float32)
    for di in range(3):
        off_r, ph_r = di // 2, di % 2
        for dj in range(3):
            off_c, ph_c = dj // 2, dj % 2
            t = di * 3 + dj
            slab = x_ref[0, ph_r * 2 + ph_c,
                         off_r:off_r + Ho, off_c:off_c + Wo, :]      # (Ho, Wo, Cin)
            patch = slab.astype(jnp.bfloat16).reshape(Ho * Wo, -1)   # bf16 MXU operand
            acc = acc + jnp.dot(patch, w_ref[t],
                                preferred_element_type=jnp.float32)
    o_ref[0] = jnp.maximum(acc + b_ref[...], 0.0)


def _pad_s2d(h_nhwc):
    """(B, H, W, C) -> (B, 4, H/2+1, W/2+1, C) padded space-to-depth view."""
    B, H, W, C = h_nhwc.shape
    assert H % 2 == 0 and W % 2 == 0, "stand-in extractor assumes even H, W"
    hp = jnp.pad(h_nhwc, ((0, 0), (1, 1), (1, 1), (0, 0)))
    Hb, Wb = (H + 2) // 2, (W + 2) // 2
    xr = hp.reshape(B, Hb, 2, Wb, 2, C)
    xr = jnp.transpose(xr, (0, 2, 4, 1, 3, 5))        # (B, p, q, Hb, Wb, C)
    return xr.reshape(B, 4, Hb, Wb, C)                # phase = p*2 + q


def _fused_conv(x_s2d, w_taps, b_row, Ho, Wo):
    B3, _, Hb, Wb, Cin = x_s2d.shape
    coutp = w_taps.shape[-1]
    # TODO(synk): for production image sizes, band the image over output rows
    # with a manual-DMA double buffer instead of one whole image per grid step.
    return pl.pallas_call(
        functools.partial(_fused_conv_kernel, Ho=Ho, Wo=Wo),
        grid=(B3,),
        in_specs=[pl.BlockSpec((1, 4, Hb, Wb, Cin), lambda b: (b, 0, 0, 0, 0)),
                  pl.BlockSpec((9, Cin, coutp), lambda b: (0, 0, 0)),   # VMEM resident
                  pl.BlockSpec((1, coutp), lambda b: (0, 0))],
        out_specs=pl.BlockSpec((1, Ho * Wo, coutp), lambda b: (b, 0, 0)),
        out_shape=jax.ShapeDtypeStruct((B3, Ho * Wo, coutp), jnp.float32),
        compiler_params=pltpu.CompilerParams(
            dimension_semantics=("parallel",),
            vmem_limit_bytes=_VMEM_LIMIT),
    )(x_s2d, w_taps, b_row)


# ---------------------------------------------------------------------------
# Kernel 3: fused per-level perceptual (L1) + style (gram L1) losses.
# Input is the natural (3N, HW, Cp) conv layout; the kernel is tiled over HW,
# accumulates grams in VMEM scratch and the two L1 sums in the resident output
# tile (rows 0/1); the gram-difference sums are added in rows 2/3 at finalize.
# ---------------------------------------------------------------------------
def _feat_loss_kernel(f_ref, o_ref, gram_ref, *, n):
    step = pl.program_id(0)

    @pl.when(step == 0)
    def _init():
        o_ref[...] = jnp.zeros_like(o_ref)
        gram_ref[...] = jnp.zeros_like(gram_ref)

    f = f_ref[...]                               # (3n, thw, Cp) f32
    fo, fc, fg = f[:n], f[n:2 * n], f[2 * n:]
    l1_o = jnp.sum(jnp.abs(fo - fg))
    l1_c = jnp.sum(jnp.abs(fc - fg))
    rows = lax.broadcasted_iota(jnp.int32, o_ref.shape, 0)
    o_ref[...] += (jnp.where(rows == 0, l1_o, 0.0)
                   + jnp.where(rows == 1, l1_c, 0.0))

    # Un-normalized gram partials: contract this HW tile (bf16 MXU operands,
    # f32 accumulation); the transpose happens on the VMEM tile (XLU).
    fb = f.astype(jnp.bfloat16)
    ft = jnp.swapaxes(fb, 1, 2)                  # (3n, Cp, thw)
    gram_ref[...] += jnp.einsum('bcx,bxd->bcd', ft, fb,
                                preferred_element_type=jnp.float32)

    @pl.when(step == pl.num_programs(0) - 1)
    def _finalize():
        g = gram_ref[...]
        s_o = jnp.sum(jnp.abs(g[:n] - g[2 * n:]))
        s_c = jnp.sum(jnp.abs(g[n:2 * n] - g[2 * n:]))
        o_ref[...] += (jnp.where(rows == 2, s_o, 0.0)
                       + jnp.where(rows == 3, s_c, 0.0))


def feat_losses(feats, n, c_true):
    """feats: (3n, HW, Cp) with [output, output_comp, gt] batch groups."""
    B3, HW, Cp = feats.shape
    hw_true = HW                                    # true HW before padding
    thw = min(512, _round_up(HW, 8))
    HWp = _round_up(HW, thw)
    if HWp != HW:                                   # zero pixels contribute 0 everywhere
        feats = jnp.pad(feats, ((0, 0), (0, HWp - HW), (0, 0)))

    tile = pl.pallas_call(
        functools.partial(_feat_loss_kernel, n=n),
        grid=(HWp // thw,),
        in_specs=[pl.BlockSpec((B3, thw, Cp), lambda i: (0, i, 0))],
        out_specs=pl.BlockSpec(_SCALAR_TILE, lambda i: (0, 0)),
        out_shape=jax.ShapeDtypeStruct(_SCALAR_TILE, jnp.float32),
        scratch_shapes=[pltpu.VMEM((B3, Cp, Cp), jnp.float32)],
        compiler_params=pltpu.CompilerParams(
            dimension_semantics=("arbitrary",),
            vmem_limit_bytes=_VMEM_LIMIT),
    )(feats)

    # True (unpadded) denominators: padded channels / pixels only add zeros to
    # the sums, never to the means.
    prc = (tile[0, 0] + tile[1, 0]) / float(n * c_true * hw_true)
    style = ((tile[2, 0] + tile[3, 0])
             / float(c_true * hw_true)              # gram normalization
             / float(n * c_true * c_true))          # L1 mean over (n, C, C)
    return prc, style


# ---------------------------------------------------------------------------
# Synthetic feature extractor (VGG stand-in): 3 stages of 3x3 / stride-2 conv
# + ReLU in NHWC with fused im2col; output channels are zero-padded to 128 and
# kept flowing between levels (lane-dense stores, no slice/re-pad passes).
# ---------------------------------------------------------------------------
def make_extractor_params(key, in_ch=3, widths=_WIDTHS):
    params = []
    cin, cin_p = in_ch, in_ch          # level-0 input keeps its true 3 channels
    for i, cout in enumerate(widths):
        kw, kb = jax.random.split(jax.random.fold_in(key, i))
        w = 0.1 * jax.random.normal(kw, (cout, cin, 3, 3), jnp.float32)
        b = 0.1 * jax.random.normal(kb, (cout,), jnp.float32)
        cout_p = _round_up(cout, _LANE)
        # per-tap (cin, cout) matrices, tap index t = di*3 + dj.
        w_taps = jnp.transpose(w, (2, 3, 1, 0)).reshape(9, cin, cout)
        w_taps = jnp.pad(w_taps, ((0, 0), (0, cin_p - cin), (0, cout_p - cout)))
        params.append((w_taps.astype(jnp.bfloat16),
                       jnp.pad(b, (0, cout_p - cout)).reshape(1, cout_p)))
        cin, cin_p = cout, cout_p
    return params


def extractor(imgs_nhwc, params):
    feats = []
    h = imgs_nhwc
    for w_taps, b_row in params:
        B3, H, W, _ = h.shape
        Ho, Wo = H // 2, W // 2
        x_s2d = _pad_s2d(h)                               # one cheap layout pass / level
        out = _fused_conv(x_s2d, w_taps, b_row, Ho, Wo)   # (B3, Ho*Wo, 128)
        feats.append(out)                                 # natural (B, HW, C) layout
        h = out.reshape(B3, Ho, Wo, out.shape[-1])
    return feats


# ---------------------------------------------------------------------------
# Full forward pass.
# ---------------------------------------------------------------------------
def inpainting_loss(inp, mask, out, gt, params):
    del mask  # `hole_mask = 1 - mask` is computed but never used in the reference forward
    N, C, H, W = inp.shape
    stacked, hole, valid, tv, mse = pixel_losses(inp, out, gt)

    # stacked is already [output, output_comp, gt] on the leading axis; only a
    # reshape + NHWC transpose (fused with the level-0 pad/s2d by XLA) remains.
    imgs = jnp.transpose(stacked.reshape(3 * N, C, H, W), (0, 2, 3, 1))
    feats = extractor(imgs, params)                       # list of (3N, HW_i, 128)

    prc = jnp.float32(0.0)
    style = jnp.float32(0.0)
    for lvl, f in enumerate(feats):
        p_i, s_i = feat_losses(f, N, _WIDTHS[lvl])
        prc = prc + p_i
        style = style + s_i

    return {'hole': hole, 'valid': valid, 'prc': prc,
            'style': style, 'tv': tv, 'mse': mse}


if __name__ == "__main__":
    key = jax.random.PRNGKey(0)
    k1, k2, k3, kp = jax.random.split(key, 4)
    N, C, H, W = 2, 3, 16, 16
    gt = jax.random.uniform(k1, (N, C, H, W), jnp.float32)
    mask = (jax.random.uniform(k2, (N, C, H, W)) > 0.25).astype(jnp.float32)
    inp = gt * mask                       # masked input -> contains exact zeros
    out = jax.random.uniform(k3, (N, C, H, W), jnp.float32)
    params = make_extractor_params(kp, in_ch=C)

    loss_fn = jax.jit(inpainting_loss)
    losses = loss_fn(inp, mask, out, gt, params)
    jax.block_until_ready(losses)
    print("KERNEL_OK")
</pallas_src>

<mosaic_0001>
module attributes {stable_mosaic.version = 11 : i64} {
  func.func @_pixel_losses_kernel(%arg0: i32, %arg1: memref<6x256xf32, #tpu.memory_space<vmem>>, %arg2: memref<6x256xf32, #tpu.memory_space<vmem>>, %arg3: memref<6x256xf32, #tpu.memory_space<vmem>>, %arg4: memref<3x6x256xf32, #tpu.memory_space<vmem>>, %arg5: memref<1x8x128xf32, #tpu.memory_space<vmem>>) attributes {dimension_semantics = [#tpu.dimension_semantics<parallel>], iteration_bounds = array<i64: 1>, scalar_prefetch = 0 : i64, scratch_operands = 0 : i64, tpu.core_type = #tpu.core_type<tc>, window_params = [{transform_indices = @transform_0, window_bounds = array<i64: 6, 256>}, {transform_indices = @transform_1, window_bounds = array<i64: 6, 256>}, {transform_indices = @transform_2, window_bounds = array<i64: 6, 256>}, {transform_indices = @transform_3, window_bounds = array<i64: 3, 6, 256>}, {transform_indices = @transform_4, window_bounds = array<i64: 1, 8, 128>}]} {
    %c0 = arith.constant 0 : index
    %c0_0 = arith.constant 0 : index
    %0 = vector.load %arg1[%c0, %c0_0] : memref<6x256xf32, #tpu.memory_space<vmem>>, vector<6x256xf32>
    %c0_1 = arith.constant 0 : index
    %c0_2 = arith.constant 0 : index
    %1 = vector.load %arg2[%c0_1, %c0_2] : memref<6x256xf32, #tpu.memory_space<vmem>>, vector<6x256xf32>
    %c0_3 = arith.constant 0 : index
    %c0_4 = arith.constant 0 : index
    %2 = vector.load %arg3[%c0_3, %c0_4] : memref<6x256xf32, #tpu.memory_space<vmem>>, vector<6x256xf32>
    %cst = arith.constant 0.000000e+00 : f32
    %3 = vector.broadcast %cst : f32 to vector<6x256xf32>
    %4 = arith.cmpf one, %0, %3 : vector<6x256xf32>
    %5 = arith.extui %4 : vector<6x256xi1> to vector<6x256xi32>
    %6 = arith.sitofp %5 : vector<6x256xi32> to vector<6x256xf32>
    %cst_5 = arith.constant 0.000000e+00 : f32
    %7 = vector.broadcast %cst_5 : f32 to vector<6x256xf32>
    %8 = arith.cmpf one, %2, %7 : vector<6x256xf32>
    %9 = arith.extui %8 : vector<6x256xi1> to vector<6x256xi32>
    %10 = arith.sitofp %9 : vector<6x256xi32> to vector<6x256xf32>
    %11 = arith.mulf %6, %0 : vector<6x256xf32>
    %cst_6 = arith.constant 1.000000e+00 : f32
    %12 = vector.broadcast %cst_6 : f32 to vector<6x256xf32>
    %13 = arith.subf %12, %6 : vector<6x256xf32>
    %14 = arith.mulf %13, %1 : vector<6x256xf32>
    %15 = arith.addf %11, %14 : vector<6x256xf32>
    %c0_7 = arith.constant 0 : index
    %c0_8 = arith.constant 0 : index
    %c0_9 = arith.constant 0 : index
    %16 = vector.load %arg4[%c0_7, %c0_8, %c0_9] : memref<3x6x256xf32, #tpu.memory_space<vmem>>, vector<1x6x256xf32>
    %17 = vector.shape_cast %16 : vector<1x6x256xf32> to vector<6x256xf32>
    %18 = vector.shape_cast %1 : vector<6x256xf32> to vector<1x6x256xf32>
    tpu.vector_store %arg4[%c0_7, %c0_8, %c0_9], %18 {strides = array<i32>} : memref<3x6x256xf32, #tpu.memory_space<vmem>>, vector<1x6x256xf32>,
    %c1 = arith.constant 1 : index
    %c0_10 = arith.constant 0 : index
    %c0_11 = arith.constant 0 : index
    %19 = vector.load %arg4[%c1, %c0_10, %c0_11] : memref<3x6x256xf32, #tpu.memory_space<vmem>>, vector<1x6x256xf32>
    %20 = vector.shape_cast %19 : vector<1x6x256xf32> to vector<6x256xf32>
    %21 = vector.shape_cast %15 : vector<6x256xf32> to vector<1x6x256xf32>
    tpu.vector_store %arg4[%c1, %c0_10, %c0_11], %21 {strides = array<i32>} : memref<3x6x256xf32, #tpu.memory_space<vmem>>, vector<1x6x256xf32>,
    %c2 = arith.constant 2 : index
    %c0_12 = arith.constant 0 : index
    %c0_13 = arith.constant 0 : index
    %22 = vector.load %arg4[%c2, %c0_12, %c0_13] : memref<3x6x256xf32, #tpu.memory_space<vmem>>, vector<1x6x256xf32>
    %23 = vector.shape_cast %22 : vector<1x6x256xf32> to vector<6x256xf32>
    %24 = vector.shape_cast %2 : vector<6x256xf32> to vector<1x6x256xf32>
    tpu.vector_store %arg4[%c2, %c0_12, %c0_13], %24 {strides = array<i32>} : memref<3x6x256xf32, #tpu.memory_space<vmem>>, vector<1x6x256xf32>,
    %25 = arith.subf %1, %2 : vector<6x256xf32>
    %26 = arith.mulf %25, %25 : vector<6x256xf32>
    %27 = arith.mulf %26, %10 : vector<6x256xf32>
    %28 = vector.shape_cast %27 : vector<6x256xf32> to vector<1x6x256xf32>
    %cst_14 = arith.constant dense<0.000000e+00> : vector<1xf32>
    %29 = vector.multi_reduction <add>, %28, %cst_14 [1, 2] : vector<1x6x256xf32> to vector<1xf32>
    %30 = vector.shape_cast %29 : vector<1xf32> to vector<1x1x1xf32>
    %31 = vector.extract %30[0, 0, 0] : f32 from vector<1x1x1xf32>
    %32 = arith.subf %1, %0 : vector<6x256xf32>
    %33 = arith.mulf %32, %32 : vector<6x256xf32>
    %34 = arith.mulf %33, %6 : vector<6x256xf32>
    %35 = vector.shape_cast %34 : vector<6x256xf32> to vector<1x6x256xf32>
    %cst_15 = arith.constant dense<0.000000e+00> : vector<1xf32>
    %36 = vector.multi_reduction <add>, %35, %cst_15 [1, 2] : vector<1x6x256xf32> to vector<1xf32>
    %37 = vector.shape_cast %36 : vector<1xf32> to vector<1x1x1xf32>
    %38 = vector.extract %37[0, 0, 0] : f32 from vector<1x1x1xf32>
    %39 = arith.subf %0, %2 : vector<6x256xf32>
    %40 = arith.mulf %39, %39 : vector<6x256xf32>
    %41 = vector.shape_cast %40 : vector<6x256xf32> to vector<1x6x256xf32>
    %cst_16 = arith.constant dense<0.000000e+00> : vector<1xf32>
    %42 = vector.multi_reduction <add>, %41, %cst_16 [1, 2] : vector<1x6x256xf32> to vector<1xf32>
    %43 = vector.shape_cast %42 : vector<1xf32> to vector<1x1x1xf32>
    %44 = vector.extract %43[0, 0, 0] : f32 from vector<1x1x1xf32>
    %45 = tpu.iota {dimensions = array<i32: 1>} : vector<6x256xi32>
    %c16_i32 = arith.constant 16 : i32
    %c0_i32 = arith.constant 0 : i32
    %46 = arith.cmpi eq, %c16_i32, %c0_i32 : i32
    %c1_i32 = arith.constant 1 : i32
    %47 = arith.select %46, %c1_i32, %c16_i32 : i32
    %48 = vector.broadcast %47 : i32 to vector<6x256xi32>
    %49 = arith.remsi %45, %48 : vector<6x256xi32>
    %c0_i32_17 = arith.constant 0 : i32
    %50 = vector.broadcast %c0_i32_17 : i32 to vector<6x256xi32>
    %51 = arith.cmpi ne, %49, %50 : vector<6x256xi32>
    %c0_i32_18 = arith.constant 0 : i32
    %52 = vector.broadcast %c0_i32_18 : i32 to vector<6x256xi32>
    %53 = arith.cmpi slt, %49, %52 : vector<6x256xi32>
    %c0_i32_19 = arith.constant 0 : i32
    %54 = arith.cmpi slt, %47, %c0_i32_19 : i32
    %55 = vector.broadcast %54 : i1 to vector<6x256xi1>
    %56 = vector.broadcast %55 : vector<6x256xi1> to vector<6x256xi1>
    %57 = arith.xori %53, %56 : vector<6x256xi1>
    %58 = arith.andi %57, %51 : vector<6x256xi1>
    %59 = vector.broadcast %47 : i32 to vector<6x256xi32>
    %60 = arith.addi %49, %59 : vector<6x256xi32>
    %61 = arith.select %58, %60, %49 : vector<6x256xi1>, vector<6x256xi32>
    %c15_i32 = arith.constant 15 : i32
    %62 = vector.broadcast %c15_i32 : i32 to vector<6x256xi32>
    %63 = arith.cmpi ne, %61, %62 : vector<6x256xi32>
    %64 = arith.extui %63 : vector<6x256xi1> to vector<6x256xi32>
    %65 = arith.sitofp %64 : vector<6x256xi32> to vector<6x256xf32>
    %c240_i32 = arith.constant 240 : i32
    %66 = vector.broadcast %c240_i32 : i32 to vector<6x256xi32>
    %67 = arith.cmpi slt, %45, %66 : vector<6x256xi32>
    %68 = arith.extui %67 : vector<6x256xi1> to vector<6x256xi32>
    %69 = arith.sitofp %68 : vector<6x256xi32> to vector<6x256xf32>
    %c255_i32 = arith.constant 255 : i32
    %70 = tpu.dynamic_rotate %15 by %c255_i32 dim 1 : vector<6x256xf32>, i32 -> vector<6x256xf32>
    %71 = arith.subf %15, %70 : vector<6x256xf32>
    %c240_i32_20 = arith.constant 240 : i32
    %72 = tpu.dynamic_rotate %15 by %c240_i32_20 dim 1 : vector<6x256xf32>, i32 -> vector<6x256xf32>
    %73 = arith.subf %15, %72 : vector<6x256xf32>
    %74 = math.absf %71 : vector<6x256xf32>
    %75 = arith.mulf %74, %65 : vector<6x256xf32>
    %76 = vector.shape_cast %75 : vector<6x256xf32> to vector<1x6x256xf32>
    %cst_21 = arith.constant dense<0.000000e+00> : vector<1xf32>
    %77 = vector.multi_reduction <add>, %76, %cst_21 [1, 2] : vector<1x6x256xf32> to vector<1xf32>
    %78 = vector.shape_cast %77 : vector<1xf32> to vector<1x1x1xf32>
    %79 = vector.extract %78[0, 0, 0] : f32 from vector<1x1x1xf32>
    %80 = math.absf %73 : vector<6x256xf32>
    %81 = arith.mulf %80, %69 : vector<6x256xf32>
    %82 = vector.shape_cast %81 : vector<6x256xf32> to vector<1x6x256xf32>
    %cst_22 = arith.constant dense<0.000000e+00> : vector<1xf32>
    %83 = vector.multi_reduction <add>, %82, %cst_22 [1, 2] : vector<1x6x256xf32> to vector<1xf32>
    %84 = vector.shape_cast %83 : vector<1xf32> to vector<1x1x1xf32>
    %85 = vector.extract %84[0, 0, 0] : f32 from vector<1x1x1xf32>
    %86 = tpu.iota {dimensions = array<i32: 0>} : vector<8x128xi32>
    %c0_i32_23 = arith.constant 0 : i32
    %87 = vector.broadcast %c0_i32_23 : i32 to vector<8x128xi32>
    %88 = arith.cmpi eq, %86, %87 : vector<8x128xi32>
    %cst_24 = arith.constant 0.000000e+00 : f32
    %89 = vector.broadcast %31 : f32 to vector<8x128xf32>
    %90 = vector.broadcast %cst_24 : f32 to vector<8x128xf32>
    %91 = arith.select %88, %89, %90 : vector<8x128xi1>, vector<8x128xf32>
    %c1_i32_25 = arith.constant 1 : i32
    %92 = vector.broadcast %c1_i32_25 : i32 to vector<8x128xi32>
    %93 = arith.cmpi eq, %86, %92 : vector<8x128xi32>
    %cst_26 = arith.constant 0.000000e+00 : f32
    %94 = vector.broadcast %38 : f32 to vector<8x128xf32>
    %95 = vector.broadcast %cst_26 : f32 to vector<8x128xf32>
    %96 = arith.select %93, %94, %95 : vector<8x128xi1>, vector<8x128xf32>
    %97 = arith.addf %91, %96 : vector<8x128xf32>
    %c2_i32 = arith.constant 2 : i32
    %98 = vector.broadcast %c2_i32 : i32 to vector<8x128xi32>
    %99 = arith.cmpi eq, %86, %98 : vector<8x128xi32>
    %cst_27 = arith.constant 0.000000e+00 : f32
    %100 = vector.broadcast %79 : f32 to vector<8x128xf32>
    %101 = vector.broadcast %cst_27 : f32 to vector<8x128xf32>
    %102 = arith.select %99, %100, %101 : vector<8x128xi1>, vector<8x128xf32>
    %103 = arith.addf %97, %102 : vector<8x128xf32>
    %c3_i32 = arith.constant 3 : i32
    %104 = vector.broadcast %c3_i32 : i32 to vector<8x128xi32>
    %105 = arith.cmpi eq, %86, %104 : vector<8x128xi32>
    %cst_28 = arith.constant 0.000000e+00 : f32
    %106 = vector.broadcast %85 : f32 to vector<8x128xf32>
    %107 = vector.broadcast %cst_28 : f32 to vector<8x128xf32>
    %108 = arith.select %105, %106, %107 : vector<8x128xi1>, vector<8x128xf32>
    %109 = arith.addf %103, %108 : vector<8x128xf32>
    %c4_i32 = arith.constant 4 : i32
    %110 = vector.broadcast %c4_i32 : i32 to vector<8x128xi32>
    %111 = arith.cmpi eq, %86, %110 : vector<8x128xi32>
    %cst_29 = arith.constant 0.000000e+00 : f32
    %112 = vector.broadcast %44 : f32 to vector<8x128xf32>
    %113 = vector.broadcast %cst_29 : f32 to vector<8x128xf32>
    %114 = arith.select %111, %112, %113 : vector<8x128xi1>, vector<8x128xf32>
    %115 = arith.addf %109, %114 : vector<8x128xf32>
    %c0_30 = arith.constant 0 : index
    %c0_31 = arith.constant 0 : index
    %c0_32 = arith.constant 0 : index
    %116 = vector.load %arg5[%c0_30, %c0_31, %c0_32] : memref<1x8x128xf32, #tpu.memory_space<vmem>>, vector<1x8x128xf32>
    %117 = vector.shape_cast %116 : vector<1x8x128xf32> to vector<8x128xf32>
    %118 = vector.shape_cast %115 : vector<8x128xf32> to vector<1x8x128xf32>
    tpu.vector_store %arg5[%c0_30, %c0_31, %c0_32], %118 {strides = array<i32>} : memref<1x8x128xf32, #tpu.memory_space<vmem>>, vector<1x8x128xf32>,
    return
  }
  func.func @transform_0(%arg0: i32) -> (i32, i32) {
    %c0_i32 = arith.constant 0 : i32
    %c0_i32_0 = arith.constant 0 : i32
    return %arg0, %c0_i32 : i32, i32
  }
  func.func @transform_1(%arg0: i32) -> (i32, i32) {
    %c0_i32 = arith.constant 0 : i32
    %c0_i32_0 = arith.constant 0 : i32
    return %arg0, %c0_i32 : i32, i32
  }
  func.func @transform_2(%arg0: i32) -> (i32, i32) {
    %c0_i32 = arith.constant 0 : i32
    %c0_i32_0 = arith.constant 0 : i32
    return %arg0, %c0_i32 : i32, i32
  }
  func.func @transform_3(%arg0: i32) -> (i32, i32, i32) {
    %c0_i32 = arith.constant 0 : i32
    %c0_i32_0 = arith.constant 0 : i32
    %c0_i32_1 = arith.constant 0 : i32
    return %c0_i32, %arg0, %c0_i32_0 : i32, i32, i32
  }
  func.func @transform_4(%arg0: i32) -> (i32, i32, i32) {
    %c0_i32 = arith.constant 0 : i32
    %c0_i32_0 = arith.constant 0 : i32
    %c0_i32_1 = arith.constant 0 : i32
    return %arg0, %c0_i32, %c0_i32_0 : i32, i32, i32
  }
}

module attributes {stable_mosaic.version = 11 : i64} {
  func.func @_feat_loss_kernel(%arg0: i32, %arg1: memref<6x64x128xf32, #tpu.memory_space<vmem>>, %arg2: memref<8x128xf32, #tpu.memory_space<vmem>>, %arg3: memref<6x128x128xf32, #tpu.memory_space<vmem>>) attributes {dimension_semantics = [#tpu.dimension_semantics<arbitrary>], iteration_bounds = array<i64: 1>, scalar_prefetch = 0 : i64, scratch_operands = 1 : i64, tpu.core_type = #tpu.core_type<tc>, window_params = [{transform_indices = @transform_0, window_bounds = array<i64: 6, 64, 128>}, {pipeline_mode = #tpu.pipeline_mode<synchronous>, transform_indices = @transform_1, window_bounds = array<i64: 8, 128>}]} {
    %c0_i32 = arith.constant 0 : i32
    %0 = arith.cmpi eq, %arg0, %c0_i32 : i32
    %1 = arith.extui %0 : i1 to i32
    %c0_i32_0 = arith.constant 0 : i32
    %2 = arith.cmpi ne, %1, %c0_i32_0 : i32
    scf.if %2 {
      %cst_20 = arith.constant 0.000000e+00 : f32
      %43 = vector.broadcast %cst_20 : f32 to vector<8x128xf32>
      %c0_21 = arith.constant 0 : index
      %c0_22 = arith.constant 0 : index
      %44 = vector.load %arg2[%c0_21, %c0_22] : memref<8x128xf32, #tpu.memory_space<vmem>>, vector<8x128xf32>
      tpu.vector_store %arg2[%c0_21, %c0_22], %43 {strides = array<i32>} : memref<8x128xf32, #tpu.memory_space<vmem>>, vector<8x128xf32>,
      %cst_23 = arith.constant 0.000000e+00 : f32
      %45 = vector.broadcast %cst_23 : f32 to vector<6x128x128xf32>
      %c0_24 = arith.constant 0 : index
      %c0_25 = arith.constant 0 : index
      %c0_26 = arith.constant 0 : index
      %46 = vector.load %arg3[%c0_24, %c0_25, %c0_26] : memref<6x128x128xf32, #tpu.memory_space<vmem>>, vector<6x128x128xf32>
      tpu.vector_store %arg3[%c0_24, %c0_25, %c0_26], %45 {strides = array<i32>} : memref<6x128x128xf32, #tpu.memory_space<vmem>>, vector<6x128x128xf32>,
    } else {
    }
    %c0 = arith.constant 0 : index
    %c0_1 = arith.constant 0 : index
    %c0_2 = arith.constant 0 : index
    %3 = vector.load %arg1[%c0, %c0_1, %c0_2] : memref<6x64x128xf32, #tpu.memory_space<vmem>>, vector<6x64x128xf32>
    %4 = vector.extract_strided_slice %3 {offsets = [0, 0, 0], sizes = [2, 64, 128], strides = [1, 1, 1]} : vector<6x64x128xf32> to vector<2x64x128xf32>
    %5 = vector.extract_strided_slice %3 {offsets = [2, 0, 0], sizes = [2, 64, 128], strides = [1, 1, 1]} : vector<6x64x128xf32> to vector<2x64x128xf32>
    %6 = vector.extract_strided_slice %3 {offsets = [4, 0, 0], sizes = [2, 64, 128], strides = [1, 1, 1]} : vector<6x64x128xf32> to vector<2x64x128xf32>
    %7 = arith.subf %4, %6 : vector<2x64x128xf32>
    %8 = math.absf %7 : vector<2x64x128xf32>
    %9 = vector.shape_cast %8 : vector<2x64x128xf32> to vector<1x2x64x128xf32>
    %cst = arith.constant dense<0.000000e+00> : vector<1xf32>
    %10 = vector.multi_reduction <add>, %9, %cst [1, 2, 3] : vector<1x2x64x128xf32> to vector<1xf32>
    %11 = vector.shape_cast %10 : vector<1xf32> to vector<1x1x1x1xf32>
    %12 = vector.extract %11[0, 0, 0, 0] : f32 from vector<1x1x1x1xf32>
    %13 = arith.subf %5, %6 : vector<2x64x128xf32>
    %14 = math.absf %13 : vector<2x64x128xf32>
    %15 = vector.shape_cast %14 : vector<2x64x128xf32> to vector<1x2x64x128xf32>
    %cst_3 = arith.constant dense<0.000000e+00> : vector<1xf32>
    %16 = vector.multi_reduction <add>, %15, %cst_3 [1, 2, 3] : vector<1x2x64x128xf32> to vector<1xf32>
    %17 = vector.shape_cast %16 : vector<1xf32> to vector<1x1x1x1xf32>
    %18 = vector.extract %17[0, 0, 0, 0] : f32 from vector<1x1x1x1xf32>
    %19 = tpu.iota {dimensions = array<i32: 0>} : vector<8x128xi32>
    %c0_4 = arith.constant 0 : index
    %c0_5 = arith.constant 0 : index
    %20 = vector.load %arg2[%c0_4, %c0_5] : memref<8x128xf32, #tpu.memory_space<vmem>>, vector<8x128xf32>
    %c0_i32_6 = arith.constant 0 : i32
    %21 = vector.broadcast %c0_i32_6 : i32 to vector<8x128xi32>
    %22 = arith.cmpi eq, %19, %21 : vector<8x128xi32>
    %cst_7 = arith.constant 0.000000e+00 : f32
    %23 = vector.broadcast %12 : f32 to vector<8x128xf32>
    %24 = vector.broadcast %cst_7 : f32 to vector<8x128xf32>
    %25 = arith.select %22, %23, %24 : vector<8x128xi1>, vector<8x128xf32>
    %c1_i32 = arith.constant 1 : i32
    %26 = vector.broadcast %c1_i32 : i32 to vector<8x128xi32>
    %27 = arith.cmpi eq, %19, %26 : vector<8x128xi32>
    %cst_8 = arith.constant 0.000000e+00 : f32
    %28 = vector.broadcast %18 : f32 to vector<8x128xf32>
    %29 = vector.broadcast %cst_8 : f32 to vector<8x128xf32>
    %30 = arith.select %27, %28, %29 : vector<8x128xi1>, vector<8x128xf32>
    %31 = arith.addf %25, %30 : vector<8x128xf32>
    %32 = arith.addf %20, %31 : vector<8x128xf32>
    %c0_9 = arith.constant 0 : index
    %c0_10 = arith.constant 0 : index
    %33 = vector.load %arg2[%c0_9, %c0_10] : memref<8x128xf32, #tpu.memory_space<vmem>>, vector<8x128xf32>
    tpu.vector_store %arg2[%c0_9, %c0_10], %32 {strides = array<i32>} : memref<8x128xf32, #tpu.memory_space<vmem>>, vector<8x128xf32>,
    %34 = arith.truncf %3 : vector<6x64x128xf32> to vector<6x64x128xbf16>
    %35 = tpu.transpose %34, [0, 2, 1] : vector<6x64x128xbf16> -> vector<6x128x64xbf16>
    %c0_11 = arith.constant 0 : index
    %c0_12 = arith.constant 0 : index
    %c0_13 = arith.constant 0 : index
    %36 = vector.load %arg3[%c0_11, %c0_12, %c0_13] : memref<6x128x128xf32, #tpu.memory_space<vmem>>, vector<6x128x128xf32>
    "tpu.trace_start"() <{level = 10 : i32, message = "bcx,bxd->bcd"}> : () -> ()
    %cst_14 = arith.constant dense<0.000000e+00> : vector<6x128x128xf32>
    %37 = tpu.matmul %35, %34, %cst_14 {dimension_numbers = #tpu.dot_dimension_numbers<[2], [1], [1], [2], [0, 0, 0, 1, 1, 2], [0], [0]>} : vector<6x128x64xbf16>, vector<6x64x128xbf16>, vector<6x128x128xf32> -> vector<6x128x128xf32>
    "tpu.trace_stop"() : () -> ()
    %38 = arith.addf %36, %37 : vector<6x128x128xf32>
    %c0_15 = arith.constant 0 : index
    %c0_16 = arith.constant 0 : index
    %c0_17 = arith.constant 0 : index
    %39 = vector.load %arg3[%c0_15, %c0_16, %c0_17] : memref<6x128x128xf32, #tpu.memory_space<vmem>>, vector<6x128x128xf32>
    tpu.vector_store %arg3[%c0_15, %c0_16, %c0_17], %38 {strides = array<i32>} : memref<6x128x128xf32, #tpu.memory_space<vmem>>, vector<6x128x128xf32>,
    %c0_i32_18 = arith.constant 0 : i32
    %40 = arith.cmpi eq, %arg0, %c0_i32_18 : i32
    %41 = arith.extui %40 : i1 to i32
    %c0_i32_19 = arith.constant 0 : i32
    %42 = arith.cmpi ne, %41, %c0_i32_19 : i32
    scf.if %42 {
      %c0_20 = arith.constant 0 : index
      %c0_21 = arith.constant 0 : index
      %c0_22 = arith.constant 0 : index
      %43 = vector.load %arg3[%c0_20, %c0_21, %c0_22] : memref<6x128x128xf32, #tpu.memory_space<vmem>>, vector<6x128x128xf32>
      %44 = vector.extract_strided_slice %43 {offsets = [0, 0, 0], sizes = [2, 128, 128], strides = [1, 1, 1]} : vector<6x128x128xf32> to vector<2x128x128xf32>
      %45 = vector.extract_strided_slice %43 {offsets = [4, 0, 0], sizes = [2, 128, 128], strides = [1, 1, 1]} : vector<6x128x128xf32> to vector<2x128x128xf32>
      %46 = arith.subf %44, %45 : vector<2x128x128xf32>
      %47 = math.absf %46 : vector<2x128x128xf32>
      %48 = vector.shape_cast %47 : vector<2x128x128xf32> to vector<1x2x128x128xf32>
      %cst_23 = arith.constant dense<0.000000e+00> : vector<1xf32>
      %49 = vector.multi_reduction <add>, %48, %cst_23 [1, 2, 3] : vector<1x2x128x128xf32> to vector<1xf32>
      %50 = vector.shape_cast %49 : vector<1xf32> to vector<1x1x1x1xf32>
      %51 = vector.extract %50[0, 0, 0, 0] : f32 from vector<1x1x1x1xf32>
      %52 = vector.extract_strided_slice %43 {offsets = [2, 0, 0], sizes = [2, 128, 128], strides = [1, 1, 1]} : vector<6x128x128xf32> to vector<2x128x128xf32>
      %53 = vector.extract_strided_slice %43 {offsets = [4, 0, 0], sizes = [2, 128, 128], strides = [1, 1, 1]} : vector<6x128x128xf32> to vector<2x128x128xf32>
      %54 = arith.subf %52, %53 : vector<2x128x128xf32>
      %55 = math.absf %54 : vector<2x128x128xf32>
      %56 = vector.shape_cast %55 : vector<2x128x128xf32> to vector<1x2x128x128xf32>
      %cst_24 = arith.constant dense<0.000000e+00> : vector<1xf32>
      %57 = vector.multi_reduction <add>, %56, %cst_24 [1, 2, 3] : vector<1x2x128x128xf32> to vector<1xf32>
      %58 = vector.shape_cast %57 : vector<1xf32> to vector<1x1x1x1xf32>
      %59 = vector.extract %58[0, 0, 0, 0] : f32 from vector<1x1x1x1xf32>
      %c0_25 = arith.constant 0 : index
      %c0_26 = arith.constant 0 : index
      %60 = vector.load %arg2[%c0_25, %c0_26] : memref<8x128xf32, #tpu.memory_space<vmem>>, vector<8x128xf32>
      %c2_i32 = arith.constant 2 : i32
      %61 = vector.broadcast %c2_i32 : i32 to vector<8x128xi32>
      %62 = arith.cmpi eq, %19, %61 : vector<8x128xi32>
      %cst_27 = arith.constant 0.000000e+00 : f32
      %63 = vector.broadcast %51 : f32 to vector<8x128xf32>
      %64 = vector.broadcast %cst_27 : f32 to vector<8x128xf32>
      %65 = arith.select %62, %63, %64 : vector<8x128xi1>, vector<8x128xf32>
      %c3_i32 = arith.constant 3 : i32
      %66 = vector.broadcast %c3_i32 : i32 to vector<8x128xi32>
      %67 = arith.cmpi eq, %19, %66 : vector<8x128xi32>
      %cst_28 = arith.constant 0.000000e+00 : f32
      %68 = vector.broadcast %59 : f32 to vector<8x128xf32>
      %69 = vector.broadcast %cst_28 : f32 to vector<8x128xf32>
      %70 = arith.select %67, %68, %69 : vector<8x128xi1>, vector<8x128xf32>
      %71 = arith.addf %65, %70 : vector<8x128xf32>
      %72 = arith.addf %60, %71 : vector<8x128xf32>
      %c0_29 = arith.constant 0 : index
      %c0_30 = arith.constant 0 : index
      %73 = vector.load %arg2[%c0_29, %c0_30] : memref<8x128xf32, #tpu.memory_space<vmem>>, vector<8x128xf32>
      tpu.vector_store %arg2[%c0_29, %c0_30], %72 {strides = array<i32>} : memref<8x128xf32, #tpu.memory_space<vmem>>, vector<8x128xf32>,
    } else {
    }
    return
  }
  func.func @transform_0(%arg0: i32) -> (i32, i32, i32) {
    %c0_i32 = arith.constant 0 : i32
    %c0_i32_0 = arith.constant 0 : i32
    %c0_i32_1 = arith.constant 0 : i32
    return %c0_i32, %arg0, %c0_i32_0 : i32, i32, i32
  }
  func.func @transform_1(%arg0: i32) -> (i32, i32) {
    %c0_i32 = arith.constant 0 : i32
    %c0_i32_0 = arith.constant 0 : i32
    %c0_i32_1 = arith.constant 0 : i32
    return %c0_i32, %c0_i32_0 : i32, i32
  }
}

module attributes {stable_mosaic.version = 11 : i64} {
  func.func @_fused_conv_kernel(%arg0: i32, %arg1: memref<1x4x9x9x3xf32, #tpu.memory_space<vmem>>, %arg2: memref<9x3x128xbf16, #tpu.memory_space<vmem>>, %arg3: memref<1x128xf32, #tpu.memory_space<vmem>>, %arg4: memref<1x64x128xf32, #tpu.memory_space<vmem>>) attributes {dimension_semantics = [#tpu.dimension_semantics<parallel>], iteration_bounds = array<i64: 6>, scalar_prefetch = 0 : i64, scratch_operands = 0 : i64, tpu.core_type = #tpu.core_type<tc>, window_params = [{transform_indices = @transform_0, window_bounds = array<i64: 1, 4, 9, 9, 3>}, {pipeline_mode = #tpu.pipeline_mode<synchronous>, transform_indices = @transform_1, window_bounds = array<i64: 9, 3, 128>}, {pipeline_mode = #tpu.pipeline_mode<synchronous>, transform_indices = @transform_2, window_bounds = array<i64: 1, 128>}, {transform_indices = @transform_3, window_bounds = array<i64: 1, 64, 128>}]} {
    %cst = arith.constant 0.000000e+00 : f32
    %0 = vector.broadcast %cst : f32 to vector<64x128xf32>
    %c0 = arith.constant 0 : index
    %c0_0 = arith.constant 0 : index
    %c0_1 = arith.constant 0 : index
    %c0_2 = arith.constant 0 : index
    %c0_3 = arith.constant 0 : index
    %1 = vector.load %arg1[%c0, %c0_0, %c0_1, %c0_2, %c0_3] : memref<1x4x9x9x3xf32, #tpu.memory_space<vmem>>, vector<1x1x8x8x3xf32>
    %2 = vector.shape_cast %1 : vector<1x1x8x8x3xf32> to vector<8x8x3xf32>
    %3 = arith.truncf %2 : vector<8x8x3xf32> to vector<8x8x3xbf16>
    %4 = vector.shape_cast %3 : vector<8x8x3xbf16> to vector<64x3xbf16>
    %c0_4 = arith.constant 0 : index
    %c0_5 = arith.constant 0 : index
    %c0_6 = arith.constant 0 : index
    %5 = vector.load %arg2[%c0_4, %c0_5, %c0_6] : memref<9x3x128xbf16, #tpu.memory_space<vmem>>, vector<1x3x128xbf16>
    %6 = vector.shape_cast %5 : vector<1x3x128xbf16> to vector<3x128xbf16>
    %cst_7 = arith.constant dense<0.000000e+00> : vector<64x128xf32>
    %7 = tpu.matmul %4, %6, %cst_7 {dimension_numbers = #tpu.dot_dimension_numbers<[1], [0], [0], [1], [0, 0, 1, 1], [], []>} : vector<64x3xbf16>, vector<3x128xbf16>, vector<64x128xf32> -> vector<64x128xf32>
    %8 = arith.addf %0, %7 : vector<64x128xf32>
    %c0_8 = arith.constant 0 : index
    %c1 = arith.constant 1 : index
    %c0_9 = arith.constant 0 : index
    %c0_10 = arith.constant 0 : index
    %c0_11 = arith.constant 0 : index
    %9 = vector.load %arg1[%c0_8, %c1, %c0_9, %c0_10, %c0_11] : memref<1x4x9x9x3xf32, #tpu.memory_space<vmem>>, vector<1x1x8x8x3xf32>
    %10 = vector.shape_cast %9 : vector<1x1x8x8x3xf32> to vector<8x8x3xf32>
    %11 = arith.truncf %10 : vector<8x8x3xf32> to vector<8x8x3xbf16>
    %12 = vector.shape_cast %11 : vector<8x8x3xbf16> to vector<64x3xbf16>
    %c1_12 = arith.constant 1 : index
    %c0_13 = arith.constant 0 : index
    %c0_14 = arith.constant 0 : index
    %13 = vector.load %arg2[%c1_12, %c0_13, %c0_14] : memref<9x3x128xbf16, #tpu.memory_space<vmem>>, vector<1x3x128xbf16>
    %14 = vector.shape_cast %13 : vector<1x3x128xbf16> to vector<3x128xbf16>
    %cst_15 = arith.constant dense<0.000000e+00> : vector<64x128xf32>
    %15 = tpu.matmul %12, %14, %cst_15 {dimension_numbers = #tpu.dot_dimension_numbers<[1], [0], [0], [1], [0, 0, 1, 1], [], []>} : vector<64x3xbf16>, vector<3x128xbf16>, vector<64x128xf32> -> vector<64x128xf32>
    %16 = arith.addf %8, %15 : vector<64x128xf32>
    %c0_16 = arith.constant 0 : index
    %c0_17 = arith.constant 0 : index
    %c0_18 = arith.constant 0 : index
    %c1_19 = arith.constant 1 : index
    %c0_20 = arith.constant 0 : index
    %17 = vector.load %arg1[%c0_16, %c0_17, %c0_18, %c1_19, %c0_20] : memref<1x4x9x9x3xf32, #tpu.memory_space<vmem>>, vector<1x1x8x8x3xf32>
    %18 = vector.shape_cast %17 : vector<1x1x8x8x3xf32> to vector<8x8x3xf32>
    %19 = arith.truncf %18 : vector<8x8x3xf32> to vector<8x8x3xbf16>
    %20 = vector.shape_cast %19 : vector<8x8x3xbf16> to vector<64x3xbf16>
    %c2 = arith.constant 2 : index
    %c0_21 = arith.constant 0 : index
    %c0_22 = arith.constant 0 : index
    %21 = vector.load %arg2[%c2, %c0_21, %c0_22] : memref<9x3x128xbf16, #tpu.memory_space<vmem>>, vector<1x3x128xbf16>
    %22 = vector.shape_cast %21 : vector<1x3x128xbf16> to vector<3x128xbf16>
    %cst_23 = arith.constant dense<0.000000e+00> : vector<64x128xf32>
    %23 = tpu.matmul %20, %22, %cst_23 {dimension_numbers = #tpu.dot_dimension_numbers<[1], [0], [0], [1], [0, 0, 1, 1], [], []>} : vector<64x3xbf16>, vector<3x128xbf16>, vector<64x128xf32> -> vector<64x128xf32>
    %24 = arith.addf %16, %23 : vector<64x128xf32>
    %c0_24 = arith.constant 0 : index
    %c2_25 = arith.constant 2 : index
    %c0_26 = arith.constant 0 : index
    %c0_27 = arith.constant 0 : index
    %c0_28 = arith.constant 0 : index
    %25 = vector.load %arg1[%c0_24, %c2_25, %c0_26, %c0_27, %c0_28] : memref<1x4x9x9x3xf32, #tpu.memory_space<vmem>>, vector<1x1x8x8x3xf32>
    %26 = vector.shape_cast %25 : vector<1x1x8x8x3xf32> to vector<8x8x3xf32>
    %27 = arith.truncf %26 : vector<8x8x3xf32> to vector<8x8x3xbf16>
    %28 = vector.shape_cast %27 : vector<8x8x3xbf16> to vector<64x3xbf16>
    %c3 = arith.constant 3 : index
    %c0_29 = arith.constant 0 : index
    %c0_30 = arith.constant 0 : index
    %29 = vector.load %arg2[%c3, %c0_29, %c0_30] : memref<9x3x128xbf16, #tpu.memory_space<vmem>>, vector<1x3x128xbf16>
    %30 = vector.shape_cast %29 : vector<1x3x128xbf16> to vector<3x128xbf16>
    %cst_31 = arith.constant dense<0.000000e+00> : vector<64x128xf32>
    %31 = tpu.matmul %28, %30, %cst_31 {dimension_numbers = #tpu.dot_dimension_numbers<[1], [0], [0], [1], [0, 0, 1, 1], [], []>} : vector<64x3xbf16>, vector<3x128xbf16>, vector<64x128xf32> -> vector<64x128xf32>
    %32 = arith.addf %24, %31 : vector<64x128xf32>
    %c0_32 = arith.constant 0 : index
    %c3_33 = arith.constant 3 : index
    %c0_34 = arith.constant 0 : index
    %c0_35 = arith.constant 0 : index
    %c0_36 = arith.constant 0 : index
    %33 = vector.load %arg1[%c0_32, %c3_33, %c0_34, %c0_35, %c0_36] : memref<1x4x9x9x3xf32, #tpu.memory_space<vmem>>, vector<1x1x8x8x3xf32>
    %34 = vector.shape_cast %33 : vector<1x1x8x8x3xf32> to vector<8x8x3xf32>
    %35 = arith.truncf %34 : vector<8x8x3xf32> to vector<8x8x3xbf16>
    %36 = vector.shape_cast %35 : vector<8x8x3xbf16> to vector<64x3xbf16>
    %c4 = arith.constant 4 : index
    %c0_37 = arith.constant 0 : index
    %c0_38 = arith.constant 0 : index
    %37 = vector.load %arg2[%c4, %c0_37, %c0_38] : memref<9x3x128xbf16, #tpu.memory_space<vmem>>, vector<1x3x128xbf16>
    %38 = vector.shape_cast %37 : vector<1x3x128xbf16> to vector<3x128xbf16>
    %cst_39 = arith.constant dense<0.000000e+00> : vector<64x128xf32>
    %39 = tpu.matmul %36, %38, %cst_39 {dimension_numbers = #tpu.dot_dimension_numbers<[1], [0], [0], [1], [0, 0, 1, 1], [], []>} : vector<64x3xbf16>, vector<3x128xbf16>, vector<64x128xf32> -> vector<64x128xf32>
    %40 = arith.addf %32, %39 : vector<64x128xf32>
    %c0_40 = arith.constant 0 : index
    %c2_41 = arith.constant 2 : index
    %c0_42 = arith.constant 0 : index
    %c1_43 = arith.constant 1 : index
    %c0_44 = arith.constant 0 : index
    %41 = vector.load %arg1[%c0_40, %c2_41, %c0_42, %c1_43, %c0_44] : memref<1x4x9x9x3xf32, #tpu.memory_space<vmem>>, vector<1x1x8x8x3xf32>
    %42 = vector.shape_cast %41 : vector<1x1x8x8x3xf32> to vector<8x8x3xf32>
    %43 = arith.truncf %42 : vector<8x8x3xf32> to vector<8x8x3xbf16>
    %44 = vector.shape_cast %43 : vector<8x8x3xbf16> to vector<64x3xbf16>
    %c5 = arith.constant 5 : index
    %c0_45 = arith.constant 0 : index
    %c0_46 = arith.constant 0 : index
    %45 = vector.load %arg2[%c5, %c0_45, %c0_46] : memref<9x3x128xbf16, #tpu.memory_space<vmem>>, vector<1x3x128xbf16>
    %46 = vector.shape_cast %45 : vector<1x3x128xbf16> to vector<3x128xbf16>
    %cst_47 = arith.constant dense<0.000000e+00> : vector<64x128xf32>
    %47 = tpu.matmul %44, %46, %cst_47 {dimension_numbers = #tpu.dot_dimension_numbers<[1], [0], [0], [1], [0, 0, 1, 1], [], []>} : vector<64x3xbf16>, vector<3x128xbf16>, vector<64x128xf32> -> vector<64x128xf32>
    %48 = arith.addf %40, %47 : vector<64x128xf32>
    %c0_48 = arith.constant 0 : index
    %c0_49 = arith.constant 0 : index
    %c1_50 = arith.constant 1 : index
    %c0_51 = arith.constant 0 : index
    %c0_52 = arith.constant 0 : index
    %49 = vector.load %arg1[%c0_48, %c0_49, %c1_50, %c0_51, %c0_52] : memref<1x4x9x9x3xf32, #tpu.memory_space<vmem>>, vector<1x1x8x8x3xf32>
    %50 = vector.shape_cast %49 : vector<1x1x8x8x3xf32> to vector<8x8x3xf32>
    %51 = arith.truncf %50 : vector<8x8x3xf32> to vector<8x8x3xbf16>
    %52 = vector.shape_cast %51 : vector<8x8x3xbf16> to vector<64x3xbf16>
    %c6 = arith.constant 6 : index
    %c0_53 = arith.constant 0 : index
    %c0_54 = arith.constant 0 : index
    %53 = vector.load %arg2[%c6, %c0_53, %c0_54] : memref<9x3x128xbf16, #tpu.memory_space<vmem>>, vector<1x3x128xbf16>
    %54 = vector.shape_cast %53 : vector<1x3x128xbf16> to vector<3x128xbf16>
    %cst_55 = arith.constant dense<0.000000e+00> : vector<64x128xf32>
    %55 = tpu.matmul %52, %54, %cst_55 {dimension_numbers = #tpu.dot_dimension_numbers<[1], [0], [0], [1], [0, 0, 1, 1], [], []>} : vector<64x3xbf16>, vector<3x128xbf16>, vector<64x128xf32> -> vector<64x128xf32>
    %56 = arith.addf %48, %55 : vector<64x128xf32>
    %c0_56 = arith.constant 0 : index
    %c1_57 = arith.constant 1 : index
    %c1_58 = arith.constant 1 : index
    %c0_59 = arith.constant 0 : index
    %c0_60 = arith.constant 0 : index
    %57 = vector.load %arg1[%c0_56, %c1_57, %c1_58, %c0_59, %c0_60] : memref<1x4x9x9x3xf32, #tpu.memory_space<vmem>>, vector<1x1x8x8x3xf32>
    %58 = vector.shape_cast %57 : vector<1x1x8x8x3xf32> to vector<8x8x3xf32>
    %59 = arith.truncf %58 : vector<8x8x3xf32> to vector<8x8x3xbf16>
    %60 = vector.shape_cast %59 : vector<8x8x3xbf16> to vector<64x3xbf16>
    %c7 = arith.constant 7 : index
    %c0_61 = arith.constant 0 : index
    %c0_62 = arith.constant 0 : index
    %61 = vector.load %arg2[%c7, %c0_61, %c0_62] : memref<9x3x128xbf16, #tpu.memory_space<vmem>>, vector<1x3x128xbf16>
    %62 = vector.shape_cast %61 : vector<1x3x128xbf16> to vector<3x128xbf16>
    %cst_63 = arith.constant dense<0.000000e+00> : vector<64x128xf32>
    %63 = tpu.matmul %60, %62, %cst_63 {dimension_numbers = #tpu.dot_dimension_numbers<[1], [0], [0], [1], [0, 0, 1, 1], [], []>} : vector<64x3xbf16>, vector<3x128xbf16>, vector<64x128xf32> -> vector<64x128xf32>
    %64 = arith.addf %56, %63 : vector<64x128xf32>
    %c0_64 = arith.constant 0 : index
    %c0_65 = arith.constant 0 : index
    %c1_66 = arith.constant 1 : index
    %c1_67 = arith.constant 1 : index
    %c0_68 = arith.constant 0 : index
    %65 = vector.load %arg1[%c0_64, %c0_65, %c1_66, %c1_67, %c0_68] : memref<1x4x9x9x3xf32, #tpu.memory_space<vmem>>, vector<1x1x8x8x3xf32>
    %66 = vector.shape_cast %65 : vector<1x1x8x8x3xf32> to vector<8x8x3xf32>
    %67 = arith.truncf %66 : vector<8x8x3xf32> to vector<8x8x3xbf16>
    %68 = vector.shape_cast %67 : vector<8x8x3xbf16> to vector<64x3xbf16>
    %c8 = arith.constant 8 : index
    %c0_69 = arith.constant 0 : index
    %c0_70 = arith.constant 0 : index
    %69 = vector.load %arg2[%c8, %c0_69, %c0_70] : memref<9x3x128xbf16, #tpu.memory_space<vmem>>, vector<1x3x128xbf16>
    %70 = vector.shape_cast %69 : vector<1x3x128xbf16> to vector<3x128xbf16>
    %cst_71 = arith.constant dense<0.000000e+00> : vector<64x128xf32>
    %71 = tpu.matmul %68, %70, %cst_71 {dimension_numbers = #tpu.dot_dimension_numbers<[1], [0], [0], [1], [0, 0, 1, 1], [], []>} : vector<64x3xbf16>, vector<3x128xbf16>, vector<64x128xf32> -> vector<64x128xf32>
    %72 = arith.addf %64, %71 : vector<64x128xf32>
    %c0_72 = arith.constant 0 : index
    %c0_73 = arith.constant 0 : index
    %73 = vector.load %arg3[%c0_72, %c0_73] : memref<1x128xf32, #tpu.memory_space<vmem>>, vector<1x128xf32>
    %74 = vector.broadcast %73 : vector<1x128xf32> to vector<64x128xf32>
    %75 = arith.addf %72, %74 : vector<64x128xf32>
    %cst_74 = arith.constant 0.000000e+00 : f32
    %76 = vector.broadcast %cst_74 : f32 to vector<64x128xf32>
    %77 = arith.maximumf %75, %76 : vector<64x128xf32>
    %c0_75 = arith.constant 0 : index
    %c0_76 = arith.constant 0 : index
    %c0_77 = arith.constant 0 : index
    %78 = vector.load %arg4[%c0_75, %c0_76, %c0_77] : memref<1x64x128xf32, #tpu.memory_space<vmem>>, vector<1x64x128xf32>
    %79 = vector.shape_cast %78 : vector<1x64x128xf32> to vector<64x128xf32>
    %80 = vector.shape_cast %77 : vector<64x128xf32> to vector<1x64x128xf32>
    tpu.vector_store %arg4[%c0_75, %c0_76, %c0_77], %80 {strides = array<i32>} : memref<1x64x128xf32, #tpu.memory_space<vmem>>, vector<1x64x128xf32>,
    return
  }
  func.func @transform_0(%arg0: i32) -> (i32, i32, i32, i32, i32) {
    %c0_i32 = arith.constant 0 : i32
    %c0_i32_0 = arith.constant 0 : i32
    %c0_i32_1 = arith.constant 0 : i32
    %c0_i32_2 = arith.constant 0 : i32
    %c0_i32_3 = arith.constant 0 : i32
    return %arg0, %c0_i32, %c0_i32_0, %c0_i32_1, %c0_i32_2 : i32, i32, i32, i32, i32
  }
  func.func @transform_1(%arg0: i32) -> (i32, i32, i32) {
    %c0_i32 = arith.constant 0 : i32
    %c0_i32_0 = arith.constant 0 : i32
    %c0_i32_1 = arith.constant 0 : i32
    %c0_i32_2 = arith.constant 0 : i32
    return %c0_i32, %c0_i32_0, %c0_i32_1 : i32, i32, i32
  }
  func.func @transform_2(%arg0: i32) -> (i32, i32) {
    %c0_i32 = arith.constant 0 : i32
    %c0_i32_0 = arith.constant 0 : i32
    %c0_i32_1 = arith.constant 0 : i32
    return %c0_i32, %c0_i32_0 : i32, i32
  }
  func.func @transform_3(%arg0: i32) -> (i32, i32, i32) {
    %c0_i32 = arith.constant 0 : i32
    %c0_i32_0 = arith.constant 0 : i32
    %c0_i32_1 = arith.constant 0 : i32
    return %arg0, %c0_i32, %c0_i32_0 : i32, i32, i32
  }
}

module attributes {stable_mosaic.version = 11 : i64} {
  func.func @_fused_conv_kernel(%arg0: i32, %arg1: memref<1x4x5x5x128xf32, #tpu.memory_space<vmem>>, %arg2: memref<9x128x128xbf16, #tpu.memory_space<vmem>>, %arg3: memref<1x128xf32, #tpu.memory_space<vmem>>, %arg4: memref<1x16x128xf32, #tpu.memory_space<vmem>>) attributes {dimension_semantics = [#tpu.dimension_semantics<parallel>], iteration_bounds = array<i64: 6>, scalar_prefetch = 0 : i64, scratch_operands = 0 : i64, tpu.core_type = #tpu.core_type<tc>, window_params = [{transform_indices = @transform_0, window_bounds = array<i64: 1, 4, 5, 5, 128>}, {pipeline_mode = #tpu.pipeline_mode<synchronous>, transform_indices = @transform_1, window_bounds = array<i64: 9, 128, 128>}, {pipeline_mode = #tpu.pipeline_mode<synchronous>, transform_indices = @transform_2, window_bounds = array<i64: 1, 128>}, {transform_indices = @transform_3, window_bounds = array<i64: 1, 16, 128>}]} {
    %cst = arith.constant 0.000000e+00 : f32
    %0 = vector.broadcast %cst : f32 to vector<16x128xf32>
    %c0 = arith.constant 0 : index
    %c0_0 = arith.constant 0 : index
    %c0_1 = arith.constant 0 : index
    %c0_2 = arith.constant 0 : index
    %c0_3 = arith.constant 0 : index
    %1 = vector.load %arg1[%c0, %c0_0, %c0_1, %c0_2, %c0_3] : memref<1x4x5x5x128xf32, #tpu.memory_space<vmem>>, vector<1x1x4x4x128xf32>
    %2 = vector.shape_cast %1 : vector<1x1x4x4x128xf32> to vector<4x4x128xf32>
    %3 = arith.truncf %2 : vector<4x4x128xf32> to vector<4x4x128xbf16>
    %4 = vector.shape_cast %3 : vector<4x4x128xbf16> to vector<16x128xbf16>
    %c0_4 = arith.constant 0 : index
    %c0_5 = arith.constant 0 : index
    %c0_6 = arith.constant 0 : index
    %5 = vector.load %arg2[%c0_4, %c0_5, %c0_6] : memref<9x128x128xbf16, #tpu.memory_space<vmem>>, vector<1x128x128xbf16>
    %6 = vector.shape_cast %5 : vector<1x128x128xbf16> to vector<128x128xbf16>
    %cst_7 = arith.constant dense<0.000000e+00> : vector<16x128xf32>
    %7 = tpu.matmul %4, %6, %cst_7 {dimension_numbers = #tpu.dot_dimension_numbers<[1], [0], [0], [1], [0, 0, 1, 1], [], []>} : vector<16x128xbf16>, vector<128x128xbf16>, vector<16x128xf32> -> vector<16x128xf32>
    %8 = arith.addf %0, %7 : vector<16x128xf32>
    %c0_8 = arith.constant 0 : index
    %c1 = arith.constant 1 : index
    %c0_9 = arith.constant 0 : index
    %c0_10 = arith.constant 0 : index
    %c0_11 = arith.constant 0 : index
    %9 = vector.load %arg1[%c0_8, %c1, %c0_9, %c0_10, %c0_11] : memref<1x4x5x5x128xf32, #tpu.memory_space<vmem>>, vector<1x1x4x4x128xf32>
    %10 = vector.shape_cast %9 : vector<1x1x4x4x128xf32> to vector<4x4x128xf32>
    %11 = arith.truncf %10 : vector<4x4x128xf32> to vector<4x4x128xbf16>
    %12 = vector.shape_cast %11 : vector<4x4x128xbf16> to vector<16x128xbf16>
    %c1_12 = arith.constant 1 : index
    %c0_13 = arith.constant 0 : index
    %c0_14 = arith.constant 0 : index
    %13 = vector.load %arg2[%c1_12, %c0_13, %c0_14] : memref<9x128x128xbf16, #tpu.memory_space<vmem>>, vector<1x128x128xbf16>
    %14 = vector.shape_cast %13 : vector<1x128x128xbf16> to vector<128x128xbf16>
    %cst_15 = arith.constant dense<0.000000e+00> : vector<16x128xf32>
    %15 = tpu.matmul %12, %14, %cst_15 {dimension_numbers = #tpu.dot_dimension_numbers<[1], [0], [0], [1], [0, 0, 1, 1], [], []>} : vector<16x128xbf16>, vector<128x128xbf16>, vector<16x128xf32> -> vector<16x128xf32>
    %16 = arith.addf %8, %15 : vector<16x128xf32>
    %c0_16 = arith.constant 0 : index
    %c0_17 = arith.constant 0 : index
    %c0_18 = arith.constant 0 : index
    %c1_19 = arith.constant 1 : index
    %c0_20 = arith.constant 0 : index
    %17 = vector.load %arg1[%c0_16, %c0_17, %c0_18, %c1_19, %c0_20] : memref<1x4x5x5x128xf32, #tpu.memory_space<vmem>>, vector<1x1x4x4x128xf32>
    %18 = vector.shape_cast %17 : vector<1x1x4x4x128xf32> to vector<4x4x128xf32>
    %19 = arith.truncf %18 : vector<4x4x128xf32> to vector<4x4x128xbf16>
    %20 = vector.shape_cast %19 : vector<4x4x128xbf16> to vector<16x128xbf16>
    %c2 = arith.constant 2 : index
    %c0_21 = arith.constant 0 : index
    %c0_22 = arith.constant 0 : index
    %21 = vector.load %arg2[%c2, %c0_21, %c0_22] : memref<9x128x128xbf16, #tpu.memory_space<vmem>>, vector<1x128x128xbf16>
    %22 = vector.shape_cast %21 : vector<1x128x128xbf16> to vector<128x128xbf16>
    %cst_23 = arith.constant dense<0.000000e+00> : vector<16x128xf32>
    %23 = tpu.matmul %20, %22, %cst_23 {dimension_numbers = #tpu.dot_dimension_numbers<[1], [0], [0], [1], [0, 0, 1, 1], [], []>} : vector<16x128xbf16>, vector<128x128xbf16>, vector<16x128xf32> -> vector<16x128xf32>
    %24 = arith.addf %16, %23 : vector<16x128xf32>
    %c0_24 = arith.constant 0 : index
    %c2_25 = arith.constant 2 : index
    %c0_26 = arith.constant 0 : index
    %c0_27 = arith.constant 0 : index
    %c0_28 = arith.constant 0 : index
    %25 = vector.load %arg1[%c0_24, %c2_25, %c0_26, %c0_27, %c0_28] : memref<1x4x5x5x128xf32, #tpu.memory_space<vmem>>, vector<1x1x4x4x128xf32>
    %26 = vector.shape_cast %25 : vector<1x1x4x4x128xf32> to vector<4x4x128xf32>
    %27 = arith.truncf %26 : vector<4x4x128xf32> to vector<4x4x128xbf16>
    %28 = vector.shape_cast %27 : vector<4x4x128xbf16> to vector<16x128xbf16>
    %c3 = arith.constant 3 : index
    %c0_29 = arith.constant 0 : index
    %c0_30 = arith.constant 0 : index
    %29 = vector.load %arg2[%c3, %c0_29, %c0_30] : memref<9x128x128xbf16, #tpu.memory_space<vmem>>, vector<1x128x128xbf16>
    %30 = vector.shape_cast %29 : vector<1x128x128xbf16> to vector<128x128xbf16>
    %cst_31 = arith.constant dense<0.000000e+00> : vector<16x128xf32>
    %31 = tpu.matmul %28, %30, %cst_31 {dimension_numbers = #tpu.dot_dimension_numbers<[1], [0], [0], [1], [0, 0, 1, 1], [], []>} : vector<16x128xbf16>, vector<128x128xbf16>, vector<16x128xf32> -> vector<16x128xf32>
    %32 = arith.addf %24, %31 : vector<16x128xf32>
    %c0_32 = arith.constant 0 : index
    %c3_33 = arith.constant 3 : index
    %c0_34 = arith.constant 0 : index
    %c0_35 = arith.constant 0 : index
    %c0_36 = arith.constant 0 : index
    %33 = vector.load %arg1[%c0_32, %c3_33, %c0_34, %c0_35, %c0_36] : memref<1x4x5x5x128xf32, #tpu.memory_space<vmem>>, vector<1x1x4x4x128xf32>
    %34 = vector.shape_cast %33 : vector<1x1x4x4x128xf32> to vector<4x4x128xf32>
    %35 = arith.truncf %34 : vector<4x4x128xf32> to vector<4x4x128xbf16>
    %36 = vector.shape_cast %35 : vector<4x4x128xbf16> to vector<16x128xbf16>
    %c4 = arith.constant 4 : index
    %c0_37 = arith.constant 0 : index
    %c0_38 = arith.constant 0 : index
    %37 = vector.load %arg2[%c4, %c0_37, %c0_38] : memref<9x128x128xbf16, #tpu.memory_space<vmem>>, vector<1x128x128xbf16>
    %38 = vector.shape_cast %37 : vector<1x128x128xbf16> to vector<128x128xbf16>
    %cst_39 = arith.constant dense<0.000000e+00> : vector<16x128xf32>
    %39 = tpu.matmul %36, %38, %cst_39 {dimension_numbers = #tpu.dot_dimension_numbers<[1], [0], [0], [1], [0, 0, 1, 1], [], []>} : vector<16x128xbf16>, vector<128x128xbf16>, vector<16x128xf32> -> vector<16x128xf32>
    %40 = arith.addf %32, %39 : vector<16x128xf32>
    %c0_40 = arith.constant 0 : index
    %c2_41 = arith.constant 2 : index
    %c0_42 = arith.constant 0 : index
    %c1_43 = arith.constant 1 : index
    %c0_44 = arith.constant 0 : index
    %41 = vector.load %arg1[%c0_40, %c2_41, %c0_42, %c1_43, %c0_44] : memref<1x4x5x5x128xf32, #tpu.memory_space<vmem>>, vector<1x1x4x4x128xf32>
    %42 = vector.shape_cast %41 : vector<1x1x4x4x128xf32> to vector<4x4x128xf32>
    %43 = arith.truncf %42 : vector<4x4x128xf32> to vector<4x4x128xbf16>
    %44 = vector.shape_cast %43 : vector<4x4x128xbf16> to vector<16x128xbf16>
    %c5 = arith.constant 5 : index
    %c0_45 = arith.constant 0 : index
    %c0_46 = arith.constant 0 : index
    %45 = vector.load %arg2[%c5, %c0_45, %c0_46] : memref<9x128x128xbf16, #tpu.memory_space<vmem>>, vector<1x128x128xbf16>
    %46 = vector.shape_cast %45 : vector<1x128x128xbf16> to vector<128x128xbf16>
    %cst_47 = arith.constant dense<0.000000e+00> : vector<16x128xf32>
    %47 = tpu.matmul %44, %46, %cst_47 {dimension_numbers = #tpu.dot_dimension_numbers<[1], [0], [0], [1], [0, 0, 1, 1], [], []>} : vector<16x128xbf16>, vector<128x128xbf16>, vector<16x128xf32> -> vector<16x128xf32>
    %48 = arith.addf %40, %47 : vector<16x128xf32>
    %c0_48 = arith.constant 0 : index
    %c0_49 = arith.constant 0 : index
    %c1_50 = arith.constant 1 : index
    %c0_51 = arith.constant 0 : index
    %c0_52 = arith.constant 0 : index
    %49 = vector.load %arg1[%c0_48, %c0_49, %c1_50, %c0_51, %c0_52] : memref<1x4x5x5x128xf32, #tpu.memory_space<vmem>>, vector<1x1x4x4x128xf32>
    %50 = vector.shape_cast %49 : vector<1x1x4x4x128xf32> to vector<4x4x128xf32>
    %51 = arith.truncf %50 : vector<4x4x128xf32> to vector<4x4x128xbf16>
    %52 = vector.shape_cast %51 : vector<4x4x128xbf16> to vector<16x128xbf16>
    %c6 = arith.constant 6 : index
    %c0_53 = arith.constant 0 : index
    %c0_54 = arith.constant 0 : index
    %53 = vector.load %arg2[%c6, %c0_53, %c0_54] : memref<9x128x128xbf16, #tpu.memory_space<vmem>>, vector<1x128x128xbf16>
    %54 = vector.shape_cast %53 : vector<1x128x128xbf16> to vector<128x128xbf16>
    %cst_55 = arith.constant dense<0.000000e+00> : vector<16x128xf32>
    %55 = tpu.matmul %52, %54, %cst_55 {dimension_numbers = #tpu.dot_dimension_numbers<[1], [0], [0], [1], [0, 0, 1, 1], [], []>} : vector<16x128xbf16>, vector<128x128xbf16>, vector<16x128xf32> -> vector<16x128xf32>
    %56 = arith.addf %48, %55 : vector<16x128xf32>
    %c0_56 = arith.constant 0 : index
    %c1_57 = arith.constant 1 : index
    %c1_58 = arith.constant 1 : index
    %c0_59 = arith.constant 0 : index
    %c0_60 = arith.constant 0 : index
    %57 = vector.load %arg1[%c0_56, %c1_57, %c1_58, %c0_59, %c0_60] : memref<1x4x5x5x128xf32, #tpu.memory_space<vmem>>, vector<1x1x4x4x128xf32>
    %58 = vector.shape_cast %57 : vector<1x1x4x4x128xf32> to vector<4x4x128xf32>
    %59 = arith.truncf %58 : vector<4x4x128xf32> to vector<4x4x128xbf16>
    %60 = vector.shape_cast %59 : vector<4x4x128xbf16> to vector<16x128xbf16>
    %c7 = arith.constant 7 : index
    %c0_61 = arith.constant 0 : index
    %c0_62 = arith.constant 0 : index
    %61 = vector.load %arg2[%c7, %c0_61, %c0_62] : memref<9x128x128xbf16, #tpu.memory_space<vmem>>, vector<1x128x128xbf16>
    %62 = vector.shape_cast %61 : vector<1x128x128xbf16> to vector<128x128xbf16>
    %cst_63 = arith.constant dense<0.000000e+00> : vector<16x128xf32>
    %63 = tpu.matmul %60, %62, %cst_63 {dimension_numbers = #tpu.dot_dimension_numbers<[1], [0], [0], [1], [0, 0, 1, 1], [], []>} : vector<16x128xbf16>, vector<128x128xbf16>, vector<16x128xf32> -> vector<16x128xf32>
    %64 = arith.addf %56, %63 : vector<16x128xf32>
    %c0_64 = arith.constant 0 : index
    %c0_65 = arith.constant 0 : index
    %c1_66 = arith.constant 1 : index
    %c1_67 = arith.constant 1 : index
    %c0_68 = arith.constant 0 : index
    %65 = vector.load %arg1[%c0_64, %c0_65, %c1_66, %c1_67, %c0_68] : memref<1x4x5x5x128xf32, #tpu.memory_space<vmem>>, vector<1x1x4x4x128xf32>
    %66 = vector.shape_cast %65 : vector<1x1x4x4x128xf32> to vector<4x4x128xf32>
    %67 = arith.truncf %66 : vector<4x4x128xf32> to vector<4x4x128xbf16>
    %68 = vector.shape_cast %67 : vector<4x4x128xbf16> to vector<16x128xbf16>
    %c8 = arith.constant 8 : index
    %c0_69 = arith.constant 0 : index
    %c0_70 = arith.constant 0 : index
    %69 = vector.load %arg2[%c8, %c0_69, %c0_70] : memref<9x128x128xbf16, #tpu.memory_space<vmem>>, vector<1x128x128xbf16>
    %70 = vector.shape_cast %69 : vector<1x128x128xbf16> to vector<128x128xbf16>
    %cst_71 = arith.constant dense<0.000000e+00> : vector<16x128xf32>
    %71 = tpu.matmul %68, %70, %cst_71 {dimension_numbers = #tpu.dot_dimension_numbers<[1], [0], [0], [1], [0, 0, 1, 1], [], []>} : vector<16x128xbf16>, vector<128x128xbf16>, vector<16x128xf32> -> vector<16x128xf32>
    %72 = arith.addf %64, %71 : vector<16x128xf32>
    %c0_72 = arith.constant 0 : index
    %c0_73 = arith.constant 0 : index
    %73 = vector.load %arg3[%c0_72, %c0_73] : memref<1x128xf32, #tpu.memory_space<vmem>>, vector<1x128xf32>
    %74 = vector.broadcast %73 : vector<1x128xf32> to vector<16x128xf32>
    %75 = arith.addf %72, %74 : vector<16x128xf32>
    %cst_74 = arith.constant 0.000000e+00 : f32
    %76 = vector.broadcast %cst_74 : f32 to vector<16x128xf32>
    %77 = arith.maximumf %75, %76 : vector<16x128xf32>
    %c0_75 = arith.constant 0 : index
    %c0_76 = arith.constant 0 : index
    %c0_77 = arith.constant 0 : index
    %78 = vector.load %arg4[%c0_75, %c0_76, %c0_77] : memref<1x16x128xf32, #tpu.memory_space<vmem>>, vector<1x16x128xf32>
    %79 = vector.shape_cast %78 : vector<1x16x128xf32> to vector<16x128xf32>
    %80 = vector.shape_cast %77 : vector<16x128xf32> to vector<1x16x128xf32>
    tpu.vector_store %arg4[%c0_75, %c0_76, %c0_77], %80 {strides = array<i32>} : memref<1x16x128xf32, #tpu.memory_space<vmem>>, vector<1x16x128xf32>,
    return
  }
  func.func @transform_0(%arg0: i32) -> (i32, i32, i32, i32, i32) {
    %c0_i32 = arith.constant 0 : i32
    %c0_i32_0 = arith.constant 0 : i32
    %c0_i32_1 = arith.constant 0 : i32
    %c0_i32_2 = arith.constant 0 : i32
    %c0_i32_3 = arith.constant 0 : i32
    return %arg0, %c0_i32, %c0_i32_0, %c0_i32_1, %c0_i32_2 : i32, i32, i32, i32, i32
  }
  func.func @transform_1(%arg0: i32) -> (i32, i32, i32) {
    %c0_i32 = arith.constant 0 : i32
    %c0_i32_0 = arith.constant 0 : i32
    %c0_i32_1 = arith.constant 0 : i32
    %c0_i32_2 = arith.constant 0 : i32
    return %c0_i32, %c0_i32_0, %c0_i32_1 : i32, i32, i32
  }
  func.func @transform_2(%arg0: i32) -> (i32, i32) {
    %c0_i32 = arith.constant 0 : i32
    %c0_i32_0 = arith.constant 0 : i32
    %c0_i32_1 = arith.constant 0 : i32
    return %c0_i32, %c0_i32_0 : i32, i32
  }
  func.func @transform_3(%arg0: i32) -> (i32, i32, i32) {
    %c0_i32 = arith.constant 0 : i32
    %c0_i32_0 = arith.constant 0 : i32
    %c0_i32_1 = arith.constant 0 : i32
    return %arg0, %c0_i32, %c0_i32_0 : i32, i32, i32
  }
}

module attributes {stable_mosaic.version = 11 : i64} {
  func.func @_feat_loss_kernel(%arg0: i32, %arg1: memref<6x16x128xf32, #tpu.memory_space<vmem>>, %arg2: memref<8x128xf32, #tpu.memory_space<vmem>>, %arg3: memref<6x128x128xf32, #tpu.memory_space<vmem>>) attributes {dimension_semantics = [#tpu.dimension_semantics<arbitrary>], iteration_bounds = array<i64: 1>, scalar_prefetch = 0 : i64, scratch_operands = 1 : i64, tpu.core_type = #tpu.core_type<tc>, window_params = [{transform_indices = @transform_0, window_bounds = array<i64: 6, 16, 128>}, {pipeline_mode = #tpu.pipeline_mode<synchronous>, transform_indices = @transform_1, window_bounds = array<i64: 8, 128>}]} {
    %c0_i32 = arith.constant 0 : i32
    %0 = arith.cmpi eq, %arg0, %c0_i32 : i32
    %1 = arith.extui %0 : i1 to i32
    %c0_i32_0 = arith.constant 0 : i32
    %2 = arith.cmpi ne, %1, %c0_i32_0 : i32
    scf.if %2 {
      %cst_20 = arith.constant 0.000000e+00 : f32
      %43 = vector.broadcast %cst_20 : f32 to vector<8x128xf32>
      %c0_21 = arith.constant 0 : index
      %c0_22 = arith.constant 0 : index
      %44 = vector.load %arg2[%c0_21, %c0_22] : memref<8x128xf32, #tpu.memory_space<vmem>>, vector<8x128xf32>
      tpu.vector_store %arg2[%c0_21, %c0_22], %43 {strides = array<i32>} : memref<8x128xf32, #tpu.memory_space<vmem>>, vector<8x128xf32>,
      %cst_23 = arith.constant 0.000000e+00 : f32
      %45 = vector.broadcast %cst_23 : f32 to vector<6x128x128xf32>
      %c0_24 = arith.constant 0 : index
      %c0_25 = arith.constant 0 : index
      %c0_26 = arith.constant 0 : index
      %46 = vector.load %arg3[%c0_24, %c0_25, %c0_26] : memref<6x128x128xf32, #tpu.memory_space<vmem>>, vector<6x128x128xf32>
      tpu.vector_store %arg3[%c0_24, %c0_25, %c0_26], %45 {strides = array<i32>} : memref<6x128x128xf32, #tpu.memory_space<vmem>>, vector<6x128x128xf32>,
    } else {
    }
    %c0 = arith.constant 0 : index
    %c0_1 = arith.constant 0 : index
    %c0_2 = arith.constant 0 : index
    %3 = vector.load %arg1[%c0, %c0_1, %c0_2] : memref<6x16x128xf32, #tpu.memory_space<vmem>>, vector<6x16x128xf32>
    %4 = vector.extract_strided_slice %3 {offsets = [0, 0, 0], sizes = [2, 16, 128], strides = [1, 1, 1]} : vector<6x16x128xf32> to vector<2x16x128xf32>
    %5 = vector.extract_strided_slice %3 {offsets = [2, 0, 0], sizes = [2, 16, 128], strides = [1, 1, 1]} : vector<6x16x128xf32> to vector<2x16x128xf32>
    %6 = vector.extract_strided_slice %3 {offsets = [4, 0, 0], sizes = [2, 16, 128], strides = [1, 1, 1]} : vector<6x16x128xf32> to vector<2x16x128xf32>
    %7 = arith.subf %4, %6 : vector<2x16x128xf32>
    %8 = math.absf %7 : vector<2x16x128xf32>
    %9 = vector.shape_cast %8 : vector<2x16x128xf32> to vector<1x2x16x128xf32>
    %cst = arith.constant dense<0.000000e+00> : vector<1xf32>
    %10 = vector.multi_reduction <add>, %9, %cst [1, 2, 3] : vector<1x2x16x128xf32> to vector<1xf32>
    %11 = vector.shape_cast %10 : vector<1xf32> to vector<1x1x1x1xf32>
    %12 = vector.extract %11[0, 0, 0, 0] : f32 from vector<1x1x1x1xf32>
    %13 = arith.subf %5, %6 : vector<2x16x128xf32>
    %14 = math.absf %13 : vector<2x16x128xf32>
    %15 = vector.shape_cast %14 : vector<2x16x128xf32> to vector<1x2x16x128xf32>
    %cst_3 = arith.constant dense<0.000000e+00> : vector<1xf32>
    %16 = vector.multi_reduction <add>, %15, %cst_3 [1, 2, 3] : vector<1x2x16x128xf32> to vector<1xf32>
    %17 = vector.shape_cast %16 : vector<1xf32> to vector<1x1x1x1xf32>
    %18 = vector.extract %17[0, 0, 0, 0] : f32 from vector<1x1x1x1xf32>
    %19 = tpu.iota {dimensions = array<i32: 0>} : vector<8x128xi32>
    %c0_4 = arith.constant 0 : index
    %c0_5 = arith.constant 0 : index
    %20 = vector.load %arg2[%c0_4, %c0_5] : memref<8x128xf32, #tpu.memory_space<vmem>>, vector<8x128xf32>
    %c0_i32_6 = arith.constant 0 : i32
    %21 = vector.broadcast %c0_i32_6 : i32 to vector<8x128xi32>
    %22 = arith.cmpi eq, %19, %21 : vector<8x128xi32>
    %cst_7 = arith.constant 0.000000e+00 : f32
    %23 = vector.broadcast %12 : f32 to vector<8x128xf32>
    %24 = vector.broadcast %cst_7 : f32 to vector<8x128xf32>
    %25 = arith.select %22, %23, %24 : vector<8x128xi1>, vector<8x128xf32>
    %c1_i32 = arith.constant 1 : i32
    %26 = vector.broadcast %c1_i32 : i32 to vector<8x128xi32>
    %27 = arith.cmpi eq, %19, %26 : vector<8x128xi32>
    %cst_8 = arith.constant 0.000000e+00 : f32
    %28 = vector.broadcast %18 : f32 to vector<8x128xf32>
    %29 = vector.broadcast %cst_8 : f32 to vector<8x128xf32>
    %30 = arith.select %27, %28, %29 : vector<8x128xi1>, vector<8x128xf32>
    %31 = arith.addf %25, %30 : vector<8x128xf32>
    %32 = arith.addf %20, %31 : vector<8x128xf32>
    %c0_9 = arith.constant 0 : index
    %c0_10 = arith.constant 0 : index
    %33 = vector.load %arg2[%c0_9, %c0_10] : memref<8x128xf32, #tpu.memory_space<vmem>>, vector<8x128xf32>
    tpu.vector_store %arg2[%c0_9, %c0_10], %32 {strides = array<i32>} : memref<8x128xf32, #tpu.memory_space<vmem>>, vector<8x128xf32>,
    %34 = arith.truncf %3 : vector<6x16x128xf32> to vector<6x16x128xbf16>
    %35 = tpu.transpose %34, [0, 2, 1] : vector<6x16x128xbf16> -> vector<6x128x16xbf16>
    %c0_11 = arith.constant 0 : index
    %c0_12 = arith.constant 0 : index
    %c0_13 = arith.constant 0 : index
    %36 = vector.load %arg3[%c0_11, %c0_12, %c0_13] : memref<6x128x128xf32, #tpu.memory_space<vmem>>, vector<6x128x128xf32>
    "tpu.trace_start"() <{level = 10 : i32, message = "bcx,bxd->bcd"}> : () -> ()
    %cst_14 = arith.constant dense<0.000000e+00> : vector<6x128x128xf32>
    %37 = tpu.matmul %35, %34, %cst_14 {dimension_numbers = #tpu.dot_dimension_numbers<[2], [1], [1], [2], [0, 0, 0, 1, 1, 2], [0], [0]>} : vector<6x128x16xbf16>, vector<6x16x128xbf16>, vector<6x128x128xf32> -> vector<6x128x128xf32>
    "tpu.trace_stop"() : () -> ()
    %38 = arith.addf %36, %37 : vector<6x128x128xf32>
    %c0_15 = arith.constant 0 : index
    %c0_16 = arith.constant 0 : index
    %c0_17 = arith.constant 0 : index
    %39 = vector.load %arg3[%c0_15, %c0_16, %c0_17] : memref<6x128x128xf32, #tpu.memory_space<vmem>>, vector<6x128x128xf32>
    tpu.vector_store %arg3[%c0_15, %c0_16, %c0_17], %38 {strides = array<i32>} : memref<6x128x128xf32, #tpu.memory_space<vmem>>, vector<6x128x128xf32>,
    %c0_i32_18 = arith.constant 0 : i32
    %40 = arith.cmpi eq, %arg0, %c0_i32_18 : i32
    %41 = arith.extui %40 : i1 to i32
    %c0_i32_19 = arith.constant 0 : i32
    %42 = arith.cmpi ne, %41, %c0_i32_19 : i32
    scf.if %42 {
      %c0_20 = arith.constant 0 : index
      %c0_21 = arith.constant 0 : index
      %c0_22 = arith.constant 0 : index
      %43 = vector.load %arg3[%c0_20, %c0_21, %c0_22] : memref<6x128x128xf32, #tpu.memory_space<vmem>>, vector<6x128x128xf32>
      %44 = vector.extract_strided_slice %43 {offsets = [0, 0, 0], sizes = [2, 128, 128], strides = [1, 1, 1]} : vector<6x128x128xf32> to vector<2x128x128xf32>
      %45 = vector.extract_strided_slice %43 {offsets = [4, 0, 0], sizes = [2, 128, 128], strides = [1, 1, 1]} : vector<6x128x128xf32> to vector<2x128x128xf32>
      %46 = arith.subf %44, %45 : vector<2x128x128xf32>
      %47 = math.absf %46 : vector<2x128x128xf32>
      %48 = vector.shape_cast %47 : vector<2x128x128xf32> to vector<1x2x128x128xf32>
      %cst_23 = arith.constant dense<0.000000e+00> : vector<1xf32>
      %49 = vector.multi_reduction <add>, %48, %cst_23 [1, 2, 3] : vector<1x2x128x128xf32> to vector<1xf32>
      %50 = vector.shape_cast %49 : vector<1xf32> to vector<1x1x1x1xf32>
      %51 = vector.extract %50[0, 0, 0, 0] : f32 from vector<1x1x1x1xf32>
      %52 = vector.extract_strided_slice %43 {offsets = [2, 0, 0], sizes = [2, 128, 128], strides = [1, 1, 1]} : vector<6x128x128xf32> to vector<2x128x128xf32>
      %53 = vector.extract_strided_slice %43 {offsets = [4, 0, 0], sizes = [2, 128, 128], strides = [1, 1, 1]} : vector<6x128x128xf32> to vector<2x128x128xf32>
      %54 = arith.subf %52, %53 : vector<2x128x128xf32>
      %55 = math.absf %54 : vector<2x128x128xf32>
      %56 = vector.shape_cast %55 : vector<2x128x128xf32> to vector<1x2x128x128xf32>
      %cst_24 = arith.constant dense<0.000000e+00> : vector<1xf32>
      %57 = vector.multi_reduction <add>, %56, %cst_24 [1, 2, 3] : vector<1x2x128x128xf32> to vector<1xf32>
      %58 = vector.shape_cast %57 : vector<1xf32> to vector<1x1x1x1xf32>
      %59 = vector.extract %58[0, 0, 0, 0] : f32 from vector<1x1x1x1xf32>
      %c0_25 = arith.constant 0 : index
      %c0_26 = arith.constant 0 : index
      %60 = vector.load %arg2[%c0_25, %c0_26] : memref<8x128xf32, #tpu.memory_space<vmem>>, vector<8x128xf32>
      %c2_i32 = arith.constant 2 : i32
      %61 = vector.broadcast %c2_i32 : i32 to vector<8x128xi32>
      %62 = arith.cmpi eq, %19, %61 : vector<8x128xi32>
      %cst_27 = arith.constant 0.000000e+00 : f32
      %63 = vector.broadcast %51 : f32 to vector<8x128xf32>
      %64 = vector.broadcast %cst_27 : f32 to vector<8x128xf32>
      %65 = arith.select %62, %63, %64 : vector<8x128xi1>, vector<8x128xf32>
      %c3_i32 = arith.constant 3 : i32
      %66 = vector.broadcast %c3_i32 : i32 to vector<8x128xi32>
      %67 = arith.cmpi eq, %19, %66 : vector<8x128xi32>
      %cst_28 = arith.constant 0.000000e+00 : f32
      %68 = vector.broadcast %59 : f32 to vector<8x128xf32>
      %69 = vector.broadcast %cst_28 : f32 to vector<8x128xf32>
      %70 = arith.select %67, %68, %69 : vector<8x128xi1>, vector<8x128xf32>
      %71 = arith.addf %65, %70 : vector<8x128xf32>
      %72 = arith.addf %60, %71 : vector<8x128xf32>
      %c0_29 = arith.constant 0 : index
      %c0_30 = arith.constant 0 : index
      %73 = vector.load %arg2[%c0_29, %c0_30] : memref<8x128xf32, #tpu.memory_space<vmem>>, vector<8x128xf32>
      tpu.vector_store %arg2[%c0_29, %c0_30], %72 {strides = array<i32>} : memref<8x128xf32, #tpu.memory_space<vmem>>, vector<8x128xf32>,
    } else {
    }
    return
  }
  func.func @transform_0(%arg0: i32) -> (i32, i32, i32) {
    %c0_i32 = arith.constant 0 : i32
    %c0_i32_0 = arith.constant 0 : i32
    %c0_i32_1 = arith.constant 0 : i32
    return %c0_i32, %arg0, %c0_i32_0 : i32, i32, i32
  }
  func.func @transform_1(%arg0: i32) -> (i32, i32) {
    %c0_i32 = arith.constant 0 : i32
    %c0_i32_0 = arith.constant 0 : i32
    %c0_i32_1 = arith.constant 0 : i32
    return %c0_i32, %c0_i32_0 : i32, i32
  }
}

module attributes {stable_mosaic.version = 11 : i64} {
  func.func @_fused_conv_kernel(%arg0: i32, %arg1: memref<1x4x3x3x128xf32, #tpu.memory_space<vmem>>, %arg2: memref<9x128x128xbf16, #tpu.memory_space<vmem>>, %arg3: memref<1x128xf32, #tpu.memory_space<vmem>>, %arg4: memref<1x4x128xf32, #tpu.memory_space<vmem>>) attributes {dimension_semantics = [#tpu.dimension_semantics<parallel>], iteration_bounds = array<i64: 6>, scalar_prefetch = 0 : i64, scratch_operands = 0 : i64, tpu.core_type = #tpu.core_type<tc>, window_params = [{transform_indices = @transform_0, window_bounds = array<i64: 1, 4, 3, 3, 128>}, {pipeline_mode = #tpu.pipeline_mode<synchronous>, transform_indices = @transform_1, window_bounds = array<i64: 9, 128, 128>}, {pipeline_mode = #tpu.pipeline_mode<synchronous>, transform_indices = @transform_2, window_bounds = array<i64: 1, 128>}, {transform_indices = @transform_3, window_bounds = array<i64: 1, 4, 128>}]} {
    %cst = arith.constant 0.000000e+00 : f32
    %0 = vector.broadcast %cst : f32 to vector<4x128xf32>
    %c0 = arith.constant 0 : index
    %c0_0 = arith.constant 0 : index
    %c0_1 = arith.constant 0 : index
    %c0_2 = arith.constant 0 : index
    %c0_3 = arith.constant 0 : index
    %1 = vector.load %arg1[%c0, %c0_0, %c0_1, %c0_2, %c0_3] : memref<1x4x3x3x128xf32, #tpu.memory_space<vmem>>, vector<1x1x2x2x128xf32>
    %2 = vector.shape_cast %1 : vector<1x1x2x2x128xf32> to vector<2x2x128xf32>
    %3 = arith.truncf %2 : vector<2x2x128xf32> to vector<2x2x128xbf16>
    %4 = vector.shape_cast %3 : vector<2x2x128xbf16> to vector<4x128xbf16>
    %c0_4 = arith.constant 0 : index
    %c0_5 = arith.constant 0 : index
    %c0_6 = arith.constant 0 : index
    %5 = vector.load %arg2[%c0_4, %c0_5, %c0_6] : memref<9x128x128xbf16, #tpu.memory_space<vmem>>, vector<1x128x128xbf16>
    %6 = vector.shape_cast %5 : vector<1x128x128xbf16> to vector<128x128xbf16>
    %cst_7 = arith.constant dense<0.000000e+00> : vector<4x128xf32>
    %7 = tpu.matmul %4, %6, %cst_7 {dimension_numbers = #tpu.dot_dimension_numbers<[1], [0], [0], [1], [0, 0, 1, 1], [], []>} : vector<4x128xbf16>, vector<128x128xbf16>, vector<4x128xf32> -> vector<4x128xf32>
    %8 = arith.addf %0, %7 : vector<4x128xf32>
    %c0_8 = arith.constant 0 : index
    %c1 = arith.constant 1 : index
    %c0_9 = arith.constant 0 : index
    %c0_10 = arith.constant 0 : index
    %c0_11 = arith.constant 0 : index
    %9 = vector.load %arg1[%c0_8, %c1, %c0_9, %c0_10, %c0_11] : memref<1x4x3x3x128xf32, #tpu.memory_space<vmem>>, vector<1x1x2x2x128xf32>
    %10 = vector.shape_cast %9 : vector<1x1x2x2x128xf32> to vector<2x2x128xf32>
    %11 = arith.truncf %10 : vector<2x2x128xf32> to vector<2x2x128xbf16>
    %12 = vector.shape_cast %11 : vector<2x2x128xbf16> to vector<4x128xbf16>
    %c1_12 = arith.constant 1 : index
    %c0_13 = arith.constant 0 : index
    %c0_14 = arith.constant 0 : index
    %13 = vector.load %arg2[%c1_12, %c0_13, %c0_14] : memref<9x128x128xbf16, #tpu.memory_space<vmem>>, vector<1x128x128xbf16>
    %14 = vector.shape_cast %13 : vector<1x128x128xbf16> to vector<128x128xbf16>
    %cst_15 = arith.constant dense<0.000000e+00> : vector<4x128xf32>
    %15 = tpu.matmul %12, %14, %cst_15 {dimension_numbers = #tpu.dot_dimension_numbers<[1], [0], [0], [1], [0, 0, 1, 1], [], []>} : vector<4x128xbf16>, vector<128x128xbf16>, vector<4x128xf32> -> vector<4x128xf32>
    %16 = arith.addf %8, %15 : vector<4x128xf32>
    %c0_16 = arith.constant 0 : index
    %c0_17 = arith.constant 0 : index
    %c0_18 = arith.constant 0 : index
    %c1_19 = arith.constant 1 : index
    %c0_20 = arith.constant 0 : index
    %17 = vector.load %arg1[%c0_16, %c0_17, %c0_18, %c1_19, %c0_20] : memref<1x4x3x3x128xf32, #tpu.memory_space<vmem>>, vector<1x1x2x2x128xf32>
    %18 = vector.shape_cast %17 : vector<1x1x2x2x128xf32> to vector<2x2x128xf32>
    %19 = arith.truncf %18 : vector<2x2x128xf32> to vector<2x2x128xbf16>
    %20 = vector.shape_cast %19 : vector<2x2x128xbf16> to vector<4x128xbf16>
    %c2 = arith.constant 2 : index
    %c0_21 = arith.constant 0 : index
    %c0_22 = arith.constant 0 : index
    %21 = vector.load %arg2[%c2, %c0_21, %c0_22] : memref<9x128x128xbf16, #tpu.memory_space<vmem>>, vector<1x128x128xbf16>
    %22 = vector.shape_cast %21 : vector<1x128x128xbf16> to vector<128x128xbf16>
    %cst_23 = arith.constant dense<0.000000e+00> : vector<4x128xf32>
    %23 = tpu.matmul %20, %22, %cst_23 {dimension_numbers = #tpu.dot_dimension_numbers<[1], [0], [0], [1], [0, 0, 1, 1], [], []>} : vector<4x128xbf16>, vector<128x128xbf16>, vector<4x128xf32> -> vector<4x128xf32>
    %24 = arith.addf %16, %23 : vector<4x128xf32>
    %c0_24 = arith.constant 0 : index
    %c2_25 = arith.constant 2 : index
    %c0_26 = arith.constant 0 : index
    %c0_27 = arith.constant 0 : index
    %c0_28 = arith.constant 0 : index
    %25 = vector.load %arg1[%c0_24, %c2_25, %c0_26, %c0_27, %c0_28] : memref<1x4x3x3x128xf32, #tpu.memory_space<vmem>>, vector<1x1x2x2x128xf32>
    %26 = vector.shape_cast %25 : vector<1x1x2x2x128xf32> to vector<2x2x128xf32>
    %27 = arith.truncf %26 : vector<2x2x128xf32> to vector<2x2x128xbf16>
    %28 = vector.shape_cast %27 : vector<2x2x128xbf16> to vector<4x128xbf16>
    %c3 = arith.constant 3 : index
    %c0_29 = arith.constant 0 : index
    %c0_30 = arith.constant 0 : index
    %29 = vector.load %arg2[%c3, %c0_29, %c0_30] : memref<9x128x128xbf16, #tpu.memory_space<vmem>>, vector<1x128x128xbf16>
    %30 = vector.shape_cast %29 : vector<1x128x128xbf16> to vector<128x128xbf16>
    %cst_31 = arith.constant dense<0.000000e+00> : vector<4x128xf32>
    %31 = tpu.matmul %28, %30, %cst_31 {dimension_numbers = #tpu.dot_dimension_numbers<[1], [0], [0], [1], [0, 0, 1, 1], [], []>} : vector<4x128xbf16>, vector<128x128xbf16>, vector<4x128xf32> -> vector<4x128xf32>
    %32 = arith.addf %24, %31 : vector<4x128xf32>
    %c0_32 = arith.constant 0 : index
    %c3_33 = arith.constant 3 : index
    %c0_34 = arith.constant 0 : index
    %c0_35 = arith.constant 0 : index
    %c0_36 = arith.constant 0 : index
    %33 = vector.load %arg1[%c0_32, %c3_33, %c0_34, %c0_35, %c0_36] : memref<1x4x3x3x128xf32, #tpu.memory_space<vmem>>, vector<1x1x2x2x128xf32>
    %34 = vector.shape_cast %33 : vector<1x1x2x2x128xf32> to vector<2x2x128xf32>
    %35 = arith.truncf %34 : vector<2x2x128xf32> to vector<2x2x128xbf16>
    %36 = vector.shape_cast %35 : vector<2x2x128xbf16> to vector<4x128xbf16>
    %c4 = arith.constant 4 : index
    %c0_37 = arith.constant 0 : index
    %c0_38 = arith.constant 0 : index
    %37 = vector.load %arg2[%c4, %c0_37, %c0_38] : memref<9x128x128xbf16, #tpu.memory_space<vmem>>, vector<1x128x128xbf16>
    %38 = vector.shape_cast %37 : vector<1x128x128xbf16> to vector<128x128xbf16>
    %cst_39 = arith.constant dense<0.000000e+00> : vector<4x128xf32>
    %39 = tpu.matmul %36, %38, %cst_39 {dimension_numbers = #tpu.dot_dimension_numbers<[1], [0], [0], [1], [0, 0, 1, 1], [], []>} : vector<4x128xbf16>, vector<128x128xbf16>, vector<4x128xf32> -> vector<4x128xf32>
    %40 = arith.addf %32, %39 : vector<4x128xf32>
    %c0_40 = arith.constant 0 : index
    %c2_41 = arith.constant 2 : index
    %c0_42 = arith.constant 0 : index
    %c1_43 = arith.constant 1 : index
    %c0_44 = arith.constant 0 : index
    %41 = vector.load %arg1[%c0_40, %c2_41, %c0_42, %c1_43, %c0_44] : memref<1x4x3x3x128xf32, #tpu.memory_space<vmem>>, vector<1x1x2x2x128xf32>
    %42 = vector.shape_cast %41 : vector<1x1x2x2x128xf32> to vector<2x2x128xf32>
    %43 = arith.truncf %42 : vector<2x2x128xf32> to vector<2x2x128xbf16>
    %44 = vector.shape_cast %43 : vector<2x2x128xbf16> to vector<4x128xbf16>
    %c5 = arith.constant 5 : index
    %c0_45 = arith.constant 0 : index
    %c0_46 = arith.constant 0 : index
    %45 = vector.load %arg2[%c5, %c0_45, %c0_46] : memref<9x128x128xbf16, #tpu.memory_space<vmem>>, vector<1x128x128xbf16>
    %46 = vector.shape_cast %45 : vector<1x128x128xbf16> to vector<128x128xbf16>
    %cst_47 = arith.constant dense<0.000000e+00> : vector<4x128xf32>
    %47 = tpu.matmul %44, %46, %cst_47 {dimension_numbers = #tpu.dot_dimension_numbers<[1], [0], [0], [1], [0, 0, 1, 1], [], []>} : vector<4x128xbf16>, vector<128x128xbf16>, vector<4x128xf32> -> vector<4x128xf32>
    %48 = arith.addf %40, %47 : vector<4x128xf32>
    %c0_48 = arith.constant 0 : index
    %c0_49 = arith.constant 0 : index
    %c1_50 = arith.constant 1 : index
    %c0_51 = arith.constant 0 : index
    %c0_52 = arith.constant 0 : index
    %49 = vector.load %arg1[%c0_48, %c0_49, %c1_50, %c0_51, %c0_52] : memref<1x4x3x3x128xf32, #tpu.memory_space<vmem>>, vector<1x1x2x2x128xf32>
    %50 = vector.shape_cast %49 : vector<1x1x2x2x128xf32> to vector<2x2x128xf32>
    %51 = arith.truncf %50 : vector<2x2x128xf32> to vector<2x2x128xbf16>
    %52 = vector.shape_cast %51 : vector<2x2x128xbf16> to vector<4x128xbf16>
    %c6 = arith.constant 6 : index
    %c0_53 = arith.constant 0 : index
    %c0_54 = arith.constant 0 : index
    %53 = vector.load %arg2[%c6, %c0_53, %c0_54] : memref<9x128x128xbf16, #tpu.memory_space<vmem>>, vector<1x128x128xbf16>
    %54 = vector.shape_cast %53 : vector<1x128x128xbf16> to vector<128x128xbf16>
    %cst_55 = arith.constant dense<0.000000e+00> : vector<4x128xf32>
    %55 = tpu.matmul %52, %54, %cst_55 {dimension_numbers = #tpu.dot_dimension_numbers<[1], [0], [0], [1], [0, 0, 1, 1], [], []>} : vector<4x128xbf16>, vector<128x128xbf16>, vector<4x128xf32> -> vector<4x128xf32>
    %56 = arith.addf %48, %55 : vector<4x128xf32>
    %c0_56 = arith.constant 0 : index
    %c1_57 = arith.constant 1 : index
    %c1_58 = arith.constant 1 : index
    %c0_59 = arith.constant 0 : index
    %c0_60 = arith.constant 0 : index
    %57 = vector.load %arg1[%c0_56, %c1_57, %c1_58, %c0_59, %c0_60] : memref<1x4x3x3x128xf32, #tpu.memory_space<vmem>>, vector<1x1x2x2x128xf32>
    %58 = vector.shape_cast %57 : vector<1x1x2x2x128xf32> to vector<2x2x128xf32>
    %59 = arith.truncf %58 : vector<2x2x128xf32> to vector<2x2x128xbf16>
    %60 = vector.shape_cast %59 : vector<2x2x128xbf16> to vector<4x128xbf16>
    %c7 = arith.constant 7 : index
    %c0_61 = arith.constant 0 : index
    %c0_62 = arith.constant 0 : index
    %61 = vector.load %arg2[%c7, %c0_61, %c0_62] : memref<9x128x128xbf16, #tpu.memory_space<vmem>>, vector<1x128x128xbf16>
    %62 = vector.shape_cast %61 : vector<1x128x128xbf16> to vector<128x128xbf16>
    %cst_63 = arith.constant dense<0.000000e+00> : vector<4x128xf32>
    %63 = tpu.matmul %60, %62, %cst_63 {dimension_numbers = #tpu.dot_dimension_numbers<[1], [0], [0], [1], [0, 0, 1, 1], [], []>} : vector<4x128xbf16>, vector<128x128xbf16>, vector<4x128xf32> -> vector<4x128xf32>
    %64 = arith.addf %56, %63 : vector<4x128xf32>
    %c0_64 = arith.constant 0 : index
    %c0_65 = arith.constant 0 : index
    %c1_66 = arith.constant 1 : index
    %c1_67 = arith.constant 1 : index
    %c0_68 = arith.constant 0 : index
    %65 = vector.load %arg1[%c0_64, %c0_65, %c1_66, %c1_67, %c0_68] : memref<1x4x3x3x128xf32, #tpu.memory_space<vmem>>, vector<1x1x2x2x128xf32>
    %66 = vector.shape_cast %65 : vector<1x1x2x2x128xf32> to vector<2x2x128xf32>
    %67 = arith.truncf %66 : vector<2x2x128xf32> to vector<2x2x128xbf16>
    %68 = vector.shape_cast %67 : vector<2x2x128xbf16> to vector<4x128xbf16>
    %c8 = arith.constant 8 : index
    %c0_69 = arith.constant 0 : index
    %c0_70 = arith.constant 0 : index
    %69 = vector.load %arg2[%c8, %c0_69, %c0_70] : memref<9x128x128xbf16, #tpu.memory_space<vmem>>, vector<1x128x128xbf16>
    %70 = vector.shape_cast %69 : vector<1x128x128xbf16> to vector<128x128xbf16>
    %cst_71 = arith.constant dense<0.000000e+00> : vector<4x128xf32>
    %71 = tpu.matmul %68, %70, %cst_71 {dimension_numbers = #tpu.dot_dimension_numbers<[1], [0], [0], [1], [0, 0, 1, 1], [], []>} : vector<4x128xbf16>, vector<128x128xbf16>, vector<4x128xf32> -> vector<4x128xf32>
    %72 = arith.addf %64, %71 : vector<4x128xf32>
    %c0_72 = arith.constant 0 : index
    %c0_73 = arith.constant 0 : index
    %73 = vector.load %arg3[%c0_72, %c0_73] : memref<1x128xf32, #tpu.memory_space<vmem>>, vector<1x128xf32>
    %74 = vector.broadcast %73 : vector<1x128xf32> to vector<4x128xf32>
    %75 = arith.addf %72, %74 : vector<4x128xf32>
    %cst_74 = arith.constant 0.000000e+00 : f32
    %76 = vector.broadcast %cst_74 : f32 to vector<4x128xf32>
    %77 = arith.maximumf %75, %76 : vector<4x128xf32>
    %c0_75 = arith.constant 0 : index
    %c0_76 = arith.constant 0 : index
    %c0_77 = arith.constant 0 : index
    %78 = vector.load %arg4[%c0_75, %c0_76, %c0_77] : memref<1x4x128xf32, #tpu.memory_space<vmem>>, vector<1x4x128xf32>
    %79 = vector.shape_cast %78 : vector<1x4x128xf32> to vector<4x128xf32>
    %80 = vector.shape_cast %77 : vector<4x128xf32> to vector<1x4x128xf32>
    tpu.vector_store %arg4[%c0_75, %c0_76, %c0_77], %80 {strides = array<i32>} : memref<1x4x128xf32, #tpu.memory_space<vmem>>, vector<1x4x128xf32>,
    return
  }
  func.func @transform_0(%arg0: i32) -> (i32, i32, i32, i32, i32) {
    %c0_i32 = arith.constant 0 : i32
    %c0_i32_0 = arith.constant 0 : i32
    %c0_i32_1 = arith.constant 0 : i32
    %c0_i32_2 = arith.constant 0 : i32
    %c0_i32_3 = arith.constant 0 : i32
    return %arg0, %c0_i32, %c0_i32_0, %c0_i32_1, %c0_i32_2 : i32, i32, i32, i32, i32
  }
  func.func @transform_1(%arg0: i32) -> (i32, i32, i32) {
    %c0_i32 = arith.constant 0 : i32
    %c0_i32_0 = arith.constant 0 : i32
    %c0_i32_1 = arith.constant 0 : i32
    %c0_i32_2 = arith.constant 0 : i32
    return %c0_i32, %c0_i32_0, %c0_i32_1 : i32, i32, i32
  }
  func.func @transform_2(%arg0: i32) -> (i32, i32) {
    %c0_i32 = arith.constant 0 : i32
    %c0_i32_0 = arith.constant 0 : i32
    %c0_i32_1 = arith.constant 0 : i32
    return %c0_i32, %c0_i32_0 : i32, i32
  }
  func.func @transform_3(%arg0: i32) -> (i32, i32, i32) {
    %c0_i32 = arith.constant 0 : i32
    %c0_i32_0 = arith.constant 0 : i32
    %c0_i32_1 = arith.constant 0 : i32
    return %arg0, %c0_i32, %c0_i32_0 : i32, i32, i32
  }
}

module attributes {stable_mosaic.version = 11 : i64} {
  func.func @_feat_loss_kernel(%arg0: i32, %arg1: memref<6x8x128xf32, #tpu.memory_space<vmem>>, %arg2: memref<8x128xf32, #tpu.memory_space<vmem>>, %arg3: memref<6x128x128xf32, #tpu.memory_space<vmem>>) attributes {dimension_semantics = [#tpu.dimension_semantics<arbitrary>], iteration_bounds = array<i64: 1>, scalar_prefetch = 0 : i64, scratch_operands = 1 : i64, tpu.core_type = #tpu.core_type<tc>, window_params = [{transform_indices = @transform_0, window_bounds = array<i64: 6, 8, 128>}, {pipeline_mode = #tpu.pipeline_mode<synchronous>, transform_indices = @transform_1, window_bounds = array<i64: 8, 128>}]} {
    %c0_i32 = arith.constant 0 : i32
    %0 = arith.cmpi eq, %arg0, %c0_i32 : i32
    %1 = arith.extui %0 : i1 to i32
    %c0_i32_0 = arith.constant 0 : i32
    %2 = arith.cmpi ne, %1, %c0_i32_0 : i32
    scf.if %2 {
      %cst_20 = arith.constant 0.000000e+00 : f32
      %43 = vector.broadcast %cst_20 : f32 to vector<8x128xf32>
      %c0_21 = arith.constant 0 : index
      %c0_22 = arith.constant 0 : index
      %44 = vector.load %arg2[%c0_21, %c0_22] : memref<8x128xf32, #tpu.memory_space<vmem>>, vector<8x128xf32>
      tpu.vector_store %arg2[%c0_21, %c0_22], %43 {strides = array<i32>} : memref<8x128xf32, #tpu.memory_space<vmem>>, vector<8x128xf32>,
      %cst_23 = arith.constant 0.000000e+00 : f32
      %45 = vector.broadcast %cst_23 : f32 to vector<6x128x128xf32>
      %c0_24 = arith.constant 0 : index
      %c0_25 = arith.constant 0 : index
      %c0_26 = arith.constant 0 : index
      %46 = vector.load %arg3[%c0_24, %c0_25, %c0_26] : memref<6x128x128xf32, #tpu.memory_space<vmem>>, vector<6x128x128xf32>
      tpu.vector_store %arg3[%c0_24, %c0_25, %c0_26], %45 {strides = array<i32>} : memref<6x128x128xf32, #tpu.memory_space<vmem>>, vector<6x128x128xf32>,
    } else {
    }
    %c0 = arith.constant 0 : index
    %c0_1 = arith.constant 0 : index
    %c0_2 = arith.constant 0 : index
    %3 = vector.load %arg1[%c0, %c0_1, %c0_2] : memref<6x8x128xf32, #tpu.memory_space<vmem>>, vector<6x8x128xf32>
    %4 = vector.extract_strided_slice %3 {offsets = [0, 0, 0], sizes = [2, 8, 128], strides = [1, 1, 1]} : vector<6x8x128xf32> to vector<2x8x128xf32>
    %5 = vector.extract_strided_slice %3 {offsets = [2, 0, 0], sizes = [2, 8, 128], strides = [1, 1, 1]} : vector<6x8x128xf32> to vector<2x8x128xf32>
    %6 = vector.extract_strided_slice %3 {offsets = [4, 0, 0], sizes = [2, 8, 128], strides = [1, 1, 1]} : vector<6x8x128xf32> to vector<2x8x128xf32>
    %7 = arith.subf %4, %6 : vector<2x8x128xf32>
    %8 = math.absf %7 : vector<2x8x128xf32>
    %9 = vector.shape_cast %8 : vector<2x8x128xf32> to vector<1x2x8x128xf32>
    %cst = arith.constant dense<0.000000e+00> : vector<1xf32>
    %10 = vector.multi_reduction <add>, %9, %cst [1, 2, 3] : vector<1x2x8x128xf32> to vector<1xf32>
    %11 = vector.shape_cast %10 : vector<1xf32> to vector<1x1x1x1xf32>
    %12 = vector.extract %11[0, 0, 0, 0] : f32 from vector<1x1x1x1xf32>
    %13 = arith.subf %5, %6 : vector<2x8x128xf32>
    %14 = math.absf %13 : vector<2x8x128xf32>
    %15 = vector.shape_cast %14 : vector<2x8x128xf32> to vector<1x2x8x128xf32>
    %cst_3 = arith.constant dense<0.000000e+00> : vector<1xf32>
    %16 = vector.multi_reduction <add>, %15, %cst_3 [1, 2, 3] : vector<1x2x8x128xf32> to vector<1xf32>
    %17 = vector.shape_cast %16 : vector<1xf32> to vector<1x1x1x1xf32>
    %18 = vector.extract %17[0, 0, 0, 0] : f32 from vector<1x1x1x1xf32>
    %19 = tpu.iota {dimensions = array<i32: 0>} : vector<8x128xi32>
    %c0_4 = arith.constant 0 : index
    %c0_5 = arith.constant 0 : index
    %20 = vector.load %arg2[%c0_4, %c0_5] : memref<8x128xf32, #tpu.memory_space<vmem>>, vector<8x128xf32>
    %c0_i32_6 = arith.constant 0 : i32
    %21 = vector.broadcast %c0_i32_6 : i32 to vector<8x128xi32>
    %22 = arith.cmpi eq, %19, %21 : vector<8x128xi32>
    %cst_7 = arith.constant 0.000000e+00 : f32
    %23 = vector.broadcast %12 : f32 to vector<8x128xf32>
    %24 = vector.broadcast %cst_7 : f32 to vector<8x128xf32>
    %25 = arith.select %22, %23, %24 : vector<8x128xi1>, vector<8x128xf32>
    %c1_i32 = arith.constant 1 : i32
    %26 = vector.broadcast %c1_i32 : i32 to vector<8x128xi32>
    %27 = arith.cmpi eq, %19, %26 : vector<8x128xi32>
    %cst_8 = arith.constant 0.000000e+00 : f32
    %28 = vector.broadcast %18 : f32 to vector<8x128xf32>
    %29 = vector.broadcast %cst_8 : f32 to vector<8x128xf32>
    %30 = arith.select %27, %28, %29 : vector<8x128xi1>, vector<8x128xf32>
    %31 = arith.addf %25, %30 : vector<8x128xf32>
    %32 = arith.addf %20, %31 : vector<8x128xf32>
    %c0_9 = arith.constant 0 : index
    %c0_10 = arith.constant 0 : index
    %33 = vector.load %arg2[%c0_9, %c0_10] : memref<8x128xf32, #tpu.memory_space<vmem>>, vector<8x128xf32>
    tpu.vector_store %arg2[%c0_9, %c0_10], %32 {strides = array<i32>} : memref<8x128xf32, #tpu.memory_space<vmem>>, vector<8x128xf32>,
    %34 = arith.truncf %3 : vector<6x8x128xf32> to vector<6x8x128xbf16>
    %35 = tpu.transpose %34, [0, 2, 1] : vector<6x8x128xbf16> -> vector<6x128x8xbf16>
    %c0_11 = arith.constant 0 : index
    %c0_12 = arith.constant 0 : index
    %c0_13 = arith.constant 0 : index
    %36 = vector.load %arg3[%c0_11, %c0_12, %c0_13] : memref<6x128x128xf32, #tpu.memory_space<vmem>>, vector<6x128x128xf32>
    "tpu.trace_start"() <{level = 10 : i32, message = "bcx,bxd->bcd"}> : () -> ()
    %cst_14 = arith.constant dense<0.000000e+00> : vector<6x128x128xf32>
    %37 = tpu.matmul %35, %34, %cst_14 {dimension_numbers = #tpu.dot_dimension_numbers<[2], [1], [1], [2], [0, 0, 0, 1, 1, 2], [0], [0]>} : vector<6x128x8xbf16>, vector<6x8x128xbf16>, vector<6x128x128xf32> -> vector<6x128x128xf32>
    "tpu.trace_stop"() : () -> ()
    %38 = arith.addf %36, %37 : vector<6x128x128xf32>
    %c0_15 = arith.constant 0 : index
    %c0_16 = arith.constant 0 : index
    %c0_17 = arith.constant 0 : index
    %39 = vector.load %arg3[%c0_15, %c0_16, %c0_17] : memref<6x128x128xf32, #tpu.memory_space<vmem>>, vector<6x128x128xf32>
    tpu.vector_store %arg3[%c0_15, %c0_16, %c0_17], %38 {strides = array<i32>} : memref<6x128x128xf32, #tpu.memory_space<vmem>>, vector<6x128x128xf32>,
    %c0_i32_18 = arith.constant 0 : i32
    %40 = arith.cmpi eq, %arg0, %c0_i32_18 : i32
    %41 = arith.extui %40 : i1 to i32
    %c0_i32_19 = arith.constant 0 : i32
    %42 = arith.cmpi ne, %41, %c0_i32_19 : i32
    scf.if %42 {
      %c0_20 = arith.constant 0 : index
      %c0_21 = arith.constant 0 : index
      %c0_22 = arith.constant 0 : index
      %43 = vector.load %arg3[%c0_20, %c0_21, %c0_22] : memref<6x128x128xf32, #tpu.memory_space<vmem>>, vector<6x128x128xf32>
      %44 = vector.extract_strided_slice %43 {offsets = [0, 0, 0], sizes = [2, 128, 128], strides = [1, 1, 1]} : vector<6x128x128xf32> to vector<2x128x128xf32>
      %45 = vector.extract_strided_slice %43 {offsets = [4, 0, 0], sizes = [2, 128, 128], strides = [1, 1, 1]} : vector<6x128x128xf32> to vector<2x128x128xf32>
      %46 = arith.subf %44, %45 : vector<2x128x128xf32>
      %47 = math.absf %46 : vector<2x128x128xf32>
      %48 = vector.shape_cast %47 : vector<2x128x128xf32> to vector<1x2x128x128xf32>
      %cst_23 = arith.constant dense<0.000000e+00> : vector<1xf32>
      %49 = vector.multi_reduction <add>, %48, %cst_23 [1, 2, 3] : vector<1x2x128x128xf32> to vector<1xf32>
      %50 = vector.shape_cast %49 : vector<1xf32> to vector<1x1x1x1xf32>
      %51 = vector.extract %50[0, 0, 0, 0] : f32 from vector<1x1x1x1xf32>
      %52 = vector.extract_strided_slice %43 {offsets = [2, 0, 0], sizes = [2, 128, 128], strides = [1, 1, 1]} : vector<6x128x128xf32> to vector<2x128x128xf32>
      %53 = vector.extract_strided_slice %43 {offsets = [4, 0, 0], sizes = [2, 128, 128], strides = [1, 1, 1]} : vector<6x128x128xf32> to vector<2x128x128xf32>
      %54 = arith.subf %52, %53 : vector<2x128x128xf32>
      %55 = math.absf %54 : vector<2x128x128xf32>
      %56 = vector.shape_cast %55 : vector<2x128x128xf32> to vector<1x2x128x128xf32>
      %cst_24 = arith.constant dense<0.000000e+00> : vector<1xf32>
      %57 = vector.multi_reduction <add>, %56, %cst_24 [1, 2, 3] : vector<1x2x128x128xf32> to vector<1xf32>
      %58 = vector.shape_cast %57 : vector<1xf32> to vector<1x1x1x1xf32>
      %59 = vector.extract %58[0, 0, 0, 0] : f32 from vector<1x1x1x1xf32>
      %c0_25 = arith.constant 0 : index
      %c0_26 = arith.constant 0 : index
      %60 = vector.load %arg2[%c0_25, %c0_26] : memref<8x128xf32, #tpu.memory_space<vmem>>, vector<8x128xf32>
      %c2_i32 = arith.constant 2 : i32
      %61 = vector.broadcast %c2_i32 : i32 to vector<8x128xi32>
      %62 = arith.cmpi eq, %19, %61 : vector<8x128xi32>
      %cst_27 = arith.constant 0.000000e+00 : f32
      %63 = vector.broadcast %51 : f32 to vector<8x128xf32>
      %64 = vector.broadcast %cst_27 : f32 to vector<8x128xf32>
      %65 = arith.select %62, %63, %64 : vector<8x128xi1>, vector<8x128xf32>
      %c3_i32 = arith.constant 3 : i32
      %66 = vector.broadcast %c3_i32 : i32 to vector<8x128xi32>
      %67 = arith.cmpi eq, %19, %66 : vector<8x128xi32>
      %cst_28 = arith.constant 0.000000e+00 : f32
      %68 = vector.broadcast %59 : f32 to vector<8x128xf32>
      %69 = vector.broadcast %cst_28 : f32 to vector<8x128xf32>
      %70 = arith.select %67, %68, %69 : vector<8x128xi1>, vector<8x128xf32>
      %71 = arith.addf %65, %70 : vector<8x128xf32>
      %72 = arith.addf %60, %71 : vector<8x128xf32>
      %c0_29 = arith.constant 0 : index
      %c0_30 = arith.constant 0 : index
      %73 = vector.load %arg2[%c0_29, %c0_30] : memref<8x128xf32, #tpu.memory_space<vmem>>, vector<8x128xf32>
      tpu.vector_store %arg2[%c0_29, %c0_30], %72 {strides = array<i32>} : memref<8x128xf32, #tpu.memory_space<vmem>>, vector<8x128xf32>,
    } else {
    }
    return
  }
  func.func @transform_0(%arg0: i32) -> (i32, i32, i32) {
    %c0_i32 = arith.constant 0 : i32
    %c0_i32_0 = arith.constant 0 : i32
    %c0_i32_1 = arith.constant 0 : i32
    return %c0_i32, %arg0, %c0_i32_0 : i32, i32, i32
  }
  func.func @transform_1(%arg0: i32) -> (i32, i32) {
    %c0_i32 = arith.constant 0 : i32
    %c0_i32_0 = arith.constant 0 : i32
    %c0_i32_1 = arith.constant 0 : i32
    return %c0_i32, %c0_i32_0 : i32, i32
  }
}

</mosaic_0001>

<bundles_post_ra>
// kernel: inpainting_loss.7
= control target key start
LH: loop header
LB: loop body
LE: loop exit
PB: predicated region body
PF: predicated region fallthrough
CT: control target
= control target key end

     0   :  { %v246_v5 = vmov 0.0   ;;  %s247_s7 = smov 112   ;;  %s248_s9 = smov 127   ;;  %vm56_vm4 = vcmask 1045504   ;;  %v103_v44 = vlaneseq  ;;  %s346_s0 = inlined_call_operand.vmem [shape: f32[6,256], index: 0, kind: input, shape index: {}]   ;;  %s347_s1 = inlined_call_operand.vmem [shape: f32[6,256], index: 1, kind: input, shape index: {}]   ;;  %s348_s3 = inlined_call_operand.vmem [shape: f32[3,6,256], index: 3, kind: output, shape index: {0}]   ;;  %s349_s2 = inlined_call_operand.vmem [shape: f32[6,256], index: 2, kind: input, shape index: {}]   ;;  %s350_s4 = inlined_call_operand.vmem [shape: f32[1,8,128], index: 4, kind: output, shape index: {1}]  }
   0x1   :  { %v16_v0 = vld [vmem:[%s346_s0] sm:$0x3f]  ;;  %v17_v2 = vld [vmem:[%s346_s0 + $0x8] sm:$0x3f] }
   0x2   :  { %v18_v1 = vld [vmem:[%s347_s1] sm:$0x3f]  ;;  %vm22_vm0 = vcmp.ne.f32.partialorder %v16_v0, 0.0  ;;  %v19_v3 = vld [vmem:[%s347_s1 + $0x8] sm:$0x3f]  ;;  %vm23_vm1 = vcmp.ne.f32.partialorder %v17_v2, 0.0 }
   0x3   :  { %42 = vst [vmem:[%s348_s3] sm:$0x3f] %v18_v1  ;;  %v20_v4 = vld [vmem:[%s349_s2] sm:$0x3f]  ;;  %v222_v6 = vsel %vm22_vm0, 1.0, %v246_v5  ;;  %v223_v7 = vsel %vm23_vm1, 1.0, %v246_v5  ;;  %v69_v21 = vsub.f32 %v18_v1, %v16_v0  ;;  %v70_v22 = vsub.f32 %v19_v3, %v17_v2 }
   0x4   :  { %43 = vst [vmem:[%s348_s3 + $0x8] sm:$0x3f] %v19_v3  ;;  %v21_v8 = vld [vmem:[%s349_s2 + $0x8] sm:$0x3f]  ;;  %228 = vst [vmem:[%s348_s3 + $0x20] sm:$0x3f] %v20_v4  ;;  %v34_v9 = vmul.f32 %v222_v6, %v16_v0  ;;  %v35_v11 = vmul.f32 %v223_v7, %v17_v2  ;;  %v50_v17 = vsub.f32 %v18_v1, %v20_v4 }
   0x5   :  { %v36_v10 = vsub.f32 1.0, %v222_v6  ;;  %v37_v12 = vsub.f32 1.0, %v223_v7  ;;  %229 = vst [vmem:[%s348_s3 + $0x28] sm:$0x3f] %v21_v8  ;;  %v51_v18 = vsub.f32 %v19_v3, %v21_v8  ;;  %vm28_vm2 = vcmp.ne.f32.partialorder %v20_v4, 0.0 }
   0x6   :  { %vm29_vm3 = vcmp.ne.f32.partialorder %v21_v8, 0.0  ;;  %v52_v19 = vmul.f32 %v50_v17, %v50_v17  ;;  %v224_v23 = vsel %vm28_vm2, 1.0, %v246_v5  ;;  %v87_v27 = vsub.f32 %v16_v0, %v20_v4 }
   0x7   :  { %v38_v13 = vmul.f32 %v36_v10, %v18_v1  ;;  %v39_v14 = vmul.f32 %v37_v12, %v19_v3  ;;  %v53_v20 = vmul.f32 %v51_v18, %v51_v18  ;;  %v225_v24 = vsel %vm29_vm3, 1.0, %v246_v5 }
   0x8   :  { %v54_v25 = vmul.f32 %v224_v23, %v52_v19  ;;  %v88_v28 = vsub.f32 %v17_v2, %v21_v8  ;;  %v71_v29 = vmul.f32 %v69_v21, %v69_v21  ;;  %v72_v30 = vmul.f32 %v70_v22, %v70_v22 }
   0x9   :  { %v306_v15 = vadd.f32 %v38_v13, %v34_v9  ;;  %v308_v16 = vadd.f32 %v39_v14, %v35_v11  ;;  %v55_v26 = vmul.f32 %v225_v24, %v53_v20  ;;  %v89_v33 = vmul.f32 %v87_v27, %v87_v27 }
   0xa   :  { %v57_v31 = vsel %vm56_vm4, %v54_v25, 0.0  ;;  %v90_v34 = vmul.f32 %v88_v28, %v88_v28  ;;  %v73_v35 = vmul.f32 %v222_v6, %v71_v29  ;;  %v74_v36 = vmul.f32 %v223_v7, %v72_v30 }
   0xb   :  { %151 = vrot.lane.b32.xlu1 %v306_v15, %s247_s7  ;;  %226 = vst [vmem:[%s348_s3 + $0x10] sm:$0x3f] %v306_v15  ;;  %142 = vrot.lane.b32.xlu0 %v306_v15, %s248_s9  ;;  %227 = vst [vmem:[%s348_s3 + $0x18] sm:$0x3f] %v308_v16  ;;  %v58_v32 = vsel %vm56_vm4, %v55_v26, 0.0  ;;  %v91_v38 = vsel %vm56_vm4, %v89_v33, 0.0 }
   0xc   :  { %v59_v37 = vadd.f32 %v58_v32, %v57_v31  ;;  %v92_v39 = vsel %vm56_vm4, %v90_v34, 0.0  ;;  %v75_v40 = vsel %vm56_vm4, %v73_v35, 0.0  ;;  %v76_v41 = vsel %vm56_vm4, %v74_v36, 0.0 }
   0xd   :  { %v93_v42 = vadd.f32 %v92_v39, %v91_v38  ;;  %v77_v43 = vadd.f32 %v76_v41, %v75_v40  ;;  %v104_v45 = vand.u32 127, %v103_v44 }
   0xf   :  { %153 = vrot.lane.b32.xlu1 %v308_v16, %s247_s7  ;;  %144 = vrot.lane.b32.xlu0 %v308_v16, %s248_s9  ;;  %v105_v46 = vadd.s32 128, %v104_v45  ;;  %v110_v49 = vand.u32 15, %v104_v45  ;;  %vm155_vm5 = vcmp.lt.s32.totalorder %v104_v45, 112  ;;  %vm146_vm6 = vcmp.lt.s32.totalorder %v104_v45, 127 }
  0x11   :  { %v117_v50 = vand.u32 15, %v105_v46  ;;  %vm137_vm7 = vcmp.lt.s32.totalorder %v105_v46, 240  ;;  %vm130_vm8 = vcmp.ne.s32.totalorder %v110_v49, 15  ;;  %v193_v49 = vshrl.u32 %v103_v44, 7 }
  0x12   :  { %v232_v61 = vsel %vm137_vm7, 1.0, %v246_v5  ;;  %v230_v62 = vsel %vm130_vm8, 1.0, %v246_v5 }
  0x13   :  { %vm131_vm9 = vcmp.ne.s32.totalorder %v117_v50, 15  ;;  %vm194_vm10 = vcmp.eq.s32.totalorder %v193_v49, 0  ;;  %vm197_vm11 = vcmp.eq.s32.totalorder %v193_v49, 1  ;;  %vm201_vm12 = vcmp.eq.s32.totalorder %v193_v49, 2 }
  0x14   :  { %v231_v63 = vsel %vm131_vm9, 1.0, %v246_v5  ;;  %vm205_vm13 = vcmp.eq.s32.totalorder %v193_v49, 3  ;;  %vm209_vm14 = vcmp.eq.s32.totalorder %v193_v49, 4 }
  0x2e   :  { %60 = vadd.xlane.f32.xlu0 %v59_v37 }
  0x32   :  { %94 = vadd.xlane.f32.xlu0 %v93_v42 }
  0x33   :  { %78 = vadd.xlane.f32.xlu1 %v77_v43 }
  0x7d   :  { %v152_v47 = vpop.permute.xlu1 %151  ;;  %v143_v48 = vpop.permute.xlu0 %142 }
  0x81   :  { %v154_v51 = vpop.permute.xlu1 %153  ;;  %v145_v52 = vpop.permute.xlu0 %144 }
  0x82   :  { %v156_v53 = vsel %vm155_vm5, %v152_v47, %v154_v51  ;;  %v157_v54 = vsel %vm155_vm5, %v154_v51, %v152_v47  ;;  %v147_v55 = vsel %vm146_vm6, %v143_v48, %v145_v52  ;;  %v148_v56 = vsel %vm146_vm6, %v145_v52, %v143_v48 }
  0x83   :  { %v158_v57 = vsub.f32 %v306_v15, %v156_v53  ;;  %v159_v58 = vsub.f32 %v308_v16, %v157_v54  ;;  %v149_v59 = vsub.f32 %v306_v15, %v147_v55  ;;  %v150_v60 = vsub.f32 %v308_v16, %v148_v56 }
  0x85   :  { %v176_v0 = vand.u32 2147483647, %v158_v57  ;;  %v177_v1 = vand.u32 2147483647, %v159_v58  ;;  %v160_v2 = vand.u32 2147483647, %v149_v59 }
  0x86   :  { %v161_v3 = vand.u32 2147483647, %v150_v60 }
  0x87   :  { %v179_v4 = vmul.f32 %v232_v61, %v177_v1  ;;  %v162_v6 = vmul.f32 %v230_v62, %v160_v2  ;;  %v180_v8 = vsel %vm56_vm4, %v176_v0, 0.0 }
  0x88   :  { %v163_v7 = vmul.f32 %v231_v63, %v161_v3 }
  0x89   :  { %v181_v9 = vsel %vm56_vm4, %v179_v4, 0.0  ;;  %v164_v10 = vsel %vm56_vm4, %v162_v6, 0.0 }
  0x8a   :  { %v182_v11 = vadd.f32 %v181_v9, %v180_v8  ;;  %v165_v12 = vsel %vm56_vm4, %v163_v7, 0.0 }
  0x8b   :  { %v166_v13 = vadd.f32 %v165_v12, %v164_v10 }
  0x8c   :  { %183 = vadd.xlane.f32.xlu1 %v182_v11 }
  0x8d   :  { %167 = vadd.xlane.f32.xlu0 %v166_v13 }
  0xbb   :  { %v61_v5 = vpop.xlane.xlu0 %60 }
  0xbc   :  { %v62_v14 = vrot.slane %v61_v5, 4 }
  0xbe   :  { %v63_v15 = vadd.f32 %v62_v14, %v61_v5 }
  0xbf   :  { %v95_v16 = vpop.xlane.xlu0 %94 }
  0xc0   :  { %v79_v17 = vpop.xlane.xlu1 %78  ;;  %v64_v18 = vrot.slane %v63_v15, 2  ;;  %v96_v19 = vrot.slane %v95_v16, 4 }
  0xc1   :  { %v80_v20 = vrot.slane %v79_v17, 4 }
  0xc2   :  { %v97_v21 = vadd.f32 %v96_v19, %v95_v16  ;;  %v65_v22 = vadd.f32 %v64_v18, %v63_v15 }
  0xc3   :  { %v81_v23 = vadd.f32 %v80_v20, %v79_v17 }
  0xc4   :  { %v98_v24 = vrot.slane %v97_v21, 2  ;;  %v66_v25 = vrot.slane %v65_v22, 1 }
  0xc5   :  { %v82_v26 = vrot.slane %v81_v23, 2 }
  0xc6   :  { %v67_v27 = vadd.f32 %v66_v25, %v65_v22  ;;  %v99_v28 = vadd.f32 %v98_v24, %v97_v21 }
  0xc7   :  { %v83_v29 = vadd.f32 %v82_v26, %v81_v23 }
  0xc8   :  { %233 = vpush %v67_v27  ;;  %v100_v30 = vrot.slane %v99_v28, 1 }
  0xc9   :  { %v84_v31 = vrot.slane %v83_v29, 1 }
  0xca   :  { %v101_v32 = vadd.f32 %v100_v30, %v99_v28 }
  0xcb   :  { %v85_v33 = vadd.f32 %v84_v31, %v83_v29 }
  0xcd   :  { %235 = vpush %v85_v33 }
  0xce   :  { %237 = vpush %v101_v32 }
  0xf9   :  { %s234_s3 = spop %233 }
  0xfa   :  { %v195_v50 = vstv %s234_s3 }
  0xfb   :  { %v196_v52 = vsel %vm194_vm10, %v195_v50, 0.0 }
  0xfe   :  { %s236_s12 = spop %235 }
  0xff   :  { %v198_v51 = vstv %s236_s12  ;;  %s238_s13 = spop %237 }
 0x100   :  { %v199_v53 = vsel %vm197_vm11, %v198_v51, 0.0  ;;  %v210_v58 = vstv %s238_s13 }
 0x101   :  { %v200_v54 = vadd.f32 %v199_v53, %v196_v52  ;;  %v211_v61 = vsel %vm209_vm14, %v210_v58, 0.0 }
 0x119   :  { %v184_v34 = vpop.xlane.xlu1 %183 }
 0x11a   :  { %v185_v35 = vrot.slane %v184_v34, 4  ;;  %v168_v36 = vpop.xlane.xlu0 %167 }
 0x11b   :  { %v169_v37 = vrot.slane %v168_v36, 4 }
 0x11c   :  { %v186_v38 = vadd.f32 %v185_v35, %v184_v34 }
 0x11d   :  { %v170_v39 = vadd.f32 %v169_v37, %v168_v36 }
 0x11e   :  { %v187_v40 = vrot.slane %v186_v38, 2 }
 0x11f   :  { %v171_v41 = vrot.slane %v170_v39, 2 }
 0x120   :  { %v188_v42 = vadd.f32 %v187_v40, %v186_v38 }
 0x121   :  { %v172_v43 = vadd.f32 %v171_v41, %v170_v39 }
 0x122   :  { %v189_v45 = vrot.slane %v188_v42, 1 }
 0x123   :  { %v173_v46 = vrot.slane %v172_v43, 1 }
 0x124   :  { %v190_v47 = vadd.f32 %v189_v45, %v188_v42 }
 0x125   :  { %v174_v48 = vadd.f32 %v173_v46, %v172_v43 }
 0x127   :  { %239 = vpush %v174_v48 }
 0x128   :  { %241 = vpush %v190_v47 }
 0x158   :  { %s240_s14 = spop %239 }
 0x159   :  { %v202_v55 = vstv %s240_s14  ;;  %s242_s15 = spop %241 }
 0x15a   :  { %v203_v56 = vsel %vm201_vm12, %v202_v55, 0.0  ;;  %v206_v57 = vstv %s242_s15 }
 0x15b   :  { %v204_v59 = vadd.f32 %v203_v56, %v200_v54  ;;  %v207_v44 = vsel %vm205_vm13, %v206_v57, 0.0 }
 0x15d   :  { %v208_v60 = vadd.f32 %v207_v44, %v204_v59 }
 0x15f   :  { %v212_v62 = vadd.f32 %v211_v61, %v208_v60 }
 0x161   :  { %213 = vst [vmem:[%s350_s4] sm:$0xff] %v212_v62 }

// kernel: inpainting_loss.8
= control target key start
LH: loop header
LB: loop body
LE: loop exit
PB: predicated region body
PF: predicated region fallthrough
CT: control target
= control target key end

     0   :  { %s1809_s12 = smov 0   ;;  %s2008_s0 = inlined_call_operand.vmem [shape: f32[6,4,9,9,3], index: 0, kind: input, shape index: {}]   ;;  %s2009_s1 = inlined_call_operand.vmem [shape: bf16[9,3,128], index: 1, kind: input, shape index: {}]   ;;  %s2010_s2 = inlined_call_operand.vmem [shape: f32[1,128], index: 2, kind: input, shape index: {}]   ;;  %s2011_s3 = inlined_call_operand.vmem [shape: f32[6,64,128], index: 3, kind: output, shape index: {}]  }
   0x1 LB: > { %s1385_s13 = sadd.s32 4294967295, %s1786_s12   ;;  %p1389_p0 = scmp.ge.s32.totalorder %s1786_s12, 1  ;;  %s1786_s12 = sphi %s1809_s12, %s13_s12  }
   0x2   : > { %p137_p1 = scmp.lt.s32.totalorder %s1786_s12, 7 }
   0x4   : > { %p138_p2 = pnand %p1389_p0, %p137_p1 }
   0x5   : > { %v1401_v0 = vld [vmem:[%s2009_s1 + $0x2] sm:$0x3] (!%p138_p2)  ;;  %vm241_vm0 = vcmask (!%p138_p2), 1040384   ;;  %vm242_vm1 = vcmask (!%p138_p2), 1041408   ;;  %p161_p3 = scmp.lt.s32.totalorder (!%p138_p2), %s1385_s13, 5  ;;  %v1788_v1 = vmov (!%p138_p2), 65535  }
   0x6   : > { %141 = sbr.rel (%p138_p2) target bundleno = 313 (0x139), region = 32  ;;  %v243_v2 = vsel (!%p138_p2), %vm241_vm0, 4294967295, %v1788_v1  ;;  %v1452_v3 = vld [vmem:[%s2009_s1 + $0x8] sm:$0x3] (!%p138_p2)  ;;  %v188_v4 = vld [vmem:[%s2009_s1] sm:$0x3] (!%p138_p2) }
   0x7   : > { %v1826_v5 = vsel (!%p138_p2), %vm242_vm1, %v243_v2, 0  ;;  %v1469_v6 = vld [vmem:[%s2009_s1 + $0xa] sm:$0x3] (!%p138_p2)  ;;  %v1486_v11 = vld [vmem:[%s2009_s1 + $0xc] sm:$0x3] (!%p138_p2)  ;;  %vm228_vm2 = vcmask (!%p138_p2), 23552  }
   0x8   : > { %v246_v7 = vand.u32 (!%p138_p2), %v1401_v0, %v1826_v5  ;;  %v1835_v8 = vand.u32 (!%p138_p2), %v1452_v3, %v1826_v5  ;;  %v346_v9 = vand.u32 (!%p138_p2), %v1826_v5, %v188_v4  ;;  %v844_v10 = vand.u32 (!%p138_p2), %v1469_v6, %v1826_v5  ;;  %v1418_v12 = vld [vmem:[%s2009_s1 + $0x4] sm:$0x3] (!%p138_p2)  ;;  %v1503_v43 = vld [vmem:[%s2009_s1 + $0xe] sm:$0x3] (!%p138_p2)  ;;  %v1435_v51 = vld [vmem:[%s2009_s1 + $0x6] sm:$0x3] (!%p138_p2) }
   0x9   : > { %v971_v27 = vand.u32 (!%p138_p2), %v1486_v11, %v1826_v5  ;;  %v464_v31 = vand.u32 (!%p138_p2), %v1418_v12, %v1826_v5  ;;  %v1098_v50 = vand.u32 (!%p138_p2), %v1503_v43, %v1826_v5  ;;  %v591_v56 = vand.u32 (!%p138_p2), %v1435_v51, %v1826_v5  ;;  %v1520_v1 = vld [vmem:[%s2009_s1 + $0x10] sm:$0x3] (!%p138_p2) }
   0xa   : > { %1614 = vmatprep.subr.bf16.mxu1 (!%p138_p2), %v246_v7  ;;  %1654 = vmatprep.subr.bf16.mxu0 (!%p138_p2), %v1835_v8 }
   0xb   : > { %1615 = vmatpush3.bf16.msra.mxu1 (!%p138_p2), %v246_v7  ;;  %1655 = vmatpush3.bf16.msra.mxu0 (!%p138_p2), %v1835_v8 }
   0xc   : > { %1624 = vmatprep.subr.bf16.mxu1 (!%p138_p2), %v346_v9  ;;  %1664 = vmatprep.subr.bf16.mxu0 (!%p138_p2), %v844_v10 }
   0xd   : > { %s2013_s13 = smov (!%p161_p3, %s1385_s13), 5 }
   0xe   : > { %s1770_s22 = smul.u32 576, %s2013_s13  ;;  %s1532_s11 = sshll.u32 %s2013_s13, 6 }
   0xf   : > { %s1995_s16 = scalar_lea.vmem %s2011_s3, %s1532_s11 }
  0x10   : > { %s1845_s25 = scalar_lea.vmem %s2008_s0, %s1770_s22 }
  0x11   : > { %v1393_v13 = vld [vmem:[%s1845_s25 + $0x90] sm:$0xff]  ;;  %v1855_v14 = vld [vmem:[%s1845_s25 + $0xa0] sm:$0xff] }
  0x12   : > { %v1444_v15 = vld [vmem:[%s1845_s25 + $0x1b0] sm:$0xff]  ;;  %v1533_v16 = vpack.c.bf16 %v1855_v14, %v1393_v13  ;;  %v1445_v17 = vld [vmem:[%s1845_s25 + $0x1c0] sm:$0xff] }
  0x13   : > { %v1861_v18 = vld [vmem:[%s1845_s25 + $0xb0] sm:$0xff]  ;;  %v1864_v19 = vld [vmem:[%s1845_s25 + $0xc0] sm:$0xff]  ;;  %v1549_v20 = vpack.c.bf16 %v1445_v17, %v1444_v15 }
  0x14   : > { %v1534_v21 = vpack.c.bf16 %v1864_v19, %v1861_v18  ;;  %v1446_v22 = vld [vmem:[%s1845_s25 + $0x1d0] sm:$0xff]  ;;  %v1447_v23 = vld [vmem:[%s1845_s25 + $0x1e0] sm:$0xff]  ;;  %1616 = vmatprep.mubr.msk.bf16.mxu1 %vm228_vm2, %v1533_v16  ;;  %v1561_v17 = vpack.c.bf16 %v1861_v18, %v1855_v14 }
  0x15   : > { %v1871_v24 = vld [vmem:[%s1845_s25 + $0xd0] sm:$0xff]  ;;  %v1550_v25 = vpack.c.bf16 %v1447_v23, %v1446_v22  ;;  %v1875_v26 = vld [vmem:[%s1845_s25 + $0xe0] sm:$0xff]  ;;  %1656 = vmatprep.mubr.msk.bf16.mxu0 %vm228_vm2, %v1549_v20 }
  0x16   : > { %1617 = vmatmul.mubr.msk.bf16.vlgmr.msra.gmra.mrb[0].mxu1 %vm228_vm2, %v1534_v21  ;;  %v1535_v28 = vpack.c.bf16 %v1875_v26, %v1871_v24  ;;  %v1461_v29 = vld [vmem:[%s1845_s25 + $0x121] sm:$0xff]  ;;  %v1462_v30 = vld [vmem:[%s1845_s25 + $0x131] sm:$0xff] }
  0x17   : > { %1625 = vmatpush3.bf16.msra.mxu1 %v346_v9  ;;  %1657 = vmatmul.mubr.msk.bf16.vlgmr.msra.gmra.mrb[0].mxu0 %vm228_vm2, %v1550_v25  ;;  %v1887_v32 = vld [vmem:[%s1845_s25 + $0xf0] sm:$0xff]  ;;  %v1890_v33 = vld [vmem:[%s1845_s25 + $0x100] sm:$0xff]  ;;  %v1553_v34 = vpack.c.bf16 %v1462_v30, %v1461_v29  ;;  %v1562_v25 = vpack.c.bf16 %v1871_v24, %v1864_v19 }
  0x18   : > { %1665 = vmatpush3.bf16.msra.mxu0 %v844_v10  ;;  %1620 = vmatprep.mubr.msk.bf16.mxu1 %vm228_vm2, %v1535_v28  ;;  %v172_v35 = vld [vmem:[%s1845_s25] sm:$0xff]  ;;  %v173_v36 = vld [vmem:[%s1845_s25 + $0x10] sm:$0xff]  ;;  %v1536_v37 = vpack.c.bf16 %v1890_v33, %v1887_v32  ;;  %v1224_v10 = vand.u32 %v1520_v1, %v1826_v5 }
  0x19   : > { %1666 = vmatprep.mubr.msk.bf16.mxu0 %vm228_vm2, %v1553_v34  ;;  %1674 = vmatprep.subr.bf16.mxu0 %v971_v27  ;;  %v1537_v38 = vpack.c.bf16 %v173_v36, %v172_v35  ;;  %v1463_v39 = vld [vmem:[%s1845_s25 + $0x141] sm:$0xff]  ;;  %v1464_v40 = vld [vmem:[%s1845_s25 + $0x151] sm:$0xff] }
  0x1a   : > { %1634 = vmatprep.subr.bf16.mxu1 %v464_v31  ;;  %v1465_v41 = vld [vmem:[%s1845_s25 + $0x161] sm:$0xff]  ;;  %v1466_v42 = vld [vmem:[%s1845_s25 + $0x171] sm:$0xff]  ;;  %v1554_v44 = vpack.c.bf16 %v1464_v40, %v1463_v39 }
  0x1b   : > { %v174_v45 = vld [vmem:[%s1845_s25 + $0x20] sm:$0xff]  ;;  %v175_v46 = vld [vmem:[%s1845_s25 + $0x30] sm:$0xff]  ;;  %v1555_v47 = vpack.c.bf16 %v1466_v42, %v1465_v41 }
  0x1c   : > { %v176_v48 = vld [vmem:[%s1845_s25 + $0x40] sm:$0xff]  ;;  %v177_v49 = vld [vmem:[%s1845_s25 + $0x50] sm:$0xff]  ;;  %v1538_v52 = vpack.c.bf16 %v175_v46, %v174_v45  ;;  %v1557_v60 = vpack.c.bf16 %v174_v45, %v173_v36 }
  0x1d   : > { %v1539_v53 = vpack.c.bf16 %v177_v49, %v176_v48  ;;  %v1467_v54 = vld [vmem:[%s1845_s25 + $0x181] sm:$0xff]  ;;  %v1468_v55 = vld [vmem:[%s1845_s25 + $0x191] sm:$0xff]  ;;  %v1558_v2 = vpack.c.bf16 %v176_v48, %v175_v46 }
  0x1e   : > { %1621 = vmatmul.mubr.msk.bf16.gmra.mrb[4].mxu1 %vm228_vm2, %v1536_v37  ;;  %v1556_v57 = vpack.c.bf16 %v1468_v55, %v1467_v54  ;;  %v178_v58 = vld [vmem:[%s1845_s25 + $0x60] sm:$0xff]  ;;  %v179_v59 = vld [vmem:[%s1845_s25 + $0x70] sm:$0xff] }
  0x1f   : > { %1626 = vmatprep.mubr.msk.bf16.mxu1 %vm228_vm2, %v1537_v38  ;;  %v413_v61 = vld [vmem:[%s1845_s25 + $0x1] sm:$0xff]  ;;  %v1926_v62 = vld [vmem:[%s1845_s25 + $0x11] sm:$0xff]  ;;  %v1540_v63 = vpack.c.bf16 %v179_v59, %v178_v58  ;;  %v1559_v6 = vpack.c.bf16 %v178_v58, %v177_v49  ;;  %v1529_v49 = vld [vmem:[%s2010_s2] ss:$0 sm:$0xff] }
  0x20   : > { %v1541_v0 = vpack.c.bf16 %v1926_v62, %v413_v61  ;;  %v415_v3 = vld [vmem:[%s1845_s25 + $0x21] sm:$0xff]  ;;  %v416_v4 = vld [vmem:[%s1845_s25 + $0x31] sm:$0xff] }
  0x21   : > { %v417_v7 = vld [vmem:[%s1845_s25 + $0x41] sm:$0xff]  ;;  %v418_v9 = vld [vmem:[%s1845_s25 + $0x51] sm:$0xff]  ;;  %v1542_v11 = vpack.c.bf16 %v416_v4, %v415_v3  ;;  %v1565_v34 = vpack.c.bf16 %v415_v3, %v1926_v62 }
  0x22   : > { %v1543_v12 = vpack.c.bf16 %v418_v9, %v417_v7  ;;  %v1485_v13 = vld [vmem:[%s1845_s25 + $0x80] sm:$0xff]  ;;  %v420_v5 = vld [vmem:[%s1845_s25 + $0x71] sm:$0xff] }
  0x23   : > { %1667 = vmatmul.mubr.msk.bf16.vlgmr.msra.gmra.mrb[0].mxu0 %vm228_vm2, %v1554_v44  ;;  %v1560_v15 = vpack.c.bf16 %v1485_v13, %v179_v59  ;;  %v419_v16 = vld [vmem:[%s1845_s25 + $0x61] sm:$0xff]  ;;  %v1428_v21 = vld [vmem:[%s1845_s25 + $0x130] sm:$0xff] }
  0x24   : > { %1675 = vmatpush3.bf16.msra.mxu0 %v971_v27  ;;  %1670 = vmatprep.mubr.msk.bf16.mxu0 %vm228_vm2, %v1555_v47  ;;  %v1427_v20 = vld [vmem:[%s1845_s25 + $0x120] sm:$0xff]  ;;  %v1544_v22 = vpack.c.bf16 %v420_v5, %v419_v16  ;;  %v1430_v18 = vld [vmem:[%s1845_s25 + $0x150] sm:$0xff]  ;;  %v1563_v27 = vpack.c.bf16 %v1887_v32, %v1875_v26 }
  0x25   : > { %1684 = vmatprep.subr.bf16.mxu0 %v1098_v50  ;;  %v1545_v23 = vpack.c.bf16 %v1428_v21, %v1427_v20  ;;  %v1429_v14 = vld [vmem:[%s1845_s25 + $0x140] sm:$0xff]  ;;  %v1432_v29 = vld [vmem:[%s1845_s25 + $0x170] sm:$0xff] }
  0x26   : > { %1627 = vmatmul.mubr.msk.bf16.vlgmr.msra.gmra.mrb[0].mxu1 %vm228_vm2, %v1538_v52  ;;  %v1431_v28 = vld [vmem:[%s1845_s25 + $0x160] sm:$0xff]  ;;  %v1546_v30 = vpack.c.bf16 %v1430_v18, %v1429_v14  ;;  %v1502_v19 = vld [vmem:[%s1845_s25 + $0x110] sm:$0xff] }
  0x27   : > { %1635 = vmatpush3.bf16.msra.mxu1 %v464_v31  ;;  %1630 = vmatprep.mubr.msk.bf16.mxu1 %vm228_vm2, %v1539_v53  ;;  %v1547_v31 = vpack.c.bf16 %v1432_v29, %v1431_v28  ;;  %v1564_v24 = vpack.c.bf16 %v1502_v19, %v1890_v33  ;;  %v1433_v26 = vld [vmem:[%s1845_s25 + $0x180] sm:$0xff]  ;;  %v1434_v32 = vld [vmem:[%s1845_s25 + $0x190] sm:$0xff]  ;;  %v1567_v33 = vpack.c.bf16 %v419_v16, %v418_v9 }
  0x28   : > { %1644 = vmatprep.subr.bf16.mxu1 %v591_v56  ;;  %v1448_v35 = vld [vmem:[%s1845_s25 + $0x1f0] sm:$0xff]  ;;  %v1449_v36 = vld [vmem:[%s1845_s25 + $0x200] sm:$0xff]  ;;  %v1548_v37 = vpack.c.bf16 %v1434_v32, %v1433_v26 }
  0x29   : > { %v1551_v38 = vpack.c.bf16 %v1449_v36, %v1448_v35  ;;  %v1450_v39 = vld [vmem:[%s1845_s25 + $0x210] sm:$0xff]  ;;  %v1451_v40 = vld [vmem:[%s1845_s25 + $0x220] sm:$0xff] }
  0x2a   : > { %v1519_v41 = vld [vmem:[%s1845_s25 + $0x81] sm:$0xff]  ;;  %v1552_v42 = vpack.c.bf16 %v1451_v40, %v1450_v39 }
  0x2b   : > { %1671 = vmatmul.mubr.msk.bf16.gmra.mrb[4].mxu0 %vm228_vm2, %v1556_v57  ;;  %v1568_v43 = vpack.c.bf16 %v1519_v41, %v420_v5 }
  0x2c   : > { %1676 = vmatprep.mubr.msk.bf16.mxu0 %vm228_vm2, %v1557_v60 }
  0x2e   : > { %1631 = vmatmul.mubr.msk.bf16.gmra.mrb[4].mxu1 %vm228_vm2, %v1540_v63 }
  0x2f   : > { %1636 = vmatprep.mubr.msk.bf16.mxu1 %vm228_vm2, %v1541_v0 }
  0x33   : > { %1677 = vmatmul.mubr.msk.bf16.vlgmr.msra.gmra.mrb[0].mxu0 %vm228_vm2, %v1558_v2 }
  0x34   : > { %1685 = vmatpush3.bf16.msra.mxu0 %v1098_v50  ;;  %1680 = vmatprep.mubr.msk.bf16.mxu0 %vm228_vm2, %v1559_v6 }
  0x35   : > { %1694 = vmatprep.subr.bf16.mxu0 %v1224_v10 }
  0x36   : > { %1637 = vmatmul.mubr.msk.bf16.vlgmr.msra.gmra.mrb[0].mxu1 %vm228_vm2, %v1542_v11 }
  0x37   : > { %1645 = vmatpush3.bf16.msra.mxu1 %v591_v56  ;;  %1640 = vmatprep.mubr.msk.bf16.mxu1 %vm228_vm2, %v1543_v12 }
  0x38   : > { %1704 = vmatprep.subr.bf16.mxu1 %v1835_v8 }
  0x3b   : > { %1681 = vmatmul.mubr.msk.bf16.gmra.mrb[4].mxu0 %vm228_vm2, %v1560_v15 }
  0x3c   : > { %1686 = vmatprep.mubr.msk.bf16.mxu0 %vm228_vm2, %v1561_v17 }
  0x3e   : > { %1641 = vmatmul.mubr.msk.bf16.gmra.mrb[4].mxu1 %vm228_vm2, %v1544_v22 }
  0x3f   : > { %1646 = vmatprep.mubr.msk.bf16.mxu1 %vm228_vm2, %v1545_v23 }
  0x43   : > { %1687 = vmatmul.mubr.msk.bf16.vlgmr.msra.gmra.mrb[0].mxu0 %vm228_vm2, %v1562_v25 }
  0x44   : > { %1695 = vmatpush3.bf16.msra.mxu0 %v1224_v10  ;;  %1690 = vmatprep.mubr.msk.bf16.mxu0 %vm228_vm2, %v1563_v27 }
  0x46   : > { %1647 = vmatmul.mubr.msk.bf16.vlgmr.msra.gmra.mrb[0].mxu1 %vm228_vm2, %v1546_v30 }
  0x47   : > { %1705 = vmatpush3.bf16.msra.mxu1 %v1835_v8  ;;  %1650 = vmatprep.mubr.msk.bf16.mxu1 %vm228_vm2, %v1547_v31  ;;  %v1566_v8 = vpack.c.bf16 %v417_v7, %v416_v4 }
  0x4b   : > { %1691 = vmatmul.mubr.msk.bf16.gmra.mrb[4].mxu0 %vm228_vm2, %v1564_v24 }
  0x4c   : > { %1696 = vmatprep.mubr.msk.bf16.mxu0 %vm228_vm2, %v1565_v34 }
  0x4e   : > { %1651 = vmatmul.mubr.msk.bf16.gmra.mrb[4].mxu1 %vm228_vm2, %v1548_v37 }
  0x4f   : > { %1660 = vmatprep.mubr.msk.bf16.mxu1 %vm228_vm2, %v1551_v38 }
  0x53   : > { %1697 = vmatmul.mubr.msk.bf16.vlgmr.msra.gmra.mrb[0].mxu0 %vm228_vm2, %v1566_v8 }
  0x54   : > { %1700 = vmatprep.mubr.msk.bf16.mxu0 %vm228_vm2, %v1567_v33 }
  0x5a   : > { %1661 = vmatmul.mubr.msk.bf16.vlgmr.msra.gmra.mrb[4].mxu1 %vm228_vm2, %v1552_v42 }
  0x5b   : > { %1701 = vmatmul.mubr.msk.bf16.gmra.mrb[4].mxu0 %vm228_vm2, %v1568_v43 }
 0x119   : > { %v1648_v44 = vpop.f32.mrb[0].mxu1 }
 0x11a   : > { %v627_v45 = vpop.f32.mrb[1].mxu1 }
 0x11b   : > { %v1649_v46 = vpop.f32.mrb[2].mxu1 }
 0x11c   : > { %v630_v47 = vpop.f32.mrb[3].mxu1 }
 0x126   : > { %v1698_v48 = vpop.f32.mrb[0].mxu0 }
 0x127   : > { %v1706_v50 = vadd.f32 %v1698_v48, %v1648_v44  ;;  %v1260_v51 = vpop.f32.mrb[1].mxu0 }
 0x128   : > { %v1707_v52 = vadd.f32 %v1260_v51, %v627_v45  ;;  %v1699_v53 = vpop.f32.mrb[2].mxu0 }
 0x129   : > { %v1308_v54 = vadd.f32 %v1706_v50, %v1529_v49  ;;  %v1708_v55 = vadd.f32 %v1699_v53, %v1649_v46  ;;  %v1263_v56 = vpop.f32.mrb[3].mxu0 }
 0x12a   : > { %v1306_v57 = vadd.f32 %v1707_v52, %v1529_v49  ;;  %v1709_v58 = vadd.f32 %v1263_v56, %v630_v47 }
 0x12b   : > { %v1316_v59 = vmax.f32 %v1308_v54, 0.0  ;;  %v1309_v60 = vadd.f32 %v1708_v55, %v1529_v49 }
 0x12c   : > { %v1314_v61 = vmax.f32 %v1306_v57, 0.0  ;;  %v1307_v62 = vadd.f32 %v1709_v58, %v1529_v49 }
 0x12d   : > { %1324 = vst [vmem:[%s1995_s16 + $0x10] sm:$0xff] %v1316_v59  ;;  %v1317_v63 = vmax.f32 %v1309_v60, 0.0  ;;  %v1662_v0 = vpop.f32.mrb[4].mxu1 }
 0x12e   : > { %1322 = vst [vmem:[%s1995_s16] sm:$0xff] %v1314_v61  ;;  %v1315_v1 = vmax.f32 %v1307_v62, 0.0  ;;  %v1702_v2 = vpop.f32.mrb[4].mxu0  ;;  %v770_v3 = vpop.f32.mrb[5].mxu1 }
 0x12f   : > { %1325 = vst [vmem:[%s1995_s16 + $0x18] sm:$0xff] %v1317_v63  ;;  %v1710_v4 = vadd.f32 %v1702_v2, %v1662_v0  ;;  %v1276_v6 = vpop.f32.mrb[5].mxu0  ;;  %v1663_v7 = vpop.f32.mrb[6].mxu1 }
 0x130   : > { %1323 = vst [vmem:[%s1995_s16 + $0x8] sm:$0xff] %v1315_v1  ;;  %v1711_v9 = vadd.f32 %v1276_v6, %v770_v3  ;;  %v1703_v10 = vpop.f32.mrb[6].mxu0  ;;  %v773_v11 = vpop.f32.mrb[7].mxu1 }
 0x131   : > { %v1312_v12 = vadd.f32 %v1710_v4, %v1529_v49  ;;  %v1712_v13 = vadd.f32 %v1703_v10, %v1663_v7  ;;  %v1279_v15 = vpop.f32.mrb[7].mxu0 }
 0x132   : > { %v1310_v16 = vadd.f32 %v1711_v9, %v1529_v49  ;;  %v1713_v5 = vadd.f32 %v1279_v15, %v773_v11 }
 0x133   : > { %v1320_v17 = vmax.f32 %v1312_v12, 0.0  ;;  %v1313_v20 = vadd.f32 %v1712_v13, %v1529_v49 }
 0x134   : > { %v1318_v21 = vmax.f32 %v1310_v16, 0.0  ;;  %v1311_v22 = vadd.f32 %v1713_v5, %v1529_v49 }
 0x135   : > { %1328 = vst [vmem:[%s1995_s16 + $0x30] sm:$0xff] %v1320_v17  ;;  %v1321_v23 = vmax.f32 %v1313_v20, 0.0 }
 0x136   : > { %1326 = vst [vmem:[%s1995_s16 + $0x20] sm:$0xff] %v1318_v21  ;;  %v1319_v25 = vmax.f32 %v1311_v22, 0.0 }
 0x137   : > { %1329 = vst [vmem:[%s1995_s16 + $0x38] sm:$0xff] %v1321_v23 }
 0x138   : > { %1327 = vst [vmem:[%s1995_s16 + $0x28] sm:$0xff] %v1319_v25 }
 0x139 PF: > { %s13_s12 = sadd.s32 1, %s1786_s12  }
 0x13a   : > { %p10_p4 = scmp.ge.s32.totalorder %s13_s12, 8  }
 0x13c   :  { %12 = sbr.rel (!%p10_p4) target bundleno = 1 (0x1), region = 75 }

// kernel: inpainting_loss.11
= control target key start
LH: loop header
LB: loop body
LE: loop exit
PB: predicated region body
PF: predicated region fallthrough
CT: control target
= control target key end

     0   :  { %vm498_vm0 = vcmask 523264   ;;  %s2790_s0 = inlined_call_operand.vmem [shape: f32[6,64,128], index: 0, kind: input, shape index: {}]   ;;  %s2791_s1 = inlined_call_operand.vmem [shape: f32[8,128], index: 1, kind: output, shape index: {}]  }
   0x1   :  { %v2025_v0 = vld [vmem:[%s2790_s0 + $0x40] sm:$0xff]  ;;  %v2030_v1 = vld [vmem:[%s2790_s0 + $0x48] sm:$0xff]  ;;  %v2067_v12 = vld [vmem:[%s2790_s0 + $0x50] sm:$0xff] }
   0x2   :  { %v2035_v2 = vld [vmem:[%s2790_s0 + $0x140] sm:$0xff]  ;;  %v2040_v3 = vld [vmem:[%s2790_s0 + $0x148] sm:$0xff]  ;;  %v286_v4 = vpack.c.bf16 %v2030_v1, %v2025_v0  ;;  %v2074_v15 = vld [vmem:[%s2790_s0 + $0x58] sm:$0xff] }
   0x3   :  { %v166_v5 = vsub.f32 %v2025_v0, %v2035_v2  ;;  %v110_v6 = vld [vmem:[%s2790_s0] sm:$0xff]  ;;  %v111_v7 = vld [vmem:[%s2790_s0 + $0x8] sm:$0xff]  ;;  %v167_v8 = vsub.f32 %v2030_v1, %v2040_v3  ;;  %v2079_v16 = vld [vmem:[%s2790_s0 + $0x150] sm:$0xff]  ;;  %v287_v20 = vpack.c.bf16 %v2074_v15, %v2067_v12 }
   0x4   :  { %v2057_v9 = vld [vmem:[%s2790_s0 + $0x100] sm:$0xff]  ;;  %v2062_v10 = vld [vmem:[%s2790_s0 + $0x108] sm:$0xff]  ;;  %v282_v11 = vpack.c.bf16 %v111_v7, %v110_v6  ;;  %322 = vxpose.xlu1.c.b16.start [1/4] (short) %v286_v4, 128  ;;  %v2084_v17 = vld [vmem:[%s2790_s0 + $0x158] sm:$0xff]  ;;  %1882 = vmatprep.subr.bf16.mxu1 %v286_v4  ;;  %v168_v18 = vsub.f32 %v2067_v12, %v2079_v16 }
   0x5   :  { %v159_v13 = vsub.f32 %v111_v7, %v2062_v10  ;;  %v158_v14 = vsub.f32 %v110_v6, %v2057_v9  ;;  %v169_v19 = vsub.f32 %v2074_v15, %v2084_v17  ;;  %v112_v21 = vld [vmem:[%s2790_s0 + $0x10] sm:$0xff]  ;;  %v113_v22 = vld [vmem:[%s2790_s0 + $0x18] sm:$0xff]  ;;  %v2112_v29 = vld [vmem:[%s2790_s0 + $0x60] sm:$0xff]  ;;  %1883 = vmatpush3.bf16.msra.mxu1 %v286_v4 }
   0x6   :  { %306 = vxpose.xlu0.c.b16.start [1/4] (short) %v282_v11, 128  ;;  %v2101_v23 = vld [vmem:[%s2790_s0 + $0x110] sm:$0xff]  ;;  %1858 = vmatprep.subr.bf16.mxu0 %v282_v11  ;;  %v2106_v26 = vld [vmem:[%s2790_s0 + $0x118] sm:$0xff]  ;;  %v283_v28 = vpack.c.bf16 %v113_v22, %v112_v21  ;;  %v2118_v31 = vld [vmem:[%s2790_s0 + $0x68] sm:$0xff] }
   0x7   :  { %v175_v24 = vand.u32 2147483647, %v159_v13  ;;  %v174_v25 = vand.u32 2147483647, %v158_v14  ;;  %v160_v27 = vsub.f32 %v112_v21, %v2101_v23  ;;  %1859 = vmatpush3.bf16.msra.mxu0 %v282_v11  ;;  %v161_v30 = vsub.f32 %v113_v22, %v2106_v26  ;;  %v2123_v32 = vld [vmem:[%s2790_s0 + $0x160] sm:$0xff]  ;;  %1884 = vmatprep.subr.bf16.mxu1 %v287_v20  ;;  %v2128_v35 = vld [vmem:[%s2790_s0 + $0x168] sm:$0xff] }
   0x8   :  { %323 = vxpose.xlu1.c.b16.cont [2/4] (short) %v287_v20, 128  ;;  %v170_v36 = vsub.f32 %v2112_v29, %v2123_v32  ;;  %v288_v37 = vpack.c.bf16 %v2118_v31, %v2112_v29  ;;  %v114_v38 = vld [vmem:[%s2790_s0 + $0x20] sm:$0xff]  ;;  %v115_v39 = vld [vmem:[%s2790_s0 + $0x28] sm:$0xff]  ;;  %1860 = vmatprep.subr.bf16.mxu0 %v283_v28  ;;  %v171_v41 = vsub.f32 %v2118_v31, %v2128_v35  ;;  %v2155_v45 = vld [vmem:[%s2790_s0 + $0x70] sm:$0xff] }
   0x9   :  { %v190_v33 = vadd.f32 %v175_v24, %v174_v25  ;;  %v176_v34 = vand.u32 2147483647, %v160_v27  ;;  %v177_v40 = vand.u32 2147483647, %v161_v30  ;;  %v2145_v42 = vld [vmem:[%s2790_s0 + $0x120] sm:$0xff]  ;;  %v2150_v43 = vld [vmem:[%s2790_s0 + $0x128] sm:$0xff]  ;;  %v284_v44 = vpack.c.bf16 %v115_v39, %v114_v38  ;;  %1885 = vmatpush3.bf16.msra.mxu1 %v287_v20 }
   0xa   :  { %307 = vxpose.xlu0.c.b16.cont [2/4] (short) %v283_v28, 128  ;;  %v162_v47 = vsub.f32 %v114_v38, %v2145_v42  ;;  %v163_v48 = vsub.f32 %v115_v39, %v2150_v43  ;;  %v2162_v49 = vld [vmem:[%s2790_s0 + $0x78] sm:$0xff]  ;;  %v116_v50 = vld [vmem:[%s2790_s0 + $0x30] sm:$0xff]  ;;  %1886 = vmatprep.subr.bf16.mxu1 %v288_v37  ;;  %v2186_v59 = vld [vmem:[%s2790_s0 + $0xc0] sm:$0xff] }
   0xb   :  { %v191_v46 = vadd.f32 %v190_v33, %v176_v34  ;;  %v117_v51 = vld [vmem:[%s2790_s0 + $0x38] sm:$0xff]  ;;  %1861 = vmatpush3.bf16.msra.mxu0 %v283_v28  ;;  %v289_v52 = vpack.c.bf16 %v2162_v49, %v2155_v45  ;;  %v2175_v53 = vld [vmem:[%s2790_s0 + $0x130] sm:$0xff]  ;;  %v2191_v60 = vld [vmem:[%s2790_s0 + $0xc8] sm:$0xff]  ;;  %v222_v63 = vsub.f32 %v2186_v59, %v2035_v2 }
   0xc   :  { %v2180_v54 = vld [vmem:[%s2790_s0 + $0x138] sm:$0xff]  ;;  %1862 = vmatprep.subr.bf16.mxu0 %v284_v44  ;;  %324 = vxpose.xlu1.c.b16.cont [3/4] (short) %v288_v37, 128  ;;  %v178_v56 = vand.u32 2147483647, %v162_v47  ;;  %v179_v57 = vand.u32 2147483647, %v163_v48  ;;  %v164_v58 = vsub.f32 %v116_v50, %v2175_v53  ;;  %v285_v62 = vpack.c.bf16 %v117_v51, %v116_v50  ;;  %v126_v6 = vld [vmem:[%s2790_s0 + $0x80] sm:$0xff] }
   0xd   :  { %v192_v55 = vadd.f32 %v191_v46, %v177_v40  ;;  %v165_v61 = vsub.f32 %v117_v51, %v2180_v54  ;;  %v223_v4 = vsub.f32 %v2191_v60, %v2040_v3  ;;  %v127_v7 = vld [vmem:[%s2790_s0 + $0x88] sm:$0xff]  ;;  %v214_v14 = vsub.f32 %v126_v6, %v2057_v9  ;;  %1887 = vmatpush3.bf16.msra.mxu1 %v288_v37  ;;  %v2213_v24 = vld [vmem:[%s2790_s0 + $0xd0] sm:$0xff]  ;;  %v2218_v25 = vld [vmem:[%s2790_s0 + $0xd8] sm:$0xff] }
   0xe   :  { %308 = vxpose.xlu0.c.b16.cont [3/4] (short) %v284_v44, 128  ;;  %v180_v13 = vand.u32 2147483647, %v164_v58  ;;  %v215_v20 = vsub.f32 %v127_v7, %v2062_v10  ;;  %v2208_v22 = vpack.c.bf16 %v2191_v60, %v2186_v59  ;;  %1888 = vmatprep.subr.bf16.mxu1 %v289_v52  ;;  %v224_v33 = vsub.f32 %v2213_v24, %v2079_v16  ;;  %v128_v34 = vld [vmem:[%s2790_s0 + $0x90] sm:$0xff]  ;;  %v129_v37 = vld [vmem:[%s2790_s0 + $0x98] sm:$0xff]  ;;  %v2240_v50 = vld [vmem:[%s2790_s0 + $0xe0] sm:$0xff] }
   0xf   :  { %v193_v11 = vadd.f32 %v192_v55, %v178_v56  ;;  %1863 = vmatpush3.bf16.msra.mxu0 %v284_v44  ;;  %v181_v21 = vand.u32 2147483647, %v165_v61  ;;  %v230_v28 = vand.u32 2147483647, %v214_v14  ;;  %v2228_v38 = vpack.c.bf16 %v127_v7, %v126_v6  ;;  %v2245_v56 = vld [vmem:[%s2790_s0 + $0xe8] sm:$0xff]  ;;  %v132_v1 = vld [vmem:[%s2790_s0 + $0xb0] sm:$0xff] }
  0x10   :  { %1864 = vmatprep.subr.bf16.mxu0 %v285_v62  ;;  %325 = vxpose.xlu1.c.b16.end [4/4] (short) %v289_v52, 128  ;;  %v231_v30 = vand.u32 2147483647, %v215_v20  ;;  %v225_v39 = vsub.f32 %v2218_v25, %v2084_v17  ;;  %v216_v40 = vsub.f32 %v128_v34, %v2101_v23  ;;  %v217_v44 = vsub.f32 %v129_v37, %v2106_v26  ;;  %v131_v59 = vld [vmem:[%s2790_s0 + $0xa8] sm:$0xff] }
  0x11   :  { %v194_v27 = vadd.f32 %v193_v11, %v179_v57  ;;  %v182_v46 = vand.u32 2147483647, %v166_v5  ;;  %1889 = vmatpush3.bf16.msra.mxu1 %v289_v52  ;;  %v226_v0 = vsub.f32 %v2240_v50, %v2123_v32  ;;  %v130_v5 = vld [vmem:[%s2790_s0 + $0xa0] sm:$0xff]  ;;  %v183_v52 = vand.u32 2147483647, %v167_v8  ;;  %v133_v8 = vld [vmem:[%s2790_s0 + $0xb8] sm:$0xff] }
  0x12   :  { %309 = vxpose.xlu0.c.b16.end [4/4] (short) %v285_v62, 128  ;;  %v246_v48 = vadd.f32 %v231_v30, %v230_v28  ;;  %v232_v51 = vand.u32 2147483647, %v216_v40  ;;  %v233_v55 = vand.u32 2147483647, %v217_v44  ;;  %1930 = vmatprep.subr.bf16.mxu1 %v2208_v22  ;;  %v227_v58 = vsub.f32 %v2245_v56, %v2128_v35 }
  0x13   :  { %v195_v47 = vadd.f32 %v194_v27, %v180_v13  ;;  %1865 = vmatpush3.bf16.msra.mxu0 %v285_v62  ;;  %v218_v60 = vsub.f32 %v130_v5, %v2145_v42  ;;  %v219_v62 = vsub.f32 %v131_v59, %v2150_v43  ;;  %v220_v14 = vsub.f32 %v132_v1, %v2175_v53 }
  0x14   :  { %1906 = vmatprep.subr.bf16.mxu0 %v2228_v38  ;;  %v247_v61 = vadd.f32 %v246_v48, %v232_v51  ;;  %v221_v20 = vsub.f32 %v133_v8, %v2180_v54  ;;  %v238_v44 = vand.u32 2147483647, %v222_v63  ;;  %v295_v51 = vpack.c.bf16 %v2218_v25, %v2213_v24 }
  0x15   :  { %v196_v57 = vadd.f32 %v195_v47, %v181_v21  ;;  %v234_v7 = vand.u32 2147483647, %v218_v60  ;;  %v235_v13 = vand.u32 2147483647, %v219_v62  ;;  %v236_v28 = vand.u32 2147483647, %v220_v14 }
  0x16   :  { %v248_v11 = vadd.f32 %v247_v61, %v233_v55  ;;  %v237_v40 = vand.u32 2147483647, %v221_v20  ;;  %v239_v47 = vand.u32 2147483647, %v223_v4  ;;  %v292_v63 = vpack.c.bf16 %v131_v59, %v130_v5  ;;  %v2285_v4 = vld [vmem:[%s2790_s0 + $0xf0] sm:$0xff]  ;;  %v2290_v61 = vld [vmem:[%s2790_s0 + $0xf8] sm:$0xff] }
  0x17   :  { %v197_v6 = vadd.f32 %v196_v57, %v182_v46  ;;  %v291_v57 = vpack.c.bf16 %v129_v37, %v128_v34  ;;  %v297_v34 = vpack.c.bf16 %v2290_v61, %v2285_v4  ;;  %v293_v37 = vpack.c.bf16 %v133_v8, %v132_v1 }
  0x18   :  { %v249_v27 = vadd.f32 %v248_v11, %v234_v7  ;;  %v2296_v5 = vpack.c.bf16 %v2040_v3, %v2035_v2  ;;  %v2300_v59 = vpack.c.bf16 %v2062_v10, %v2057_v9  ;;  %v2305_v62 = vpack.c.bf16 %v2084_v17, %v2079_v16  ;;  %v2325_v9 = vld [vmem:[%s2790_s0 + $0x170] sm:$0xff]  ;;  %v2330_v10 = vld [vmem:[%s2790_s0 + $0x178] sm:$0xff] }
  0x19   :  { %v2272_v21 = vadd.f32 %v197_v6, %v183_v52  ;;  %v296_v52 = vpack.c.bf16 %v2245_v56, %v2240_v50  ;;  %v2310_v6 = vpack.c.bf16 %v2106_v26, %v2101_v23  ;;  %v2315_v2 = vpack.c.bf16 %v2128_v35, %v2123_v32 }
  0x1a   :  { %v250_v30 = vadd.f32 %v249_v27, %v235_v13  ;;  %v2320_v3 = vpack.c.bf16 %v2150_v43, %v2145_v42  ;;  %v2335_v23 = vpack.c.bf16 %v2330_v10, %v2325_v9  ;;  %v2340_v26 = vpack.c.bf16 %v2180_v54, %v2175_v53 }
  0x1b   :  { %v242_v12 = vand.u32 2147483647, %v226_v0  ;;  %v243_v15 = vand.u32 2147483647, %v227_v58  ;;  %v187_v17 = vand.u32 2147483647, %v171_v41  ;;  %v228_v29 = vsub.f32 %v2285_v4, %v2325_v9 }
  0x1c   :  { %v251_v46 = vadd.f32 %v250_v30, %v236_v28  ;;  %v172_v32 = vsub.f32 %v2155_v45, %v2325_v9  ;;  %v229_v56 = vsub.f32 %v2290_v61, %v2330_v10  ;;  %v173_v35 = vsub.f32 %v2162_v49, %v2330_v10 }
  0x1d   :  { %v244_v0 = vand.u32 2147483647, %v228_v29 }
  0x1e   :  { %v252_v48 = vadd.f32 %v251_v46, %v237_v40  ;;  %v188_v45 = vand.u32 2147483647, %v172_v32  ;;  %v245_v9 = vand.u32 2147483647, %v229_v56 }
  0x20   :  { %v253_v55 = vadd.f32 %v252_v48, %v238_v44 }
  0x21   :  { %354 = vxpose.xlu1.c.b16.start [1/4] (short) %v2208_v22, 128 }
  0x22   :  { %v2278_v60 = vadd.f32 %v253_v55, %v239_v47 }
  0x23   :  { %338 = vxpose.xlu0.c.b16.start [1/4] (short) %v2228_v38, 128 }
  0x25   :  { %355 = vxpose.xlu1.c.b16.cont [2/4] (short) %v295_v51, 128 }
  0x27   :  { %339 = vxpose.xlu0.c.b16.cont [2/4] (short) %v291_v57, 128 }
  0x29   :  { %356 = vxpose.xlu1.c.b16.cont [3/4] (short) %v296_v52, 128 }
  0x2b   :  { %340 = vxpose.xlu0.c.b16.cont [3/4] (short) %v292_v63, 128 }
  0x2d   :  { %357 = vxpose.xlu1.c.b16.end [4/4] (short) %v297_v34, 128 }
  0x2f   :  { %341 = vxpose.xlu0.c.b16.end [4/4] (short) %v293_v37, 128 }
  0x3e   :  { %386 = vxpose.xlu1.c.b16.start [1/4] (short) %v2296_v5, 128 }
  0x40   :  { %370 = vxpose.xlu0.c.b16.start [1/4] (short) %v2300_v59, 128 }
  0x42   :  { %387 = vxpose.xlu1.c.b16.cont [2/4] (short) %v2305_v62, 128 }
  0x44   :  { %371 = vxpose.xlu0.c.b16.cont [2/4] (short) %v2310_v6, 128 }
  0x46   :  { %388 = vxpose.xlu1.c.b16.cont [3/4] (short) %v2315_v2, 128 }
  0x48   :  { %372 = vxpose.xlu0.c.b16.cont [3/4] (short) %v2320_v3, 128 }
  0x4a   :  { %389 = vxpose.xlu1.c.b16.end [4/4] (short) %v2335_v23, 128 }
  0x4c   :  { %373 = vxpose.xlu0.c.b16.end [4/4] (short) %v2340_v26, 128 }
  0x6a   :  { %v330_v42 = vpop.trf.xlu1 }
  0x6b   :  { %1890 = vmatprep.mubr.msk.bf16.mxu1 %vm498_vm0, %v330_v42 }
  0x6c   :  { %v314_v43 = vpop.trf.xlu0 }
  0x6d   :  { %1866 = vmatprep.mubr.msk.bf16.mxu0 %vm498_vm0, %v314_v43 }
  0x6e   :  { %v331_v7 = vpop.trf.xlu1 }
  0x6f   :  { %1891 = vmatmul.mubr.msk.bf16.vlgmr.msra.gmra.mrb[0].mxu1 %vm498_vm0, %v331_v7 }
  0x70   :  { %v315_v1 = vpop.trf.xlu0  ;;  %1931 = vmatpush3.bf16.msra.mxu1 %v2208_v22 }
  0x71   :  { %1867 = vmatmul.mubr.msk.bf16.vlgmr.msra.gmra.mrb[0].mxu0 %vm498_vm0, %v315_v1  ;;  %1932 = vmatprep.subr.bf16.mxu1 %v295_v51 }
  0x72   :  { %1907 = vmatpush3.bf16.msra.mxu0 %v2228_v38  ;;  %v332_v53 = vpop.trf.xlu1 }
  0x73   :  { %1908 = vmatprep.subr.bf16.mxu0 %v291_v57  ;;  %1894 = vmatprep.mubr.msk.bf16.mxu1 %vm498_vm0, %v332_v53 }
  0x74   :  { %v316_v54 = vpop.trf.xlu0  ;;  %1933 = vmatpush3.bf16.msra.mxu1 %v295_v51 }
  0x75   :  { %1870 = vmatprep.mubr.msk.bf16.mxu0 %vm498_vm0, %v316_v54  ;;  %1934 = vmatprep.subr.bf16.mxu1 %v296_v52 }
  0x76   :  { %1909 = vmatpush3.bf16.msra.mxu0 %v291_v57  ;;  %v333_v8 = vpop.trf.xlu1 }
  0x77   :  { %1910 = vmatprep.subr.bf16.mxu0 %v292_v63  ;;  %1895 = vmatmul.mubr.msk.bf16.gmra.mrb[4].mxu1 %vm498_vm0, %v333_v8 }
  0x78   :  { %v317_v11 = vpop.trf.xlu0  ;;  %1935 = vmatpush3.bf16.msra.mxu1 %v296_v52 }
  0x79   :  { %1871 = vmatmul.mubr.msk.bf16.gmra.mrb[4].mxu0 %vm498_vm0, %v317_v11  ;;  %1936 = vmatprep.subr.bf16.mxu1 %v297_v34 }
  0x7a   :  { %1911 = vmatpush3.bf16.msra.mxu0 %v292_v63  ;;  %v334_v22 = vpop.trf.xlu1 }
  0x7b   :  { %1912 = vmatprep.subr.bf16.mxu0 %v293_v37  ;;  %1898 = vmatprep.mubr.msk.bf16.mxu1 %vm498_vm0, %v334_v22 }
  0x7c   :  { %v318_v38 = vpop.trf.xlu0  ;;  %1937 = vmatpush3.bf16.msra.mxu1 %v297_v34 }
  0x7d   :  { %1874 = vmatprep.mubr.msk.bf16.mxu0 %vm498_vm0, %v318_v38  ;;  %1978 = vmatprep.subr.bf16.mxu1 %v2296_v5 }
  0x7e   :  { %1913 = vmatpush3.bf16.msra.mxu0 %v293_v37  ;;  %v335_v13 = vpop.trf.xlu1 }
  0x7f   :  { %1954 = vmatprep.subr.bf16.mxu0 %v2300_v59  ;;  %1899 = vmatmul.mubr.msk.bf16.gmra.mrb[8].mxu1 %vm498_vm0, %v335_v13 }
  0x80   :  { %v319_v14 = vpop.trf.xlu0 }
  0x81   :  { %1875 = vmatmul.mubr.msk.bf16.gmra.mrb[8].mxu0 %vm498_vm0, %v319_v14 }
  0x82   :  { %v336_v20 = vpop.trf.xlu1 }
  0x83   :  { %1902 = vmatprep.mubr.msk.bf16.mxu1 %vm498_vm0, %v336_v20  ;;  %v184_v20 = vand.u32 2147483647, %v168_v18 }
  0x84   :  { %v320_v27 = vpop.trf.xlu0 }
  0x85   :  { %1878 = vmatprep.mubr.msk.bf16.mxu0 %vm498_vm0, %v320_v27  ;;  %v240_v27 = vand.u32 2147483647, %v224_v33  ;;  %v199_v16 = vadd.f32 %v2272_v21, %v184_v20 }
  0x86   :  { %v337_v28 = vpop.trf.xlu1 }
  0x87   :  { %1903 = vmatmul.mubr.msk.bf16.gmra.mrb[12].mxu1 %vm498_vm0, %v337_v28  ;;  %v185_v28 = vand.u32 2147483647, %v169_v19  ;;  %v255_v18 = vadd.f32 %v2278_v60, %v240_v27 }
  0x88   :  { %v321_v30 = vpop.trf.xlu0 }
  0x89   :  { %1879 = vmatmul.mubr.msk.bf16.gmra.mrb[12].mxu0 %vm498_vm0, %v321_v30  ;;  %v241_v30 = vand.u32 2147483647, %v225_v39  ;;  %v200_v24 = vadd.f32 %v199_v16, %v185_v28 }
  0x8a   :  { %v362_v40 = vpop.trf.xlu1 }
  0x8b   :  { %1938 = vmatprep.mubr.msk.bf16.mxu1 %vm498_vm0, %v362_v40  ;;  %v186_v40 = vand.u32 2147483647, %v170_v36  ;;  %v256_v19 = vadd.f32 %v255_v18, %v241_v30 }
  0x8c   :  { %v346_v44 = vpop.trf.xlu0 }
  0x8d   :  { %1914 = vmatprep.mubr.msk.bf16.mxu0 %vm498_vm0, %v346_v44  ;;  %v257_v36 = vadd.f32 %v256_v19, %v242_v12  ;;  %v201_v25 = vadd.f32 %v200_v24, %v186_v40 }
  0x8e   :  { %v363_v46 = vpop.trf.xlu1 }
  0x8f   :  { %1939 = vmatmul.mubr.msk.bf16.vlgmr.msra.gmra.mrb[16].mxu1 %vm498_vm0, %v363_v46  ;;  %v258_v31 = vadd.f32 %v257_v36, %v243_v15  ;;  %v202_v21 = vadd.f32 %v201_v25, %v187_v17  ;;  %v189_v46 = vand.u32 2147483647, %v173_v35 }
  0x90   :  { %v347_v47 = vpop.trf.xlu0  ;;  %1979 = vmatpush3.bf16.msra.mxu1 %v2296_v5 }
  0x91   :  { %1915 = vmatmul.mubr.msk.bf16.vlgmr.msra.gmra.mrb[16].mxu0 %vm498_vm0, %v347_v47  ;;  %1980 = vmatprep.subr.bf16.mxu1 %v2305_v62  ;;  %v259_v44 = vadd.f32 %v258_v31, %v244_v0  ;;  %v203_v61 = vadd.f32 %v202_v21, %v188_v45 }
  0x92   :  { %1955 = vmatpush3.bf16.msra.mxu0 %v2300_v59  ;;  %v364_v48 = vpop.trf.xlu1 }
  0x93   :  { %1956 = vmatprep.subr.bf16.mxu0 %v2310_v6  ;;  %1942 = vmatprep.mubr.msk.bf16.mxu1 %vm498_vm0, %v364_v48  ;;  %v260_v48 = vadd.f32 %v259_v44, %v245_v9 }
  0x94   :  { %v348_v51 = vpop.trf.xlu0  ;;  %1981 = vmatpush3.bf16.msra.mxu1 %v2305_v62 }
  0x95   :  { %1918 = vmatprep.mubr.msk.bf16.mxu0 %vm498_vm0, %v348_v51  ;;  %1982 = vmatprep.subr.bf16.mxu1 %v2315_v2  ;;  %v204_v51 = vadd.f32 %v203_v61, %v189_v46 }
  0x96   :  { %1957 = vmatpush3.bf16.msra.mxu0 %v2310_v6  ;;  %v365_v55 = vpop.trf.xlu1  ;;  %261 = vadd.xlane.f32.xlu1 %v260_v48 }
  0x97   :  { %1958 = vmatprep.subr.bf16.mxu0 %v2320_v3  ;;  %1943 = vmatmul.mubr.msk.bf16.gmra.mrb[20].mxu1 %vm498_vm0, %v365_v55 }
  0x98   :  { %v349_v57 = vpop.trf.xlu0  ;;  %1983 = vmatpush3.bf16.msra.mxu1 %v2315_v2  ;;  %205 = vadd.xlane.f32.xlu0 %v204_v51 }
  0x99   :  { %1919 = vmatmul.mubr.msk.bf16.gmra.mrb[20].mxu0 %vm498_vm0, %v349_v57  ;;  %1984 = vmatprep.subr.bf16.mxu1 %v2335_v23 }
  0x9a   :  { %1959 = vmatpush3.bf16.msra.mxu0 %v2320_v3  ;;  %v366_v52 = vpop.trf.xlu1 }
  0x9b   :  { %1960 = vmatprep.subr.bf16.mxu0 %v2340_v26  ;;  %1946 = vmatprep.mubr.msk.bf16.mxu1 %vm498_vm0, %v366_v52 }
  0x9c   :  { %v350_v63 = vpop.trf.xlu0  ;;  %1985 = vmatpush3.bf16.msra.mxu1 %v2335_v23 }
  0x9d   :  { %1922 = vmatprep.mubr.msk.bf16.mxu0 %vm498_vm0, %v350_v63 }
  0x9e   :  { %1961 = vmatpush3.bf16.msra.mxu0 %v2340_v26  ;;  %v367_v34 = vpop.trf.xlu1 }
  0x9f   :  { %1947 = vmatmul.mubr.msk.bf16.gmra.mrb[24].mxu1 %vm498_vm0, %v367_v34 }
  0xa0   :  { %v351_v37 = vpop.trf.xlu0 }
  0xa1   :  { %1923 = vmatmul.mubr.msk.bf16.gmra.mrb[24].mxu0 %vm498_vm0, %v351_v37 }
  0xa2   :  { %v368_v5 = vpop.trf.xlu1 }
  0xa3   :  { %1950 = vmatprep.mubr.msk.bf16.mxu1 %vm498_vm0, %v368_v5 }
  0xa4   :  { %v352_v59 = vpop.trf.xlu0 }
  0xa5   :  { %1926 = vmatprep.mubr.msk.bf16.mxu0 %vm498_vm0, %v352_v59 }
  0xa6   :  { %v369_v62 = vpop.trf.xlu1 }
  0xa7   :  { %1951 = vmatmul.mubr.msk.bf16.gmra.mrb[28].mxu1 %vm498_vm0, %v369_v62 }
  0xa8   :  { %v353_v6 = vpop.trf.xlu0 }
  0xa9   :  { %1927 = vmatmul.mubr.msk.bf16.gmra.mrb[28].mxu0 %vm498_vm0, %v353_v6 }
  0xaa   :  { %v394_v2 = vpop.trf.xlu1 }
  0xab   :  { %1986 = vmatprep.mubr.msk.bf16.mxu1 %vm498_vm0, %v394_v2 }
  0xac   :  { %v378_v3 = vpop.trf.xlu0 }
  0xad   :  { %1962 = vmatprep.mubr.msk.bf16.mxu0 %vm498_vm0, %v378_v3 }
  0xae   :  { %v395_v23 = vpop.trf.xlu1 }
  0xaf   :  { %1987 = vmatmul.mubr.msk.bf16.vlgmr.msra.gmra.mrb[32].mxu1 %vm498_vm0, %v395_v23 }
  0xb0   :  { %v379_v26 = vpop.trf.xlu0 }
  0xb1   :  { %1963 = vmatmul.mubr.msk.bf16.vlgmr.msra.gmra.mrb[32].mxu0 %vm498_vm0, %v379_v26 }
  0xb2   :  { %v396_v42 = vpop.trf.xlu1 }
  0xb3   :  { %1990 = vmatprep.mubr.msk.bf16.mxu1 %vm498_vm0, %v396_v42 }
  0xb4   :  { %v380_v43 = vpop.trf.xlu0 }
  0xb5   :  { %1966 = vmatprep.mubr.msk.bf16.mxu0 %vm498_vm0, %v380_v43 }
  0xb6   :  { %v397_v7 = vpop.trf.xlu1 }
  0xb7   :  { %1991 = vmatmul.mubr.msk.bf16.gmra.mrb[36].mxu1 %vm498_vm0, %v397_v7 }
  0xb8   :  { %v381_v1 = vpop.trf.xlu0 }
  0xb9   :  { %1967 = vmatmul.mubr.msk.bf16.gmra.mrb[36].mxu0 %vm498_vm0, %v381_v1 }
  0xba   :  { %v398_v53 = vpop.trf.xlu1 }
  0xbb   :  { %1994 = vmatprep.mubr.msk.bf16.mxu1 %vm498_vm0, %v398_v53 }
  0xbc   :  { %v382_v54 = vpop.trf.xlu0 }
  0xbd   :  { %1970 = vmatprep.mubr.msk.bf16.mxu0 %vm498_vm0, %v382_v54 }
  0xbe   :  { %v399_v8 = vpop.trf.xlu1 }
  0xbf   :  { %1995 = vmatmul.mubr.msk.bf16.gmra.mrb[40].mxu1 %vm498_vm0, %v399_v8 }
  0xc0   :  { %v383_v11 = vpop.trf.xlu0 }
  0xc1   :  { %1971 = vmatmul.mubr.msk.bf16.gmra.mrb[40].mxu0 %vm498_vm0, %v383_v11 }
  0xc2   :  { %v400_v22 = vpop.trf.xlu1 }
  0xc3   :  { %1998 = vmatprep.mubr.msk.bf16.mxu1 %vm498_vm0, %v400_v22 }
  0xc4   :  { %v384_v38 = vpop.trf.xlu0 }
  0xc5   :  { %1974 = vmatprep.mubr.msk.bf16.mxu0 %vm498_vm0, %v384_v38 }
  0xc6   :  { %v401_v13 = vpop.trf.xlu1 }
  0xc7   :  { %1999 = vmatmul.mubr.msk.bf16.gmra.mrb[44].mxu1 %vm498_vm0, %v401_v13 }
  0xc8   :  { %v385_v14 = vpop.trf.xlu0 }
  0xc9   :  { %1975 = vmatmul.mubr.msk.bf16.gmra.mrb[44].mxu0 %vm498_vm0, %v385_v14 }
 0x142   :  { %v2440_v33 = vpop.f32.mrb[0].mxu1 }
 0x143   :  { %2810 = vst [vmem:[#allocation3_spill] sm:$0xff] %v2440_v33  ;;  %v2444_v50 = vpop.f32.mrb[1].mxu1 }
 0x144   :  { %v2442_v39 = vpop.f32.mrb[0].mxu0  ;;  %v2452_v58 = vpop.f32.mrb[2].mxu1 }
 0x145   :  { %v2450_v41 = vpop.f32.mrb[1].mxu0  ;;  %2811 = vst [vmem:[#allocation4_spill] sm:$0xff] %v2452_v58  ;;  %v2456_v4 = vpop.f32.mrb[3].mxu1 }
 0x146   :  { %v2454_v60 = vpop.f32.mrb[2].mxu0 }
 0x147   :  { %v2458_v47 = vpop.f32.mrb[3].mxu0 }
 0x14a   :  { %v2460_v49 = vpop.f32.mrb[4].mxu1 }
 0x14b   :  { %v2464_v55 = vpop.f32.mrb[5].mxu1 }
 0x14c   :  { %v2462_v10 = vpop.f32.mrb[4].mxu0  ;;  %v2468_v52 = vpop.f32.mrb[6].mxu1 }
 0x14d   :  { %v2466_v57 = vpop.f32.mrb[5].mxu0  ;;  %v2472_v34 = vpop.f32.mrb[7].mxu1 }
 0x14e   :  { %v2470_v63 = vpop.f32.mrb[6].mxu0 }
 0x14f   :  { %v2474_v37 = vpop.f32.mrb[7].mxu0 }
 0x152   :  { %v2476_v5 = vpop.f32.mrb[8].mxu1 }
 0x153   :  { %v2480_v62 = vpop.f32.mrb[9].mxu1 }
 0x154   :  { %v2478_v59 = vpop.f32.mrb[8].mxu0  ;;  %v2484_v2 = vpop.f32.mrb[10].mxu1 }
 0x155   :  { %v2482_v6 = vpop.f32.mrb[9].mxu0  ;;  %v2488_v23 = vpop.f32.mrb[11].mxu1 }
 0x156   :  { %v2486_v3 = vpop.f32.mrb[10].mxu0 }
 0x157   :  { %v2490_v26 = vpop.f32.mrb[11].mxu0 }
 0x15a   :  { %v2492_v42 = vpop.f32.mrb[12].mxu1 }
 0x15b   :  { %2812 = vst [vmem:[#allocation5_spill] sm:$0xff] %v2492_v42  ;;  %v2496_v7 = vpop.f32.mrb[13].mxu1 }
 0x15c   :  { %v2494_v43 = vpop.f32.mrb[12].mxu0  ;;  %2813 = vst [vmem:[#allocation6_spill] sm:$0xff] %v2496_v7  ;;  %v2500_v53 = vpop.f32.mrb[14].mxu1 }
 0x15d   :  { %v2498_v1 = vpop.f32.mrb[13].mxu0  ;;  %2815 = vst [vmem:[#allocation8_spill] sm:$0xff] %v2500_v53  ;;  %v2504_v8 = vpop.f32.mrb[15].mxu1 }
 0x15e   :  { %2814 = vst [vmem:[#allocation7_spill] sm:$0xff] %v2498_v1  ;;  %v2502_v54 = vpop.f32.mrb[14].mxu0  ;;  %2817 = vst [vmem:[#allocation10_spill] sm:$0xff] %v2504_v8 }
 0x15f   :  { %2816 = vst [vmem:[#allocation9_spill] sm:$0xff] %v2502_v54  ;;  %v2506_v11 = vpop.f32.mrb[15].mxu0 }
 0x160   :  { %2818 = vst [vmem:[#allocation11_spill] sm:$0xff] %v2506_v11 }
 0x162   :  { %v2508_v22 = vpop.f32.mrb[16].mxu1 }
 0x163   :  { %2819 = vst [vmem:[#allocation12_spill] sm:$0xff] %v2508_v22  ;;  %v2510_v13 = vpop.f32.mrb[17].mxu1 }
 0x164   :  { %v1916_v38 = vpop.f32.mrb[16].mxu0  ;;  %2820 = vst [vmem:[#allocation13_spill] sm:$0xff] %v2510_v13  ;;  %v2512_v20 = vpop.f32.mrb[18].mxu1 }
 0x165   :  { %v799_v14 = vpop.f32.mrb[17].mxu0  ;;  %2821 = vst [vmem:[#allocation14_spill] sm:$0xff] %v2512_v20  ;;  %v2516_v28 = vpop.f32.mrb[19].mxu1 }
 0x166   :  { %v2514_v27 = vpop.f32.mrb[18].mxu0 }
 0x167   :  { %v802_v30 = vpop.f32.mrb[19].mxu0 }
 0x16a   :  { %v2518_v40 = vpop.f32.mrb[20].mxu1 }
 0x16b   :  { %v2522_v18 = vpop.f32.mrb[21].mxu1 }
 0x16c   :  { %v2520_v12 = vpop.f32.mrb[20].mxu0  ;;  %v2526_v15 = vpop.f32.mrb[22].mxu1 }
 0x16d   :  { %v2524_v16 = vpop.f32.mrb[21].mxu0  ;;  %v2530_v24 = vpop.f32.mrb[23].mxu1 }
 0x16e   :  { %v2528_v19 = vpop.f32.mrb[22].mxu0 }
 0x16f   :  { %v2532_v17 = vpop.f32.mrb[23].mxu0 }
 0x172   :  { %v2534_v29 = vpop.f32.mrb[24].mxu1 }
 0x173   :  { %v2538_v32 = vpop.f32.mrb[25].mxu1 }
 0x174   :  { %v2536_v36 = vpop.f32.mrb[24].mxu0  ;;  %v2542_v56 = vpop.f32.mrb[26].mxu1 }
 0x175   :  { %v2540_v25 = vpop.f32.mrb[25].mxu0  ;;  %2822 = vst [vmem:[#allocation15_spill] sm:$0xff] %v2542_v56  ;;  %v2546_v31 = vpop.f32.mrb[27].mxu1 }
 0x176   :  { %v2544_v0 = vpop.f32.mrb[26].mxu0 }
 0x177   :  { %v2548_v35 = vpop.f32.mrb[27].mxu0 }
 0x17a   :  { %v2550_v45 = vpop.f32.mrb[28].mxu1 }
 0x17b   :  { %2823 = vst [vmem:[#allocation16_spill] sm:$0xff] %v2550_v45  ;;  %v2554_v9 = vpop.f32.mrb[29].mxu1 }
 0x17c   :  { %v2552_v21 = vpop.f32.mrb[28].mxu0  ;;  %2824 = vst [vmem:[#allocation17_spill] sm:$0xff] %v2554_v9  ;;  %v2558_v46 = vpop.f32.mrb[30].mxu1 }
 0x17d   :  { %v2556_v44 = vpop.f32.mrb[29].mxu0  ;;  %2826 = vst [vmem:[#allocation19_spill] sm:$0xff] %v2558_v46  ;;  %v2562_v48 = vpop.f32.mrb[31].mxu1 }
 0x17e   :  { %2825 = vst [vmem:[#allocation18_spill] sm:$0xff] %v2556_v44  ;;  %v2560_v61 = vpop.f32.mrb[30].mxu0  ;;  %2828 = vst [vmem:[#allocation21_spill] sm:$0xff] %v2562_v48 }
 0x17f   :  { %2827 = vst [vmem:[#allocation20_spill] sm:$0xff] %v2560_v61  ;;  %v2564_v51 = vpop.f32.mrb[31].mxu0 }
 0x180   :  { %2829 = vst [vmem:[#allocation22_spill] sm:$0xff] %v2564_v51 }
 0x182   :  { %v2566_v8 = vpop.f32.mrb[32].mxu1 }
 0x183   :  { %2830 = vst [vmem:[#allocation23_spill] sm:$0xff] %v2566_v8  ;;  %v2572_v9 = vpop.f32.mrb[33].mxu1 }
 0x184   :  { %v1964_v11 = vpop.f32.mrb[32].mxu0  ;;  %v2579_v61 = vpop.f32.mrb[34].mxu1 }
 0x185   :  { %v1518_v7 = vsub.f32 %v2442_v39, %v1964_v11  ;;  %v1622_v46 = vsub.f32 %v1916_v38, %v1964_v11  ;;  %v1041_v44 = vpop.f32.mrb[33].mxu0  ;;  %2831 = vst [vmem:[#allocation24_spill] sm:$0xff] %v2579_v61  ;;  %v2582_v45 = vpop.f32.mrb[35].mxu1 }
 0x186   :  { %v1516_v1 = vsub.f32 %v2450_v41, %v1041_v44  ;;  %v1620_v53 = vsub.f32 %v799_v14, %v1041_v44  ;;  %v1965_v33 = vpop.f32.mrb[34].mxu0 }
 0x187   :  { %v1519_v54 = vsub.f32 %v2454_v60, %v1965_v33  ;;  %v1623_v39 = vsub.f32 %v2514_v27, %v1965_v33  ;;  %v1044_v48 = vpop.f32.mrb[35].mxu0  ;;  %v1550_v27 = vand.u32 2147483647, %v1518_v7  ;;  %v1654_v13 = vand.u32 2147483647, %v1622_v46 }
 0x188   :  { %v1517_v41 = vsub.f32 %v2458_v47, %v1044_v48  ;;  %v1621_v14 = vsub.f32 %v802_v30, %v1044_v48  ;;  %v1548_v22 = vand.u32 2147483647, %v1516_v1  ;;  %v1652_v60 = vand.u32 2147483647, %v1620_v53 }
 0x18a   :  { %v1549_v8 = vand.u32 2147483647, %v1517_v41  ;;  %v1653_v33 = vand.u32 2147483647, %v1621_v14  ;;  %v2595_v58 = vpop.f32.mrb[36].mxu1 }
 0x18b   :  { %v2599_v30 = vpop.f32.mrb[37].mxu1 }
 0x18c   :  { %v1968_v11 = vpop.f32.mrb[36].mxu0  ;;  %v1580_v38 = vadd.f32 %v1549_v8, %v1548_v22  ;;  %v1684_v20 = vadd.f32 %v1653_v33, %v1652_v60  ;;  %v2607_v8 = vpop.f32.mrb[38].mxu1  ;;  %v1551_v22 = vand.u32 2147483647, %v1519_v54 }
 0x18d   :  { %v1522_v61 = vsub.f32 %v2462_v10, %v1968_v11  ;;  %v1626_v51 = vsub.f32 %v2520_v12, %v1968_v11  ;;  %v1057_v47 = vpop.f32.mrb[37].mxu0  ;;  %v1655_v10 = vand.u32 2147483647, %v1623_v39  ;;  %v2609_v14 = vpop.f32.mrb[39].mxu1 }
 0x18e   :  { %v1520_v7 = vsub.f32 %v2466_v57, %v1057_v47  ;;  %v1624_v46 = vsub.f32 %v2524_v16, %v1057_v47  ;;  %v1969_v48 = vpop.f32.mrb[38].mxu0  ;;  %v1581_v41 = vadd.f32 %v1580_v38, %v1550_v27  ;;  %v1685_v12 = vadd.f32 %v1684_v20, %v1654_v13 }
 0x18f   :  { %v1060_v11 = vpop.f32.mrb[39].mxu0  ;;  %v1523_v16 = vsub.f32 %v2470_v63, %v1969_v48  ;;  %v1627_v54 = vsub.f32 %v2528_v19, %v1969_v48  ;;  %v1658_v27 = vand.u32 2147483647, %v1626_v51 }
 0x190   :  { %v1552_v60 = vand.u32 2147483647, %v1520_v7  ;;  %v1582_v1 = vadd.f32 %v1581_v41, %v1551_v22  ;;  %v1656_v53 = vand.u32 2147483647, %v1624_v46  ;;  %v1686_v44 = vadd.f32 %v1685_v12, %v1655_v10 }
 0x191   :  { %v1521_v46 = vsub.f32 %v2474_v37, %v1060_v11  ;;  %v1625_v22 = vsub.f32 %v2532_v17, %v1060_v11  ;;  %v1555_v13 = vand.u32 2147483647, %v1523_v16  ;;  %v1659_v63 = vand.u32 2147483647, %v1627_v54 }
 0x192   :  { %v2619_v20 = vpop.f32.mrb[40].mxu1  ;;  %v1583_v39 = vadd.f32 %v1582_v1, %v1552_v60  ;;  %v1687_v38 = vadd.f32 %v1686_v44, %v1656_v53  ;;  %v1554_v60 = vand.u32 2147483647, %v1522_v61 }
 0x193   :  { %v2623_v7 = vpop.f32.mrb[41].mxu1  ;;  %v1553_v44 = vand.u32 2147483647, %v1521_v46  ;;  %v1657_v17 = vand.u32 2147483647, %v1625_v22 }
 0x194   :  { %v1972_v47 = vpop.f32.mrb[40].mxu0  ;;  %v2631_v10 = vpop.f32.mrb[42].mxu1 }
 0x195   :  { %v1073_v48 = vpop.f32.mrb[41].mxu0  ;;  %v1526_v1 = vsub.f32 %v2478_v59, %v1972_v47  ;;  %v1630_v53 = vsub.f32 %v2536_v36, %v1972_v47  ;;  %v2637_v12 = vpop.f32.mrb[43].mxu1  ;;  %v1584_v19 = vadd.f32 %v1583_v39, %v1553_v44  ;;  %v1688_v46 = vadd.f32 %v1687_v38, %v1657_v17 }
 0x196   :  { %v1973_v37 = vpop.f32.mrb[42].mxu0  ;;  %v1524_v59 = vsub.f32 %v2482_v6, %v1073_v48  ;;  %v1628_v36 = vsub.f32 %v2540_v25, %v1073_v48 }
 0x197   :  { %v1076_v47 = vpop.f32.mrb[43].mxu0  ;;  %v1585_v57 = vadd.f32 %v1584_v19, %v1554_v60  ;;  %v1527_v11 = vsub.f32 %v2486_v3, %v1973_v37  ;;  %v1689_v51 = vadd.f32 %v1688_v46, %v1658_v27  ;;  %v1631_v39 = vsub.f32 %v2544_v0, %v1973_v37 }
 0x198   :  { %v1556_v16 = vand.u32 2147483647, %v1524_v59  ;;  %v1660_v54 = vand.u32 2147483647, %v1628_v36  ;;  %v1525_v27 = vsub.f32 %v2490_v26, %v1076_v47  ;;  %v1629_v46 = vsub.f32 %v2548_v35, %v1076_v47  ;;  %v2832_v47 = vld [vmem:[#allocation16_spill] sm:$0xff]  ;;  %v2836_v35 = vld [vmem:[#allocation17_spill] sm:$0xff] }
 0x199   :  { %v1586_v25 = vadd.f32 %v1585_v57, %v1555_v13  ;;  %v1690_v19 = vadd.f32 %v1689_v51, %v1659_v63  ;;  %v1662_v48 = vand.u32 2147483647, %v1630_v53  ;;  %v1559_v63 = vand.u32 2147483647, %v1527_v11  ;;  %v2839_v11 = vld [vmem:[#allocation8_spill] sm:$0xff] }
 0x19a   :  { %v2648_v61 = vpop.f32.mrb[44].mxu1  ;;  %v1557_v36 = vand.u32 2147483647, %v1525_v27  ;;  %v1661_v51 = vand.u32 2147483647, %v1629_v46  ;;  %v2834_v27 = vld [vmem:[#allocation18_spill] sm:$0xff] }
 0x19b   :  { %v2651_v38 = vpop.f32.mrb[45].mxu1  ;;  %v1587_v60 = vadd.f32 %v1586_v25, %v1556_v16  ;;  %v1691_v13 = vadd.f32 %v1690_v19, %v1660_v54  ;;  %v1558_v16 = vand.u32 2147483647, %v1526_v1  ;;  %v2833_v19 = vld [vmem:[#allocation7_spill] sm:$0xff]  ;;  %v1663_v41 = vand.u32 2147483647, %v1631_v39 }
 0x19c   :  { %v1976_v6 = vpop.f32.mrb[44].mxu0  ;;  %v2657_v3 = vpop.f32.mrb[46].mxu1  ;;  %v2837_v25 = vld [vmem:[#allocation9_spill] sm:$0xff] }
 0x19d   :  { %v1089_v17 = vpop.f32.mrb[45].mxu0  ;;  %v2663_v57 = vpop.f32.mrb[47].mxu1  ;;  %v1530_v44 = vsub.f32 %v2494_v43, %v1976_v6  ;;  %v1634_v26 = vsub.f32 %v2552_v21, %v1976_v6  ;;  %v1588_v0 = vadd.f32 %v1587_v60, %v1557_v36  ;;  %v1692_v54 = vadd.f32 %v1691_v13, %v1661_v51  ;;  %v2835_v21 = vld [vmem:[#allocation6_spill] sm:$0xff]  ;;  %v2838_v60 = vld [vmem:[#allocation20_spill] sm:$0xff] }
 0x19e   :  { %v1977_v37 = vpop.f32.mrb[46].mxu0  ;;  %v1528_v22 = vsub.f32 %v2833_v19, %v1089_v17  ;;  %v1632_v46 = vsub.f32 %v2834_v27, %v1089_v17  ;;  %v2840_v17 = vld [vmem:[#allocation19_spill] sm:$0xff]  ;;  %v2842_v19 = vld [vmem:[#allocation22_spill] sm:$0xff] }
 0x19f   :  { %v1092_v59 = vpop.f32.mrb[47].mxu0  ;;  %v1589_v33 = vadd.f32 %v1588_v0, %v1558_v16  ;;  %v1693_v43 = vadd.f32 %v1692_v54, %v1662_v48  ;;  %v1531_v53 = vsub.f32 %v2837_v25, %v1977_v37  ;;  %v1635_v13 = vsub.f32 %v2838_v60, %v1977_v37  ;;  %v2841_v16 = vld [vmem:[#allocation11_spill] sm:$0xff]  ;;  %v2844_v25 = vld [vmem:[#allocation21_spill] sm:$0xff] }
 0x1a0   :  { %v1560_v1 = vand.u32 2147483647, %v1528_v22  ;;  %v1664_v56 = vand.u32 2147483647, %v1632_v46  ;;  %v1529_v54 = vsub.f32 %v2841_v16, %v1092_v59  ;;  %v1633_v27 = vsub.f32 %v2842_v19, %v1092_v59  ;;  %v2843_v46 = vld [vmem:[#allocation10_spill] sm:$0xff]  ;;  %v2846_v16 = vld [vmem:[#allocation13_spill] sm:$0xff] }
 0x1a1   :  { %v1590_v36 = vadd.f32 %v1589_v33, %v1559_v63  ;;  %v1694_v51 = vadd.f32 %v1693_v43, %v1663_v41  ;;  %v1562_v63 = vand.u32 2147483647, %v1530_v44  ;;  %v1666_v60 = vand.u32 2147483647, %v1634_v26 }
 0x1a2   :  { %v1561_v33 = vand.u32 2147483647, %v1529_v54  ;;  %v1665_v41 = vand.u32 2147483647, %v1633_v27  ;;  %v1563_v6 = vand.u32 2147483647, %v1531_v53  ;;  %v2847_v19 = vsub.f32 %v2846_v16, %v2572_v9 }
 0x1a3   :  { %v1591_v22 = vadd.f32 %v1590_v36, %v1560_v1  ;;  %v1695_v0 = vadd.f32 %v1694_v51, %v1664_v56  ;;  %v1667_v1 = vand.u32 2147483647, %v1635_v13  ;;  %v2845_v36 = vsub.f32 %v2444_v50, %v2572_v9  ;;  %v2851_v54 = vld [vmem:[#allocation23_spill] sm:$0xff] }
 0x1a4   :  { %v1668_v42 = vand.u32 2147483647, %v2847_v19  ;;  %v2848_v44 = vsub.f32 %v2456_v4, %v2582_v45  ;;  %v2849_v53 = vsub.f32 %v2516_v28, %v2582_v45 }
 0x1a5   :  { %v1592_v43 = vadd.f32 %v1591_v22, %v1561_v33  ;;  %v1696_v39 = vadd.f32 %v1695_v0, %v1665_v41  ;;  %v1564_v59 = vand.u32 2147483647, %v2845_v36  ;;  %v2850_v0 = vld [vmem:[#allocation3_spill] sm:$0xff] }
 0x1a6   :  { %v1565_v22 = vand.u32 2147483647, %v2848_v44  ;;  %v1669_v13 = vand.u32 2147483647, %v2849_v53  ;;  %v2852_v50 = vsub.f32 %v2850_v0, %v2851_v54  ;;  %v2862_v44 = vsub.f32 %v2472_v34, %v2609_v14 }
 0x1a7   :  { %v1593_v48 = vadd.f32 %v1592_v43, %v1562_v63  ;;  %v1697_v56 = vadd.f32 %v1696_v39, %v1666_v60  ;;  %v2855_v63 = vld [vmem:[#allocation4_spill] sm:$0xff]  ;;  %v2863_v53 = vsub.f32 %v2530_v24, %v2609_v14  ;;  %v2866_v34 = vsub.f32 %v2468_v52, %v2607_v8 }
 0x1a8   :  { %v1566_v27 = vand.u32 2147483647, %v2852_v50  ;;  %v2856_v43 = vld [vmem:[#allocation24_spill] sm:$0xff]  ;;  %v2867_v24 = vsub.f32 %v2526_v15, %v2607_v8  ;;  %v2870_v52 = vsub.f32 %v2488_v23, %v2637_v12  ;;  %v2871_v15 = vsub.f32 %v2546_v31, %v2637_v12 }
 0x1a9   :  { %v1594_v51 = vadd.f32 %v1593_v48, %v1563_v6  ;;  %v1698_v37 = vadd.f32 %v1697_v56, %v1667_v1  ;;  %v2853_v48 = vld [vmem:[#allocation12_spill] sm:$0xff]  ;;  %v2857_v4 = vsub.f32 %v2855_v63, %v2856_v43  ;;  %v2858_v56 = vld [vmem:[#allocation14_spill] sm:$0xff]  ;;  %v2874_v23 = vsub.f32 %v2484_v2, %v2631_v10 }
 0x1aa   :  { %v2854_v9 = vsub.f32 %v2853_v48, %v2851_v54  ;;  %v2859_v28 = vsub.f32 %v2858_v56, %v2856_v43  ;;  %v1675_v14 = vand.u32 2147483647, %v2867_v24  ;;  %v1573_v63 = vand.u32 2147483647, %v2870_v52 }
 0x1ab   :  { %v1595_v26 = vadd.f32 %v1594_v51, %v1564_v59  ;;  %v1699_v39 = vadd.f32 %v1698_v37, %v1668_v42  ;;  %v1567_v60 = vand.u32 2147483647, %v2857_v4  ;;  %v2860_v37 = vsub.f32 %v2464_v55, %v2599_v30 }
 0x1ac   :  { %v1670_v33 = vand.u32 2147483647, %v2854_v9  ;;  %v1671_v45 = vand.u32 2147483647, %v2859_v28  ;;  %v2861_v51 = vsub.f32 %v2522_v18, %v2599_v30  ;;  %v2864_v55 = vsub.f32 %v2460_v49, %v2595_v58 }
 0x1ad   :  { %v1596_v6 = vadd.f32 %v1595_v26, %v1565_v22  ;;  %v1700_v41 = vadd.f32 %v1699_v39, %v1669_v13  ;;  %v1568_v36 = vand.u32 2147483647, %v2860_v37  ;;  %v1569_v22 = vand.u32 2147483647, %v2862_v44 }
 0x1ae   :  { %v1672_v16 = vand.u32 2147483647, %v2861_v51  ;;  %v1673_v13 = vand.u32 2147483647, %v2863_v53  ;;  %v1570_v0 = vand.u32 2147483647, %v2864_v55  ;;  %v2865_v18 = vsub.f32 %v2518_v40, %v2595_v58 }
 0x1af   :  { %v1597_v1 = vadd.f32 %v1596_v6, %v1566_v27  ;;  %v1701_v42 = vadd.f32 %v1700_v41, %v1670_v33  ;;  %v1571_v27 = vand.u32 2147483647, %v2866_v34  ;;  %v2868_v49 = vsub.f32 %v2480_v62, %v2623_v7 }
 0x1b0   :  { %v1674_v30 = vand.u32 2147483647, %v2865_v18  ;;  %v2869_v58 = vsub.f32 %v2538_v32, %v2623_v7  ;;  %v1677_v8 = vand.u32 2147483647, %v2871_v15  ;;  %v2872_v62 = vsub.f32 %v2476_v5, %v2619_v20 }
 0x1b1   :  { %v1598_v59 = vadd.f32 %v1597_v1, %v1567_v60  ;;  %v1702_v19 = vadd.f32 %v1701_v42, %v1671_v45  ;;  %v1572_v9 = vand.u32 2147483647, %v2868_v49  ;;  %v2873_v32 = vsub.f32 %v2534_v29, %v2619_v20  ;;  %v2875_v42 = vld [vmem:[#allocation15_spill] sm:$0xff] }
 0x1b2   :  { %v1676_v40 = vand.u32 2147483647, %v2869_v58  ;;  %v1574_v60 = vand.u32 2147483647, %v2872_v62  ;;  %v1575_v28 = vand.u32 2147483647, %v2874_v23  ;;  %v2876_v31 = vsub.f32 %v2875_v42, %v2631_v10 }
 0x1b3   :  { %v1599_v26 = vadd.f32 %v1598_v59, %v1568_v36  ;;  %v1703_v39 = vadd.f32 %v1702_v19, %v1672_v16  ;;  %v1678_v7 = vand.u32 2147483647, %v2873_v32  ;;  %v2877_v5 = vsub.f32 %v2835_v21, %v2651_v38 }
 0x1b4   :  { %v1679_v12 = vand.u32 2147483647, %v2876_v31  ;;  %v2878_v29 = vsub.f32 %v2836_v35, %v2651_v38  ;;  %v2879_v2 = vsub.f32 %v2843_v46, %v2663_v57  ;;  %v2880_v10 = vsub.f32 %v2844_v25, %v2663_v57 }
 0x1b5   :  { %v1600_v54 = vadd.f32 %v1599_v26, %v1569_v22  ;;  %v1704_v50 = vadd.f32 %v1703_v39, %v1673_v13  ;;  %v1576_v36 = vand.u32 2147483647, %v2877_v5  ;;  %v2881_v26 = vld [vmem:[#allocation5_spill] sm:$0xff]  ;;  %v2883_v38 = vsub.f32 %v2832_v47, %v2648_v61 }
 0x1b6   :  { %v1680_v20 = vand.u32 2147483647, %v2878_v29  ;;  %v1577_v16 = vand.u32 2147483647, %v2879_v2  ;;  %v1681_v44 = vand.u32 2147483647, %v2880_v10  ;;  %v2882_v21 = vsub.f32 %v2881_v26, %v2648_v61 }
 0x1b7   :  { %v1601_v6 = vadd.f32 %v1600_v54, %v1570_v0  ;;  %v1705_v48 = vadd.f32 %v1704_v50, %v1674_v30  ;;  %v1682_v35 = vand.u32 2147483647, %v2883_v38  ;;  %v2884_v46 = vsub.f32 %v2839_v11, %v2657_v3  ;;  %v262_v50 = vpop.xlane.xlu1 %261 }
 0x1b8   :  { %v1578_v53 = vand.u32 2147483647, %v2882_v21  ;;  %v2885_v57 = vsub.f32 %v2840_v17, %v2657_v3  ;;  %v263_v34 = vrot.slane %v262_v50, 4 }
 0x1b9   :  { %v1602_v33 = vadd.f32 %v1601_v6, %v1571_v27  ;;  %v1706_v41 = vadd.f32 %v1705_v48, %v1675_v14  ;;  %v1579_v55 = vand.u32 2147483647, %v2884_v46  ;;  %v206_v27 = vpop.xlane.xlu0 %205 }
 0x1ba   :  { %v1683_v25 = vand.u32 2147483647, %v2885_v57  ;;  %v207_v61 = vrot.slane %v206_v27, 4  ;;  %v264_v47 = vadd.f32 %v263_v34, %v262_v50 }
 0x1bb   :  { %v1603_v43 = vadd.f32 %v1602_v33, %v1572_v9  ;;  %v1707_v4 = vadd.f32 %v1706_v41, %v1676_v40 }
 0x1bc   :  { %v208_v6 = vadd.f32 %v207_v61, %v206_v27  ;;  %v265_v24 = vrot.slane %v264_v47, 2 }
 0x1bd   :  { %v1604_v1 = vadd.f32 %v1603_v43, %v1573_v63  ;;  %v1708_v56 = vadd.f32 %v1707_v4, %v1677_v8 }
 0x1be   :  { %v209_v14 = vrot.slane %v208_v6, 2  ;;  %v266_v11 = vadd.f32 %v265_v24, %v264_v47 }
 0x1bf   :  { %v1605_v45 = vadd.f32 %v1604_v1, %v1574_v60  ;;  %v1709_v37 = vadd.f32 %v1708_v56, %v1678_v7  ;;  %v270_v7 = vlaneseq }
 0x1c0   :  { %v210_v48 = vadd.f32 %v209_v14, %v208_v6  ;;  %v267_v49 = vrot.slane %v266_v11, 1 }
 0x1c1   :  { %v1606_v59 = vadd.f32 %v1605_v45, %v1575_v28  ;;  %v1710_v51 = vadd.f32 %v1709_v37, %v1679_v12  ;;  %v271_v56 = vshrl.u32 %v270_v7, 7 }
 0x1c2   :  { %v211_v9 = vrot.slane %v210_v48, 1  ;;  %v268_v33 = vadd.f32 %v267_v49, %v266_v11 }
 0x1c3   :  { %v1607_v19 = vadd.f32 %v1606_v59, %v1576_v36  ;;  %v1711_v22 = vadd.f32 %v1710_v51, %v1680_v20  ;;  %vm273_vm1 = vcmp.eq.s32.totalorder %v271_v56, 0  ;;  %vm276_vm2 = vcmp.eq.s32.totalorder %v271_v56, 1 }
 0x1c4   :  { %v212_v3 = vadd.f32 %v211_v9, %v210_v48  ;;  %vm1725_vm3 = vcmp.eq.s32.totalorder %v271_v56, 2  ;;  %vm1728_vm4 = vcmp.eq.s32.totalorder %v271_v56, 3 }
 0x1c5   :  { %v1608_v13 = vadd.f32 %v1607_v19, %v1577_v16  ;;  %v1712_v39 = vadd.f32 %v1711_v22, %v1681_v44 }
 0x1c6   :  { %2002 = vpush %v212_v3 }
 0x1c7   :  { %v1609_v0 = vadd.f32 %v1608_v13, %v1578_v53  ;;  %v1713_v54 = vadd.f32 %v1712_v39, %v1682_v35  ;;  %2004 = vpush %v268_v33 }
 0x1c9   :  { %v1610_v18 = vadd.f32 %v1609_v0, %v1579_v55  ;;  %v1714_v30 = vadd.f32 %v1713_v54, %v1683_v25 }
 0x1cb   :  { %1611 = vadd.xlane.f32.xlu0 %v1610_v18  ;;  %1715 = vadd.xlane.f32.xlu1 %v1714_v30 }
 0x1f7   :  { %s2003_s0 = spop %2002 }
 0x1f8   :  { %s2005_s15 = spop %2004  ;;  %v274_v23 = vstv %s2003_s0 }
 0x1f9   :  { %v277_v28 = vstv %s2005_s15  ;;  %v275_v45 = vsel %vm273_vm1, %v274_v23, 0.0 }
 0x1fa   :  { %v278_v42 = vsel %vm276_vm2, %v277_v28, 0.0 }
 0x1fb   :  { %v279_v31 = vadd.f32 %v278_v42, %v275_v45 }
 0x258   :  { %v1612_v17 = vpop.xlane.xlu0 %1611  ;;  %v1716_v58 = vpop.xlane.xlu1 %1715 }
 0x259   :  { %v1613_v40 = vrot.slane %v1612_v17, 4  ;;  %v1717_v41 = vrot.slane %v1716_v58, 4 }
 0x25b   :  { %v1614_v52 = vadd.f32 %v1613_v40, %v1612_v17  ;;  %v1718_v63 = vadd.f32 %v1717_v41, %v1716_v58 }
 0x25d   :  { %v1615_v43 = vrot.slane %v1614_v52, 2  ;;  %v1719_v15 = vrot.slane %v1718_v63, 2 }
 0x25f   :  { %v1616_v8 = vadd.f32 %v1615_v43, %v1614_v52  ;;  %v1720_v4 = vadd.f32 %v1719_v15, %v1718_v63 }
 0x261   :  { %v1617_v62 = vrot.slane %v1616_v8, 1  ;;  %v1721_v60 = vrot.slane %v1720_v4, 1 }
 0x263   :  { %v1618_v1 = vadd.f32 %v1617_v62, %v1616_v8  ;;  %v1722_v32 = vadd.f32 %v1721_v60, %v1720_v4 }
 0x265   :  { %2006 = vpush %v1618_v1 }
 0x266   :  { %2008 = vpush %v1722_v32 }
 0x296   :  { %s2007_s16 = spop %2006 }
 0x297   :  { %v1726_v12 = vstv %s2007_s16  ;;  %s2009_s17 = spop %2008 }
 0x298   :  { %v1727_v37 = vsel %vm1725_vm3, %v1726_v12, 0.0  ;;  %v1729_v5 = vstv %s2009_s17 }
 0x299   :  { %v1730_v36 = vsel %vm1728_vm4, %v1729_v5, 0.0 }
 0x29a   :  { %v1731_v59 = vadd.f32 %v1730_v36, %v1727_v37 }
 0x29c   :  { %v1732_v29 = vadd.f32 %v1731_v59, %v279_v31 }
 0x29e   :  { %1733 = vst [vmem:[%s2791_s1] sm:$0xff] %v1732_v29 }

// kernel: inpainting_loss.9
= control target key start
LH: loop header
LB: loop body
LE: loop exit
PB: predicated region body
PF: predicated region fallthrough
CT: control target
= control target key end

     0   :  { %s2116_s12 = smov 0   ;;  %s2504_s0 = inlined_call_operand.vmem [shape: f32[6,4,5,5,128], index: 0, kind: input, shape index: {}]   ;;  %s2505_s1 = inlined_call_operand.vmem [shape: bf16[9,128,128], index: 1, kind: input, shape index: {}]   ;;  %s2506_s2 = inlined_call_operand.vmem [shape: f32[1,128], index: 2, kind: input, shape index: {}]   ;;  %s2507_s3 = inlined_call_operand.vmem [shape: f32[6,16,128], index: 3, kind: output, shape index: {}]  }
   0x1 LB: > { %s1482_s13 = sadd.s32 4294967295, %s2091_s12   ;;  %p1486_p0 = scmp.ge.s32.totalorder %s2091_s12, 1  ;;  %s2091_s12 = sphi %s2116_s12, %s13_s12  }
   0x2   : > { %p137_p1 = scmp.lt.s32.totalorder %s2091_s12, 7 }
   0x4   : > { %p138_p2 = pnand %p1486_p0, %p137_p1 }
   0x5   : > { %v2013_v0 = vld [vmem:[%s2505_s1 + $0x40] sm:$0xff] (!%p138_p2)   ;;  %v2093_v1 = vmov (!%p138_p2), 0.0   ;;  %v2015_v3 = vld [vmem:[%s2505_s1 + $0x48] sm:$0xff] (!%p138_p2)   ;;  %vm2094_vm0 = vmmov (!%p138_p2), 0   ;;  %p161_p3 = scmp.lt.s32.totalorder (!%p138_p2), %s1482_s13, 5  ;;  %v2017_v5 = vld [vmem:[%s2505_s1 + $0x50] sm:$0xff] (!%p138_p2)   ;;  %v231_v9 = vlaneseq (!%p138_p2) }
   0x6   : > { %141 = sbr.rel (%p138_p2) target bundleno = 387 (0x183), region = 32  ;;  %1821 = vmatprep.subr.bf16.mxu0 (!%p138_p2), %v2093_v1  ;;  %1841 = vmatprep.subr.bf16.mxu1 (!%p138_p2), %v2093_v1  ;;  %v2014_v2 = vld [vmem:[%s2505_s1] sm:$0xff] (!%p138_p2)   ;;  %v2016_v4 = vld [vmem:[%s2505_s1 + $0x8] sm:$0xff] (!%p138_p2)   ;;  %v2018_v6 = vld [vmem:[%s2505_s1 + $0x10] sm:$0xff] (!%p138_p2)   ;;  %v2095_v19 = vmov (!%p138_p2), 1983009808  }
   0x7   : > { %1822 = vmatpush3.bf16.msra.mxu0 (!%p138_p2), %v2013_v0  ;;  %1837 = vmatprep.mubr.msk.bf16.mxu0 (!%p138_p2), %vm2094_vm0, %v2093_v1  ;;  %v2019_v7 = vld [vmem:[%s2505_s1 + $0x58] sm:$0xff] (!%p138_p2)   ;;  %v2021_v10 = vld [vmem:[%s2505_s1 + $0x60] sm:$0xff] (!%p138_p2)   ;;  %v2023_v12 = vld [vmem:[%s2505_s1 + $0x68] sm:$0xff] (!%p138_p2)   ;;  %v232_v15 = vshrl.u32 (!%p138_p2), %v231_v9, 7  ;;  %v229_v20 = vunpack.c.l.s4 (!%p138_p2), %v2095_v19 }
   0x8   : > { %1842 = vmatpush3.bf16.msra.mxu1 (!%p138_p2), %v2014_v2  ;;  %1823 = vmatprep.subr.bf16.mxu0 (!%p138_p2), %v2093_v1  ;;  %v2020_v8 = vld [vmem:[%s2505_s1 + $0x18] sm:$0xff] (!%p138_p2)   ;;  %v2022_v11 = vld [vmem:[%s2505_s1 + $0x20] sm:$0xff] (!%p138_p2)   ;;  %v2024_v16 = vld [vmem:[%s2505_s1 + $0x28] sm:$0xff] (!%p138_p2)  }
   0x9   : > { %1843 = vmatprep.subr.bf16.mxu1 (!%p138_p2), %v2093_v1  ;;  %1857 = vmatprep.mubr.msk.bf16.mxu1 (!%p138_p2), %vm2094_vm0, %v2093_v1  ;;  %v230_v25 = vunpack.c.0.s8 (!%p138_p2), %v229_v20  ;;  %v2025_v28 = vld [vmem:[%s2505_s1 + $0x70] sm:$0xff] (!%p138_p2)   ;;  %v2027_v35 = vld [vmem:[%s2505_s1 + $0x78] sm:$0xff] (!%p138_p2)   ;;  %v2029_v41 = vld [vmem:[%s2505_s1 + $0x80] sm:$0xff] (!%p138_p2)  }
   0xa   : > { %v2026_v32 = vld [vmem:[%s2505_s1 + $0x30] sm:$0xff] (!%p138_p2)   ;;  %v2028_v38 = vld [vmem:[%s2505_s1 + $0x38] sm:$0xff] (!%p138_p2)   ;;  %v2030_v42 = vld [vmem:[%s2505_s1 + $0xc0] sm:$0xff] (!%p138_p2)  }
   0xb   : > { %1824 = vmatpush3.bf16.msra.mxu0 (!%p138_p2), %v2015_v3  ;;  %v2195_v29 = vsub.s32 (!%p138_p2), %v230_v25, %v232_v15  ;;  %v2031_v43 = vld [vmem:[%s2505_s1 + $0x88] sm:$0xff] (!%p138_p2)   ;;  %v2033_v45 = vld [vmem:[%s2505_s1 + $0x90] sm:$0xff] (!%p138_p2)   ;;  %v2035_v47 = vld [vmem:[%s2505_s1 + $0x98] sm:$0xff] (!%p138_p2)  }
   0xc   : > { %1844 = vmatpush3.bf16.msra.mxu1 (!%p138_p2), %v2016_v4  ;;  %1825 = vmatprep.subr.bf16.mxu0 (!%p138_p2), %v2093_v1  ;;  %v2032_v44 = vld [vmem:[%s2505_s1 + $0xc8] sm:$0xff] (!%p138_p2)   ;;  %v2034_v46 = vld [vmem:[%s2505_s1 + $0xd0] sm:$0xff] (!%p138_p2)   ;;  %v2036_v48 = vld [vmem:[%s2505_s1 + $0xd8] sm:$0xff] (!%p138_p2)  }
   0xd   : > { %s2509_s13 = smov (!%p161_p3, %s1482_s13), 5  ;;  %1845 = vmatprep.subr.bf16.mxu1 %v2093_v1  ;;  %v2037_v49 = vld [vmem:[%s2505_s1 + $0xa0] sm:$0xff]   ;;  %v2039_v51 = vld [vmem:[%s2505_s1 + $0xa8] sm:$0xff]   ;;  %v2041_v63 = vld [vmem:[%s2505_s1 + $0xb0] sm:$0xff]  }
   0xe   : > { %s2001_s26 = smul.u32 160, %s2509_s13  ;;  %v2038_v50 = vld [vmem:[%s2505_s1 + $0xe0] sm:$0xff]   ;;  %v2040_v56 = vld [vmem:[%s2505_s1 + $0xe8] sm:$0xff]   ;;  %v2042_v3 = vld [vmem:[%s2505_s1 + $0xf0] sm:$0xff]   ;;  %s1739_s18 = sshll.u32 %s2509_s13, 4 }
   0xf   : > { %1826 = vmatpush3.bf16.msra.mxu0 %v2017_v5  ;;  %v2044_v9 = vld [vmem:[%s2505_s1 + $0xf8] sm:$0xff]   ;;  %v2048_v15 = vld [vmem:[%s2505_s1 + $0x148] sm:$0xff]   ;;  %v2053_v20 = vld [vmem:[%s2505_s1 + $0x120] sm:$0xff]   ;;  %s170_s21 = scalar_lea.vmem %s2507_s3, %s1739_s18 }
  0x10   : > { %1846 = vmatpush3.bf16.msra.mxu1 %v2018_v6  ;;  %1827 = vmatprep.subr.bf16.mxu0 %v2093_v1  ;;  %s2166_s6 = scalar_lea.vmem %s2504_s0, %s2001_s26  ;;  %v2043_v6 = vld [vmem:[%s2505_s1 + $0xb8] sm:$0xff]  }
  0x11   : > { %1847 = vmatprep.subr.bf16.mxu1 %v2093_v1  ;;  %v1490_v13 = vld [vmem:[%s2166_s6 + $0x28] sm:$0xf]  ;;  %v1491_v14 = vld [vmem:[%s2166_s6 + $0x30] sm:$0xf]  ;;  %v1492_v17 = vld [vmem:[%s2166_s6 + $0x38] sm:$0xf] }
  0x12   : > { %v1493_v18 = vld [vmem:[%s2166_s6 + $0x40] sm:$0xf]  ;;  %v173_v22 = vld [vmem:[%s2166_s6 + $0x8] sm:$0xf]  ;;  %v174_v23 = vld [vmem:[%s2166_s6 + $0x10] sm:$0xf]  ;;  %v1510_v26 = vpack.c.bf16 %v1491_v14, %v1490_v13 }
  0x13   : > { %1828 = vmatpush3.bf16.msra.mxu0 %v2019_v7  ;;  %v172_v21 = vld [vmem:[%s2166_s6] sm:$0xf]  ;;  %v175_v24 = vld [vmem:[%s2166_s6 + $0x18] sm:$0xf]  ;;  %v1511_v27 = vpack.c.bf16 %v1493_v18, %v1492_v17  ;;  %v445_v53 = vld [vmem:[%s2166_s6 + $0x9] sm:$0xf] }
  0x14   : > { %1848 = vmatpush3.bf16.msra.mxu1 %v2020_v8  ;;  %1829 = vmatprep.subr.bf16.mxu0 %v2093_v1  ;;  %v1520_v30 = vpack.c.bf16 %v173_v22, %v172_v21  ;;  %v1521_v31 = vpack.c.bf16 %v175_v24, %v174_v23  ;;  %v234_v33 = vrot.slane %v1510_v26, %v2195_v29  ;;  %v444_v52 = vld [vmem:[%s2166_s6 + $0x1] sm:$0xf]  ;;  %v446_v54 = vld [vmem:[%s2166_s6 + $0x11] sm:$0xf]  ;;  %v447_v55 = vld [vmem:[%s2166_s6 + $0x19] sm:$0xf] }
  0x15   : > { %1849 = vmatprep.subr.bf16.mxu1 %v2093_v1  ;;  %v241_v34 = vrot.slane %v1511_v27, %v2195_v29  ;;  %v1556_v57 = vld [vmem:[%s2166_s6 + $0x50] sm:$0xf]  ;;  %v1557_v58 = vld [vmem:[%s2166_s6 + $0x58] sm:$0xf]  ;;  %v1558_v59 = vld [vmem:[%s2166_s6 + $0x60] sm:$0xf]  ;;  %v1546_v61 = vpack.c.bf16 %v445_v53, %v444_v52  ;;  %v1547_v62 = vpack.c.bf16 %v447_v55, %v446_v54 }
  0x16   : > { %v345_v36 = vrot.slane %v1520_v30, %v2195_v29  ;;  %v352_v37 = vrot.slane %v1521_v31, %v2195_v29  ;;  %v1559_v60 = vld [vmem:[%s2166_s6 + $0x68] sm:$0xf]  ;;  %v1576_v0 = vpack.c.bf16 %v1557_v58, %v1556_v57  ;;  %v2046_v13 = vld [vmem:[%s2505_s1 + $0x140] sm:$0xff]   ;;  %v2050_v17 = vld [vmem:[%s2505_s1 + $0x150] sm:$0xff]  }
  0x17   : > { %1830 = vmatpush3.bf16.msra.mxu0 %v2021_v10  ;;  %v242_v39 = vcombine.low %v234_v33, %v241_v34  ;;  %v1577_v2 = vpack.c.bf16 %v1559_v60, %v1558_v59  ;;  %v481_v4 = vrot.slane %v1546_v61, %v2195_v29  ;;  %v488_v5 = vrot.slane %v1547_v62, %v2195_v29  ;;  %v2047_v14 = vld [vmem:[%s2505_s1 + $0x108] sm:$0xff]   ;;  %v2051_v18 = vld [vmem:[%s2505_s1 + $0x118] sm:$0xff]   ;;  %v2054_v21 = vld [vmem:[%s2505_s1 + $0x160] sm:$0xff]  }
  0x18   : > { %1850 = vmatpush3.bf16.msra.mxu1 %v2022_v11  ;;  %1831 = vmatprep.subr.bf16.mxu0 %v2093_v1  ;;  %v353_v40 = vcombine.low %v345_v36, %v352_v37  ;;  %v620_v7 = vrot.slane %v1576_v0, %v2195_v29  ;;  %v2045_v11 = vld [vmem:[%s2505_s1 + $0x100] sm:$0xff]   ;;  %v2052_v19 = vld [vmem:[%s2505_s1 + $0x158] sm:$0xff]   ;;  %v2055_v22 = vld [vmem:[%s2505_s1 + $0x128] sm:$0xff]  }
  0x19   : > { %1851 = vmatprep.subr.bf16.mxu1 %v2093_v1  ;;  %v627_v8 = vrot.slane %v1577_v2, %v2195_v29  ;;  %v489_v10 = vcombine.low %v481_v4, %v488_v5  ;;  %v1586_v23 = vld [vmem:[%s2166_s6 + $0x78] sm:$0xf]  ;;  %v1587_v24 = vld [vmem:[%s2166_s6 + $0x80] sm:$0xf]  ;;  %v1588_v25 = vld [vmem:[%s2166_s6 + $0x88] sm:$0xf] }
  0x1a   : > { %v2056_v26 = vld [vmem:[%s2505_s1 + $0x168] sm:$0xff]   ;;  %v1589_v27 = vld [vmem:[%s2166_s6 + $0x90] sm:$0xf]  ;;  %v1617_v30 = vld [vmem:[%s2166_s6 + $0x59] sm:$0xf]  ;;  %v1606_v33 = vpack.c.bf16 %v1587_v24, %v1586_v23 }
  0x1b   : > { %1832 = vmatpush3.bf16.msra.mxu0 %v2023_v12  ;;  %v628_v12 = vcombine.low %v620_v7, %v627_v8  ;;  %v1618_v31 = vld [vmem:[%s2166_s6 + $0x61] sm:$0xf]  ;;  %v1607_v34 = vpack.c.bf16 %v1589_v27, %v1588_v25  ;;  %v2066_v52 = vld [vmem:[%s2505_s1 + $0x1d0] sm:$0xff]   ;;  %v2067_v53 = vld [vmem:[%s2505_s1 + $0x198] sm:$0xff]  }
  0x1c   : > { %1852 = vmatpush3.bf16.msra.mxu1 %v2024_v16  ;;  %1833 = vmatprep.subr.bf16.mxu0 %v2093_v1  ;;  %v2049_v16 = vld [vmem:[%s2505_s1 + $0x110] sm:$0xff]   ;;  %v2068_v54 = vld [vmem:[%s2505_s1 + $0x1d8] sm:$0xff]   ;;  %v2069_v55 = vld [vmem:[%s2505_s1 + $0x1a0] sm:$0xff]  }
  0x1d   : > { %1853 = vmatprep.subr.bf16.mxu1 %v2093_v1  ;;  %v2071_v57 = vld [vmem:[%s2505_s1 + $0x1a8] sm:$0xff]   ;;  %v1647_v60 = vld [vmem:[%s2166_s6 + $0x10] sm:$0xf]  ;;  %v1648_v61 = vld [vmem:[%s2166_s6 + $0x18] sm:$0xf] }
  0x1e   : > { %v2072_v58 = vld [vmem:[%s2505_s1 + $0x1e8] sm:$0xff]   ;;  %v1649_v62 = vld [vmem:[%s2166_s6 + $0x20] sm:$0xf]  ;;  %v1677_v0 = vld [vmem:[%s2166_s6 + $0x38] sm:$0xf] }
  0x1f   : > { %1834 = vmatpush3.bf16.msra.mxu0 %v2025_v28  ;;  %v1616_v28 = vld [vmem:[%s2166_s6 + $0x51] sm:$0xf]  ;;  %v1646_v59 = vld [vmem:[%s2166_s6 + $0x8] sm:$0xf]  ;;  %v1678_v2 = vld [vmem:[%s2166_s6 + $0x40] sm:$0xf]  ;;  %v1667_v5 = vpack.c.bf16 %v1649_v62, %v1648_v61 }
  0x20   : > { %1854 = vmatpush3.bf16.msra.mxu1 %v2026_v32  ;;  %1835 = vmatprep.subr.bf16.mxu0 %v2093_v1  ;;  %v1619_v32 = vld [vmem:[%s2166_s6 + $0x69] sm:$0xf]  ;;  %v1636_v36 = vpack.c.bf16 %v1617_v30, %v1616_v28  ;;  %v1666_v4 = vpack.c.bf16 %v1647_v60, %v1646_v59  ;;  %v1707_v25 = vld [vmem:[%s2166_s6 + $0x11] sm:$0xf]  ;;  %v1709_v27 = vld [vmem:[%s2166_s6 + $0x21] sm:$0xf] }
  0x21   : > { %1855 = vmatprep.subr.bf16.mxu1 %v2093_v1  ;;  %v1637_v37 = vpack.c.bf16 %v1619_v32, %v1618_v31  ;;  %v2082_v23 = vld [vmem:[%s2505_s1 + $0x228] sm:$0xff]   ;;  %v2083_v31 = vld [vmem:[%s2505_s1 + $0x230] sm:$0xff]  }
  0x22   : > { %v1706_v24 = vld [vmem:[%s2166_s6 + $0x9] sm:$0xf] }
  0x23   : > { %1836 = vmatpush3.bf16.msra.mxu0 %v2027_v35  ;;  %v2057_v35 = vld [vmem:[%s2505_s1 + $0x130] sm:$0xff]   ;;  %v1726_v28 = vpack.c.bf16 %v1707_v25, %v1706_v24 }
  0x24   : > { %1856 = vmatpush3.bf16.msra.mxu1 %v2028_v38  ;;  %1861 = vmatprep.subr.bf16.mxu0 %v2093_v1  ;;  %v2058_v38 = vld [vmem:[%s2505_s1 + $0x170] sm:$0xff]  }
  0x25   : > { %1881 = vmatprep.subr.bf16.mxu1 %v2093_v1  ;;  %v1313_v32 = vrot.slane %v1726_v28, %v2195_v29 }
  0x26   : > { %1838 = vmatmul.mubr.bf16.vlgmr.msra.gmra.mrb[0].mxu0 %v242_v39  ;;  %v759_v39 = vrot.slane %v1606_v33, %v2195_v29 }
  0x27   : > { %1858 = vmatmul.mubr.bf16.vlgmr.msra.gmra.mrb[0].mxu1 %v353_v40  ;;  %1862 = vmatpush3.bf16.msra.mxu0 %v2029_v41  ;;  %v766_v40 = vrot.slane %v1607_v34, %v2195_v29  ;;  %v2059_v41 = vld [vmem:[%s2505_s1 + $0x138] sm:$0xff]  }
  0x28   : > { %1882 = vmatpush3.bf16.msra.mxu1 %v2030_v42  ;;  %1863 = vmatprep.subr.bf16.mxu0 %v2093_v1  ;;  %v897_v42 = vrot.slane %v1636_v36, %v2195_v29  ;;  %v2084_v34 = vld [vmem:[%s2505_s1 + $0x238] sm:$0xff]  }
  0x29   : > { %1883 = vmatprep.subr.bf16.mxu1 %v2093_v1  ;;  %1877 = vmatprep.mubr.msk.bf16.mxu0 %vm2094_vm0, %v2093_v1 }
  0x2a   : > { %1897 = vmatprep.mubr.msk.bf16.mxu1 %vm2094_vm0, %v2093_v1 }
  0x2b   : > { %1864 = vmatpush3.bf16.msra.mxu0 %v2031_v43  ;;  %v904_v43 = vrot.slane %v1637_v37, %v2195_v29 }
  0x2c   : > { %1884 = vmatpush3.bf16.msra.mxu1 %v2032_v44  ;;  %1865 = vmatprep.subr.bf16.mxu0 %v2093_v1  ;;  %v2060_v44 = vld [vmem:[%s2505_s1 + $0x178] sm:$0xff]  }
  0x2d   : > { %1885 = vmatprep.subr.bf16.mxu1 %v2093_v1 }
  0x2f   : > { %1866 = vmatpush3.bf16.msra.mxu0 %v2033_v45  ;;  %v767_v45 = vcombine.low %v759_v39, %v766_v40 }
  0x30   : > { %1886 = vmatpush3.bf16.msra.mxu1 %v2034_v46  ;;  %1867 = vmatprep.subr.bf16.mxu0 %v2093_v1  ;;  %v2061_v46 = vld [vmem:[%s2505_s1 + $0x180] sm:$0xff]  }
  0x31   : > { %1887 = vmatprep.subr.bf16.mxu1 %v2093_v1 }
  0x33   : > { %1868 = vmatpush3.bf16.msra.mxu0 %v2035_v47  ;;  %v905_v47 = vcombine.low %v897_v42, %v904_v43 }
  0x34   : > { %1888 = vmatpush3.bf16.msra.mxu1 %v2036_v48  ;;  %1869 = vmatprep.subr.bf16.mxu0 %v2093_v1  ;;  %v2062_v48 = vld [vmem:[%s2505_s1 + $0x1c0] sm:$0xff]  }
  0x35   : > { %1889 = vmatprep.subr.bf16.mxu1 %v2093_v1 }
  0x37   : > { %1870 = vmatpush3.bf16.msra.mxu0 %v2037_v49  ;;  %v2063_v49 = vld [vmem:[%s2505_s1 + $0x188] sm:$0xff]  }
  0x38   : > { %1890 = vmatpush3.bf16.msra.mxu1 %v2038_v50  ;;  %1871 = vmatprep.subr.bf16.mxu0 %v2093_v1  ;;  %v2064_v50 = vld [vmem:[%s2505_s1 + $0x1c8] sm:$0xff]  }
  0x39   : > { %1891 = vmatprep.subr.bf16.mxu1 %v2093_v1 }
  0x3b   : > { %1872 = vmatpush3.bf16.msra.mxu0 %v2039_v51  ;;  %v2065_v51 = vld [vmem:[%s2505_s1 + $0x190] sm:$0xff]  }
  0x3c   : > { %1892 = vmatpush3.bf16.msra.mxu1 %v2040_v56  ;;  %1873 = vmatprep.subr.bf16.mxu0 %v2093_v1  ;;  %v2070_v56 = vld [vmem:[%s2505_s1 + $0x1e0] sm:$0xff]  }
  0x3d   : > { %1893 = vmatprep.subr.bf16.mxu1 %v2093_v1 }
  0x3f   : > { %1874 = vmatpush3.bf16.msra.mxu0 %v2041_v63  ;;  %v1676_v63 = vld [vmem:[%s2166_s6 + $0x30] sm:$0xf] }
  0x40   : > { %1894 = vmatpush3.bf16.msra.mxu1 %v2042_v3  ;;  %1875 = vmatprep.subr.bf16.mxu0 %v2093_v1  ;;  %v1679_v3 = vld [vmem:[%s2166_s6 + $0x48] sm:$0xf]  ;;  %v1696_v7 = vpack.c.bf16 %v1677_v0, %v1676_v63 }
  0x41   : > { %1895 = vmatprep.subr.bf16.mxu1 %v2093_v1  ;;  %v1697_v8 = vpack.c.bf16 %v1679_v3, %v1678_v2 }
  0x43   : > { %1876 = vmatpush3.bf16.msra.mxu0 %v2043_v6  ;;  %v2073_v6 = vld [vmem:[%s2505_s1 + $0x1b0] sm:$0xff]  }
  0x44   : > { %1896 = vmatpush3.bf16.msra.mxu1 %v2044_v9  ;;  %1901 = vmatprep.subr.bf16.mxu0 %v2093_v1  ;;  %v2074_v9 = vld [vmem:[%s2505_s1 + $0x1f0] sm:$0xff]  }
  0x45   : > { %1921 = vmatprep.subr.bf16.mxu1 %v2093_v1 }
  0x46   : > { %1878 = vmatmul.mubr.bf16.vlgmr.msra.gmra.mrb[4].mxu0 %v489_v10  ;;  %v1036_v10 = vrot.slane %v1666_v4, %v2195_v29 }
  0x47   : > { %1902 = vmatpush3.bf16.msra.mxu0 %v2045_v11  ;;  %1898 = vmatmul.mubr.bf16.vlgmr.msra.gmra.mrb[4].mxu1 %v628_v12  ;;  %v1043_v11 = vrot.slane %v1667_v5, %v2195_v29  ;;  %v2075_v12 = vld [vmem:[%s2505_s1 + $0x1b8] sm:$0xff]  }
  0x48   : > { %1922 = vmatpush3.bf16.msra.mxu1 %v2046_v13  ;;  %1903 = vmatprep.subr.bf16.mxu0 %v2093_v1  ;;  %v1175_v13 = vrot.slane %v1696_v7, %v2195_v29 }
  0x49   : > { %1923 = vmatprep.subr.bf16.mxu1 %v2093_v1  ;;  %1917 = vmatprep.mubr.msk.bf16.mxu0 %vm2094_vm0, %v2093_v1 }
  0x4a   : > { %1937 = vmatprep.mubr.msk.bf16.mxu1 %vm2094_vm0, %v2093_v1 }
  0x4b   : > { %1904 = vmatpush3.bf16.msra.mxu0 %v2047_v14  ;;  %v1182_v14 = vrot.slane %v1697_v8, %v2195_v29 }
  0x4c   : > { %1924 = vmatpush3.bf16.msra.mxu1 %v2048_v15  ;;  %1905 = vmatprep.subr.bf16.mxu0 %v2093_v1  ;;  %v2076_v15 = vld [vmem:[%s2505_s1 + $0x1f8] sm:$0xff]  }
  0x4d   : > { %1925 = vmatprep.subr.bf16.mxu1 %v2093_v1 }
  0x4f   : > { %1906 = vmatpush3.bf16.msra.mxu0 %v2049_v16  ;;  %v1044_v16 = vcombine.low %v1036_v10, %v1043_v11 }
  0x50   : > { %1926 = vmatpush3.bf16.msra.mxu1 %v2050_v17  ;;  %1907 = vmatprep.subr.bf16.mxu0 %v2093_v1  ;;  %v2077_v17 = vld [vmem:[%s2505_s1 + $0x200] sm:$0xff]  }
  0x51   : > { %1927 = vmatprep.subr.bf16.mxu1 %v2093_v1 }
  0x53   : > { %1908 = vmatpush3.bf16.msra.mxu0 %v2051_v18  ;;  %v1183_v18 = vcombine.low %v1175_v13, %v1182_v14 }
  0x54   : > { %1928 = vmatpush3.bf16.msra.mxu1 %v2052_v19  ;;  %1909 = vmatprep.subr.bf16.mxu0 %v2093_v1  ;;  %v2078_v19 = vld [vmem:[%s2505_s1 + $0x208] sm:$0xff]  }
  0x55   : > { %1929 = vmatprep.subr.bf16.mxu1 %v2093_v1 }
  0x57   : > { %1910 = vmatpush3.bf16.msra.mxu0 %v2053_v20  ;;  %v2079_v20 = vld [vmem:[%s2505_s1 + $0x210] sm:$0xff]  }
  0x58   : > { %1930 = vmatpush3.bf16.msra.mxu1 %v2054_v21  ;;  %1911 = vmatprep.subr.bf16.mxu0 %v2093_v1  ;;  %v2080_v21 = vld [vmem:[%s2505_s1 + $0x218] sm:$0xff]  }
  0x59   : > { %1931 = vmatprep.subr.bf16.mxu1 %v2093_v1 }
  0x5b   : > { %1912 = vmatpush3.bf16.msra.mxu0 %v2055_v22  ;;  %v2081_v22 = vld [vmem:[%s2505_s1 + $0x220] sm:$0xff]  }
  0x5c   : > { %1932 = vmatpush3.bf16.msra.mxu1 %v2056_v26  ;;  %1913 = vmatprep.subr.bf16.mxu0 %v2093_v1  ;;  %v1708_v26 = vld [vmem:[%s2166_s6 + $0x19] sm:$0xf] }
  0x5d   : > { %1933 = vmatprep.subr.bf16.mxu1 %v2093_v1  ;;  %v1727_v30 = vpack.c.bf16 %v1709_v27, %v1708_v26 }
  0x5f   : > { %1914 = vmatpush3.bf16.msra.mxu0 %v2057_v35  ;;  %v1320_v33 = vrot.slane %v1727_v30, %v2195_v29 }
  0x60   : > { %1934 = vmatpush3.bf16.msra.mxu1 %v2058_v38  ;;  %1915 = vmatprep.subr.bf16.mxu0 %v2093_v1 }
  0x61   : > { %1935 = vmatprep.subr.bf16.mxu1 %v2093_v1  ;;  %v1321_v35 = vcombine.low %v1313_v32, %v1320_v33 }
  0x63   : > { %1916 = vmatpush3.bf16.msra.mxu0 %v2059_v41 }
  0x64   : > { %1936 = vmatpush3.bf16.msra.mxu1 %v2060_v44  ;;  %1941 = vmatprep.subr.bf16.mxu0 %v2093_v1 }
  0x65   : > { %1961 = vmatprep.subr.bf16.mxu1 %v2093_v1 }
  0x66   : > { %1918 = vmatmul.mubr.bf16.vlgmr.msra.gmra.mrb[8].mxu0 %v767_v45 }
  0x67   : > { %1942 = vmatpush3.bf16.msra.mxu0 %v2061_v46  ;;  %1938 = vmatmul.mubr.bf16.vlgmr.msra.gmra.mrb[8].mxu1 %v905_v47 }
  0x68   : > { %1962 = vmatpush3.bf16.msra.mxu1 %v2062_v48  ;;  %1943 = vmatprep.subr.bf16.mxu0 %v2093_v1 }
  0x69   : > { %1963 = vmatprep.subr.bf16.mxu1 %v2093_v1  ;;  %1957 = vmatprep.mubr.msk.bf16.mxu0 %vm2094_vm0, %v2093_v1 }
  0x6a   : > { %1977 = vmatprep.mubr.msk.bf16.mxu1 %vm2094_vm0, %v2093_v1 }
  0x6b   : > { %1944 = vmatpush3.bf16.msra.mxu0 %v2063_v49 }
  0x6c   : > { %1964 = vmatpush3.bf16.msra.mxu1 %v2064_v50  ;;  %1945 = vmatprep.subr.bf16.mxu0 %v2093_v1 }
  0x6d   : > { %1965 = vmatprep.subr.bf16.mxu1 %v2093_v1 }
  0x6f   : > { %1946 = vmatpush3.bf16.msra.mxu0 %v2065_v51 }
  0x70   : > { %1966 = vmatpush3.bf16.msra.mxu1 %v2066_v52  ;;  %1947 = vmatprep.subr.bf16.mxu0 %v2093_v1 }
  0x71   : > { %1967 = vmatprep.subr.bf16.mxu1 %v2093_v1 }
  0x73   : > { %1948 = vmatpush3.bf16.msra.mxu0 %v2067_v53 }
  0x74   : > { %1968 = vmatpush3.bf16.msra.mxu1 %v2068_v54  ;;  %1949 = vmatprep.subr.bf16.mxu0 %v2093_v1 }
  0x75   : > { %1969 = vmatprep.subr.bf16.mxu1 %v2093_v1 }
  0x77   : > { %1950 = vmatpush3.bf16.msra.mxu0 %v2069_v55 }
  0x78   : > { %1970 = vmatpush3.bf16.msra.mxu1 %v2070_v56  ;;  %1951 = vmatprep.subr.bf16.mxu0 %v2093_v1 }
  0x79   : > { %1971 = vmatprep.subr.bf16.mxu1 %v2093_v1 }
  0x7b   : > { %1952 = vmatpush3.bf16.msra.mxu0 %v2071_v57 }
  0x7c   : > { %1972 = vmatpush3.bf16.msra.mxu1 %v2072_v58  ;;  %1953 = vmatprep.subr.bf16.mxu0 %v2093_v1 }
  0x7d   : > { %1973 = vmatprep.subr.bf16.mxu1 %v2093_v1 }
  0x7f   : > { %1954 = vmatpush3.bf16.msra.mxu0 %v2073_v6 }
  0x80   : > { %1974 = vmatpush3.bf16.msra.mxu1 %v2074_v9  ;;  %1955 = vmatprep.subr.bf16.mxu0 %v2093_v1 }
  0x81   : > { %1975 = vmatprep.subr.bf16.mxu1 %v2093_v1 }
  0x83   : > { %1956 = vmatpush3.bf16.msra.mxu0 %v2075_v12 }
  0x84   : > { %1976 = vmatpush3.bf16.msra.mxu1 %v2076_v15  ;;  %1981 = vmatprep.subr.bf16.mxu0 %v2093_v1 }
  0x86   : > { %1958 = vmatmul.mubr.bf16.vlgmr.msra.gmra.mrb[12].mxu0 %v1044_v16 }
  0x87   : > { %1982 = vmatpush3.bf16.msra.mxu0 %v2077_v17  ;;  %1978 = vmatmul.mubr.bf16.vlgmr.msra.gmra.mrb[12].mxu1 %v1183_v18  ;;  %v1736_v18 = vld [vmem:[%s2506_s2] ss:$0 sm:$0xff] }
  0x88   : > { %1983 = vmatprep.subr.bf16.mxu0 %v2093_v1  ;;  %1997 = vmatprep.mubr.msk.bf16.mxu0 %vm2094_vm0, %v2093_v1 }
  0x8b   : > { %1984 = vmatpush3.bf16.msra.mxu0 %v2078_v19 }
  0x8c   : > { %1985 = vmatprep.subr.bf16.mxu0 %v2093_v1 }
  0x8f   : > { %1986 = vmatpush3.bf16.msra.mxu0 %v2079_v20 }
  0x90   : > { %1987 = vmatprep.subr.bf16.mxu0 %v2093_v1 }
  0x93   : > { %1988 = vmatpush3.bf16.msra.mxu0 %v2080_v21 }
  0x94   : > { %1989 = vmatprep.subr.bf16.mxu0 %v2093_v1 }
  0x97   : > { %1990 = vmatpush3.bf16.msra.mxu0 %v2081_v22 }
  0x98   : > { %1991 = vmatprep.subr.bf16.mxu0 %v2093_v1 }
  0x9b   : > { %1992 = vmatpush3.bf16.msra.mxu0 %v2082_v23 }
  0x9c   : > { %1993 = vmatprep.subr.bf16.mxu0 %v2093_v1 }
  0x9f   : > { %1994 = vmatpush3.bf16.msra.mxu0 %v2083_v31 }
  0xa0   : > { %1995 = vmatprep.subr.bf16.mxu0 %v2093_v1 }
  0xa3   : > { %1996 = vmatpush3.bf16.msra.mxu0 %v2084_v34 }
  0xa6   : > { %1998 = vmatmul.mubr.bf16.vlgmr.msra.gmra.mrb[16].mxu0 %v1321_v35 }
  0xf9   : > { %v326_v36 = vpop.f32.mrb[0].mxu0 }
  0xfa   : > { %v437_v37 = vpop.f32.mrb[0].mxu1  ;;  %v1839_v38 = vpop.f32.mrb[1].mxu0 }
  0xfb   : > { %v438_v39 = vadd.f32 %v437_v37, %v326_v36  ;;  %v1859_v40 = vpop.f32.mrb[1].mxu1  ;;  %v329_v41 = vpop.f32.mrb[2].mxu0 }
  0xfc   : > { %v440_v42 = vpop.f32.mrb[2].mxu1  ;;  %v1840_v43 = vpop.f32.mrb[3].mxu0 }
  0xfd   : > { %v441_v44 = vadd.f32 %v440_v42, %v329_v41  ;;  %v1860_v29 = vpop.f32.mrb[3].mxu1 }
 0x119   : > { %v573_v45 = vpop.f32.mrb[4].mxu0 }
 0x11a   : > { %v580_v46 = vadd.f32 %v573_v45, %v438_v39  ;;  %v1879_v47 = vpop.f32.mrb[5].mxu0  ;;  %v712_v48 = vpop.f32.mrb[4].mxu1 }
 0x11b   : > { %v576_v49 = vpop.f32.mrb[6].mxu0  ;;  %v1899_v50 = vpop.f32.mrb[5].mxu1 }
 0x11c   : > { %v581_v1 = vadd.f32 %v576_v49, %v441_v44  ;;  %v719_v51 = vadd.f32 %v712_v48, %v580_v46  ;;  %v1880_v52 = vpop.f32.mrb[7].mxu0  ;;  %v715_v53 = vpop.f32.mrb[6].mxu1 }
 0x11d   : > { %v1900_v54 = vpop.f32.mrb[7].mxu1 }
 0x11e   : > { %v720_v55 = vadd.f32 %v715_v53, %v581_v1 }
 0x139   : > { %v851_v56 = vpop.f32.mrb[8].mxu0 }
 0x13a   : > { %v858_v57 = vadd.f32 %v851_v56, %v719_v51  ;;  %v1919_v58 = vpop.f32.mrb[9].mxu0  ;;  %v989_v59 = vpop.f32.mrb[8].mxu1 }
 0x13b   : > { %v854_v60 = vpop.f32.mrb[10].mxu0  ;;  %v1939_v61 = vpop.f32.mrb[9].mxu1 }
 0x13c   : > { %v859_v62 = vadd.f32 %v854_v60, %v720_v55  ;;  %v996_v63 = vadd.f32 %v989_v59, %v858_v57  ;;  %v1920_v0 = vpop.f32.mrb[11].mxu0  ;;  %v992_v2 = vpop.f32.mrb[10].mxu1 }
 0x13d   : > { %v1940_v3 = vpop.f32.mrb[11].mxu1 }
 0x13e   : > { %v997_v4 = vadd.f32 %v992_v2, %v859_v62 }
 0x159   : > { %v1128_v5 = vpop.f32.mrb[12].mxu0 }
 0x15a   : > { %v1135_v6 = vadd.f32 %v1128_v5, %v996_v63  ;;  %v1959_v7 = vpop.f32.mrb[13].mxu0  ;;  %v1267_v8 = vpop.f32.mrb[12].mxu1 }
 0x15b   : > { %v1131_v9 = vpop.f32.mrb[14].mxu0  ;;  %v1979_v10 = vpop.f32.mrb[13].mxu1 }
 0x15c   : > { %v1136_v11 = vadd.f32 %v1131_v9, %v997_v4  ;;  %v1274_v12 = vadd.f32 %v1267_v8, %v1135_v6  ;;  %v1960_v13 = vpop.f32.mrb[15].mxu0  ;;  %v1270_v14 = vpop.f32.mrb[14].mxu1 }
 0x15d   : > { %v1980_v15 = vpop.f32.mrb[15].mxu1 }
 0x15e   : > { %v1275_v16 = vadd.f32 %v1270_v14, %v1136_v11 }
 0x179   : > { %v1405_v17 = vpop.f32.mrb[16].mxu0 }
 0x17a   : > { %v1412_v19 = vadd.f32 %v1405_v17, %v1274_v12  ;;  %v1999_v20 = vpop.f32.mrb[17].mxu0 }
 0x17b   : > { %v1408_v21 = vpop.f32.mrb[18].mxu0 }
 0x17c   : > { %v1421_v22 = vadd.f32 %v1736_v18, %v1412_v19  ;;  %v1413_v23 = vadd.f32 %v1408_v21, %v1275_v16  ;;  %v2000_v24 = vpop.f32.mrb[19].mxu0 }
 0x17e   : > { %v1423_v25 = vmax.f32 %v1421_v22, 0.0  ;;  %v1422_v26 = vadd.f32 %v1736_v18, %v1413_v23 }
 0x180   : > { %1425 = vst [vmem:[%s170_s21] sm:$0xff] %v1423_v25  ;;  %v1424_v27 = vmax.f32 %v1422_v26, 0.0 }
 0x182   : > { %1426 = vst [vmem:[%s170_s21 + $0x8] sm:$0xff] %v1424_v27 }
 0x183 PF: > { %s13_s12 = sadd.s32 1, %s2091_s12  }
 0x184   : > { %p10_p4 = scmp.ge.s32.totalorder %s13_s12, 8  }
 0x186   :  { %12 = sbr.rel (!%p10_p4) target bundleno = 1 (0x1), region = 75 }

// kernel: inpainting_loss.12
= control target key start
LH: loop header
LB: loop body
LE: loop exit
PB: predicated region body
PF: predicated region fallthrough
CT: control target
= control target key end

     0   :  { %vm372_vm0 = vcmask 130048   ;;  %s2178_s0 = inlined_call_operand.vmem [shape: f32[6,16,128], index: 0, kind: input, shape index: {}]   ;;  %s2179_s1 = inlined_call_operand.vmem [shape: f32[8,128], index: 1, kind: output, shape index: {}]  }
   0x1   :  { %v1845_v0 = vld [vmem:[%s2178_s0] sm:$0xff]  ;;  %v1850_v1 = vld [vmem:[%s2178_s0 + $0x8] sm:$0xff]  ;;  %v1887_v12 = vld [vmem:[%s2178_s0 + $0x10] sm:$0xff] }
   0x2   :  { %v1855_v2 = vld [vmem:[%s2178_s0 + $0x40] sm:$0xff]  ;;  %v1860_v3 = vld [vmem:[%s2178_s0 + $0x48] sm:$0xff]  ;;  %v174_v4 = vpack.c.bf16 %v1850_v1, %v1845_v0  ;;  %v1892_v13 = vld [vmem:[%s2178_s0 + $0x18] sm:$0xff] }
   0x3   :  { %v122_v5 = vsub.f32 %v1845_v0, %v1855_v2  ;;  %v1869_v6 = vld [vmem:[%s2178_s0 + $0x20] sm:$0xff]  ;;  %v1874_v7 = vld [vmem:[%s2178_s0 + $0x28] sm:$0xff]  ;;  %v123_v8 = vsub.f32 %v1850_v1, %v1860_v3  ;;  %v1897_v14 = vld [vmem:[%s2178_s0 + $0x30] sm:$0xff]  ;;  %v175_v15 = vpack.c.bf16 %v1892_v13, %v1887_v12  ;;  %v178_v20 = vpack.c.bf16 %v1860_v3, %v1855_v2 }
   0x4   :  { %v143_v9 = vsub.f32 %v1874_v7, %v1860_v3  ;;  %v176_v10 = vpack.c.bf16 %v1874_v7, %v1869_v6  ;;  %v142_v11 = vsub.f32 %v1869_v6, %v1855_v2  ;;  %180 = vxpose.xlu0.c.b16.start.end [1/1] (short) %v174_v4, 128  ;;  %v1904_v16 = vld [vmem:[%s2178_s0 + $0x38] sm:$0xff]  ;;  %1714 = vmatprep.subr.bf16.mxu0 %v174_v4  ;;  %v1911_v18 = vld [vmem:[%s2178_s0 + $0x50] sm:$0xff] }
   0x5   :  { %1715 = vmatpush3.bf16.msra.mxu0 %v174_v4  ;;  %v177_v17 = vpack.c.bf16 %v1904_v16, %v1897_v14  ;;  %1732 = vmatprep.subr.bf16.mxu1 %v175_v15  ;;  %v1916_v19 = vld [vmem:[%s2178_s0 + $0x58] sm:$0xff] }
   0x6   :  { %212 = vxpose.xlu1.c.b16.start.end [1/1] (short) %v176_v10, 128  ;;  %1750 = vmatprep.subr.bf16.mxu0 %v176_v10  ;;  %v1922_v21 = vpack.c.bf16 %v1916_v19, %v1911_v18  ;;  %v145_v7 = vsub.f32 %v1904_v16, %v1916_v19 }
   0x7   :  { %1733 = vmatpush3.bf16.msra.mxu1 %v175_v15 }
   0x8   :  { %1768 = vmatprep.subr.bf16.mxu1 %v177_v17 }
  0x21   :  { %196 = vxpose.xlu0.c.b16.start.end [1/1] (short) %v175_v15, 128 }
  0x23   :  { %228 = vxpose.xlu1.c.b16.start.end [1/1] (short) %v177_v17, 128 }
  0x3e   :  { %244 = vxpose.xlu0.c.b16.start.end [1/1] (short) %v178_v20, 128 }
  0x40   :  { %260 = vxpose.xlu1.c.b16.start.end [1/1] (short) %v1922_v21, 128 }
  0x6a   :  { %v188_v22 = vpop.trf.xlu0 }
  0x6b   :  { %1716 = vmatprep.mubr.msk.bf16.mxu0 %vm372_vm0, %v188_v22  ;;  %v147_v22 = vand.u32 2147483647, %v143_v9 }
  0x6c   :  { %v220_v23 = vpop.trf.xlu1 }
  0x6e   :  { %v189_v24 = vpop.trf.xlu0 }
  0x6f   :  { %1717 = vmatmul.mubr.msk.bf16.vlgmr.msra.gmra.mrb[0].mxu0 %vm372_vm0, %v189_v24  ;;  %v127_v24 = vand.u32 2147483647, %v123_v8  ;;  %v149_v8 = vand.u32 2147483647, %v145_v7 }
  0x70   :  { %v221_v25 = vpop.trf.xlu1  ;;  %1751 = vmatpush3.bf16.msra.mxu0 %v176_v10 }
  0x71   :  { %1786 = vmatprep.subr.bf16.mxu0 %v178_v20 }
  0x72   :  { %v190_v26 = vpop.trf.xlu0 }
  0x73   :  { %1720 = vmatprep.mubr.msk.bf16.mxu0 %vm372_vm0, %v190_v26  ;;  %v144_v26 = vsub.f32 %v1897_v14, %v1911_v18 }
  0x74   :  { %v222_v27 = vpop.trf.xlu1 }
  0x75   :  { %v148_v9 = vand.u32 2147483647, %v144_v26 }
  0x76   :  { %v191_v28 = vpop.trf.xlu0 }
  0x77   :  { %1721 = vmatmul.mubr.msk.bf16.gmra.mrb[4].mxu0 %vm372_vm0, %v191_v28 }
  0x78   :  { %v223_v29 = vpop.trf.xlu1 }
  0x7a   :  { %v192_v30 = vpop.trf.xlu0 }
  0x7b   :  { %1724 = vmatprep.mubr.msk.bf16.mxu0 %vm372_vm0, %v192_v30 }
  0x7c   :  { %v224_v31 = vpop.trf.xlu1 }
  0x7e   :  { %v193_v32 = vpop.trf.xlu0 }
  0x7f   :  { %1725 = vmatmul.mubr.msk.bf16.gmra.mrb[8].mxu0 %vm372_vm0, %v193_v32 }
  0x80   :  { %v225_v33 = vpop.trf.xlu1 }
  0x82   :  { %v194_v34 = vpop.trf.xlu0 }
  0x83   :  { %1728 = vmatprep.mubr.msk.bf16.mxu0 %vm372_vm0, %v194_v34 }
  0x84   :  { %v226_v35 = vpop.trf.xlu1 }
  0x86   :  { %v195_v36 = vpop.trf.xlu0 }
  0x87   :  { %1729 = vmatmul.mubr.msk.bf16.gmra.mrb[12].mxu0 %vm372_vm0, %v195_v36 }
  0x88   :  { %v227_v37 = vpop.trf.xlu1  ;;  %1752 = vmatprep.mubr.msk.bf16.mxu0 %vm372_vm0, %v220_v23  ;;  %v146_v23 = vand.u32 2147483647, %v142_v11  ;;  %v125_v11 = vsub.f32 %v1892_v13, %v1916_v19 }
  0x8a   :  { %v204_v38 = vpop.trf.xlu0  ;;  %v150_v6 = vadd.f32 %v147_v22, %v146_v23  ;;  %v129_v0 = vand.u32 2147483647, %v125_v11 }
  0x8b   :  { %1734 = vmatprep.mubr.msk.bf16.mxu1 %vm372_vm0, %v204_v38 }
  0x8c   :  { %v236_v39 = vpop.trf.xlu1  ;;  %v151_v28 = vadd.f32 %v150_v6, %v148_v9 }
  0x8e   :  { %v205_v40 = vpop.trf.xlu0 }
  0x8f   :  { %1735 = vmatmul.mubr.msk.bf16.vlgmr.msra.gmra.mrb[0].mxu1 %vm372_vm0, %v205_v40  ;;  %1753 = vmatmul.mubr.msk.bf16.vlgmr.msra.gmra.mrb[16].mxu0 %vm372_vm0, %v221_v25  ;;  %v126_v25 = vand.u32 2147483647, %v122_v5  ;;  %v152_v5 = vadd.f32 %v151_v28, %v149_v8 }
  0x90   :  { %v237_v41 = vpop.trf.xlu1  ;;  %1769 = vmatpush3.bf16.msra.mxu1 %v177_v17  ;;  %1787 = vmatpush3.bf16.msra.mxu0 %v178_v20 }
  0x91   :  { %1756 = vmatprep.mubr.msk.bf16.mxu0 %vm372_vm0, %v222_v27  ;;  %1804 = vmatprep.subr.bf16.mxu1 %v1922_v21  ;;  %v124_v27 = vsub.f32 %v1887_v12, %v1911_v18  ;;  %v130_v3 = vadd.f32 %v127_v24, %v126_v25 }
  0x92   :  { %v206_v42 = vpop.trf.xlu0  ;;  %153 = vadd.xlane.f32.xlu1 %v152_v5 }
  0x93   :  { %1738 = vmatprep.mubr.msk.bf16.mxu1 %vm372_vm0, %v206_v42  ;;  %v128_v1 = vand.u32 2147483647, %v124_v27 }
  0x94   :  { %v238_v43 = vpop.trf.xlu1 }
  0x95   :  { %v131_v2 = vadd.f32 %v130_v3, %v128_v1 }
  0x96   :  { %v207_v44 = vpop.trf.xlu0 }
  0x97   :  { %1739 = vmatmul.mubr.msk.bf16.gmra.mrb[4].mxu1 %vm372_vm0, %v207_v44  ;;  %1757 = vmatmul.mubr.msk.bf16.gmra.mrb[20].mxu0 %vm372_vm0, %v223_v29  ;;  %v132_v29 = vadd.f32 %v131_v2, %v129_v0 }
  0x98   :  { %1760 = vmatprep.mubr.msk.bf16.mxu0 %vm372_vm0, %v224_v31  ;;  %v239_v46 = vpop.trf.xlu1 }
  0x99   :  { %133 = vadd.xlane.f32.xlu0 %v132_v29 }
  0x9a   :  { %v208_v45 = vpop.trf.xlu0 }
  0x9b   :  { %1742 = vmatprep.mubr.msk.bf16.mxu1 %vm372_vm0, %v208_v45 }
  0x9c   :  { %v240_v48 = vpop.trf.xlu1 }
  0x9e   :  { %v209_v47 = vpop.trf.xlu0 }
  0x9f   :  { %1743 = vmatmul.mubr.msk.bf16.gmra.mrb[8].mxu1 %vm372_vm0, %v209_v47  ;;  %1761 = vmatmul.mubr.msk.bf16.gmra.mrb[24].mxu0 %vm372_vm0, %v225_v33 }
  0xa0   :  { %1764 = vmatprep.mubr.msk.bf16.mxu0 %vm372_vm0, %v226_v35  ;;  %v241_v51 = vpop.trf.xlu1 }
  0xa2   :  { %v210_v49 = vpop.trf.xlu0 }
  0xa3   :  { %1746 = vmatprep.mubr.msk.bf16.mxu1 %vm372_vm0, %v210_v49 }
  0xa4   :  { %v242_v53 = vpop.trf.xlu1 }
  0xa6   :  { %v211_v50 = vpop.trf.xlu0 }
  0xa7   :  { %1747 = vmatmul.mubr.msk.bf16.gmra.mrb[12].mxu1 %vm372_vm0, %v211_v50  ;;  %1765 = vmatmul.mubr.msk.bf16.gmra.mrb[28].mxu0 %vm372_vm0, %v227_v37 }
  0xa8   :  { %1770 = vmatprep.mubr.msk.bf16.mxu1 %vm372_vm0, %v236_v39  ;;  %v243_v56 = vpop.trf.xlu1 }
  0xaa   :  { %v252_v52 = vpop.trf.xlu0 }
  0xab   :  { %1788 = vmatprep.mubr.msk.bf16.mxu0 %vm372_vm0, %v252_v52 }
  0xac   :  { %v268_v58 = vpop.trf.xlu1 }
  0xae   :  { %v253_v54 = vpop.trf.xlu0 }
  0xaf   :  { %1771 = vmatmul.mubr.msk.bf16.vlgmr.msra.gmra.mrb[16].mxu1 %vm372_vm0, %v237_v41  ;;  %1789 = vmatmul.mubr.msk.bf16.vlgmr.msra.gmra.mrb[32].mxu0 %vm372_vm0, %v253_v54 }
  0xb0   :  { %1805 = vmatpush3.bf16.msra.mxu1 %v1922_v21  ;;  %1774 = vmatprep.mubr.msk.bf16.mxu1 %vm372_vm0, %v238_v43  ;;  %v269_v61 = vpop.trf.xlu1 }
  0xb2   :  { %v254_v55 = vpop.trf.xlu0 }
  0xb3   :  { %1792 = vmatprep.mubr.msk.bf16.mxu0 %vm372_vm0, %v254_v55 }
  0xb4   :  { %v270_v63 = vpop.trf.xlu1 }
  0xb6   :  { %v255_v57 = vpop.trf.xlu0 }
  0xb7   :  { %1775 = vmatmul.mubr.msk.bf16.gmra.mrb[20].mxu1 %vm372_vm0, %v239_v46  ;;  %1793 = vmatmul.mubr.msk.bf16.gmra.mrb[36].mxu0 %vm372_vm0, %v255_v57 }
  0xb8   :  { %1778 = vmatprep.mubr.msk.bf16.mxu1 %vm372_vm0, %v240_v48  ;;  %v271_v10 = vpop.trf.xlu1 }
  0xba   :  { %v256_v59 = vpop.trf.xlu0 }
  0xbb   :  { %1796 = vmatprep.mubr.msk.bf16.mxu0 %vm372_vm0, %v256_v59 }
  0xbc   :  { %v272_v15 = vpop.trf.xlu1 }
  0xbe   :  { %v257_v60 = vpop.trf.xlu0 }
  0xbf   :  { %1779 = vmatmul.mubr.msk.bf16.gmra.mrb[24].mxu1 %vm372_vm0, %v241_v51  ;;  %1797 = vmatmul.mubr.msk.bf16.gmra.mrb[40].mxu0 %vm372_vm0, %v257_v60 }
  0xc0   :  { %1782 = vmatprep.mubr.msk.bf16.mxu1 %vm372_vm0, %v242_v53  ;;  %v273_v17 = vpop.trf.xlu1 }
  0xc2   :  { %v258_v62 = vpop.trf.xlu0 }
  0xc3   :  { %1800 = vmatprep.mubr.msk.bf16.mxu0 %vm372_vm0, %v258_v62 }
  0xc4   :  { %v274_v20 = vpop.trf.xlu1 }
  0xc6   :  { %v259_v4 = vpop.trf.xlu0 }
  0xc7   :  { %1783 = vmatmul.mubr.msk.bf16.gmra.mrb[28].mxu1 %vm372_vm0, %v243_v56  ;;  %1801 = vmatmul.mubr.msk.bf16.gmra.mrb[44].mxu0 %vm372_vm0, %v259_v4 }
  0xc8   :  { %1806 = vmatprep.mubr.msk.bf16.mxu1 %vm372_vm0, %v268_v58  ;;  %v275_v21 = vpop.trf.xlu1 }
  0xcf   :  { %1807 = vmatmul.mubr.msk.bf16.vlgmr.msra.gmra.mrb[32].mxu1 %vm372_vm0, %v269_v61 }
  0xd0   :  { %1810 = vmatprep.mubr.msk.bf16.mxu1 %vm372_vm0, %v270_v63 }
  0xd7   :  { %1811 = vmatmul.mubr.msk.bf16.gmra.mrb[36].mxu1 %vm372_vm0, %v271_v10 }
  0xd8   :  { %1814 = vmatprep.mubr.msk.bf16.mxu1 %vm372_vm0, %v272_v15 }
  0xdf   :  { %1815 = vmatmul.mubr.msk.bf16.gmra.mrb[40].mxu1 %vm372_vm0, %v273_v17 }
  0xe0   :  { %1818 = vmatprep.mubr.msk.bf16.mxu1 %vm372_vm0, %v274_v20 }
  0xe7   :  { %1819 = vmatmul.mubr.msk.bf16.gmra.mrb[44].mxu1 %vm372_vm0, %v275_v21 }
 0x142   :  { %v1995_v14 = vpop.f32.mrb[0].mxu0 }
 0x143   :  { %v1997_v12 = vpop.f32.mrb[1].mxu0 }
 0x144   :  { %v1999_v16 = vpop.f32.mrb[2].mxu0 }
 0x145   :  { %v2001_v18 = vpop.f32.mrb[3].mxu0 }
 0x14a   :  { %v2003_v30 = vpop.f32.mrb[4].mxu0 }
 0x14b   :  { %v2005_v13 = vpop.f32.mrb[5].mxu0 }
 0x14c   :  { %v2007_v19 = vpop.f32.mrb[6].mxu0 }
 0x14d   :  { %v2009_v31 = vpop.f32.mrb[7].mxu0 }
 0x152   :  { %v2011_v32 = vpop.f32.mrb[8].mxu0 }
 0x153   :  { %v2013_v33 = vpop.f32.mrb[9].mxu0 }
 0x154   :  { %v2015_v34 = vpop.f32.mrb[10].mxu0 }
 0x155   :  { %v2017_v35 = vpop.f32.mrb[11].mxu0 }
 0x15a   :  { %v2019_v36 = vpop.f32.mrb[12].mxu0 }
 0x15b   :  { %v2021_v37 = vpop.f32.mrb[13].mxu0 }
 0x15c   :  { %v2023_v38 = vpop.f32.mrb[14].mxu0 }
 0x15d   :  { %v2025_v39 = vpop.f32.mrb[15].mxu0 }
 0x162   :  { %v2027_v40 = vpop.f32.mrb[0].mxu1  ;;  %v1754_v41 = vpop.f32.mrb[16].mxu0 }
 0x163   :  { %v2029_v42 = vpop.f32.mrb[1].mxu1  ;;  %v673_v43 = vpop.f32.mrb[17].mxu0 }
 0x164   :  { %v2031_v44 = vpop.f32.mrb[2].mxu1  ;;  %v1755_v45 = vpop.f32.mrb[18].mxu0 }
 0x165   :  { %v2033_v46 = vpop.f32.mrb[3].mxu1  ;;  %v676_v47 = vpop.f32.mrb[19].mxu0 }
 0x16a   :  { %v2035_v48 = vpop.f32.mrb[4].mxu1  ;;  %v2037_v49 = vpop.f32.mrb[20].mxu0 }
 0x16b   :  { %v2039_v50 = vpop.f32.mrb[5].mxu1  ;;  %v2041_v51 = vpop.f32.mrb[21].mxu0 }
 0x16c   :  { %v2043_v52 = vpop.f32.mrb[6].mxu1  ;;  %v2045_v53 = vpop.f32.mrb[22].mxu0 }
 0x16d   :  { %v2047_v54 = vpop.f32.mrb[7].mxu1  ;;  %v2049_v55 = vpop.f32.mrb[23].mxu0 }
 0x172   :  { %v2051_v56 = vpop.f32.mrb[8].mxu1  ;;  %v2053_v57 = vpop.f32.mrb[24].mxu0 }
 0x173   :  { %v2055_v58 = vpop.f32.mrb[9].mxu1  ;;  %v2057_v59 = vpop.f32.mrb[25].mxu0 }
 0x174   :  { %v2059_v60 = vpop.f32.mrb[10].mxu1  ;;  %v2061_v61 = vpop.f32.mrb[26].mxu0 }
 0x175   :  { %2180 = vst [vmem:[#allocation3_spill] sm:$0xff] %v2059_v60  ;;  %v2063_v62 = vpop.f32.mrb[11].mxu1  ;;  %v2065_v63 = vpop.f32.mrb[27].mxu0 }
 0x176   :  { %2181 = vst [vmem:[#allocation4_spill] sm:$0xff] %v2063_v62 }
 0x17a   :  { %v2067_v4 = vpop.f32.mrb[12].mxu1  ;;  %v2069_v10 = vpop.f32.mrb[28].mxu0 }
 0x17b   :  { %2182 = vst [vmem:[#allocation5_spill] sm:$0xff] %v2067_v4  ;;  %v2071_v15 = vpop.f32.mrb[13].mxu1  ;;  %v2073_v17 = vpop.f32.mrb[29].mxu0 }
 0x17c   :  { %2183 = vst [vmem:[#allocation6_spill] sm:$0xff] %v2071_v15  ;;  %v2075_v20 = vpop.f32.mrb[14].mxu1  ;;  %v2077_v21 = vpop.f32.mrb[30].mxu0 }
 0x17d   :  { %2184 = vst [vmem:[#allocation7_spill] sm:$0xff] %v2075_v20  ;;  %v2079_v22 = vpop.f32.mrb[15].mxu1  ;;  %v2081_v23 = vpop.f32.mrb[31].mxu0 }
 0x17e   :  { %2185 = vst [vmem:[#allocation8_spill] sm:$0xff] %v2079_v22 }
 0x182   :  { %v2083_v24 = vpop.f32.mrb[16].mxu1  ;;  %v1790_v25 = vpop.f32.mrb[32].mxu0 }
 0x183   :  { %v1392_v26 = vsub.f32 %v1995_v14, %v1790_v25  ;;  %v1496_v27 = vsub.f32 %v1754_v41, %v1790_v25  ;;  %v2086_v7 = vpop.f32.mrb[17].mxu1  ;;  %v915_v9 = vpop.f32.mrb[33].mxu0 }
 0x184   :  { %v1390_v6 = vsub.f32 %v1997_v12, %v915_v9  ;;  %v1494_v11 = vsub.f32 %v673_v43, %v915_v9  ;;  %v2089_v1 = vpop.f32.mrb[18].mxu1  ;;  %v1791_v3 = vpop.f32.mrb[34].mxu0 }
 0x185   :  { %v1393_v8 = vsub.f32 %v1999_v16, %v1791_v3  ;;  %v1497_v28 = vsub.f32 %v1755_v45, %v1791_v3  ;;  %v2092_v0 = vpop.f32.mrb[19].mxu1  ;;  %v918_v2 = vpop.f32.mrb[35].mxu0  ;;  %v1424_v20 = vand.u32 2147483647, %v1392_v26  ;;  %v1528_v15 = vand.u32 2147483647, %v1496_v27 }
 0x186   :  { %v1391_v5 = vsub.f32 %v2001_v18, %v918_v2  ;;  %v1495_v29 = vsub.f32 %v676_v47, %v918_v2  ;;  %v1422_v14 = vand.u32 2147483647, %v1390_v6  ;;  %v1526_v41 = vand.u32 2147483647, %v1494_v11 }
 0x187   :  { %v1425_v62 = vand.u32 2147483647, %v1393_v8  ;;  %v1529_v16 = vand.u32 2147483647, %v1497_v28 }
 0x188   :  { %v1423_v25 = vand.u32 2147483647, %v1391_v5  ;;  %v1527_v22 = vand.u32 2147483647, %v1495_v29 }
 0x18a   :  { %v1454_v12 = vadd.f32 %v1423_v25, %v1422_v14  ;;  %v1558_v43 = vadd.f32 %v1527_v22, %v1526_v41  ;;  %v2095_v9 = vpop.f32.mrb[20].mxu1  ;;  %v1794_v4 = vpop.f32.mrb[36].mxu0 }
 0x18b   :  { %v1396_v45 = vsub.f32 %v2003_v30, %v1794_v4  ;;  %v1500_v3 = vsub.f32 %v2037_v49, %v1794_v4  ;;  %v2099_v60 = vpop.f32.mrb[21].mxu1  ;;  %v931_v18 = vpop.f32.mrb[37].mxu0 }
 0x18c   :  { %v1455_v47 = vadd.f32 %v1454_v12, %v1424_v20  ;;  %v1559_v6 = vadd.f32 %v1558_v43, %v1528_v15  ;;  %v1394_v11 = vsub.f32 %v2005_v13, %v931_v18  ;;  %v1498_v26 = vsub.f32 %v2041_v51, %v931_v18  ;;  %v2103_v27 = vpop.f32.mrb[22].mxu1  ;;  %v1795_v22 = vpop.f32.mrb[38].mxu0 }
 0x18d   :  { %v1397_v2 = vsub.f32 %v2007_v19, %v1795_v22  ;;  %v1501_v8 = vsub.f32 %v2045_v53, %v1795_v22  ;;  %v2107_v28 = vpop.f32.mrb[23].mxu1  ;;  %v934_v30 = vpop.f32.mrb[39].mxu0  ;;  %v1428_v25 = vand.u32 2147483647, %v1396_v45  ;;  %v1532_v12 = vand.u32 2147483647, %v1500_v3 }
 0x18e   :  { %v1426_v49 = vand.u32 2147483647, %v1394_v11  ;;  %v1456_v4 = vadd.f32 %v1455_v47, %v1425_v62  ;;  %v1530_v5 = vand.u32 2147483647, %v1498_v26  ;;  %v1560_v29 = vadd.f32 %v1559_v6, %v1529_v16 }
 0x18f   :  { %v1395_v15 = vsub.f32 %v2009_v31, %v934_v30  ;;  %v1499_v13 = vsub.f32 %v2049_v55, %v934_v30  ;;  %v1429_v3 = vand.u32 2147483647, %v1397_v2  ;;  %v1533_v26 = vand.u32 2147483647, %v1501_v8 }
 0x190   :  { %v1457_v20 = vadd.f32 %v1456_v4, %v1426_v49  ;;  %v1561_v51 = vadd.f32 %v1560_v29, %v1530_v5 }
 0x191   :  { %v1427_v14 = vand.u32 2147483647, %v1395_v15  ;;  %v1531_v41 = vand.u32 2147483647, %v1499_v13 }
 0x192   :  { %v2111_v19 = vpop.f32.mrb[24].mxu1  ;;  %v1798_v53 = vpop.f32.mrb[40].mxu0 }
 0x193   :  { %v1458_v43 = vadd.f32 %v1457_v20, %v1427_v14  ;;  %v1562_v18 = vadd.f32 %v1561_v51, %v1531_v41  ;;  %v1400_v11 = vsub.f32 %v2011_v32, %v1798_v53  ;;  %v1504_v62 = vsub.f32 %v2053_v57, %v1798_v53  ;;  %v2115_v16 = vpop.f32.mrb[25].mxu1  ;;  %v947_v31 = vpop.f32.mrb[41].mxu0 }
 0x194   :  { %v1398_v55 = vsub.f32 %v2013_v33, %v947_v31  ;;  %v1502_v47 = vsub.f32 %v2057_v59, %v947_v31  ;;  %v2119_v6 = vpop.f32.mrb[26].mxu1  ;;  %v1799_v45 = vpop.f32.mrb[42].mxu0 }
 0x195   :  { %v1459_v22 = vadd.f32 %v1458_v43, %v1428_v25  ;;  %v1563_v30 = vadd.f32 %v1562_v18, %v1532_v12  ;;  %v2121_v49 = vpop.f32.mrb[27].mxu1  ;;  %v950_v4 = vpop.f32.mrb[43].mxu0  ;;  %v1401_v57 = vsub.f32 %v2015_v34, %v1799_v45  ;;  %v1505_v29 = vsub.f32 %v2061_v61, %v1799_v45 }
 0x196   :  { %v1430_v32 = vand.u32 2147483647, %v1398_v55  ;;  %v1534_v5 = vand.u32 2147483647, %v1502_v47  ;;  %v1399_v59 = vsub.f32 %v2017_v35, %v950_v4  ;;  %v1503_v13 = vsub.f32 %v2065_v63, %v950_v4 }
 0x197   :  { %v1460_v15 = vadd.f32 %v1459_v22, %v1429_v3  ;;  %v1564_v33 = vadd.f32 %v1563_v30, %v1533_v26  ;;  %v1432_v14 = vand.u32 2147483647, %v1400_v11  ;;  %v1536_v41 = vand.u32 2147483647, %v1504_v62 }
 0x198   :  { %v1431_v8 = vand.u32 2147483647, %v1399_v59  ;;  %v1535_v51 = vand.u32 2147483647, %v1503_v13  ;;  %v1433_v62 = vand.u32 2147483647, %v1401_v57 }
 0x199   :  { %v1461_v20 = vadd.f32 %v1460_v15, %v1430_v32  ;;  %v1565_v2 = vadd.f32 %v1564_v33, %v1534_v5  ;;  %v1537_v47 = vand.u32 2147483647, %v1505_v29 }
 0x19a   :  { %v2127_v25 = vpop.f32.mrb[28].mxu1  ;;  %v1802_v12 = vpop.f32.mrb[44].mxu0 }
 0x19b   :  { %v1462_v53 = vadd.f32 %v1461_v20, %v1431_v8  ;;  %v1566_v43 = vadd.f32 %v1565_v2, %v1535_v51  ;;  %v1404_v34 = vsub.f32 %v2019_v36, %v1802_v12  ;;  %v1508_v61 = vsub.f32 %v2069_v10, %v1802_v12  ;;  %v2131_v18 = vpop.f32.mrb[29].mxu1  ;;  %v963_v35 = vpop.f32.mrb[45].mxu0 }
 0x19c   :  { %v1402_v63 = vsub.f32 %v2021_v37, %v963_v35  ;;  %v1506_v31 = vsub.f32 %v2073_v17, %v963_v35  ;;  %v2135_v55 = vpop.f32.mrb[30].mxu1  ;;  %v1803_v11 = vpop.f32.mrb[46].mxu0 }
 0x19d   :  { %v1463_v45 = vadd.f32 %v1462_v53, %v1432_v14  ;;  %v1567_v3 = vadd.f32 %v1566_v43, %v1536_v41  ;;  %v2137_v26 = vpop.f32.mrb[31].mxu1  ;;  %v966_v22 = vpop.f32.mrb[47].mxu0  ;;  %v1405_v10 = vsub.f32 %v2023_v38, %v1803_v11  ;;  %v1509_v4 = vsub.f32 %v2077_v21, %v1803_v11 }
 0x19e   :  { %v1434_v36 = vand.u32 2147483647, %v1402_v63  ;;  %v1538_v30 = vand.u32 2147483647, %v1506_v31  ;;  %v1403_v17 = vsub.f32 %v2025_v39, %v966_v22  ;;  %v1507_v5 = vsub.f32 %v2081_v23, %v966_v22 }
 0x19f   :  { %v1464_v32 = vadd.f32 %v1463_v45, %v1433_v62  ;;  %v1568_v37 = vadd.f32 %v1567_v3, %v1537_v47  ;;  %v1436_v59 = vand.u32 2147483647, %v1404_v34  ;;  %v1540_v13 = vand.u32 2147483647, %v1508_v61 }
 0x1a0   :  { %v1435_v29 = vand.u32 2147483647, %v1403_v17  ;;  %v1539_v33 = vand.u32 2147483647, %v1507_v5  ;;  %v1437_v23 = vand.u32 2147483647, %v1405_v10 }
 0x1a1   :  { %v1465_v15 = vadd.f32 %v1464_v32, %v1434_v36  ;;  %v1569_v57 = vadd.f32 %v1568_v37, %v1538_v30  ;;  %v1541_v12 = vand.u32 2147483647, %v1509_v4 }
 0x1a2   :  { %v1808_v20 = vpop.f32.mrb[32].mxu1 }
 0x1a3   :  { %v1466_v2 = vadd.f32 %v1465_v15, %v1435_v29  ;;  %v1570_v8 = vadd.f32 %v1569_v57, %v1539_v33  ;;  %v1408_v51 = vsub.f32 %v2027_v40, %v1808_v20  ;;  %v1512_v38 = vsub.f32 %v2083_v24, %v1808_v20  ;;  %v1036_v21 = vpop.f32.mrb[33].mxu1 }
 0x1a4   :  { %v1406_v14 = vsub.f32 %v2029_v42, %v1036_v21  ;;  %v1510_v39 = vsub.f32 %v2086_v7, %v1036_v21  ;;  %v1809_v41 = vpop.f32.mrb[34].mxu1 }
 0x1a5   :  { %v1467_v53 = vadd.f32 %v1466_v2, %v1436_v59  ;;  %v1571_v43 = vadd.f32 %v1570_v8, %v1540_v13  ;;  %v1039_v35 = vpop.f32.mrb[35].mxu1  ;;  %v1409_v63 = vsub.f32 %v2031_v44, %v1809_v41  ;;  %v1513_v31 = vsub.f32 %v2089_v1, %v1809_v41 }
 0x1a6   :  { %v1438_v34 = vand.u32 2147483647, %v1406_v14  ;;  %v1542_v61 = vand.u32 2147483647, %v1510_v39  ;;  %v1407_v24 = vsub.f32 %v2033_v46, %v1039_v35  ;;  %v1511_v42 = vsub.f32 %v2092_v0, %v1039_v35 }
 0x1a7   :  { %v1468_v40 = vadd.f32 %v1467_v53, %v1437_v23  ;;  %v1572_v11 = vadd.f32 %v1571_v43, %v1541_v12  ;;  %v1440_v3 = vand.u32 2147483647, %v1408_v51  ;;  %v1544_v22 = vand.u32 2147483647, %v1512_v38 }
 0x1a8   :  { %v1439_v47 = vand.u32 2147483647, %v1407_v24  ;;  %v1543_v45 = vand.u32 2147483647, %v1511_v42  ;;  %v1441_v0 = vand.u32 2147483647, %v1409_v63 }
 0x1a9   :  { %v1469_v62 = vadd.f32 %v1468_v40, %v1438_v34  ;;  %v1573_v7 = vadd.f32 %v1572_v11, %v1542_v61  ;;  %v1545_v17 = vand.u32 2147483647, %v1513_v31  ;;  %v2186_v40 = vld [vmem:[#allocation3_spill] sm:$0xff] }
 0x1aa   :  { %v1812_v36 = vpop.f32.mrb[36].mxu1 }
 0x1ab   :  { %v1470_v30 = vadd.f32 %v1469_v62, %v1439_v47  ;;  %v1574_v10 = vadd.f32 %v1573_v7, %v1543_v45  ;;  %v1412_v4 = vsub.f32 %v2035_v48, %v1812_v36  ;;  %v1516_v44 = vsub.f32 %v2095_v9, %v1812_v36  ;;  %v1052_v1 = vpop.f32.mrb[37].mxu1 }
 0x1ac   :  { %v1410_v32 = vsub.f32 %v2039_v50, %v1052_v1  ;;  %v1514_v46 = vsub.f32 %v2099_v60, %v1052_v1  ;;  %v1813_v37 = vpop.f32.mrb[38].mxu1 }
 0x1ad   :  { %v1471_v5 = vadd.f32 %v1470_v30, %v1440_v3  ;;  %v1575_v15 = vadd.f32 %v1574_v10, %v1544_v22  ;;  %v1055_v57 = vpop.f32.mrb[39].mxu1  ;;  %v1413_v59 = vsub.f32 %v2043_v52, %v1813_v37  ;;  %v1517_v13 = vsub.f32 %v2103_v27, %v1813_v37 }
 0x1ae   :  { %v1442_v29 = vand.u32 2147483647, %v1410_v32  ;;  %v1546_v33 = vand.u32 2147483647, %v1514_v46  ;;  %v1411_v9 = vsub.f32 %v2047_v54, %v1055_v57  ;;  %v1515_v50 = vsub.f32 %v2107_v28, %v1055_v57  ;;  %v2189_v32 = vld [vmem:[#allocation6_spill] sm:$0xff] }
 0x1af   :  { %v1472_v48 = vadd.f32 %v1471_v5, %v1441_v0  ;;  %v1576_v20 = vadd.f32 %v1575_v15, %v1545_v17  ;;  %v1444_v38 = vand.u32 2147483647, %v1412_v4  ;;  %v1548_v21 = vand.u32 2147483647, %v1516_v44  ;;  %v2188_v4 = vld [vmem:[#allocation5_spill] sm:$0xff] }
 0x1b0   :  { %v1443_v8 = vand.u32 2147483647, %v1411_v9  ;;  %v1547_v51 = vand.u32 2147483647, %v1515_v50  ;;  %v1445_v28 = vand.u32 2147483647, %v1413_v59 }
 0x1b1   :  { %v1473_v2 = vadd.f32 %v1472_v48, %v1442_v29  ;;  %v1577_v60 = vadd.f32 %v1576_v20, %v1546_v33  ;;  %v1549_v43 = vand.u32 2147483647, %v1517_v13  ;;  %v2190_v59 = vld [vmem:[#allocation7_spill] sm:$0xff] }
 0x1b2   :  { %v1816_v14 = vpop.f32.mrb[40].mxu1 }
 0x1b3   :  { %v1474_v39 = vadd.f32 %v1473_v2, %v1443_v8  ;;  %v1578_v41 = vadd.f32 %v1577_v60, %v1547_v51  ;;  %v1416_v23 = vsub.f32 %v2051_v56, %v1816_v14  ;;  %v1520_v52 = vsub.f32 %v2111_v19, %v1816_v14  ;;  %v1068_v27 = vpop.f32.mrb[41].mxu1  ;;  %v2187_v19 = vld [vmem:[#allocation4_spill] sm:$0xff] }
 0x1b4   :  { %v1414_v12 = vsub.f32 %v2055_v58, %v1068_v27  ;;  %v1518_v54 = vsub.f32 %v2115_v16, %v1068_v27  ;;  %v1817_v53 = vpop.f32.mrb[42].mxu1 }
 0x1b5   :  { %v1475_v35 = vadd.f32 %v1474_v39, %v1444_v38  ;;  %v1579_v34 = vadd.f32 %v1578_v41, %v1548_v21  ;;  %v1071_v61 = vpop.f32.mrb[43].mxu1  ;;  %v1417_v11 = vsub.f32 %v2186_v40, %v1817_v53  ;;  %v1521_v24 = vsub.f32 %v2119_v6, %v1817_v53 }
 0x1b6   :  { %v1446_v63 = vand.u32 2147483647, %v1414_v12  ;;  %v1550_v31 = vand.u32 2147483647, %v1518_v54  ;;  %v1415_v62 = vsub.f32 %v2187_v19, %v1071_v61  ;;  %v1519_v58 = vsub.f32 %v2121_v49, %v1071_v61  ;;  %v154_v54 = vpop.xlane.xlu1 %153 }
 0x1b7   :  { %v1476_v56 = vadd.f32 %v1475_v35, %v1445_v28  ;;  %v1580_v42 = vadd.f32 %v1579_v34, %v1549_v43  ;;  %v1448_v3 = vand.u32 2147483647, %v1416_v23  ;;  %v1552_v22 = vand.u32 2147483647, %v1520_v52  ;;  %v134_v28 = vpop.xlane.xlu0 %133 }
 0x1b8   :  { %v1447_v47 = vand.u32 2147483647, %v1415_v62  ;;  %v1551_v45 = vand.u32 2147483647, %v1519_v58  ;;  %v1449_v49 = vand.u32 2147483647, %v1417_v11 }
 0x1b9   :  { %v1477_v7 = vadd.f32 %v1476_v56, %v1446_v63  ;;  %v1581_v16 = vadd.f32 %v1580_v42, %v1550_v31  ;;  %v1553_v17 = vand.u32 2147483647, %v1521_v24  ;;  %v155_v53 = vrot.slane %v154_v54, 4 }
 0x1ba   :  { %v1820_v36 = vpop.f32.mrb[44].mxu1 }
 0x1bb   :  { %v1478_v30 = vadd.f32 %v1477_v7, %v1447_v47  ;;  %v1582_v10 = vadd.f32 %v1581_v16, %v1551_v45  ;;  %v1420_v44 = vsub.f32 %v2188_v4, %v1820_v36  ;;  %v1524_v1 = vsub.f32 %v2127_v25, %v1820_v36  ;;  %v1084_v6 = vpop.f32.mrb[45].mxu1  ;;  %v2191_v25 = vld [vmem:[#allocation8_spill] sm:$0xff] }
 0x1bc   :  { %v1418_v46 = vsub.f32 %v2189_v32, %v1084_v6  ;;  %v1522_v37 = vsub.f32 %v2131_v18, %v1084_v6  ;;  %v1821_v0 = vpop.f32.mrb[46].mxu1  ;;  %v156_v43 = vadd.f32 %v155_v53, %v154_v54 }
 0x1bd   :  { %v1479_v5 = vadd.f32 %v1478_v30, %v1448_v3  ;;  %v1583_v15 = vadd.f32 %v1582_v10, %v1552_v22  ;;  %v1087_v57 = vpop.f32.mrb[47].mxu1  ;;  %v1421_v13 = vsub.f32 %v2190_v59, %v1821_v0  ;;  %v1525_v48 = vsub.f32 %v2135_v55, %v1821_v0 }
 0x1be   :  { %v1450_v29 = vand.u32 2147483647, %v1418_v46  ;;  %v1554_v33 = vand.u32 2147483647, %v1522_v37  ;;  %v1419_v50 = vsub.f32 %v2191_v25, %v1087_v57  ;;  %v1523_v2 = vsub.f32 %v2137_v26, %v1087_v57 }
 0x1bf   :  { %v1480_v20 = vadd.f32 %v1479_v5, %v1449_v49  ;;  %v1584_v9 = vadd.f32 %v1583_v15, %v1553_v17  ;;  %v1452_v38 = vand.u32 2147483647, %v1420_v44  ;;  %v1556_v21 = vand.u32 2147483647, %v1524_v1 }
 0x1c0   :  { %v1451_v8 = vand.u32 2147483647, %v1419_v50  ;;  %v1555_v51 = vand.u32 2147483647, %v1523_v2  ;;  %v1453_v41 = vand.u32 2147483647, %v1421_v13  ;;  %v162_v44 = vlaneseq }
 0x1c1   :  { %v1481_v60 = vadd.f32 %v1480_v20, %v1450_v29  ;;  %v1585_v18 = vadd.f32 %v1584_v9, %v1554_v33  ;;  %v1557_v23 = vand.u32 2147483647, %v1525_v48  ;;  %v135_v26 = vrot.slane %v134_v28, 4 }
 0x1c2   :  { %v157_v34 = vrot.slane %v156_v43, 2  ;;  %v163_v1 = vshrl.u32 %v162_v44, 7 }
 0x1c3   :  { %v1482_v14 = vadd.f32 %v1481_v60, %v1451_v8  ;;  %v1586_v39 = vadd.f32 %v1585_v18, %v1555_v51  ;;  %v136_v35 = vadd.f32 %v135_v26, %v134_v28 }
 0x1c4   :  { %v158_v63 = vadd.f32 %v157_v34, %v156_v43  ;;  %vm165_vm1 = vcmp.eq.s32.totalorder %v163_v1, 0  ;;  %vm168_vm2 = vcmp.eq.s32.totalorder %v163_v1, 1  ;;  %vm1599_vm3 = vcmp.eq.s32.totalorder %v163_v1, 2 }
 0x1c5   :  { %v1587_v52 = vadd.f32 %v1586_v39, %v1556_v21  ;;  %v1483_v27 = vadd.f32 %v1482_v14, %v1452_v38  ;;  %v137_v61 = vrot.slane %v136_v35, 2  ;;  %vm1602_vm4 = vcmp.eq.s32.totalorder %v163_v1, 3 }
 0x1c6   :  { %v159_v40 = vrot.slane %v158_v63, 1 }
 0x1c7   :  { %v1588_v12 = vadd.f32 %v1587_v52, %v1557_v23  ;;  %v1484_v55 = vadd.f32 %v1483_v27, %v1453_v41  ;;  %v138_v31 = vadd.f32 %v137_v61, %v136_v35 }
 0x1c8   :  { %v160_v24 = vadd.f32 %v159_v40, %v158_v63 }
 0x1c9   :  { %1589 = vadd.xlane.f32.xlu1 %v1588_v12  ;;  %1485 = vadd.xlane.f32.xlu0 %v1484_v55  ;;  %v139_v11 = vrot.slane %v138_v31, 1 }
 0x1cb   :  { %v140_v56 = vadd.f32 %v139_v11, %v138_v31 }
 0x1cd   :  { %1822 = vpush %v140_v56 }
 0x1ce   :  { %1824 = vpush %v160_v24 }
 0x1fe   :  { %s1823_s0 = spop %1822 }
 0x1ff   :  { %s1825_s30 = spop %1824  ;;  %v166_v6 = vstv %s1823_s0 }
 0x200   :  { %v169_v32 = vstv %s1825_s30  ;;  %v167_v46 = vsel %vm165_vm1, %v166_v6, 0.0 }
 0x201   :  { %v170_v37 = vsel %vm168_vm2, %v169_v32, 0.0 }
 0x202   :  { %v171_v0 = vadd.f32 %v170_v37, %v167_v46 }
 0x256   :  { %v1590_v42 = vpop.xlane.xlu1 %1589  ;;  %v1486_v19 = vpop.xlane.xlu0 %1485 }
 0x257   :  { %v1591_v62 = vrot.slane %v1590_v42, 4  ;;  %v1487_v58 = vrot.slane %v1486_v19, 4 }
 0x259   :  { %v1592_v7 = vadd.f32 %v1591_v62, %v1590_v42  ;;  %v1488_v16 = vadd.f32 %v1487_v58, %v1486_v19 }
 0x25b   :  { %v1593_v47 = vrot.slane %v1592_v7, 2  ;;  %v1489_v45 = vrot.slane %v1488_v16, 2 }
 0x25d   :  { %v1594_v3 = vadd.f32 %v1593_v47, %v1592_v7  ;;  %v1490_v22 = vadd.f32 %v1489_v45, %v1488_v16 }
 0x25f   :  { %v1491_v36 = vrot.slane %v1490_v22, 1  ;;  %v1595_v30 = vrot.slane %v1594_v3, 1 }
 0x261   :  { %v1492_v10 = vadd.f32 %v1491_v36, %v1490_v22  ;;  %v1596_v4 = vadd.f32 %v1595_v30, %v1594_v3 }
 0x263   :  { %1826 = vpush %v1492_v10 }
 0x264   :  { %1828 = vpush %v1596_v4 }
 0x294   :  { %s1827_s2 = spop %1826 }
 0x295   :  { %v1600_v49 = vstv %s1827_s2  ;;  %s1829_s3 = spop %1828 }
 0x296   :  { %v1601_v17 = vsel %vm1599_vm3, %v1600_v49, 0.0  ;;  %v1603_v5 = vstv %s1829_s3 }
 0x297   :  { %v1604_v15 = vsel %vm1602_vm4, %v1603_v5, 0.0 }
 0x298   :  { %v1605_v57 = vadd.f32 %v1604_v15, %v1601_v17 }
 0x29a   :  { %v1606_v29 = vadd.f32 %v1605_v57, %v171_v0 }
 0x29c   :  { %1607 = vst [vmem:[%s2179_s1] sm:$0xff] %v1606_v29 }

// kernel: inpainting_loss.10
= control target key start
LH: loop header
LB: loop body
LE: loop exit
PB: predicated region body
PF: predicated region fallthrough
CT: control target
= control target key end

     0   :  { %s1996_s12 = smov 0   ;;  %s2396_s0 = inlined_call_operand.vmem [shape: f32[6,4,3,3,128], index: 0, kind: input, shape index: {}]   ;;  %s2397_s1 = inlined_call_operand.vmem [shape: bf16[9,128,128], index: 1, kind: input, shape index: {}]   ;;  %s2398_s2 = inlined_call_operand.vmem [shape: f32[1,128], index: 2, kind: input, shape index: {}]   ;;  %s2399_s3 = inlined_call_operand.vmem [shape: f32[6,4,128], index: 3, kind: output, shape index: {}]  }
   0x1 LB: > { %s1387_s13 = sadd.s32 4294967295, %s1971_s12   ;;  %p1391_p0 = scmp.ge.s32.totalorder %s1971_s12, 1  ;;  %s1971_s12 = sphi %s1996_s12, %s13_s12  }
   0x2   : > { %p137_p1 = scmp.lt.s32.totalorder %s1971_s12, 7 }
   0x4   : > { %p138_p2 = pnand %p1391_p0, %p137_p1 }
   0x5   : > { %v1893_v0 = vld [vmem:[%s2397_s1 + $0x40] sm:$0xff] (!%p138_p2)   ;;  %v1973_v1 = vmov (!%p138_p2), 0.0   ;;  %v1895_v3 = vld [vmem:[%s2397_s1 + $0x48] sm:$0xff] (!%p138_p2)   ;;  %vm1974_vm0 = vmmov (!%p138_p2), 0   ;;  %p160_p3 = scmp.lt.s32.totalorder (!%p138_p2), %s1387_s13, 5  ;;  %v1897_v5 = vld [vmem:[%s2397_s1 + $0x50] sm:$0xff] (!%p138_p2)   ;;  %v218_v9 = vlaneseq (!%p138_p2) }
   0x6   : > { %141 = sbr.rel (%p138_p2) target bundleno = 385 (0x181), region = 32  ;;  %1701 = vmatprep.subr.bf16.mxu0 (!%p138_p2), %v1973_v1  ;;  %1721 = vmatprep.subr.bf16.mxu1 (!%p138_p2), %v1973_v1  ;;  %v1894_v2 = vld [vmem:[%s2397_s1] sm:$0xff] (!%p138_p2)   ;;  %v1896_v4 = vld [vmem:[%s2397_s1 + $0x8] sm:$0xff] (!%p138_p2)   ;;  %v1898_v6 = vld [vmem:[%s2397_s1 + $0x10] sm:$0xff] (!%p138_p2)   ;;  %v1975_v17 = vmov (!%p138_p2), 1966171168  }
   0x7   : > { %1702 = vmatpush3.bf16.msra.mxu0 (!%p138_p2), %v1893_v0  ;;  %1717 = vmatprep.mubr.msk.bf16.mxu0 (!%p138_p2), %vm1974_vm0, %v1973_v1  ;;  %v1899_v7 = vld [vmem:[%s2397_s1 + $0x58] sm:$0xff] (!%p138_p2)   ;;  %v1901_v10 = vld [vmem:[%s2397_s1 + $0x60] sm:$0xff] (!%p138_p2)   ;;  %v1903_v12 = vld [vmem:[%s2397_s1 + $0x68] sm:$0xff] (!%p138_p2)   ;;  %v219_v13 = vshrl.u32 (!%p138_p2), %v218_v9, 7  ;;  %v216_v18 = vunpack.c.l.s4 (!%p138_p2), %v1975_v17 }
   0x8   : > { %1722 = vmatpush3.bf16.msra.mxu1 (!%p138_p2), %v1894_v2  ;;  %1703 = vmatprep.subr.bf16.mxu0 (!%p138_p2), %v1973_v1  ;;  %v1900_v8 = vld [vmem:[%s2397_s1 + $0x18] sm:$0xff] (!%p138_p2)   ;;  %v1902_v11 = vld [vmem:[%s2397_s1 + $0x20] sm:$0xff] (!%p138_p2)   ;;  %v1904_v14 = vld [vmem:[%s2397_s1 + $0x28] sm:$0xff] (!%p138_p2)  }
   0x9   : > { %1723 = vmatprep.subr.bf16.mxu1 (!%p138_p2), %v1973_v1  ;;  %1737 = vmatprep.mubr.msk.bf16.mxu1 (!%p138_p2), %vm1974_vm0, %v1973_v1  ;;  %v217_v20 = vunpack.c.0.s8 (!%p138_p2), %v216_v18  ;;  %v1905_v24 = vld [vmem:[%s2397_s1 + $0x70] sm:$0xff] (!%p138_p2)   ;;  %v1907_v28 = vld [vmem:[%s2397_s1 + $0x78] sm:$0xff] (!%p138_p2)   ;;  %v1909_v33 = vld [vmem:[%s2397_s1 + $0x80] sm:$0xff] (!%p138_p2)  }
   0xa   : > { %v1906_v26 = vld [vmem:[%s2397_s1 + $0x30] sm:$0xff] (!%p138_p2)   ;;  %v1908_v30 = vld [vmem:[%s2397_s1 + $0x38] sm:$0xff] (!%p138_p2)   ;;  %v1910_v34 = vld [vmem:[%s2397_s1 + $0xc0] sm:$0xff] (!%p138_p2)  }
   0xb   : > { %1704 = vmatpush3.bf16.msra.mxu0 (!%p138_p2), %v1895_v3  ;;  %v2068_v23 = vsub.s32 (!%p138_p2), %v217_v20, %v219_v13  ;;  %v1911_v35 = vld [vmem:[%s2397_s1 + $0x88] sm:$0xff] (!%p138_p2)   ;;  %v1913_v37 = vld [vmem:[%s2397_s1 + $0x90] sm:$0xff] (!%p138_p2)   ;;  %v1915_v39 = vld [vmem:[%s2397_s1 + $0x98] sm:$0xff] (!%p138_p2)  }
   0xc   : > { %1724 = vmatpush3.bf16.msra.mxu1 (!%p138_p2), %v1896_v4  ;;  %1705 = vmatprep.subr.bf16.mxu0 (!%p138_p2), %v1973_v1  ;;  %v1912_v36 = vld [vmem:[%s2397_s1 + $0xc8] sm:$0xff] (!%p138_p2)   ;;  %v1914_v38 = vld [vmem:[%s2397_s1 + $0xd0] sm:$0xff] (!%p138_p2)   ;;  %v1916_v40 = vld [vmem:[%s2397_s1 + $0xd8] sm:$0xff] (!%p138_p2)  }
   0xd   : > { %s2401_s13 = smov (!%p160_p3, %s1387_s13), 5  ;;  %1725 = vmatprep.subr.bf16.mxu1 %v1973_v1  ;;  %v1917_v41 = vld [vmem:[%s2397_s1 + $0xa0] sm:$0xff]   ;;  %v1919_v43 = vld [vmem:[%s2397_s1 + $0xa8] sm:$0xff]   ;;  %v1921_v55 = vld [vmem:[%s2397_s1 + $0xb0] sm:$0xff]  }
   0xe   : > { %s1881_s28 = smul.u32 48, %s2401_s13  ;;  %v1918_v42 = vld [vmem:[%s2397_s1 + $0xe0] sm:$0xff]   ;;  %v1920_v46 = vld [vmem:[%s2397_s1 + $0xe8] sm:$0xff]   ;;  %v1922_v59 = vld [vmem:[%s2397_s1 + $0xf0] sm:$0xff]   ;;  %s1393_s16 = sshll.u32 %s2401_s13, 2 }
   0xf   : > { %1706 = vmatpush3.bf16.msra.mxu0 %v1897_v5  ;;  %v1923_v63 = vld [vmem:[%s2397_s1 + $0xb8] sm:$0xff]   ;;  %v1925_v5 = vld [vmem:[%s2397_s1 + $0x100] sm:$0xff]   ;;  %v1928_v9 = vld [vmem:[%s2397_s1 + $0x148] sm:$0xff]   ;;  %s168_s19 = scalar_lea.vmem %s2399_s3, %s1393_s16 }
  0x10   : > { %1726 = vmatpush3.bf16.msra.mxu1 %v1898_v6  ;;  %1707 = vmatprep.subr.bf16.mxu0 %v1973_v1  ;;  %s2049_s8 = scalar_lea.vmem %s2396_s0, %s1881_s28  ;;  %v1924_v3 = vld [vmem:[%s2397_s1 + $0xf8] sm:$0xff]  }
  0x11   : > { %1727 = vmatprep.subr.bf16.mxu1 %v1973_v1  ;;  %v1394_v15 = vld [vmem:[%s2049_s8 + $0xc] sm:$0x3]  ;;  %v1395_v16 = vld [vmem:[%s2049_s8 + $0x10] sm:$0x3]  ;;  %v170_v19 = vld [vmem:[%s2049_s8] sm:$0x3] }
  0x12   : > { %v171_v21 = vld [vmem:[%s2049_s8 + $0x4] sm:$0x3]  ;;  %v1412_v22 = vpack.c.bf16 %v1395_v16, %v1394_v15  ;;  %v424_v44 = vld [vmem:[%s2049_s8 + $0x1] sm:$0x3]  ;;  %v1455_v47 = vld [vmem:[%s2049_s8 + $0x18] sm:$0x3] }
  0x13   : > { %1708 = vmatpush3.bf16.msra.mxu0 %v1899_v7  ;;  %v1421_v25 = vpack.c.bf16 %v171_v21, %v170_v19  ;;  %v425_v45 = vld [vmem:[%s2049_s8 + $0x5] sm:$0x3]  ;;  %v1456_v48 = vld [vmem:[%s2049_s8 + $0x1c] sm:$0x3]  ;;  %v1483_v50 = vld [vmem:[%s2049_s8 + $0x28] sm:$0x3] }
  0x14   : > { %1728 = vmatpush3.bf16.msra.mxu1 %v1900_v8  ;;  %1709 = vmatprep.subr.bf16.mxu0 %v1973_v1  ;;  %v221_v27 = vrot.slane %v1412_v22, %v2068_v23  ;;  %v1482_v49 = vld [vmem:[%s2049_s8 + $0x24] sm:$0x3]  ;;  %v1509_v52 = vld [vmem:[%s2049_s8 + $0x19] sm:$0x3]  ;;  %v1446_v53 = vpack.c.bf16 %v425_v45, %v424_v44  ;;  %v1510_v54 = vld [vmem:[%s2049_s8 + $0x1d] sm:$0x3]  ;;  %v1473_v56 = vpack.c.bf16 %v1456_v48, %v1455_v47 }
  0x15   : > { %1729 = vmatprep.subr.bf16.mxu1 %v1973_v1  ;;  %v327_v29 = vrot.slane %v1421_v25, %v2068_v23  ;;  %v1500_v51 = vpack.c.bf16 %v1483_v50, %v1482_v49  ;;  %v1527_v58 = vpack.c.bf16 %v1510_v54, %v1509_v52  ;;  %v1926_v7 = vld [vmem:[%s2397_s1 + $0x140] sm:$0xff]   ;;  %v1927_v8 = vld [vmem:[%s2397_s1 + $0x108] sm:$0xff]   ;;  %v1564_v15 = vld [vmem:[%s2049_s8 + $0x14] sm:$0x3] }
  0x16   : > { %v228_v31 = vrot.slane %v221_v27, %v2068_v23  ;;  %v454_v62 = vrot.slane %v1446_v53, %v2068_v23  ;;  %v583_v0 = vrot.slane %v1473_v56, %v2068_v23  ;;  %v1930_v16 = vld [vmem:[%s2397_s1 + $0x150] sm:$0xff]   ;;  %v1931_v21 = vld [vmem:[%s2397_s1 + $0x118] sm:$0xff]   ;;  %v1590_v25 = vld [vmem:[%s2049_s8 + $0x5] sm:$0x3] }
  0x17   : > { %1710 = vmatpush3.bf16.msra.mxu0 %v1901_v10  ;;  %v334_v32 = vrot.slane %v327_v29, %v2068_v23  ;;  %v2154_v57 = vrot.slane %v1500_v51, %v2068_v23  ;;  %v2164_v61 = vrot.slane %v1527_v58, %v2068_v23  ;;  %v1536_v10 = vld [vmem:[%s2049_s8 + $0x4] sm:$0x3]  ;;  %v1932_v22 = vld [vmem:[%s2397_s1 + $0x158] sm:$0xff]   ;;  %v1591_v27 = vld [vmem:[%s2049_s8 + $0x9] sm:$0x3] }
  0x18   : > { %1730 = vmatpush3.bf16.msra.mxu1 %v1902_v11  ;;  %1711 = vmatprep.subr.bf16.mxu0 %v1973_v1  ;;  %v461_v4 = vrot.slane %v454_v62, %v2068_v23  ;;  %v590_v6 = vrot.slane %v583_v0, %v2068_v23  ;;  %v1537_v11 = vld [vmem:[%s2049_s8 + $0x8] sm:$0x3]  ;;  %v1608_v29 = vpack.c.bf16 %v1591_v27, %v1590_v25  ;;  %v1947_v44 = vld [vmem:[%s2397_s1 + $0x198] sm:$0xff]   ;;  %v1950_v47 = vld [vmem:[%s2397_s1 + $0x1e0] sm:$0xff]  }
  0x19   : > { %1731 = vmatprep.subr.bf16.mxu1 %v1973_v1  ;;  %v719_v60 = vrot.slane %v2154_v57, %v2068_v23  ;;  %v847_v2 = vrot.slane %v2164_v61, %v2068_v23  ;;  %v1554_v13 = vpack.c.bf16 %v1537_v11, %v1536_v10  ;;  %v1948_v45 = vld [vmem:[%s2397_s1 + $0x1d8] sm:$0xff]   ;;  %v1951_v48 = vld [vmem:[%s2397_s1 + $0x1a8] sm:$0xff]   ;;  %v1953_v50 = vld [vmem:[%s2397_s1 + $0x1b0] sm:$0xff]  }
  0x1a   : > { %v1952_v49 = vld [vmem:[%s2397_s1 + $0x1e8] sm:$0xff]   ;;  %v1954_v51 = vld [vmem:[%s2397_s1 + $0x1f0] sm:$0xff]   ;;  %v1955_v52 = vld [vmem:[%s2397_s1 + $0x1b8] sm:$0xff]  }
  0x1b   : > { %1712 = vmatpush3.bf16.msra.mxu0 %v1903_v12  ;;  %v1929_v12 = vld [vmem:[%s2397_s1 + $0x110] sm:$0xff]   ;;  %v2212_v17 = vrot.slane %v1554_v13, %v2068_v23  ;;  %v1956_v53 = vld [vmem:[%s2397_s1 + $0x1f8] sm:$0xff]   ;;  %v1957_v54 = vld [vmem:[%s2397_s1 + $0x200] sm:$0xff]  }
  0x1c   : > { %1732 = vmatpush3.bf16.msra.mxu1 %v1904_v14  ;;  %1713 = vmatprep.subr.bf16.mxu0 %v1973_v1  ;;  %v1563_v14 = vld [vmem:[%s2049_s8 + $0x10] sm:$0x3]  ;;  %v1960_v57 = vld [vmem:[%s2397_s1 + $0x218] sm:$0xff]   ;;  %v1961_v58 = vld [vmem:[%s2397_s1 + $0x220] sm:$0xff]  }
  0x1d   : > { %1733 = vmatprep.subr.bf16.mxu1 %v1973_v1  ;;  %v1581_v18 = vpack.c.bf16 %v1564_v15, %v1563_v14  ;;  %v976_v19 = vrot.slane %v2212_v17, %v2068_v23  ;;  %v1959_v56 = vld [vmem:[%s2397_s1 + $0x210] sm:$0xff]   ;;  %v1964_v61 = vld [vmem:[%s2397_s1 + $0x238] sm:$0xff]  }
  0x1f   : > { %1714 = vmatpush3.bf16.msra.mxu0 %v1905_v24  ;;  %v2218_v20 = vrot.slane %v1581_v18, %v2068_v23 }
  0x20   : > { %1734 = vmatpush3.bf16.msra.mxu1 %v1906_v26  ;;  %1715 = vmatprep.subr.bf16.mxu0 %v1973_v1  ;;  %v1933_v26 = vld [vmem:[%s2397_s1 + $0x120] sm:$0xff]  }
  0x21   : > { %1735 = vmatprep.subr.bf16.mxu1 %v1973_v1  ;;  %v1105_v24 = vrot.slane %v2218_v20, %v2068_v23 }
  0x23   : > { %1716 = vmatpush3.bf16.msra.mxu0 %v1907_v28  ;;  %v1934_v28 = vld [vmem:[%s2397_s1 + $0x160] sm:$0xff]  }
  0x24   : > { %1736 = vmatpush3.bf16.msra.mxu1 %v1908_v30  ;;  %1741 = vmatprep.subr.bf16.mxu0 %v1973_v1  ;;  %v2241_v30 = vrot.slane %v1608_v29, %v2068_v23 }
  0x25   : > { %1761 = vmatprep.subr.bf16.mxu1 %v1973_v1 }
  0x26   : > { %1718 = vmatmul.mubr.bf16.vlgmr.msra.gmra.mrb[0].mxu0 %v228_v31  ;;  %v1935_v31 = vld [vmem:[%s2397_s1 + $0x128] sm:$0xff]  }
  0x27   : > { %1738 = vmatmul.mubr.bf16.vlgmr.msra.gmra.mrb[0].mxu1 %v334_v32  ;;  %1742 = vmatpush3.bf16.msra.mxu0 %v1909_v33  ;;  %v1936_v32 = vld [vmem:[%s2397_s1 + $0x168] sm:$0xff]   ;;  %v1233_v33 = vrot.slane %v2241_v30, %v2068_v23 }
  0x28   : > { %1762 = vmatpush3.bf16.msra.mxu1 %v1910_v34  ;;  %1743 = vmatprep.subr.bf16.mxu0 %v1973_v1  ;;  %v1937_v34 = vld [vmem:[%s2397_s1 + $0x130] sm:$0xff]  }
  0x29   : > { %1763 = vmatprep.subr.bf16.mxu1 %v1973_v1  ;;  %1757 = vmatprep.mubr.msk.bf16.mxu0 %vm1974_vm0, %v1973_v1 }
  0x2a   : > { %1777 = vmatprep.mubr.msk.bf16.mxu1 %vm1974_vm0, %v1973_v1 }
  0x2b   : > { %1744 = vmatpush3.bf16.msra.mxu0 %v1911_v35  ;;  %v1938_v35 = vld [vmem:[%s2397_s1 + $0x170] sm:$0xff]  }
  0x2c   : > { %1764 = vmatpush3.bf16.msra.mxu1 %v1912_v36  ;;  %1745 = vmatprep.subr.bf16.mxu0 %v1973_v1  ;;  %v1939_v36 = vld [vmem:[%s2397_s1 + $0x138] sm:$0xff]  }
  0x2d   : > { %1765 = vmatprep.subr.bf16.mxu1 %v1973_v1 }
  0x2f   : > { %1746 = vmatpush3.bf16.msra.mxu0 %v1913_v37  ;;  %v1940_v37 = vld [vmem:[%s2397_s1 + $0x178] sm:$0xff]  }
  0x30   : > { %1766 = vmatpush3.bf16.msra.mxu1 %v1914_v38  ;;  %1747 = vmatprep.subr.bf16.mxu0 %v1973_v1  ;;  %v1941_v38 = vld [vmem:[%s2397_s1 + $0x180] sm:$0xff]  }
  0x31   : > { %1767 = vmatprep.subr.bf16.mxu1 %v1973_v1 }
  0x33   : > { %1748 = vmatpush3.bf16.msra.mxu0 %v1915_v39  ;;  %v1942_v39 = vld [vmem:[%s2397_s1 + $0x1c0] sm:$0xff]  }
  0x34   : > { %1768 = vmatpush3.bf16.msra.mxu1 %v1916_v40  ;;  %1749 = vmatprep.subr.bf16.mxu0 %v1973_v1  ;;  %v1943_v40 = vld [vmem:[%s2397_s1 + $0x188] sm:$0xff]  }
  0x35   : > { %1769 = vmatprep.subr.bf16.mxu1 %v1973_v1 }
  0x37   : > { %1750 = vmatpush3.bf16.msra.mxu0 %v1917_v41  ;;  %v1944_v41 = vld [vmem:[%s2397_s1 + $0x1c8] sm:$0xff]  }
  0x38   : > { %1770 = vmatpush3.bf16.msra.mxu1 %v1918_v42  ;;  %1751 = vmatprep.subr.bf16.mxu0 %v1973_v1  ;;  %v1945_v42 = vld [vmem:[%s2397_s1 + $0x190] sm:$0xff]  }
  0x39   : > { %1771 = vmatprep.subr.bf16.mxu1 %v1973_v1 }
  0x3b   : > { %1752 = vmatpush3.bf16.msra.mxu0 %v1919_v43  ;;  %v1946_v43 = vld [vmem:[%s2397_s1 + $0x1d0] sm:$0xff]  }
  0x3c   : > { %1772 = vmatpush3.bf16.msra.mxu1 %v1920_v46  ;;  %1753 = vmatprep.subr.bf16.mxu0 %v1973_v1  ;;  %v1949_v46 = vld [vmem:[%s2397_s1 + $0x1a0] sm:$0xff]  }
  0x3d   : > { %1773 = vmatprep.subr.bf16.mxu1 %v1973_v1 }
  0x3f   : > { %1754 = vmatpush3.bf16.msra.mxu0 %v1921_v55  ;;  %v1958_v55 = vld [vmem:[%s2397_s1 + $0x208] sm:$0xff]  }
  0x40   : > { %1774 = vmatpush3.bf16.msra.mxu1 %v1922_v59  ;;  %1755 = vmatprep.subr.bf16.mxu0 %v1973_v1  ;;  %v1962_v59 = vld [vmem:[%s2397_s1 + $0x228] sm:$0xff]  }
  0x41   : > { %1775 = vmatprep.subr.bf16.mxu1 %v1973_v1 }
  0x43   : > { %1756 = vmatpush3.bf16.msra.mxu0 %v1923_v63 }
  0x44   : > { %1776 = vmatpush3.bf16.msra.mxu1 %v1924_v3  ;;  %1781 = vmatprep.subr.bf16.mxu0 %v1973_v1 }
  0x45   : > { %1801 = vmatprep.subr.bf16.mxu1 %v1973_v1 }
  0x46   : > { %1758 = vmatmul.mubr.bf16.vlgmr.msra.gmra.mrb[4].mxu0 %v461_v4 }
  0x47   : > { %1782 = vmatpush3.bf16.msra.mxu0 %v1925_v5  ;;  %1778 = vmatmul.mubr.bf16.vlgmr.msra.gmra.mrb[4].mxu1 %v590_v6 }
  0x48   : > { %1802 = vmatpush3.bf16.msra.mxu1 %v1926_v7  ;;  %1783 = vmatprep.subr.bf16.mxu0 %v1973_v1 }
  0x49   : > { %1803 = vmatprep.subr.bf16.mxu1 %v1973_v1  ;;  %1797 = vmatprep.mubr.msk.bf16.mxu0 %vm1974_vm0, %v1973_v1 }
  0x4a   : > { %1817 = vmatprep.mubr.msk.bf16.mxu1 %vm1974_vm0, %v1973_v1 }
  0x4b   : > { %1784 = vmatpush3.bf16.msra.mxu0 %v1927_v8 }
  0x4c   : > { %1804 = vmatpush3.bf16.msra.mxu1 %v1928_v9  ;;  %1785 = vmatprep.subr.bf16.mxu0 %v1973_v1 }
  0x4d   : > { %1805 = vmatprep.subr.bf16.mxu1 %v1973_v1 }
  0x4f   : > { %1786 = vmatpush3.bf16.msra.mxu0 %v1929_v12 }
  0x50   : > { %1806 = vmatpush3.bf16.msra.mxu1 %v1930_v16  ;;  %1787 = vmatprep.subr.bf16.mxu0 %v1973_v1 }
  0x51   : > { %1807 = vmatprep.subr.bf16.mxu1 %v1973_v1 }
  0x53   : > { %1788 = vmatpush3.bf16.msra.mxu0 %v1931_v21 }
  0x54   : > { %1808 = vmatpush3.bf16.msra.mxu1 %v1932_v22  ;;  %1789 = vmatprep.subr.bf16.mxu0 %v1973_v1 }
  0x55   : > { %1809 = vmatprep.subr.bf16.mxu1 %v1973_v1 }
  0x57   : > { %1790 = vmatpush3.bf16.msra.mxu0 %v1933_v26 }
  0x58   : > { %1810 = vmatpush3.bf16.msra.mxu1 %v1934_v28  ;;  %1791 = vmatprep.subr.bf16.mxu0 %v1973_v1 }
  0x59   : > { %1811 = vmatprep.subr.bf16.mxu1 %v1973_v1 }
  0x5b   : > { %1792 = vmatpush3.bf16.msra.mxu0 %v1935_v31 }
  0x5c   : > { %1812 = vmatpush3.bf16.msra.mxu1 %v1936_v32  ;;  %1793 = vmatprep.subr.bf16.mxu0 %v1973_v1 }
  0x5d   : > { %1813 = vmatprep.subr.bf16.mxu1 %v1973_v1 }
  0x5f   : > { %1794 = vmatpush3.bf16.msra.mxu0 %v1937_v34 }
  0x60   : > { %1814 = vmatpush3.bf16.msra.mxu1 %v1938_v35  ;;  %1795 = vmatprep.subr.bf16.mxu0 %v1973_v1 }
  0x61   : > { %1815 = vmatprep.subr.bf16.mxu1 %v1973_v1 }
  0x63   : > { %1796 = vmatpush3.bf16.msra.mxu0 %v1939_v36 }
  0x64   : > { %1816 = vmatpush3.bf16.msra.mxu1 %v1940_v37  ;;  %1821 = vmatprep.subr.bf16.mxu0 %v1973_v1 }
  0x65   : > { %1841 = vmatprep.subr.bf16.mxu1 %v1973_v1 }
  0x66   : > { %1798 = vmatmul.mubr.bf16.vlgmr.msra.gmra.mrb[8].mxu0 %v719_v60  ;;  %v1963_v60 = vld [vmem:[%s2397_s1 + $0x230] sm:$0xff]  }
  0x67   : > { %1822 = vmatpush3.bf16.msra.mxu0 %v1941_v38  ;;  %1818 = vmatmul.mubr.bf16.vlgmr.msra.gmra.mrb[8].mxu1 %v847_v2  ;;  %v1617_v38 = vld [vmem:[%s2398_s2] ss:$0 sm:$0xff] }
  0x68   : > { %1842 = vmatpush3.bf16.msra.mxu1 %v1942_v39  ;;  %1823 = vmatprep.subr.bf16.mxu0 %v1973_v1 }
  0x69   : > { %1843 = vmatprep.subr.bf16.mxu1 %v1973_v1  ;;  %1837 = vmatprep.mubr.msk.bf16.mxu0 %vm1974_vm0, %v1973_v1 }
  0x6a   : > { %1857 = vmatprep.mubr.msk.bf16.mxu1 %vm1974_vm0, %v1973_v1 }
  0x6b   : > { %1824 = vmatpush3.bf16.msra.mxu0 %v1943_v40 }
  0x6c   : > { %1844 = vmatpush3.bf16.msra.mxu1 %v1944_v41  ;;  %1825 = vmatprep.subr.bf16.mxu0 %v1973_v1 }
  0x6d   : > { %1845 = vmatprep.subr.bf16.mxu1 %v1973_v1 }
  0x6f   : > { %1826 = vmatpush3.bf16.msra.mxu0 %v1945_v42 }
  0x70   : > { %1846 = vmatpush3.bf16.msra.mxu1 %v1946_v43  ;;  %1827 = vmatprep.subr.bf16.mxu0 %v1973_v1 }
  0x71   : > { %1847 = vmatprep.subr.bf16.mxu1 %v1973_v1 }
  0x73   : > { %1828 = vmatpush3.bf16.msra.mxu0 %v1947_v44 }
  0x74   : > { %1848 = vmatpush3.bf16.msra.mxu1 %v1948_v45  ;;  %1829 = vmatprep.subr.bf16.mxu0 %v1973_v1 }
  0x75   : > { %1849 = vmatprep.subr.bf16.mxu1 %v1973_v1 }
  0x77   : > { %1830 = vmatpush3.bf16.msra.mxu0 %v1949_v46 }
  0x78   : > { %1850 = vmatpush3.bf16.msra.mxu1 %v1950_v47  ;;  %1831 = vmatprep.subr.bf16.mxu0 %v1973_v1 }
  0x79   : > { %1851 = vmatprep.subr.bf16.mxu1 %v1973_v1 }
  0x7b   : > { %1832 = vmatpush3.bf16.msra.mxu0 %v1951_v48 }
  0x7c   : > { %1852 = vmatpush3.bf16.msra.mxu1 %v1952_v49  ;;  %1833 = vmatprep.subr.bf16.mxu0 %v1973_v1 }
  0x7d   : > { %1853 = vmatprep.subr.bf16.mxu1 %v1973_v1 }
  0x7f   : > { %1834 = vmatpush3.bf16.msra.mxu0 %v1953_v50 }
  0x80   : > { %1854 = vmatpush3.bf16.msra.mxu1 %v1954_v51  ;;  %1835 = vmatprep.subr.bf16.mxu0 %v1973_v1 }
  0x81   : > { %1855 = vmatprep.subr.bf16.mxu1 %v1973_v1 }
  0x83   : > { %1836 = vmatpush3.bf16.msra.mxu0 %v1955_v52 }
  0x84   : > { %1856 = vmatpush3.bf16.msra.mxu1 %v1956_v53  ;;  %1861 = vmatprep.subr.bf16.mxu0 %v1973_v1 }
  0x86   : > { %1838 = vmatmul.mubr.bf16.vlgmr.msra.gmra.mrb[12].mxu0 %v976_v19 }
  0x87   : > { %1862 = vmatpush3.bf16.msra.mxu0 %v1957_v54  ;;  %1858 = vmatmul.mubr.bf16.vlgmr.msra.gmra.mrb[12].mxu1 %v1105_v24 }
  0x88   : > { %1863 = vmatprep.subr.bf16.mxu0 %v1973_v1  ;;  %1877 = vmatprep.mubr.msk.bf16.mxu0 %vm1974_vm0, %v1973_v1 }
  0x8b   : > { %1864 = vmatpush3.bf16.msra.mxu0 %v1958_v55 }
  0x8c   : > { %1865 = vmatprep.subr.bf16.mxu0 %v1973_v1 }
  0x8f   : > { %1866 = vmatpush3.bf16.msra.mxu0 %v1959_v56 }
  0x90   : > { %1867 = vmatprep.subr.bf16.mxu0 %v1973_v1 }
  0x93   : > { %1868 = vmatpush3.bf16.msra.mxu0 %v1960_v57 }
  0x94   : > { %1869 = vmatprep.subr.bf16.mxu0 %v1973_v1 }
  0x97   : > { %1870 = vmatpush3.bf16.msra.mxu0 %v1961_v58 }
  0x98   : > { %1871 = vmatprep.subr.bf16.mxu0 %v1973_v1 }
  0x9b   : > { %1872 = vmatpush3.bf16.msra.mxu0 %v1962_v59 }
  0x9c   : > { %1873 = vmatprep.subr.bf16.mxu0 %v1973_v1 }
  0x9f   : > { %1874 = vmatpush3.bf16.msra.mxu0 %v1963_v60 }
  0xa0   : > { %1875 = vmatprep.subr.bf16.mxu0 %v1973_v1 }
  0xa3   : > { %1876 = vmatpush3.bf16.msra.mxu0 %v1964_v61 }
  0xa6   : > { %1878 = vmatmul.mubr.bf16.vlgmr.msra.gmra.mrb[16].mxu0 %v1233_v33 }
  0xf9   : > { %v312_v62 = vpop.f32.mrb[0].mxu0 }
  0xfa   : > { %v1719_v63 = vpop.f32.mrb[1].mxu0  ;;  %v418_v0 = vpop.f32.mrb[0].mxu1 }
  0xfb   : > { %v419_v2 = vadd.f32 %v418_v0, %v312_v62  ;;  %v315_v3 = vpop.f32.mrb[2].mxu0  ;;  %v1739_v4 = vpop.f32.mrb[1].mxu1 }
  0xfc   : > { %v1720_v5 = vpop.f32.mrb[3].mxu0  ;;  %v421_v6 = vpop.f32.mrb[2].mxu1 }
  0xfd   : > { %v1740_v7 = vpop.f32.mrb[3].mxu1 }
 0x119   : > { %v545_v8 = vpop.f32.mrb[4].mxu0 }
 0x11a   : > { %v551_v9 = vadd.f32 %v545_v8, %v419_v2  ;;  %v1759_v10 = vpop.f32.mrb[5].mxu0  ;;  %v674_v11 = vpop.f32.mrb[4].mxu1 }
 0x11b   : > { %v548_v12 = vpop.f32.mrb[6].mxu0  ;;  %v1779_v1 = vpop.f32.mrb[5].mxu1 }
 0x11c   : > { %v680_v13 = vadd.f32 %v674_v11, %v551_v9  ;;  %v1760_v14 = vpop.f32.mrb[7].mxu0  ;;  %v677_v15 = vpop.f32.mrb[6].mxu1 }
 0x11d   : > { %v1780_v23 = vpop.f32.mrb[7].mxu1 }
 0x139   : > { %v803_v16 = vpop.f32.mrb[8].mxu0 }
 0x13a   : > { %v809_v17 = vadd.f32 %v803_v16, %v680_v13  ;;  %v1799_v18 = vpop.f32.mrb[9].mxu0  ;;  %v931_v19 = vpop.f32.mrb[8].mxu1 }
 0x13b   : > { %v806_v20 = vpop.f32.mrb[10].mxu0  ;;  %v1819_v21 = vpop.f32.mrb[9].mxu1 }
 0x13c   : > { %v937_v22 = vadd.f32 %v931_v19, %v809_v17  ;;  %v1800_v24 = vpop.f32.mrb[11].mxu0  ;;  %v934_v25 = vpop.f32.mrb[10].mxu1 }
 0x13d   : > { %v1820_v26 = vpop.f32.mrb[11].mxu1 }
 0x159   : > { %v1060_v27 = vpop.f32.mrb[12].mxu0 }
 0x15a   : > { %v1066_v28 = vadd.f32 %v1060_v27, %v937_v22  ;;  %v1839_v29 = vpop.f32.mrb[13].mxu0  ;;  %v1189_v30 = vpop.f32.mrb[12].mxu1 }
 0x15b   : > { %v1063_v31 = vpop.f32.mrb[14].mxu0  ;;  %v1859_v32 = vpop.f32.mrb[13].mxu1 }
 0x15c   : > { %v1195_v33 = vadd.f32 %v1189_v30, %v1066_v28  ;;  %v1840_v34 = vpop.f32.mrb[15].mxu0  ;;  %v1192_v35 = vpop.f32.mrb[14].mxu1 }
 0x15d   : > { %v1860_v36 = vpop.f32.mrb[15].mxu1 }
 0x179   : > { %v1317_v37 = vpop.f32.mrb[16].mxu0 }
 0x17a   : > { %v1323_v39 = vadd.f32 %v1317_v37, %v1195_v33  ;;  %v1879_v40 = vpop.f32.mrb[17].mxu0 }
 0x17b   : > { %v1320_v41 = vpop.f32.mrb[18].mxu0 }
 0x17c   : > { %v1331_v42 = vadd.f32 %v1617_v38, %v1323_v39  ;;  %v1880_v43 = vpop.f32.mrb[19].mxu0 }
 0x17e   : > { %v1332_v44 = vmax.f32 %v1331_v42, 0.0 }
 0x180   : > { %1333 = vst [vmem:[%s168_s19] sm:$0xf] %v1332_v44 }
 0x181 PF: > { %s13_s12 = sadd.s32 1, %s1971_s12  }
 0x182   : > { %p10_p4 = scmp.ge.s32.totalorder %s13_s12, 8  }
 0x184   :  { %12 = sbr.rel (!%p10_p4) target bundleno = 1 (0x1), region = 75 }

// kernel: inpainting_loss.13
= control target key start
LH: loop header
LB: loop body
LE: loop exit
PB: predicated region body
PF: predicated region fallthrough
CT: control target
= control target key end

     0   :  { %vm379_vm0 = vcmask 1043456   ;;  %vm354_vm1 = vcmask 64512   ;;  %s2147_s0 = inlined_call_operand.vmem [shape: f32[6,8,128], index: 0, kind: input, shape index: {}]   ;;  %s2148_s1 = inlined_call_operand.vmem [shape: f32[8,128], index: 1, kind: output, shape index: {}]  }
   0x1   :  { %v1852_v0 = vld [vmem:[%s2147_s0] sm:$0xff]  ;;  %v1857_v1 = vld [vmem:[%s2147_s0 + $0x10] sm:$0xff]  ;;  %v1862_v2 = vld [vmem:[%s2147_s0 + $0x8] sm:$0xff] }
   0x2   :  { %v156_v3 = vpack.c.bf16 %v1852_v0, %v1852_v0  ;;  %v158_v4 = vpack.c.bf16 %v1857_v1, %v1857_v1  ;;  %v157_v5 = vpack.c.bf16 %v1862_v2, %v1862_v2  ;;  %v1876_v7 = vld [vmem:[%s2147_s0 + $0x18] sm:$0xff]  ;;  %v1886_v10 = vld [vmem:[%s2147_s0 + $0x20] sm:$0xff]  ;;  %v1891_v11 = vld [vmem:[%s2147_s0 + $0x28] sm:$0xff] }
   0x3   :  { %v159_v8 = vpack.c.bf16 %v1876_v7, %v1876_v7  ;;  %v160_v12 = vpack.c.bf16 %v1886_v10, %v1886_v10  ;;  %v1897_v13 = vpack.c.bf16 %v1891_v11, %v1891_v11 }
   0x4   :  { %162 = vxpose.xlu0.c.b16.start.end [1/1] (short) %v156_v3, 128  ;;  %194 = vxpose.xlu1.c.b16.start.end [1/1] (short) %v158_v4, 128  ;;  %v381_v6 = vsel %vm379_vm0, %v156_v3, 0  ;;  %v505_v9 = vsel %vm379_vm0, %v157_v5, 0  ;;  %v629_v16 = vsel %vm379_vm0, %v158_v4, 0 }
   0x5   :  { %1823 = vmatprep.subr.msk.bf16.mxu0 %vm379_vm0, %v156_v3  ;;  %1824 = vmatprep.subr.msk.bf16.mxu1 %vm379_vm0, %v157_v5  ;;  %v753_v33 = vsel %vm379_vm0, %v159_v8, 0  ;;  %v877_v34 = vsel %vm379_vm0, %v160_v12, 0  ;;  %v1001_v48 = vsel %vm379_vm0, %v1897_v13, 0 }
   0x6   :  { %1716 = vmatpush3.bf16.msra.mxu0 %v381_v6  ;;  %1734 = vmatpush3.bf16.msra.mxu1 %v505_v9  ;;  %v131_v6 = vsub.f32 %v1876_v7, %v1891_v11  ;;  %v117_v9 = vsub.f32 %v1862_v2, %v1891_v11 }
   0x7   :  { %1825 = vmatprep.subr.msk.bf16.mxu0 %vm379_vm0, %v158_v4  ;;  %1826 = vmatprep.subr.msk.bf16.mxu1 %vm379_vm0, %v159_v8 }
  0x21   :  { %178 = vxpose.xlu0.c.b16.start.end [1/1] (short) %v157_v5, 128  ;;  %210 = vxpose.xlu1.c.b16.start.end [1/1] (short) %v159_v8, 128  ;;  %v130_v5 = vsub.f32 %v1857_v1, %v1886_v10  ;;  %v116_v8 = vsub.f32 %v1852_v0, %v1886_v10 }
  0x3e   :  { %226 = vxpose.xlu0.c.b16.start.end [1/1] (short) %v160_v12, 128  ;;  %242 = vxpose.xlu1.c.b16.start.end [1/1] (short) %v1897_v13, 128 }
  0x6a   :  { %v170_v14 = vpop.trf.xlu0  ;;  %v202_v15 = vpop.trf.xlu1 }
  0x6b   :  { %1717 = vmatprep.mubr.msk.bf16.mxu0 %vm354_vm1, %v170_v14  ;;  %v118_v14 = vand.u32 2147483647, %v116_v8 }
  0x6e   :  { %v171_v17 = vpop.trf.xlu0  ;;  %v203_v18 = vpop.trf.xlu1 }
  0x6f   :  { %1718 = vmatmul.mubr.msk.bf16.vlgmr.msra.gmra.mrb[0].mxu0 %vm354_vm1, %v171_v17 }
  0x70   :  { %1752 = vmatpush3.bf16.msra.mxu0 %v629_v16 }
  0x71   :  { %1827 = vmatprep.subr.msk.bf16.mxu0 %vm379_vm0, %v160_v12  ;;  %v132_v12 = vand.u32 2147483647, %v130_v5 }
  0x72   :  { %v172_v19 = vpop.trf.xlu0  ;;  %v204_v20 = vpop.trf.xlu1 }
  0x73   :  { %1721 = vmatprep.mubr.msk.bf16.mxu0 %vm354_vm1, %v172_v19 }
  0x76   :  { %v173_v21 = vpop.trf.xlu0  ;;  %v205_v22 = vpop.trf.xlu1 }
  0x77   :  { %1722 = vmatmul.mubr.msk.bf16.gmra.mrb[4].mxu0 %vm354_vm1, %v173_v21 }
  0x7a   :  { %v174_v23 = vpop.trf.xlu0  ;;  %v206_v24 = vpop.trf.xlu1 }
  0x7b   :  { %1725 = vmatprep.mubr.msk.bf16.mxu0 %vm354_vm1, %v174_v23 }
  0x7e   :  { %v175_v25 = vpop.trf.xlu0  ;;  %v207_v26 = vpop.trf.xlu1 }
  0x7f   :  { %1726 = vmatmul.mubr.msk.bf16.gmra.mrb[8].mxu0 %vm354_vm1, %v175_v25 }
  0x82   :  { %v176_v27 = vpop.trf.xlu0  ;;  %v208_v28 = vpop.trf.xlu1 }
  0x83   :  { %1729 = vmatprep.mubr.msk.bf16.mxu0 %vm354_vm1, %v176_v27 }
  0x86   :  { %v177_v29 = vpop.trf.xlu0  ;;  %v209_v30 = vpop.trf.xlu1 }
  0x87   :  { %1730 = vmatmul.mubr.msk.bf16.gmra.mrb[12].mxu0 %vm354_vm1, %v177_v29 }
  0x88   :  { %1753 = vmatprep.mubr.msk.bf16.mxu0 %vm354_vm1, %v202_v15  ;;  %v119_v15 = vand.u32 2147483647, %v117_v9 }
  0x8a   :  { %v186_v31 = vpop.trf.xlu0  ;;  %v218_v32 = vpop.trf.xlu1  ;;  %v120_v17 = vadd.f32 %v119_v15, %v118_v14 }
  0x8b   :  { %1735 = vmatprep.mubr.msk.bf16.mxu1 %vm354_vm1, %v186_v31 }
  0x8c   :  { %121 = vadd.xlane.f32.xlu0 %v120_v17 }
  0x8e   :  { %v187_v35 = vpop.trf.xlu0  ;;  %v219_v36 = vpop.trf.xlu1 }
  0x8f   :  { %1736 = vmatmul.mubr.msk.bf16.vlgmr.msra.gmra.mrb[0].mxu1 %vm354_vm1, %v187_v35  ;;  %1754 = vmatmul.mubr.msk.bf16.vlgmr.msra.gmra.mrb[16].mxu0 %vm354_vm1, %v203_v18 }
  0x90   :  { %1770 = vmatpush3.bf16.msra.mxu1 %v753_v33  ;;  %1788 = vmatpush3.bf16.msra.mxu0 %v877_v34 }
  0x91   :  { %1757 = vmatprep.mubr.msk.bf16.mxu0 %vm354_vm1, %v204_v20  ;;  %1828 = vmatprep.subr.msk.bf16.mxu1 %vm379_vm0, %v1897_v13  ;;  %v133_v13 = vand.u32 2147483647, %v131_v6 }
  0x92   :  { %v188_v37 = vpop.trf.xlu0  ;;  %v220_v38 = vpop.trf.xlu1 }
  0x93   :  { %1739 = vmatprep.mubr.msk.bf16.mxu1 %vm354_vm1, %v188_v37  ;;  %v134_v16 = vadd.f32 %v133_v13, %v132_v12 }
  0x95   :  { %135 = vadd.xlane.f32.xlu1 %v134_v16 }
  0x96   :  { %v189_v39 = vpop.trf.xlu0  ;;  %v221_v41 = vpop.trf.xlu1 }
  0x97   :  { %1740 = vmatmul.mubr.msk.bf16.gmra.mrb[4].mxu1 %vm354_vm1, %v189_v39  ;;  %1758 = vmatmul.mubr.msk.bf16.gmra.mrb[20].mxu0 %vm354_vm1, %v205_v22 }
  0x98   :  { %1761 = vmatprep.mubr.msk.bf16.mxu0 %vm354_vm1, %v206_v24 }
  0x9a   :  { %v190_v40 = vpop.trf.xlu0  ;;  %v222_v43 = vpop.trf.xlu1 }
  0x9b   :  { %1743 = vmatprep.mubr.msk.bf16.mxu1 %vm354_vm1, %v190_v40 }
  0x9e   :  { %v191_v42 = vpop.trf.xlu0  ;;  %v223_v46 = vpop.trf.xlu1 }
  0x9f   :  { %1744 = vmatmul.mubr.msk.bf16.gmra.mrb[8].mxu1 %vm354_vm1, %v191_v42  ;;  %1762 = vmatmul.mubr.msk.bf16.gmra.mrb[24].mxu0 %vm354_vm1, %v207_v26 }
  0xa0   :  { %1765 = vmatprep.mubr.msk.bf16.mxu0 %vm354_vm1, %v208_v28 }
  0xa2   :  { %v192_v44 = vpop.trf.xlu0  ;;  %v224_v49 = vpop.trf.xlu1 }
  0xa3   :  { %1747 = vmatprep.mubr.msk.bf16.mxu1 %vm354_vm1, %v192_v44 }
  0xa6   :  { %v193_v45 = vpop.trf.xlu0  ;;  %v225_v52 = vpop.trf.xlu1 }
  0xa7   :  { %1748 = vmatmul.mubr.msk.bf16.gmra.mrb[12].mxu1 %vm354_vm1, %v193_v45  ;;  %1766 = vmatmul.mubr.msk.bf16.gmra.mrb[28].mxu0 %vm354_vm1, %v209_v30 }
  0xa8   :  { %1771 = vmatprep.mubr.msk.bf16.mxu1 %vm354_vm1, %v218_v32 }
  0xaa   :  { %v234_v47 = vpop.trf.xlu0  ;;  %v250_v54 = vpop.trf.xlu1 }
  0xab   :  { %1789 = vmatprep.mubr.msk.bf16.mxu0 %vm354_vm1, %v234_v47 }
  0xae   :  { %v235_v50 = vpop.trf.xlu0  ;;  %v251_v57 = vpop.trf.xlu1 }
  0xaf   :  { %1772 = vmatmul.mubr.msk.bf16.vlgmr.msra.gmra.mrb[16].mxu1 %vm354_vm1, %v219_v36  ;;  %1790 = vmatmul.mubr.msk.bf16.vlgmr.msra.gmra.mrb[32].mxu0 %vm354_vm1, %v235_v50 }
  0xb0   :  { %1806 = vmatpush3.bf16.msra.mxu1 %v1001_v48  ;;  %1775 = vmatprep.mubr.msk.bf16.mxu1 %vm354_vm1, %v220_v38 }
  0xb2   :  { %v236_v51 = vpop.trf.xlu0  ;;  %v252_v59 = vpop.trf.xlu1 }
  0xb3   :  { %1793 = vmatprep.mubr.msk.bf16.mxu0 %vm354_vm1, %v236_v51 }
  0xb6   :  { %v237_v53 = vpop.trf.xlu0  ;;  %v253_v61 = vpop.trf.xlu1 }
  0xb7   :  { %1776 = vmatmul.mubr.msk.bf16.gmra.mrb[20].mxu1 %vm354_vm1, %v221_v41  ;;  %1794 = vmatmul.mubr.msk.bf16.gmra.mrb[36].mxu0 %vm354_vm1, %v237_v53 }
  0xb8   :  { %1779 = vmatprep.mubr.msk.bf16.mxu1 %vm354_vm1, %v222_v43 }
  0xba   :  { %v238_v55 = vpop.trf.xlu0  ;;  %v254_v62 = vpop.trf.xlu1 }
  0xbb   :  { %1797 = vmatprep.mubr.msk.bf16.mxu0 %vm354_vm1, %v238_v55 }
  0xbe   :  { %v239_v56 = vpop.trf.xlu0  ;;  %v255_v63 = vpop.trf.xlu1 }
  0xbf   :  { %1780 = vmatmul.mubr.msk.bf16.gmra.mrb[24].mxu1 %vm354_vm1, %v223_v46  ;;  %1798 = vmatmul.mubr.msk.bf16.gmra.mrb[40].mxu0 %vm354_vm1, %v239_v56 }
  0xc0   :  { %1783 = vmatprep.mubr.msk.bf16.mxu1 %vm354_vm1, %v224_v49 }
  0xc2   :  { %v240_v58 = vpop.trf.xlu0  ;;  %v256_v3 = vpop.trf.xlu1 }
  0xc3   :  { %1801 = vmatprep.mubr.msk.bf16.mxu0 %vm354_vm1, %v240_v58 }
  0xc6   :  { %v241_v60 = vpop.trf.xlu0  ;;  %v257_v4 = vpop.trf.xlu1 }
  0xc7   :  { %1784 = vmatmul.mubr.msk.bf16.gmra.mrb[28].mxu1 %vm354_vm1, %v225_v52  ;;  %1802 = vmatmul.mubr.msk.bf16.gmra.mrb[44].mxu0 %vm354_vm1, %v241_v60 }
  0xc8   :  { %1807 = vmatprep.mubr.msk.bf16.mxu1 %vm354_vm1, %v250_v54 }
  0xcf   :  { %1808 = vmatmul.mubr.msk.bf16.vlgmr.msra.gmra.mrb[32].mxu1 %vm354_vm1, %v251_v57 }
  0xd0   :  { %1811 = vmatprep.mubr.msk.bf16.mxu1 %vm354_vm1, %v252_v59 }
  0xd7   :  { %1812 = vmatmul.mubr.msk.bf16.gmra.mrb[36].mxu1 %vm354_vm1, %v253_v61 }
  0xd8   :  { %1815 = vmatprep.mubr.msk.bf16.mxu1 %vm354_vm1, %v254_v62 }
  0xdf   :  { %1816 = vmatmul.mubr.msk.bf16.gmra.mrb[40].mxu1 %vm354_vm1, %v255_v63 }
  0xe0   :  { %1819 = vmatprep.mubr.msk.bf16.mxu1 %vm354_vm1, %v256_v3 }
  0xe7   :  { %1820 = vmatmul.mubr.msk.bf16.gmra.mrb[44].mxu1 %vm354_vm1, %v257_v4 }
 0x142   :  { %v1964_v18 = vpop.f32.mrb[0].mxu0 }
 0x143   :  { %v1966_v1 = vpop.f32.mrb[1].mxu0 }
 0x144   :  { %v1968_v19 = vpop.f32.mrb[2].mxu0 }
 0x145   :  { %v1970_v7 = vpop.f32.mrb[3].mxu0 }
 0x14a   :  { %v1972_v0 = vpop.f32.mrb[4].mxu0 }
 0x14b   :  { %v1974_v10 = vpop.f32.mrb[5].mxu0 }
 0x14c   :  { %v1976_v2 = vpop.f32.mrb[6].mxu0 }
 0x14d   :  { %v1978_v11 = vpop.f32.mrb[7].mxu0 }
 0x152   :  { %v1980_v20 = vpop.f32.mrb[8].mxu0 }
 0x153   :  { %v1982_v21 = vpop.f32.mrb[9].mxu0 }
 0x154   :  { %v1984_v22 = vpop.f32.mrb[10].mxu0 }
 0x155   :  { %v1986_v23 = vpop.f32.mrb[11].mxu0 }
 0x15a   :  { %v1988_v24 = vpop.f32.mrb[12].mxu0 }
 0x15b   :  { %v1990_v25 = vpop.f32.mrb[13].mxu0 }
 0x15c   :  { %v1992_v26 = vpop.f32.mrb[14].mxu0 }
 0x15d   :  { %v1994_v27 = vpop.f32.mrb[15].mxu0 }
 0x162   :  { %v1996_v28 = vpop.f32.mrb[0].mxu1  ;;  %v1755_v29 = vpop.f32.mrb[16].mxu0 }
 0x163   :  { %v1998_v30 = vpop.f32.mrb[1].mxu1  ;;  %v665_v31 = vpop.f32.mrb[17].mxu0 }
 0x164   :  { %v2000_v32 = vpop.f32.mrb[2].mxu1  ;;  %v1756_v33 = vpop.f32.mrb[18].mxu0 }
 0x165   :  { %v2002_v34 = vpop.f32.mrb[3].mxu1  ;;  %v668_v35 = vpop.f32.mrb[19].mxu0 }
 0x16a   :  { %v2004_v36 = vpop.f32.mrb[4].mxu1  ;;  %v2006_v37 = vpop.f32.mrb[20].mxu0 }
 0x16b   :  { %v2008_v38 = vpop.f32.mrb[5].mxu1  ;;  %v2010_v39 = vpop.f32.mrb[21].mxu0 }
 0x16c   :  { %v2012_v40 = vpop.f32.mrb[6].mxu1  ;;  %v2014_v41 = vpop.f32.mrb[22].mxu0 }
 0x16d   :  { %v2016_v42 = vpop.f32.mrb[7].mxu1  ;;  %v2018_v43 = vpop.f32.mrb[23].mxu0 }
 0x172   :  { %v2020_v44 = vpop.f32.mrb[8].mxu1  ;;  %v2022_v45 = vpop.f32.mrb[24].mxu0 }
 0x173   :  { %v2024_v46 = vpop.f32.mrb[9].mxu1  ;;  %v2026_v47 = vpop.f32.mrb[25].mxu0 }
 0x174   :  { %v2028_v48 = vpop.f32.mrb[10].mxu1  ;;  %v2030_v49 = vpop.f32.mrb[26].mxu0 }
 0x175   :  { %2149 = vst [vmem:[#allocation3_spill] sm:$0xff] %v2028_v48  ;;  %v2032_v50 = vpop.f32.mrb[11].mxu1  ;;  %v2034_v51 = vpop.f32.mrb[27].mxu0 }
 0x176   :  { %2150 = vst [vmem:[#allocation4_spill] sm:$0xff] %v2032_v50 }
 0x17a   :  { %v2036_v52 = vpop.f32.mrb[12].mxu1  ;;  %v2038_v53 = vpop.f32.mrb[28].mxu0 }
 0x17b   :  { %2151 = vst [vmem:[#allocation5_spill] sm:$0xff] %v2036_v52  ;;  %v2040_v54 = vpop.f32.mrb[13].mxu1  ;;  %v2042_v55 = vpop.f32.mrb[29].mxu0 }
 0x17c   :  { %2152 = vst [vmem:[#allocation6_spill] sm:$0xff] %v2040_v54  ;;  %v2044_v56 = vpop.f32.mrb[14].mxu1  ;;  %v2046_v57 = vpop.f32.mrb[30].mxu0 }
 0x17d   :  { %2153 = vst [vmem:[#allocation7_spill] sm:$0xff] %v2044_v56  ;;  %v2048_v58 = vpop.f32.mrb[15].mxu1  ;;  %v2050_v59 = vpop.f32.mrb[31].mxu0 }
 0x17e   :  { %2154 = vst [vmem:[#allocation8_spill] sm:$0xff] %v2048_v58 }
 0x182   :  { %v2052_v60 = vpop.f32.mrb[16].mxu1  ;;  %v1791_v61 = vpop.f32.mrb[32].mxu0 }
 0x183   :  { %v1393_v62 = vsub.f32 %v1964_v18, %v1791_v61  ;;  %v1497_v63 = vsub.f32 %v1755_v29, %v1791_v61  ;;  %v2055_v3 = vpop.f32.mrb[17].mxu1  ;;  %v913_v4 = vpop.f32.mrb[33].mxu0 }
 0x184   :  { %v1391_v5 = vsub.f32 %v1966_v1, %v913_v4  ;;  %v1495_v6 = vsub.f32 %v665_v31, %v913_v4  ;;  %v2058_v8 = vpop.f32.mrb[18].mxu1  ;;  %v1792_v9 = vpop.f32.mrb[34].mxu0 }
 0x185   :  { %v1394_v12 = vsub.f32 %v1968_v19, %v1792_v9  ;;  %v1498_v13 = vsub.f32 %v1756_v33, %v1792_v9  ;;  %v2061_v14 = vpop.f32.mrb[19].mxu1  ;;  %v916_v15 = vpop.f32.mrb[35].mxu0  ;;  %v1425_v56 = vand.u32 2147483647, %v1393_v62  ;;  %v1529_v54 = vand.u32 2147483647, %v1497_v63 }
 0x186   :  { %v1392_v16 = vsub.f32 %v1970_v7, %v916_v15  ;;  %v1496_v17 = vsub.f32 %v668_v35, %v916_v15  ;;  %v1423_v18 = vand.u32 2147483647, %v1391_v5  ;;  %v1527_v29 = vand.u32 2147483647, %v1495_v6 }
 0x187   :  { %v1426_v50 = vand.u32 2147483647, %v1394_v12  ;;  %v1530_v19 = vand.u32 2147483647, %v1498_v13 }
 0x188   :  { %v1424_v61 = vand.u32 2147483647, %v1392_v16  ;;  %v1528_v58 = vand.u32 2147483647, %v1496_v17 }
 0x18a   :  { %v1455_v1 = vadd.f32 %v1424_v61, %v1423_v18  ;;  %v1559_v31 = vadd.f32 %v1528_v58, %v1527_v29  ;;  %v2064_v4 = vpop.f32.mrb[20].mxu1  ;;  %v1795_v52 = vpop.f32.mrb[36].mxu0 }
 0x18b   :  { %v1397_v33 = vsub.f32 %v1972_v0, %v1795_v52  ;;  %v1501_v9 = vsub.f32 %v2006_v37, %v1795_v52  ;;  %v2068_v48 = vpop.f32.mrb[21].mxu1  ;;  %v929_v7 = vpop.f32.mrb[37].mxu0 }
 0x18c   :  { %v1456_v35 = vadd.f32 %v1455_v1, %v1425_v56  ;;  %v1560_v5 = vadd.f32 %v1559_v31, %v1529_v54  ;;  %v1395_v6 = vsub.f32 %v1974_v10, %v929_v7  ;;  %v1499_v62 = vsub.f32 %v2010_v39, %v929_v7  ;;  %v2072_v63 = vpop.f32.mrb[22].mxu1  ;;  %v1796_v58 = vpop.f32.mrb[38].mxu0 }
 0x18d   :  { %v1398_v15 = vsub.f32 %v1976_v2, %v1796_v58  ;;  %v1502_v12 = vsub.f32 %v2014_v41, %v1796_v58  ;;  %v2076_v13 = vpop.f32.mrb[23].mxu1  ;;  %v932_v0 = vpop.f32.mrb[39].mxu0  ;;  %v1429_v61 = vand.u32 2147483647, %v1397_v33  ;;  %v1533_v1 = vand.u32 2147483647, %v1501_v9 }
 0x18e   :  { %v1427_v37 = vand.u32 2147483647, %v1395_v6  ;;  %v1457_v52 = vadd.f32 %v1456_v35, %v1426_v50  ;;  %v1531_v16 = vand.u32 2147483647, %v1499_v62  ;;  %v1561_v17 = vadd.f32 %v1560_v5, %v1530_v19 }
 0x18f   :  { %v1396_v54 = vsub.f32 %v1978_v11, %v932_v0  ;;  %v1500_v10 = vsub.f32 %v2018_v43, %v932_v0  ;;  %v1430_v9 = vand.u32 2147483647, %v1398_v15  ;;  %v1534_v62 = vand.u32 2147483647, %v1502_v12 }
 0x190   :  { %v1458_v56 = vadd.f32 %v1457_v52, %v1427_v37  ;;  %v1562_v39 = vadd.f32 %v1561_v17, %v1531_v16 }
 0x191   :  { %v1428_v18 = vand.u32 2147483647, %v1396_v54  ;;  %v1532_v29 = vand.u32 2147483647, %v1500_v10 }
 0x192   :  { %v2080_v2 = vpop.f32.mrb[24].mxu1  ;;  %v1799_v41 = vpop.f32.mrb[40].mxu0 }
 0x193   :  { %v1459_v31 = vadd.f32 %v1458_v56, %v1428_v18  ;;  %v1563_v7 = vadd.f32 %v1562_v39, %v1532_v29  ;;  %v1401_v6 = vsub.f32 %v1980_v20, %v1799_v41  ;;  %v1505_v50 = vsub.f32 %v2022_v45, %v1799_v41  ;;  %v2084_v19 = vpop.f32.mrb[25].mxu1  ;;  %v945_v11 = vpop.f32.mrb[41].mxu0 }
 0x194   :  { %v1399_v43 = vsub.f32 %v1982_v21, %v945_v11  ;;  %v1503_v35 = vsub.f32 %v2026_v47, %v945_v11  ;;  %v2088_v5 = vpop.f32.mrb[26].mxu1  ;;  %v1800_v33 = vpop.f32.mrb[42].mxu0 }
 0x195   :  { %v1460_v58 = vadd.f32 %v1459_v31, %v1429_v61  ;;  %v1564_v0 = vadd.f32 %v1563_v7, %v1533_v1  ;;  %v2090_v37 = vpop.f32.mrb[27].mxu1  ;;  %v948_v52 = vpop.f32.mrb[43].mxu0  ;;  %v1402_v45 = vsub.f32 %v1984_v22, %v1800_v33  ;;  %v1506_v17 = vsub.f32 %v2030_v49, %v1800_v33 }
 0x196   :  { %v1431_v20 = vand.u32 2147483647, %v1399_v43  ;;  %v1535_v16 = vand.u32 2147483647, %v1503_v35  ;;  %v1400_v47 = vsub.f32 %v1986_v23, %v948_v52  ;;  %v1504_v10 = vsub.f32 %v2034_v51, %v948_v52 }
 0x197   :  { %v1461_v54 = vadd.f32 %v1460_v58, %v1430_v9  ;;  %v1565_v21 = vadd.f32 %v1564_v0, %v1534_v62  ;;  %v1433_v18 = vand.u32 2147483647, %v1401_v6  ;;  %v1537_v29 = vand.u32 2147483647, %v1505_v50 }
 0x198   :  { %v1432_v12 = vand.u32 2147483647, %v1400_v47  ;;  %v1536_v39 = vand.u32 2147483647, %v1504_v10  ;;  %v1434_v50 = vand.u32 2147483647, %v1402_v45 }
 0x199   :  { %v1462_v56 = vadd.f32 %v1461_v54, %v1431_v20  ;;  %v1566_v15 = vadd.f32 %v1565_v21, %v1535_v16  ;;  %v1538_v35 = vand.u32 2147483647, %v1506_v17 }
 0x19a   :  { %v2096_v61 = vpop.f32.mrb[28].mxu1  ;;  %v1803_v1 = vpop.f32.mrb[44].mxu0 }
 0x19b   :  { %v1463_v41 = vadd.f32 %v1462_v56, %v1432_v12  ;;  %v1567_v31 = vadd.f32 %v1566_v15, %v1536_v39  ;;  %v1405_v22 = vsub.f32 %v1988_v24, %v1803_v1  ;;  %v1509_v49 = vsub.f32 %v2038_v53, %v1803_v1  ;;  %v2100_v7 = vpop.f32.mrb[29].mxu1  ;;  %v961_v23 = vpop.f32.mrb[45].mxu0 }
 0x19c   :  { %v1403_v51 = vsub.f32 %v1990_v25, %v961_v23  ;;  %v1507_v11 = vsub.f32 %v2042_v55, %v961_v23  ;;  %v2104_v43 = vpop.f32.mrb[30].mxu1  ;;  %v1804_v6 = vpop.f32.mrb[46].mxu0 }
 0x19d   :  { %v1464_v33 = vadd.f32 %v1463_v41, %v1433_v18  ;;  %v1568_v9 = vadd.f32 %v1567_v31, %v1537_v29  ;;  %v2106_v62 = vpop.f32.mrb[31].mxu1  ;;  %v964_v58 = vpop.f32.mrb[47].mxu0  ;;  %v1406_v53 = vsub.f32 %v1992_v26, %v1804_v6  ;;  %v1510_v52 = vsub.f32 %v2046_v57, %v1804_v6 }
 0x19e   :  { %v1435_v24 = vand.u32 2147483647, %v1403_v51  ;;  %v1539_v0 = vand.u32 2147483647, %v1507_v11  ;;  %v1404_v55 = vsub.f32 %v1994_v27, %v964_v58  ;;  %v1508_v16 = vsub.f32 %v2050_v59, %v964_v58 }
 0x19f   :  { %v1465_v20 = vadd.f32 %v1464_v33, %v1434_v50  ;;  %v1569_v25 = vadd.f32 %v1568_v9, %v1538_v35  ;;  %v1437_v47 = vand.u32 2147483647, %v1405_v22  ;;  %v1541_v10 = vand.u32 2147483647, %v1509_v49 }
 0x1a0   :  { %v1436_v17 = vand.u32 2147483647, %v1404_v55  ;;  %v1540_v21 = vand.u32 2147483647, %v1508_v16  ;;  %v1438_v59 = vand.u32 2147483647, %v1406_v53 }
 0x1a1   :  { %v1466_v54 = vadd.f32 %v1465_v20, %v1435_v24  ;;  %v1570_v45 = vadd.f32 %v1569_v25, %v1539_v0  ;;  %v1542_v1 = vand.u32 2147483647, %v1510_v52 }
 0x1a2   :  { %v1809_v56 = vpop.f32.mrb[32].mxu1 }
 0x1a3   :  { %v1467_v15 = vadd.f32 %v1466_v54, %v1436_v17  ;;  %v1571_v12 = vadd.f32 %v1570_v45, %v1540_v21  ;;  %v1409_v39 = vsub.f32 %v1996_v28, %v1809_v56  ;;  %v1513_v26 = vsub.f32 %v2052_v60, %v1809_v56  ;;  %v1037_v57 = vpop.f32.mrb[33].mxu1 }
 0x1a4   :  { %v1407_v18 = vsub.f32 %v1998_v30, %v1037_v57  ;;  %v1511_v27 = vsub.f32 %v2055_v3, %v1037_v57  ;;  %v1810_v29 = vpop.f32.mrb[34].mxu1 }
 0x1a5   :  { %v1468_v41 = vadd.f32 %v1467_v15, %v1437_v47  ;;  %v1572_v31 = vadd.f32 %v1571_v12, %v1541_v10  ;;  %v1040_v23 = vpop.f32.mrb[35].mxu1  ;;  %v1410_v51 = vsub.f32 %v2000_v32, %v1810_v29  ;;  %v1514_v11 = vsub.f32 %v2058_v8, %v1810_v29 }
 0x1a6   :  { %v1439_v22 = vand.u32 2147483647, %v1407_v18  ;;  %v1543_v49 = vand.u32 2147483647, %v1511_v27  ;;  %v1408_v60 = vsub.f32 %v2002_v34, %v1040_v23  ;;  %v1512_v30 = vsub.f32 %v2061_v14, %v1040_v23 }
 0x1a7   :  { %v1469_v28 = vadd.f32 %v1468_v41, %v1438_v59  ;;  %v1573_v6 = vadd.f32 %v1572_v31, %v1542_v1  ;;  %v1441_v9 = vand.u32 2147483647, %v1409_v39  ;;  %v1545_v58 = vand.u32 2147483647, %v1513_v26 }
 0x1a8   :  { %v1440_v35 = vand.u32 2147483647, %v1408_v60  ;;  %v1544_v33 = vand.u32 2147483647, %v1512_v30  ;;  %v1442_v14 = vand.u32 2147483647, %v1410_v51 }
 0x1a9   :  { %v1470_v50 = vadd.f32 %v1469_v28, %v1439_v22  ;;  %v1574_v3 = vadd.f32 %v1573_v6, %v1543_v49  ;;  %v1546_v55 = vand.u32 2147483647, %v1514_v11  ;;  %v2155_v28 = vld [vmem:[#allocation3_spill] sm:$0xff] }
 0x1aa   :  { %v1813_v24 = vpop.f32.mrb[36].mxu1 }
 0x1ab   :  { %v1471_v0 = vadd.f32 %v1470_v50, %v1440_v35  ;;  %v1575_v53 = vadd.f32 %v1574_v3, %v1544_v33  ;;  %v1413_v52 = vsub.f32 %v2004_v36, %v1813_v24  ;;  %v1517_v32 = vsub.f32 %v2064_v4, %v1813_v24  ;;  %v1053_v8 = vpop.f32.mrb[37].mxu1 }
 0x1ac   :  { %v1411_v20 = vsub.f32 %v2008_v38, %v1053_v8  ;;  %v1515_v34 = vsub.f32 %v2068_v48, %v1053_v8  ;;  %v1814_v25 = vpop.f32.mrb[38].mxu1 }
 0x1ad   :  { %v1472_v16 = vadd.f32 %v1471_v0, %v1441_v9  ;;  %v1576_v54 = vadd.f32 %v1575_v53, %v1545_v58  ;;  %v1056_v45 = vpop.f32.mrb[39].mxu1  ;;  %v1414_v47 = vsub.f32 %v2012_v40, %v1814_v25  ;;  %v1518_v10 = vsub.f32 %v2072_v63, %v1814_v25 }
 0x1ae   :  { %v1443_v17 = vand.u32 2147483647, %v1411_v20  ;;  %v1547_v21 = vand.u32 2147483647, %v1515_v34  ;;  %v1412_v4 = vsub.f32 %v2016_v42, %v1056_v45  ;;  %v1516_v38 = vsub.f32 %v2076_v13, %v1056_v45  ;;  %v2158_v20 = vld [vmem:[#allocation6_spill] sm:$0xff] }
 0x1af   :  { %v1473_v36 = vadd.f32 %v1472_v16, %v1442_v14  ;;  %v1577_v56 = vadd.f32 %v1576_v54, %v1546_v55  ;;  %v1445_v26 = vand.u32 2147483647, %v1413_v52  ;;  %v1549_v57 = vand.u32 2147483647, %v1517_v32  ;;  %v2157_v52 = vld [vmem:[#allocation5_spill] sm:$0xff] }
 0x1b0   :  { %v1444_v12 = vand.u32 2147483647, %v1412_v4  ;;  %v1548_v39 = vand.u32 2147483647, %v1516_v38  ;;  %v1446_v13 = vand.u32 2147483647, %v1414_v47 }
 0x1b1   :  { %v1474_v15 = vadd.f32 %v1473_v36, %v1443_v17  ;;  %v1578_v48 = vadd.f32 %v1577_v56, %v1547_v21  ;;  %v1550_v31 = vand.u32 2147483647, %v1518_v10  ;;  %v2159_v47 = vld [vmem:[#allocation7_spill] sm:$0xff] }
 0x1b2   :  { %v1817_v18 = vpop.f32.mrb[40].mxu1 }
 0x1b3   :  { %v1475_v27 = vadd.f32 %v1474_v15, %v1444_v12  ;;  %v1579_v29 = vadd.f32 %v1578_v48, %v1548_v39  ;;  %v1417_v59 = vsub.f32 %v2020_v44, %v1817_v18  ;;  %v1521_v40 = vsub.f32 %v2080_v2, %v1817_v18  ;;  %v1069_v63 = vpop.f32.mrb[41].mxu1  ;;  %v2156_v2 = vld [vmem:[#allocation4_spill] sm:$0xff] }
 0x1b4   :  { %v1415_v1 = vsub.f32 %v2024_v46, %v1069_v63  ;;  %v1519_v42 = vsub.f32 %v2084_v19, %v1069_v63  ;;  %v1818_v41 = vpop.f32.mrb[42].mxu1 }
 0x1b5   :  { %v1476_v23 = vadd.f32 %v1475_v27, %v1445_v26  ;;  %v1580_v22 = vadd.f32 %v1579_v29, %v1549_v57  ;;  %v1072_v49 = vpop.f32.mrb[43].mxu1  ;;  %v1418_v6 = vsub.f32 %v2155_v28, %v1818_v41  ;;  %v1522_v60 = vsub.f32 %v2088_v5, %v1818_v41 }
 0x1b6   :  { %v1447_v51 = vand.u32 2147483647, %v1415_v1  ;;  %v1551_v11 = vand.u32 2147483647, %v1519_v42  ;;  %v1416_v50 = vsub.f32 %v2156_v2, %v1072_v49  ;;  %v1520_v46 = vsub.f32 %v2090_v37, %v1072_v49  ;;  %v136_v42 = vpop.xlane.xlu1 %135 }
 0x1b7   :  { %v1477_v44 = vadd.f32 %v1476_v23, %v1446_v13  ;;  %v1581_v30 = vadd.f32 %v1580_v22, %v1550_v31  ;;  %v1449_v9 = vand.u32 2147483647, %v1417_v59  ;;  %v1553_v58 = vand.u32 2147483647, %v1521_v40  ;;  %v122_v13 = vpop.xlane.xlu0 %121 }
 0x1b8   :  { %v1448_v35 = vand.u32 2147483647, %v1416_v50  ;;  %v1552_v33 = vand.u32 2147483647, %v1520_v46  ;;  %v1450_v37 = vand.u32 2147483647, %v1418_v6 }
 0x1b9   :  { %v1478_v3 = vadd.f32 %v1477_v44, %v1447_v51  ;;  %v1582_v19 = vadd.f32 %v1581_v30, %v1551_v11  ;;  %v1554_v55 = vand.u32 2147483647, %v1522_v60  ;;  %v137_v41 = vrot.slane %v136_v42, 4 }
 0x1ba   :  { %v1821_v24 = vpop.f32.mrb[44].mxu1 }
 0x1bb   :  { %v1479_v0 = vadd.f32 %v1478_v3, %v1448_v35  ;;  %v1583_v53 = vadd.f32 %v1582_v19, %v1552_v33  ;;  %v1421_v32 = vsub.f32 %v2157_v52, %v1821_v24  ;;  %v1525_v8 = vsub.f32 %v2096_v61, %v1821_v24  ;;  %v1085_v5 = vpop.f32.mrb[45].mxu1  ;;  %v2160_v61 = vld [vmem:[#allocation8_spill] sm:$0xff] }
 0x1bc   :  { %v1419_v34 = vsub.f32 %v2158_v20, %v1085_v5  ;;  %v1523_v25 = vsub.f32 %v2100_v7, %v1085_v5  ;;  %v1822_v14 = vpop.f32.mrb[46].mxu1  ;;  %v138_v31 = vadd.f32 %v137_v41, %v136_v42 }
 0x1bd   :  { %v1480_v16 = vadd.f32 %v1479_v0, %v1449_v9  ;;  %v1584_v54 = vadd.f32 %v1583_v53, %v1553_v58  ;;  %v1088_v45 = vpop.f32.mrb[47].mxu1  ;;  %v1422_v10 = vsub.f32 %v2159_v47, %v1822_v14  ;;  %v1526_v36 = vsub.f32 %v2104_v43, %v1822_v14 }
 0x1be   :  { %v1451_v17 = vand.u32 2147483647, %v1419_v34  ;;  %v1555_v21 = vand.u32 2147483647, %v1523_v25  ;;  %v1420_v38 = vsub.f32 %v2160_v61, %v1088_v45  ;;  %v1524_v15 = vsub.f32 %v2106_v62, %v1088_v45 }
 0x1bf   :  { %v1481_v56 = vadd.f32 %v1480_v16, %v1450_v37  ;;  %v1585_v4 = vadd.f32 %v1584_v54, %v1554_v55  ;;  %v1453_v26 = vand.u32 2147483647, %v1421_v32  ;;  %v1557_v57 = vand.u32 2147483647, %v1525_v8 }
 0x1c0   :  { %v1452_v12 = vand.u32 2147483647, %v1420_v38  ;;  %v1556_v39 = vand.u32 2147483647, %v1524_v15  ;;  %v1454_v29 = vand.u32 2147483647, %v1422_v10  ;;  %v144_v32 = vlaneseq }
 0x1c1   :  { %v1482_v48 = vadd.f32 %v1481_v56, %v1451_v17  ;;  %v1586_v7 = vadd.f32 %v1585_v4, %v1555_v21  ;;  %v1558_v59 = vand.u32 2147483647, %v1526_v36  ;;  %v123_v62 = vrot.slane %v122_v13, 4 }
 0x1c2   :  { %v139_v22 = vrot.slane %v138_v31, 2  ;;  %v145_v8 = vshrl.u32 %v144_v32, 7 }
 0x1c3   :  { %v1483_v18 = vadd.f32 %v1482_v48, %v1452_v12  ;;  %v1587_v27 = vadd.f32 %v1586_v7, %v1556_v39  ;;  %v124_v23 = vadd.f32 %v123_v62, %v122_v13 }
 0x1c4   :  { %v140_v51 = vadd.f32 %v139_v22, %v138_v31  ;;  %vm147_vm2 = vcmp.eq.s32.totalorder %v145_v8, 0  ;;  %vm150_vm3 = vcmp.eq.s32.totalorder %v145_v8, 1  ;;  %vm1600_vm4 = vcmp.eq.s32.totalorder %v145_v8, 2 }
 0x1c5   :  { %v1588_v40 = vadd.f32 %v1587_v27, %v1557_v57  ;;  %v1484_v63 = vadd.f32 %v1483_v18, %v1453_v26  ;;  %v125_v49 = vrot.slane %v124_v23, 2  ;;  %vm1603_vm5 = vcmp.eq.s32.totalorder %v145_v8, 3 }
 0x1c6   :  { %v141_v28 = vrot.slane %v140_v51, 1 }
 0x1c7   :  { %v1589_v1 = vadd.f32 %v1588_v40, %v1558_v59  ;;  %v1485_v43 = vadd.f32 %v1484_v63, %v1454_v29  ;;  %v126_v11 = vadd.f32 %v125_v49, %v124_v23 }
 0x1c8   :  { %v142_v60 = vadd.f32 %v141_v28, %v140_v51 }
 0x1c9   :  { %1590 = vadd.xlane.f32.xlu1 %v1589_v1  ;;  %1486 = vadd.xlane.f32.xlu0 %v1485_v43  ;;  %v127_v6 = vrot.slane %v126_v11, 1 }
 0x1cb   :  { %v128_v44 = vadd.f32 %v127_v6, %v126_v11 }
 0x1cd   :  { %1829 = vpush %v128_v44 }
 0x1ce   :  { %1831 = vpush %v142_v60 }
 0x1fe   :  { %s1830_s0 = spop %1829 }
 0x1ff   :  { %s1832_s18 = spop %1831  ;;  %v148_v5 = vstv %s1830_s0 }
 0x200   :  { %v151_v20 = vstv %s1832_s18  ;;  %v149_v34 = vsel %vm147_vm2, %v148_v5, 0.0 }
 0x201   :  { %v152_v25 = vsel %vm150_vm3, %v151_v20, 0.0 }
 0x202   :  { %v153_v14 = vadd.f32 %v152_v25, %v149_v34 }
 0x256   :  { %v1591_v30 = vpop.xlane.xlu1 %1590  ;;  %v1487_v2 = vpop.xlane.xlu0 %1486 }
 0x257   :  { %v1592_v50 = vrot.slane %v1591_v30, 4  ;;  %v1488_v46 = vrot.slane %v1487_v2, 4 }
 0x259   :  { %v1593_v3 = vadd.f32 %v1592_v50, %v1591_v30  ;;  %v1489_v19 = vadd.f32 %v1488_v46, %v1487_v2 }
 0x25b   :  { %v1594_v35 = vrot.slane %v1593_v3, 2  ;;  %v1490_v33 = vrot.slane %v1489_v19, 2 }
 0x25d   :  { %v1595_v9 = vadd.f32 %v1594_v35, %v1593_v3  ;;  %v1491_v58 = vadd.f32 %v1490_v33, %v1489_v19 }
 0x25f   :  { %v1492_v24 = vrot.slane %v1491_v58, 1  ;;  %v1596_v0 = vrot.slane %v1595_v9, 1 }
 0x261   :  { %v1493_v53 = vadd.f32 %v1492_v24, %v1491_v58  ;;  %v1597_v52 = vadd.f32 %v1596_v0, %v1595_v9 }
 0x263   :  { %1833 = vpush %v1493_v53 }
 0x264   :  { %1835 = vpush %v1597_v52 }
 0x294   :  { %s1834_s19 = spop %1833 }
 0x295   :  { %v1601_v37 = vstv %s1834_s19  ;;  %s1836_s20 = spop %1835 }
 0x296   :  { %v1602_v55 = vsel %vm1600_vm4, %v1601_v37, 0.0  ;;  %v1604_v16 = vstv %s1836_s20 }
 0x297   :  { %v1605_v54 = vsel %vm1603_vm5, %v1604_v16, 0.0 }
 0x298   :  { %v1606_v45 = vadd.f32 %v1605_v54, %v1602_v55 }
 0x29a   :  { %v1607_v17 = vadd.f32 %v1606_v45, %v153_v14 }
 0x29c   :  { %1608 = vst [vmem:[%s2148_s1] sm:$0xff] %v1607_v17 }

</bundles_post_ra>
